<compile_context>
chip_gen: v7x
topology: tpu7x:2x2x1
jax: 0.10.0
libtpu: 0.0.40
codegen_flags: <defaults>
</compile_context>

<pallas_src>
import jax
import jax.numpy as jnp
from jax.experimental import pallas as pl
from jax.experimental.pallas import tpu as pltpu


def _round_up(x, m):
    return ((x + m - 1) // m) * m


def head_kernel(x_ref, w1_ref, b1_ref, w2_ref, b2_ref, o_ref):
    # x_ref : (TB, D)   bf16 VMEM   batch tile
    # w1_ref: (D, H)    bf16 VMEM   resident weight (constant index_map)
    # b1_ref: (1, H)    f32  VMEM
    # w2_ref: (H, Cp)   f32  VMEM   lane-padded class projection
    # b2_ref: (1, Cp)   f32  VMEM
    # o_ref : (TB, Cp)  f32  VMEM   lane-dense output tile
    # Layer 1: bf16 x bf16 -> f32 accumulation on the MXU.
    h = jnp.dot(x_ref[...], w1_ref[...], preferred_element_type=jnp.float32)
    # TODO(synk): training-mode Dropout(p=0.2) not implemented (eval semantics).
    h = jnp.maximum(h + b1_ref[...], 0.0)                       # ReLU
    # Layer 2: small (H, 128-padded) projection, kept in f32 for accuracy.
    logits = jnp.dot(h, w2_ref[...], preferred_element_type=jnp.float32)
    o_ref[...] = logits + b2_ref[...]


def descriptive_task_head(features, w1, b1, w2, b2, *, tile_b=256):
    """features: (B, D) f32.
    Weights in PyTorch Linear layout: w1 (H, D), b1 (H,), w2 (C, H), b2 (C,)."""
    B, D = features.shape
    H = w1.shape[0]
    C = w2.shape[0]
    assert w1.shape == (H, D) and b1.shape == (H,)
    assert w2.shape == (C, H) and b2.shape == (C,)

    # Lane-dense class dim: removes masked vst partial stores on the output.
    C_pad = _round_up(C, 128)
    # Full MXU batch tile for large B; clamp for tiny batches, then pad B up.
    tile_b = min(tile_b, _round_up(B, 8))
    B_pad = _round_up(B, tile_b)

    x = features.astype(jnp.bfloat16)
    if B_pad != B:
        x = jnp.pad(x, ((0, B_pad - B), (0, 0)))

    w1_t = w1.T.astype(jnp.bfloat16)                                 # (D, H)
    b1_r = b1.reshape(1, H).astype(jnp.float32)
    w2_t = jnp.zeros((H, C_pad), jnp.float32).at[:, :C].set(w2.T.astype(jnp.float32))
    b2_r = jnp.zeros((1, C_pad), jnp.float32).at[:, :C].set(b2.astype(jnp.float32))

    grid = (B_pad // tile_b,)
    cost = pl.CostEstimate(
        flops=2 * B_pad * D * H + 2 * B_pad * H * C_pad,
        transcendentals=0,
        bytes_accessed=(B_pad * D * 2 + D * H * 2 + H * 4
                        + H * C_pad * 4 + C_pad * 4 + B_pad * C_pad * 4),
    )

    def call(single_buffer_weights):
        const_kw = (
            dict(pipeline_mode=pl.Buffered(1)) if single_buffer_weights else {}
        )
        grid_spec = pl.GridSpec(
            grid=grid,
            in_specs=[
                pl.BlockSpec((tile_b, D), lambda i: (i, 0)),             # x tile
                pl.BlockSpec((D, H), lambda i: (0, 0), **const_kw),      # W1
                pl.BlockSpec((1, H), lambda i: (0, 0), **const_kw),      # b1
                pl.BlockSpec((H, C_pad), lambda i: (0, 0), **const_kw),  # W2
                pl.BlockSpec((1, C_pad), lambda i: (0, 0), **const_kw),  # b2
            ],
            out_specs=pl.BlockSpec((tile_b, C_pad), lambda i: (i, 0)),
        )
        return pl.pallas_call(
            head_kernel,
            out_shape=jax.ShapeDtypeStruct((B_pad, C_pad), jnp.float32),
            grid_spec=grid_spec,
            compiler_params=pltpu.CompilerParams(
                dimension_semantics=("parallel",),
                vmem_limit_bytes=32 * 1024 * 1024,
            ),
            cost_estimate=cost,
        )(x, w1_t, b1_r, w2_t, b2_r)

    try:
        out = call(single_buffer_weights=True)
    except Exception:
        # Fallback: some JAX/libtpu builds reject per-operand buffer counts;
        # default double-buffering only costs ~3 MiB extra VMEM here.
        out = call(single_buffer_weights=False)

    return out[:B, :C]


def reference(features, w1, b1, w2, b2):
    h = jnp.maximum(features @ w1.T + b1, 0.0)
    return h @ w2.T + b2


if __name__ == "__main__":
    # Module-intrinsic dims: input_dim = 768*2, hidden = 1024, n_classes = 21.
    B = 40                  # deliberately not a tile multiple -> exercises padding
    INPUT_DIM = 768 * 2
    HIDDEN = 1024
    N_CLASSES = 21

    key = jax.random.PRNGKey(0)
    k_x, k_w1, k_b1, k_w2, k_b2 = jax.random.split(key, 5)

    features = jax.random.normal(k_x, (B, INPUT_DIM), dtype=jnp.float32)
    # PyTorch Linear layout: weight is (out_features, in_features).
    w1 = jax.random.normal(k_w1, (HIDDEN, INPUT_DIM), dtype=jnp.float32) * 0.02
    b1 = jax.random.normal(k_b1, (HIDDEN,), dtype=jnp.float32) * 0.02
    w2 = jax.random.normal(k_w2, (N_CLASSES, HIDDEN), dtype=jnp.float32) * 0.02
    b2 = jax.random.normal(k_b2, (N_CLASSES,), dtype=jnp.float32) * 0.02

    # Small tile so the test exercises a multi-step grid (B=40 -> pad 48, grid=3).
    out = descriptive_task_head(features, w1, b1, w2, b2, tile_b=16)
    out = jax.block_until_ready(out)

    ref = reference(features, w1, b1, w2, b2)
    assert out.shape == (B, N_CLASSES), out.shape
    # Tolerance loosened vs. the pure-f32 reference because the first matmul
    # runs with bf16 inputs (f32 accumulation).
    assert jnp.allclose(out, ref, atol=2e-2, rtol=2e-2), float(
        jnp.max(jnp.abs(out - ref)))

    print("KERNEL_OK")
</pallas_src>

<mosaic_0001>
module attributes {stable_mosaic.version = 11 : i64} {
  func.func @head_kernel(%arg0: i32, %arg1: memref<16x1536xbf16, #tpu.memory_space<vmem>>, %arg2: memref<1536x1024xbf16, #tpu.memory_space<vmem>>, %arg3: memref<1x1024xf32, #tpu.memory_space<vmem>>, %arg4: memref<1024x128xf32, #tpu.memory_space<vmem>>, %arg5: memref<1x128xf32, #tpu.memory_space<vmem>>, %arg6: memref<16x128xf32, #tpu.memory_space<vmem>>) attributes {dimension_semantics = [#tpu.dimension_semantics<parallel>], iteration_bounds = array<i64: 3>, scalar_prefetch = 0 : i64, scratch_operands = 0 : i64, tpu.core_type = #tpu.core_type<tc>, window_params = [{transform_indices = @transform_0, window_bounds = array<i64: 16, 1536>}, {pipeline_mode = #tpu.pipeline_mode<synchronous>, transform_indices = @transform_1, window_bounds = array<i64: 1536, 1024>}, {pipeline_mode = #tpu.pipeline_mode<synchronous>, transform_indices = @transform_2, window_bounds = array<i64: 1, 1024>}, {pipeline_mode = #tpu.pipeline_mode<synchronous>, transform_indices = @transform_3, window_bounds = array<i64: 1024, 128>}, {pipeline_mode = #tpu.pipeline_mode<synchronous>, transform_indices = @transform_4, window_bounds = array<i64: 1, 128>}, {transform_indices = @transform_5, window_bounds = array<i64: 16, 128>}]} {
    %c0 = arith.constant 0 : index
    %c0_0 = arith.constant 0 : index
    %0 = vector.load %arg1[%c0, %c0_0] : memref<16x1536xbf16, #tpu.memory_space<vmem>>, vector<16x1536xbf16>
    %c0_1 = arith.constant 0 : index
    %c0_2 = arith.constant 0 : index
    %1 = vector.load %arg2[%c0_1, %c0_2] : memref<1536x1024xbf16, #tpu.memory_space<vmem>>, vector<1536x1024xbf16>
    %cst = arith.constant dense<0.000000e+00> : vector<16x1024xf32>
    %2 = tpu.matmul %0, %1, %cst {dimension_numbers = #tpu.dot_dimension_numbers<[1], [0], [0], [1], [0, 0, 1, 1], [], []>} : vector<16x1536xbf16>, vector<1536x1024xbf16>, vector<16x1024xf32> -> vector<16x1024xf32>
    %c0_3 = arith.constant 0 : index
    %c0_4 = arith.constant 0 : index
    %3 = vector.load %arg3[%c0_3, %c0_4] : memref<1x1024xf32, #tpu.memory_space<vmem>>, vector<1x1024xf32>
    %4 = vector.broadcast %3 : vector<1x1024xf32> to vector<16x1024xf32>
    %5 = arith.addf %2, %4 : vector<16x1024xf32>
    %cst_5 = arith.constant 0.000000e+00 : f32
    %6 = vector.broadcast %cst_5 : f32 to vector<16x1024xf32>
    %7 = arith.maximumf %5, %6 : vector<16x1024xf32>
    %c0_6 = arith.constant 0 : index
    %c0_7 = arith.constant 0 : index
    %8 = vector.load %arg4[%c0_6, %c0_7] : memref<1024x128xf32, #tpu.memory_space<vmem>>, vector<1024x128xf32>
    %cst_8 = arith.constant dense<0.000000e+00> : vector<16x128xf32>
    %9 = tpu.matmul %7, %8, %cst_8 {dimension_numbers = #tpu.dot_dimension_numbers<[1], [0], [0], [1], [0, 0, 1, 1], [], []>} : vector<16x1024xf32>, vector<1024x128xf32>, vector<16x128xf32> -> vector<16x128xf32>
    %c0_9 = arith.constant 0 : index
    %c0_10 = arith.constant 0 : index
    %10 = vector.load %arg5[%c0_9, %c0_10] : memref<1x128xf32, #tpu.memory_space<vmem>>, vector<1x128xf32>
    %11 = vector.broadcast %10 : vector<1x128xf32> to vector<16x128xf32>
    %12 = arith.addf %9, %11 : vector<16x128xf32>
    %c0_11 = arith.constant 0 : index
    %c0_12 = arith.constant 0 : index
    %13 = vector.load %arg6[%c0_11, %c0_12] : memref<16x128xf32, #tpu.memory_space<vmem>>, vector<16x128xf32>
    tpu.vector_store %arg6[%c0_11, %c0_12], %12 {strides = array<i32>} : memref<16x128xf32, #tpu.memory_space<vmem>>, vector<16x128xf32>,
    return
  }
  func.func @transform_0(%arg0: i32) -> (i32, i32) {
    %c0_i32 = arith.constant 0 : i32
    %c0_i32_0 = arith.constant 0 : i32
    return %arg0, %c0_i32 : i32, i32
  }
  func.func @transform_1(%arg0: i32) -> (i32, i32) {
    %c0_i32 = arith.constant 0 : i32
    %c0_i32_0 = arith.constant 0 : i32
    %c0_i32_1 = arith.constant 0 : i32
    return %c0_i32, %c0_i32_0 : i32, i32
  }
  func.func @transform_2(%arg0: i32) -> (i32, i32) {
    %c0_i32 = arith.constant 0 : i32
    %c0_i32_0 = arith.constant 0 : i32
    %c0_i32_1 = arith.constant 0 : i32
    return %c0_i32, %c0_i32_0 : i32, i32
  }
  func.func @transform_3(%arg0: i32) -> (i32, i32) {
    %c0_i32 = arith.constant 0 : i32
    %c0_i32_0 = arith.constant 0 : i32
    %c0_i32_1 = arith.constant 0 : i32
    return %c0_i32, %c0_i32_0 : i32, i32
  }
  func.func @transform_4(%arg0: i32) -> (i32, i32) {
    %c0_i32 = arith.constant 0 : i32
    %c0_i32_0 = arith.constant 0 : i32
    %c0_i32_1 = arith.constant 0 : i32
    return %c0_i32, %c0_i32_0 : i32, i32
  }
  func.func @transform_5(%arg0: i32) -> (i32, i32) {
    %c0_i32 = arith.constant 0 : i32
    %c0_i32_0 = arith.constant 0 : i32
    return %arg0, %c0_i32 : i32, i32
  }
}

module attributes {stable_mosaic.version = 11 : i64} {
  func.func @head_kernel(%arg0: i32, %arg1: memref<16x1536xbf16, #tpu.memory_space<vmem>>, %arg2: memref<1536x1024xbf16, #tpu.memory_space<vmem>>, %arg3: memref<1x1024xf32, #tpu.memory_space<vmem>>, %arg4: memref<1024x128xf32, #tpu.memory_space<vmem>>, %arg5: memref<1x128xf32, #tpu.memory_space<vmem>>, %arg6: memref<16x128xf32, #tpu.memory_space<vmem>>) attributes {dimension_semantics = [#tpu.dimension_semantics<parallel>], iteration_bounds = array<i64: 3>, scalar_prefetch = 0 : i64, scratch_operands = 0 : i64, tpu.core_type = #tpu.core_type<tc>, window_params = [{transform_indices = @transform_0, window_bounds = array<i64: 16, 1536>}, {pipeline_mode = #tpu.pipeline_mode<synchronous>, transform_indices = @transform_1, window_bounds = array<i64: 1536, 1024>}, {pipeline_mode = #tpu.pipeline_mode<synchronous>, transform_indices = @transform_2, window_bounds = array<i64: 1, 1024>}, {pipeline_mode = #tpu.pipeline_mode<synchronous>, transform_indices = @transform_3, window_bounds = array<i64: 1024, 128>}, {pipeline_mode = #tpu.pipeline_mode<synchronous>, transform_indices = @transform_4, window_bounds = array<i64: 1, 128>}, {transform_indices = @transform_5, window_bounds = array<i64: 16, 128>}]} {
    %c0 = arith.constant 0 : index
    %c0_0 = arith.constant 0 : index
    %0 = vector.load %arg1[%c0, %c0_0] : memref<16x1536xbf16, #tpu.memory_space<vmem>>, vector<16x1536xbf16>
    %c0_1 = arith.constant 0 : index
    %c0_2 = arith.constant 0 : index
    %1 = vector.load %arg2[%c0_1, %c0_2] : memref<1536x1024xbf16, #tpu.memory_space<vmem>>, vector<1536x1024xbf16>
    %cst = arith.constant dense<0.000000e+00> : vector<16x1024xf32>
    %2 = tpu.matmul %0, %1, %cst {dimension_numbers = #tpu.dot_dimension_numbers<[1], [0], [0], [1], [0, 0, 1, 1], [], []>} : vector<16x1536xbf16>, vector<1536x1024xbf16>, vector<16x1024xf32> -> vector<16x1024xf32>
    %c0_3 = arith.constant 0 : index
    %c0_4 = arith.constant 0 : index
    %3 = vector.load %arg3[%c0_3, %c0_4] : memref<1x1024xf32, #tpu.memory_space<vmem>>, vector<1x1024xf32>
    %4 = vector.broadcast %3 : vector<1x1024xf32> to vector<16x1024xf32>
    %5 = arith.addf %2, %4 : vector<16x1024xf32>
    %cst_5 = arith.constant 0.000000e+00 : f32
    %6 = vector.broadcast %cst_5 : f32 to vector<16x1024xf32>
    %7 = arith.maximumf %5, %6 : vector<16x1024xf32>
    %c0_6 = arith.constant 0 : index
    %c0_7 = arith.constant 0 : index
    %8 = vector.load %arg4[%c0_6, %c0_7] : memref<1024x128xf32, #tpu.memory_space<vmem>>, vector<1024x128xf32>
    %cst_8 = arith.constant dense<0.000000e+00> : vector<16x128xf32>
    %9 = tpu.matmul %7, %8, %cst_8 {dimension_numbers = #tpu.dot_dimension_numbers<[1], [0], [0], [1], [0, 0, 1, 1], [], []>} : vector<16x1024xf32>, vector<1024x128xf32>, vector<16x128xf32> -> vector<16x128xf32>
    %c0_9 = arith.constant 0 : index
    %c0_10 = arith.constant 0 : index
    %10 = vector.load %arg5[%c0_9, %c0_10] : memref<1x128xf32, #tpu.memory_space<vmem>>, vector<1x128xf32>
    %11 = vector.broadcast %10 : vector<1x128xf32> to vector<16x128xf32>
    %12 = arith.addf %9, %11 : vector<16x128xf32>
    %c0_11 = arith.constant 0 : index
    %c0_12 = arith.constant 0 : index
    %13 = vector.load %arg6[%c0_11, %c0_12] : memref<16x128xf32, #tpu.memory_space<vmem>>, vector<16x128xf32>
    tpu.vector_store %arg6[%c0_11, %c0_12], %12 {strides = array<i32>} : memref<16x128xf32, #tpu.memory_space<vmem>>, vector<16x128xf32>,
    return
  }
  func.func @transform_0(%arg0: i32) -> (i32, i32) {
    %c0_i32 = arith.constant 0 : i32
    %c0_i32_0 = arith.constant 0 : i32
    return %arg0, %c0_i32 : i32, i32
  }
  func.func @transform_1(%arg0: i32) -> (i32, i32) {
    %c0_i32 = arith.constant 0 : i32
    %c0_i32_0 = arith.constant 0 : i32
    %c0_i32_1 = arith.constant 0 : i32
    return %c0_i32, %c0_i32_0 : i32, i32
  }
  func.func @transform_2(%arg0: i32) -> (i32, i32) {
    %c0_i32 = arith.constant 0 : i32
    %c0_i32_0 = arith.constant 0 : i32
    %c0_i32_1 = arith.constant 0 : i32
    return %c0_i32, %c0_i32_0 : i32, i32
  }
  func.func @transform_3(%arg0: i32) -> (i32, i32) {
    %c0_i32 = arith.constant 0 : i32
    %c0_i32_0 = arith.constant 0 : i32
    %c0_i32_1 = arith.constant 0 : i32
    return %c0_i32, %c0_i32_0 : i32, i32
  }
  func.func @transform_4(%arg0: i32) -> (i32, i32) {
    %c0_i32 = arith.constant 0 : i32
    %c0_i32_0 = arith.constant 0 : i32
    %c0_i32_1 = arith.constant 0 : i32
    return %c0_i32, %c0_i32_0 : i32, i32
  }
  func.func @transform_5(%arg0: i32) -> (i32, i32) {
    %c0_i32 = arith.constant 0 : i32
    %c0_i32_0 = arith.constant 0 : i32
    return %arg0, %c0_i32 : i32, i32
  }
}

</mosaic_0001>

<bundles_post_ra>
// kernel: tpu_custom_call.1
= control target key start
LH: loop header
LB: loop body
LE: loop exit
PB: predicated region body
PF: predicated region fallthrough
CT: control target
= control target key end

     0   :  { %10 = vsyncpa [#allocation3], 0  ;;  %s8553_s0 = inlined_call_operand.hbm [shape: bf16[48,1536], index: 0, kind: input, shape index: {}]   ;;  %s8554_s1 = inlined_call_operand.hbm [shape: bf16[1536,1024], index: 1, kind: input, shape index: {}]   ;;  %s8555_s2 = inlined_call_operand.hbm [shape: f32[1,1024], index: 2, kind: input, shape index: {}]   ;;  %s8556_s3 = inlined_call_operand.hbm [shape: f32[1024,128], index: 3, kind: input, shape index: {}]   ;;  %s8557_s4 = inlined_call_operand.hbm [shape: f32[1,128], index: 4, kind: input, shape index: {}]   ;;  %s8558_s5 = inlined_call_operand.hbm [shape: f32[48,128], index: 5, kind: output, shape index: {}]  }
   0x1   :  { %12 = vsyncpa [#allocation3 + $0x1], 0 }
   0x2   :  { %13 = vsyncpa [#allocation6], 0 }
   0x3   :  { %14 = vsyncpa [#allocation9], 0 }
   0x4   :  { %15 = vsyncpa [#allocation4], 0 }
   0x5   :  { %17 = vsyncpa [#allocation4 + $0x1], 0  ;;  %s8201_s18 = smov 0   ;;  %s8203_s19 = smov 0  }
   0x6   :  { %s8205_s20 = smov 0   ;;  %s8207_s21 = smov 0  }
   0x7 LB: > { %s8222_s22 = sadd.s32 4294967295, %s8155_s21   ;;  %s6632_s23 = sadd.s32 4294967294, %s8155_s21   ;;  %s8155_s21 = sphi %s8207_s21, %s8580_s21   ;;  %s8151_s20 = sphi %s8205_s20, %s8579_s20   ;;  %s8147_s19 = sphi %s8203_s19, %s8578_s19   ;;  %s8143_s18 = sphi %s8201_s18, %s8577_s18  }
   0x8   : > { %p43_p0 = scmp.ne.s32.totalorder %s8147_s19, %s8143_s18  ;;  %p8559_p1 = scmp.eq.s32.totalorder %s8222_s22, 0 }
   0x9   : > { %p157_p3 = scmp.eq.s32.totalorder %s6632_s23, 2  ;;  %p6633_p5 = scmp.ge.s32.totalorder %s8155_s21, 1 }
   0xa   : > { %p8231_p4 = por %p8559_p1, %p43_p0  ;;  %p164_p7 = scmp.lt.s32.totalorder %s8155_s21, 4 }
   0xb   : > { %p8236_p6 = por %p157_p3, %p43_p0  ;;  %s8157_s27 = smov [#allocation5]  }
   0xc   : > { %s8562_s24 = scalar_select %p8231_p4, 1, 0 }
   0xd   : > { %s8563_s25 = scalar_select %p8236_p6, 1, 0 }
   0xe   : > { %p8241_p8 = pnand %p6633_p5, %p164_p7  ;;  %s176_s28 = sshll.u32 %s8157_s27, 4  ;;  %s177_s28 = int_to_ptr.vmem [resolvable:$true] %s176_s28 }
   0xf   : > { %s8158_s30 = smov [#allocation8]   ;;  %s7939_s9 = scalar_lea.hbm %s8554_s1, 98304 }
  0x10   : > { %s8564_s26 = scalar_select %p8241_p8, 1, 0 }
  0x11   : > { %p7834_p9 = pneg %p8241_p8  ;;  %s200_s6 = sshll.u32 %s8158_s30, 4  ;;  %s8253_s6 = int_to_ptr.vmem [resolvable:$true] %s200_s6 }
  0x12   : > { %p7940_p11 = scmp.ne.s32.totalorder %s8554_s1, %s7939_s9  ;;  %p7946_p3 = scmp.lt.u32.totalorder %s7939_s9, %s8554_s1 }
  0x13   : > { %p8249_p10 = pnand %p7834_p9, %p8559_p1 }
  0x15   : > { %p8263_p12 = pneg %p8249_p10 }
  0x17   : > { %p7942_p13 = pnand %p8263_p12, %p7940_p11 }
  0x19   : > { %p7943_p0 = pneg %p7942_p13 }
  0x1b   : > { %p7948_p5 = pnand %p7946_p3, %p7943_p0 }
  0x1d   : > { %7951 = shalt.err (!%p7948_p5)
}
  0x1e   : > { %s7952_s15 = scalar_lea.vmem %s177_s28, 98304  ;;  %p7960_p2 = scmp.lt.s32.totalorder %s177_s28, %s177_s28 }
  0x1f   : > { %p7953_p7 = scmp.ne.s32.totalorder %s177_s28, %s7952_s15  ;;  %p7961_p6 = scmp.lt.s32.totalorder %s7952_s15, %s7952_s15 }
  0x21   : > { %p7955_p9 = pnand %p7953_p7, %p8263_p12  ;;  %p7962_p4 = por %p7961_p6, %p7960_p2 }
  0x23   : > { %p7956_p1 = pneg %p7955_p9 }
  0x25   : > { %p7963_p8 = pnand %p7962_p4, %p7956_p1 }
  0x27   : > { %7966 = shalt.err (!%p7963_p8)
}
  0x28   : > { %s8159_s16 = smov 512   ;;  %s8160_s17 = smov 32  }
  0x29   : > { %7837 = dma.hbm_to_vmem [thread:$0]  (!%p8249_p10), %s8554_s1, 98304, %s177_s28, [#allocation6], %s8159_s16, %s8159_s16, %s8160_s17  }
  0x2a   : > { %s7967_s8 = scalar_lea.hbm %s8556_s3, 16384 }
  0x2b   : > { %p7968_p11 = scmp.ne.s32.totalorder %s8556_s3, %s7967_s8  ;;  %p7974_p4 = scmp.lt.u32.totalorder %s7967_s8, %s8556_s3 }
  0x2d   : > { %p7970_p1 = pnand %p7968_p11, %p8263_p12 }
  0x2f   : > { %p7971_p2 = pneg %p7970_p1 }
  0x31   : > { %p7976_p6 = pnand %p7974_p4, %p7971_p2 }
  0x33   : > { %7979 = shalt.err (!%p7976_p6)
}
  0x34   : > { %s7980_s28 = scalar_lea.vmem %s8253_s6, 16384  ;;  %p7988_p3 = scmp.lt.s32.totalorder %s8253_s6, %s8253_s6 }
  0x35   : > { %p7981_p8 = scmp.ne.s32.totalorder %s8253_s6, %s7980_s28  ;;  %p7989_p5 = scmp.lt.s32.totalorder %s7980_s28, %s7980_s28 }
  0x37   : > { %p7983_p13 = pnand %p7981_p8, %p8263_p12  ;;  %p7990_p7 = por %p7989_p5, %p7988_p3 }
  0x39   : > { %p7984_p0 = pneg %p7983_p13 }
  0x3b   : > { %p7991_p9 = pnand %p7990_p7, %p7984_p0 }
  0x3d   : > { %7994 = shalt.err (!%p7991_p9)
}
  0x3e   : > { %s8161_s14 = smov 128   ;;  %s8162_s15 = smov 8  }
  0x3f   : > { %7843 = dma.hbm_to_vmem [thread:$0]  (!%p8249_p10), %s8556_s3, 16384, %s8253_s6, [#allocation9], %s8161_s14, %s8161_s14, %s8162_s15  }
  0x40   : > { %s8163_s23 = smov [#allocation7]   ;;  %s8164_s30 = smov [#allocation10]  }
  0x41   : > { %s190_s27 = sshll.u32 %s8163_s23, 4  ;;  %s214_s7 = sshll.u32 %s8164_s30, 4  ;;  %s191_s27 = int_to_ptr.vmem [resolvable:$true] %s190_s27  ;;  %s8302_s7 = int_to_ptr.vmem [resolvable:$true] %s214_s7 }
  0x42   : > { %s7995_s10 = scalar_lea.hbm %s8555_s2, 128 }
  0x43   : > { %p7996_p11 = scmp.ne.s32.totalorder %s8555_s2, %s7995_s10  ;;  %p8002_p4 = scmp.lt.u32.totalorder %s7995_s10, %s8555_s2 }
  0x45   : > { %p7998_p1 = pnand %p7996_p11, %p8263_p12 }
  0x47   : > { %p7999_p2 = pneg %p7998_p1 }
  0x49   : > { %p8004_p6 = pnand %p8002_p4, %p7999_p2 }
  0x4b   : > { %8007 = shalt.err (!%p8004_p6)
}
  0x4c   : > { %s8008_s14 = scalar_lea.vmem %s191_s27, 128  ;;  %p8016_p3 = scmp.lt.s32.totalorder %s191_s27, %s191_s27 }
  0x4d   : > { %p8009_p8 = scmp.ne.s32.totalorder %s191_s27, %s8008_s14  ;;  %p8017_p5 = scmp.lt.s32.totalorder %s8008_s14, %s8008_s14 }
  0x4f   : > { %p8011_p13 = pnand %p8009_p8, %p8263_p12  ;;  %p8018_p7 = por %p8017_p5, %p8016_p3 }
  0x51   : > { %p8012_p0 = pneg %p8011_p13 }
  0x53   : > { %p8019_p9 = pnand %p8018_p7, %p8012_p0 }
  0x55   : > { %8022 = shalt.err (!%p8019_p9)
}
  0x56   : > { %7840 = dma.hbm_to_vmem [thread:$0]  (!%p8249_p10), %s8555_s2, 128, %s191_s27, [#allocation6]  }
  0x57   : > { %s8023_s30 = scalar_lea.hbm %s8557_s4, 16 }
  0x58   : > { %p8024_p11 = scmp.ne.s32.totalorder %s8557_s4, %s8023_s30  ;;  %p8030_p4 = scmp.lt.u32.totalorder %s8023_s30, %s8557_s4 }
  0x5a   : > { %p8026_p1 = pnand %p8024_p11, %p8263_p12 }
  0x5c   : > { %p8027_p2 = pneg %p8026_p1 }
  0x5e   : > { %p8032_p6 = pnand %p8030_p4, %p8027_p2 }
  0x60   : > { %8035 = shalt.err (!%p8032_p6)
}
  0x61   : > { %s8036_s27 = scalar_lea.vmem %s8302_s7, 16  ;;  %s8043_s13 = scalar_lea.vmem %s8302_s7, 32 }
  0x62   : > { %p8037_p8 = scmp.ne.s32.totalorder %s8302_s7, %s8036_s27  ;;  %p8044_p3 = scmp.lt.s32.totalorder %s8302_s7, %s8302_s7 }
  0x63   : > { %p8045_p5 = scmp.lt.s32.totalorder %s8043_s13, %s8036_s27 }
  0x64   : > { %p8039_p13 = pnand %p8037_p8, %p8263_p12 }
  0x65   : > { %p8046_p7 = por %p8045_p5, %p8044_p3 }
  0x66   : > { %p8040_p0 = pneg %p8039_p13 }
  0x68   : > { %p8047_p9 = pnand %p8046_p7, %p8040_p0 }
  0x6a   : > { %8050 = shalt.err (!%p8047_p9)
}
  0x6b   : > { %7846 = dma.hbm_to_vmem [thread:$0]  (!%p8249_p10), %s8557_s4, 16, %s8302_s7, [#allocation9]  }
  0x6c   : > { %s8347_s12 = sadd.s32 1, %s8155_s21   ;;  %s30_s14 = sadd.s32 1, %s8151_s20 }
  0x6d   : > { %s27_s29 = ssub.s32 %s8155_s21, %s8347_s12  ;;  %p37_p11 = scmp.ne.s32.totalorder %s8151_s20, %s8147_s19 }
  0x6e   : > { %p28_p12 = scmp.eq.s32.totalorder %s27_s29, 0  ;;  %p38_p1 = scmp.eq.s32.totalorder %s8155_s21, 0 }
  0x6f   : > { %p8567_p4 = scmp.eq.s32.totalorder %s8222_s22, 2  ;;  %p7859_p8 = scmp.lt.s32.totalorder %s8155_s21, 3 }
  0x70   : > { %s8356_s15 = scalar_select %p28_p12, %s8151_s20, %s30_s14  }
  0x71   : > { %p39_p2 = por %p38_p1, %p37_p11  ;;  %p8360_p6 = por %p8567_p4, %p37_p11 }
  0x72   : > { %s225_s17 = sand.u32 1, %s8151_s20   ;;  %s7812_s7 = smul.u32 1536, %s8155_s21 }
  0x73   : > { %s7811_s23 = smul.u32 96, %s225_s17  ;;  %p8367_p10 = pnand %p7859_p8, %p39_p2 }
  0x74   : > { %s8374_s10 = scalar_lea.hbm %s8553_s0, %s7812_s7  ;;  %s8378_s13 = scalar_lea.sflag [#allocation3], %s225_s17 }
  0x75   : > { %s229_s11 = scalar_lea.vmem [#allocation2], %s7811_s23  ;;  %s8051_s28 = scalar_lea.hbm %s8374_s10, 1536 }
  0x76   : > { %s237_s27 = sshll.u32 %s229_s11, 4  ;;  %p8052_p13 = scmp.ne.s32.totalorder %s8374_s10, %s8051_s28  ;;  %s8376_s27 = int_to_ptr.vmem [resolvable:$true] %s237_s27 }
  0x77   : > { %p8053_p0 = pneg %p8367_p10  ;;  %s8056_s14 = scalar_lea.hbm %s8553_s0, 4608 }
  0x78   : > { %p8057_p7 = scmp.lt.u32.totalorder %s8374_s10, %s8553_s0  ;;  %p8058_p9 = scmp.lt.u32.totalorder %s8056_s14, %s8051_s28 }
  0x79   : > { %p8054_p3 = pnand %p8053_p0, %p8052_p13  ;;  %p8060_p11 = scmp.lt.u32.totalorder %s8051_s28, %s8374_s10 }
  0x7a   : > { %p8059_p12 = por %p8058_p9, %p8057_p7 }
  0x7b   : > { %p8055_p5 = pneg %p8054_p3 }
  0x7c   : > { %p8061_p1 = por %p8060_p11, %p8059_p12 }
  0x7e   : > { %p8062_p2 = pnand %p8061_p1, %p8055_p5 }
  0x80   : > { %8065 = shalt.err (!%p8062_p2)
}
  0x81   : > { %s8066_s17 = scalar_lea.vmem %s8376_s27, 1536  ;;  %s8165_s23 = smov [#allocation2]  }
  0x82   : > { %p8067_p4 = scmp.ne.s32.totalorder %s8376_s27, %s8066_s17  ;;  %s8071_s9 = sshll.u32 %s8165_s23, 4  ;;  %s8072_s9 = int_to_ptr.vmem [resolvable:$false] %s8071_s9 }
  0x83   : > { %s8073_s11 = scalar_lea.vmem %s8072_s9, 3072  ;;  %p8074_p3 = scmp.lt.s32.totalorder %s8376_s27, %s8072_s9 }
  0x84   : > { %p8069_p8 = pnand %p8067_p4, %p8053_p0  ;;  %p8075_p7 = scmp.lt.s32.totalorder %s8073_s11, %s8066_s17 }
  0x86   : > { %p8070_p13 = pneg %p8069_p8  ;;  %p8076_p9 = por %p8075_p7, %p8074_p3 }
  0x88   : > { %p8077_p12 = pnand %p8076_p9, %p8070_p13 }
  0x8a   : > { %8080 = shalt.err (!%p8077_p12)
}
  0x8b   : > { %s8166_s28 = smov 768   ;;  %s8167_s6 = smov 48  }
  0x8c   : > { %7850 = dma.hbm_to_vmem [thread:$0]  (!%p8367_p10), %s8374_s10, 1536, %s8376_s27, %s8378_s13, %s8166_s28, %s8166_s28, %s8167_s6  }
  0x8d   : > { %p8570_p0 = scmp.ne.s32.totalorder %s8564_s26, 0 }
  0x8e   : > { %s8409_s29 = sand.u32 (!%p8570_p0), 1, %s8147_s19   ;;  %p8571_p5 = scmp.ne.s32.totalorder (!%p8570_p0), %s8562_s24, 0 }
  0x8f   : > { %249 = sbr.rel (%p8570_p0) target bundleno = 1385 (0x569), region = 40  ;;  %s252_s7 = scalar_lea.sflag (!%p8570_p0), [#allocation3], %s8409_s29 }
  0x90   : > { %s7813_s14 = smul.u32 (!%p8570_p0), 96, %s8409_s29 }
  0x92   : > { %s8413_s8 = scalar_lea.vmem (!%p8570_p0), [#allocation2], %s7813_s14 }
  0x96   : > { %8126 = dma.done.wait (%p8571_p5), %s252_s7, 1536  }
  0x97   : > { %8128 = vsyncadd (%p8571_p5), %s252_s7, 4294965760  ;;  %p8572_p10 = scmp.eq.s32.totalorder %s8222_s22, 0 }
  0x99   : > { %8130 = dma.done.wait (%p8572_p10), [#allocation6], 98432   ;;  %p8573_p11 = pmov %p8572_p10 }
  0x9a   : > { %p8574_p1 = pmov %p8572_p10 }
  0x9b   : > { %8132 = vsyncadd (%p8573_p11), [#allocation6], 4294868864 }
  0x9c   : > { %8134 = dma.done.wait (%p8574_p1), [#allocation9], 16400   ;;  %p8575_p2 = pmov %p8574_p1 }
  0x9d   : > { %v312_v0 = vld [vmem:[#allocation5] sm:$0xff]  ;;  %v313_v2 = vld [vmem:[#allocation5 + $0x8] sm:$0xff]  ;;  %s6647_s24 = sshll.u32 %s8409_s29, 4  ;;  %s7434_s10 = sshll.u32 %s8222_s22, 8 }
  0x9e   : > { %8136 = vsyncadd (%p8575_p2), [#allocation9], 4294950896  ;;  %v316_v1 = vld [vmem:[#allocation5 + $0x20] sm:$0xff]  ;;  %v317_v4 = vld [vmem:[#allocation5 + $0x28] sm:$0xff]  ;;  %s297_s26 = scalar_lea.vmem [#allocation11], %s6647_s24  ;;  %s8510_s17 = scalar_lea.hbm %s8558_s5, %s7434_s10 }
  0x9f   : > { %v6661_v3 = vcombine.high %v312_v0, %v316_v1  ;;  %v6660_v5 = vcombine.low %v312_v0, %v316_v1  ;;  %v320_v6 = vld [vmem:[#allocation5 + $0x40] sm:$0xff]  ;;  %v6663_v8 = vcombine.high %v313_v2, %v317_v4  ;;  %v6662_v9 = vcombine.low %v313_v2, %v317_v4  ;;  %v321_v11 = vld [vmem:[#allocation5 + $0x48] sm:$0xff]  ;;  %s6521_s30 = sshll.u32 %s297_s26, 4  ;;  %s6508_s23 = scalar_lea.sflag [#allocation4], %s8409_s29  ;;  %s8505_s30 = int_to_ptr.vmem [resolvable:$true] %s6521_s30 }
  0xa0   : > { %v324_v7 = vld [vmem:[#allocation5 + $0x60] sm:$0xff]  ;;  %v325_v12 = vld [vmem:[#allocation5 + $0x68] sm:$0xff]  ;;  %s8081_s9 = scalar_lea.vmem %s8505_s30, 256  ;;  %s8168_s22 = smov [#allocation11]  }
  0xa1   : > { %v6669_v10 = vcombine.high %v320_v6, %v324_v7  ;;  %v328_v13 = vld [vmem:[#allocation5 + $0x80] sm:$0xff]  ;;  %5022 = vmatprep.subr.bf16.mxu0 %v6661_v3  ;;  %v6671_v14 = vcombine.high %v321_v11, %v325_v12  ;;  %v329_v16 = vld [vmem:[#allocation5 + $0x88] sm:$0xff]  ;;  %5280 = vmatprep.subr.bf16.mxu1 %v6663_v8  ;;  %v6668_v18 = vcombine.low %v320_v6, %v324_v7  ;;  %p8082_p4 = scmp.ne.s32.totalorder %s8505_s30, %s8081_s9  ;;  %s8085_s11 = sshll.u32 %s8168_s22, 4  ;;  %s8086_s11 = int_to_ptr.vmem [resolvable:$false] %s8085_s11 }
  0xa2   : > { %v332_v15 = vld [vmem:[#allocation5 + $0xa0] sm:$0xff]  ;;  %v333_v17 = vld [vmem:[#allocation5 + $0xa8] sm:$0xff]  ;;  %5023 = vmatpush1.bf16.msra.mxu0 %v6660_v5  ;;  %5281 = vmatpush1.bf16.msra.mxu1 %v6662_v9  ;;  %v6670_v19 = vcombine.low %v321_v11, %v325_v12  ;;  %s8087_s28 = scalar_lea.vmem %s8086_s11, 512  ;;  %p8088_p3 = scmp.lt.s32.totalorder %s8505_s30, %s8086_s11 }
  0xa3   : > { %5024 = vmatprep.subr.bf16.mxu0 %v6669_v10  ;;  %v6677_v20 = vcombine.high %v328_v13, %v332_v15  ;;  %5282 = vmatprep.subr.bf16.mxu1 %v6671_v14  ;;  %v6679_v21 = vcombine.high %v329_v16, %v333_v17  ;;  %v336_v22 = vld [vmem:[#allocation5 + $0xc0] sm:$0xff]  ;;  %v337_v24 = vld [vmem:[#allocation5 + $0xc8] sm:$0xff]  ;;  %v6676_v26 = vcombine.low %v328_v13, %v332_v15  ;;  %p8083_p8 = pnand %p8082_p4, %p8360_p6  ;;  %p8089_p7 = scmp.lt.s32.totalorder %s8087_s28, %s8081_s9 }
  0xa4   : > { %v340_v23 = vld [vmem:[#allocation5 + $0xe0] sm:$0xff]  ;;  %v341_v25 = vld [vmem:[#allocation5 + $0xe8] sm:$0xff]  ;;  %v6678_v27 = vcombine.low %v329_v16, %v333_v17 }
  0xa5   : > { %v6685_v28 = vcombine.high %v336_v22, %v340_v23  ;;  %v6687_v29 = vcombine.high %v337_v24, %v341_v25  ;;  %v344_v30 = vld [vmem:[#allocation5 + $0x100] sm:$0xff]  ;;  %v345_v32 = vld [vmem:[#allocation5 + $0x108] sm:$0xff]  ;;  %v6684_v34 = vcombine.low %v336_v22, %v340_v23  ;;  %v6686_v35 = vcombine.low %v337_v24, %v341_v25  ;;  %p8084_p13 = pneg %p8083_p8  ;;  %p8090_p9 = por %p8089_p7, %p8088_p3 }
  0xa6   : > { %5025 = vmatpush1.bf16.msra.mxu0 %v6668_v18  ;;  %5283 = vmatpush1.bf16.msra.mxu1 %v6670_v19  ;;  %v348_v31 = vld [vmem:[#allocation5 + $0x120] sm:$0xff]  ;;  %v349_v33 = vld [vmem:[#allocation5 + $0x128] sm:$0xff] }
  0xa7   : > { %5026 = vmatprep.subr.bf16.mxu0 %v6677_v20  ;;  %5284 = vmatprep.subr.bf16.mxu1 %v6679_v21  ;;  %v6693_v36 = vcombine.high %v344_v30, %v348_v31  ;;  %v6695_v37 = vcombine.high %v345_v32, %v349_v33  ;;  %v352_v38 = vld [vmem:[#allocation5 + $0x140] sm:$0xff]  ;;  %v353_v40 = vld [vmem:[#allocation5 + $0x148] sm:$0xff]  ;;  %v6692_v42 = vcombine.low %v344_v30, %v348_v31  ;;  %p8091_p12 = pnand %p8090_p9, %p8084_p13 }
  0xa8   : > { %v356_v39 = vld [vmem:[#allocation5 + $0x160] sm:$0xff]  ;;  %v357_v41 = vld [vmem:[#allocation5 + $0x168] sm:$0xff]  ;;  %v6694_v43 = vcombine.low %v345_v32, %v349_v33 }
  0xa9   : > { %v6701_v44 = vcombine.high %v352_v38, %v356_v39  ;;  %v6703_v45 = vcombine.high %v353_v40, %v357_v41  ;;  %v360_v46 = vld [vmem:[#allocation5 + $0x180] sm:$0xff]  ;;  %v361_v48 = vld [vmem:[#allocation5 + $0x188] sm:$0xff]  ;;  %v6700_v50 = vcombine.low %v352_v38, %v356_v39  ;;  %v6702_v51 = vcombine.low %v353_v40, %v357_v41 }
  0xaa   : > { %5027 = vmatpush1.bf16.msra.mxu0 %v6676_v26  ;;  %5285 = vmatpush1.bf16.msra.mxu1 %v6678_v27  ;;  %v364_v47 = vld [vmem:[#allocation5 + $0x1a0] sm:$0xff]  ;;  %v365_v49 = vld [vmem:[#allocation5 + $0x1a8] sm:$0xff] }
  0xab   : > { %5028 = vmatprep.subr.bf16.mxu0 %v6685_v28  ;;  %5286 = vmatprep.subr.bf16.mxu1 %v6687_v29  ;;  %v6709_v52 = vcombine.high %v360_v46, %v364_v47  ;;  %v6711_v53 = vcombine.high %v361_v48, %v365_v49  ;;  %v368_v54 = vld [vmem:[#allocation5 + $0x1c0] sm:$0xff]  ;;  %v369_v57 = vld [vmem:[#allocation5 + $0x1c8] sm:$0xff]  ;;  %v6708_v59 = vcombine.low %v360_v46, %v364_v47 }
  0xac   : > { %v372_v55 = vld [vmem:[#allocation5 + $0x1e0] sm:$0xff]  ;;  %v373_v58 = vld [vmem:[#allocation5 + $0x1e8] sm:$0xff]  ;;  %v6710_v60 = vcombine.low %v361_v48, %v365_v49 }
  0xad   : > { %v7909_v56 = vld [vmem:[%s8413_s8 + $0x4] ss:$48 sps:$4 sm:$0xff]   ;;  %v6717_v61 = vcombine.high %v368_v54, %v372_v55  ;;  %v6719_v62 = vcombine.high %v369_v57, %v373_v58  ;;  %v377_v1 = vld [vmem:[#allocation5 + $0x208] sm:$0xff]  ;;  %v6716_v3 = vcombine.low %v368_v54, %v372_v55  ;;  %v6718_v4 = vcombine.low %v369_v57, %v373_v58 }
  0xae   : > { %5029 = vmatpush1.bf16.msra.mxu0 %v6684_v34  ;;  %5287 = vmatpush1.bf16.msra.mxu1 %v6686_v35  ;;  %v376_v63 = vld [vmem:[#allocation5 + $0x200] sm:$0xff]  ;;  %v381_v2 = vld [vmem:[#allocation5 + $0x228] sm:$0xff] }
  0xaf   : > { %5030 = vmatprep.subr.bf16.mxu0 %v6693_v36  ;;  %5288 = vmatprep.subr.bf16.mxu1 %v6695_v37  ;;  %v380_v0 = vld [vmem:[#allocation5 + $0x220] sm:$0xff]  ;;  %v6727_v6 = vcombine.high %v377_v1, %v381_v2  ;;  %v385_v9 = vld [vmem:[#allocation5 + $0x248] sm:$0xff]  ;;  %v6726_v12 = vcombine.low %v377_v1, %v381_v2 }
  0xb0   : > { %5054 = vmatprep.mubr.bf16.mxu0 %v7909_v56  ;;  %5312 = vmatprep.mubr.bf16.mxu1 %v7909_v56  ;;  %v6725_v5 = vcombine.high %v376_v63, %v380_v0  ;;  %v384_v7 = vld [vmem:[#allocation5 + $0x240] sm:$0xff]  ;;  %v389_v10 = vld [vmem:[#allocation5 + $0x268] sm:$0xff]  ;;  %v6724_v11 = vcombine.low %v376_v63, %v380_v0 }
  0xb1   : > { %v388_v8 = vld [vmem:[#allocation5 + $0x260] sm:$0xff]  ;;  %v6735_v14 = vcombine.high %v385_v9, %v389_v10  ;;  %v393_v17 = vld [vmem:[#allocation5 + $0x288] sm:$0xff]  ;;  %v6734_v20 = vcombine.low %v385_v9, %v389_v10 }
  0xb2   : > { %5031 = vmatpush1.bf16.msra.mxu0 %v6692_v42  ;;  %5289 = vmatpush1.bf16.msra.mxu1 %v6694_v43  ;;  %v6733_v13 = vcombine.high %v384_v7, %v388_v8  ;;  %v392_v15 = vld [vmem:[#allocation5 + $0x280] sm:$0xff]  ;;  %v397_v18 = vld [vmem:[#allocation5 + $0x2a8] sm:$0xff]  ;;  %v6732_v19 = vcombine.low %v384_v7, %v388_v8 }
  0xb3   : > { %5032 = vmatprep.subr.bf16.mxu0 %v6701_v44  ;;  %5290 = vmatprep.subr.bf16.mxu1 %v6703_v45  ;;  %v396_v16 = vld [vmem:[#allocation5 + $0x2a0] sm:$0xff]  ;;  %v6743_v22 = vcombine.high %v393_v17, %v397_v18  ;;  %v401_v25 = vld [vmem:[#allocation5 + $0x2c8] sm:$0xff]  ;;  %v6742_v28 = vcombine.low %v393_v17, %v397_v18 }
  0xb4   : > { %v6741_v21 = vcombine.high %v392_v15, %v396_v16  ;;  %v400_v23 = vld [vmem:[#allocation5 + $0x2c0] sm:$0xff]  ;;  %v405_v26 = vld [vmem:[#allocation5 + $0x2e8] sm:$0xff]  ;;  %v6740_v27 = vcombine.low %v392_v15, %v396_v16 }
  0xb5   : > { %v404_v24 = vld [vmem:[#allocation5 + $0x2e0] sm:$0xff]  ;;  %v6751_v30 = vcombine.high %v401_v25, %v405_v26  ;;  %v409_v33 = vld [vmem:[#allocation5 + $0x308] sm:$0xff]  ;;  %v6750_v36 = vcombine.low %v401_v25, %v405_v26 }
  0xb6   : > { %5033 = vmatpush1.bf16.msra.mxu0 %v6700_v50  ;;  %5291 = vmatpush1.bf16.msra.mxu1 %v6702_v51  ;;  %v6749_v29 = vcombine.high %v400_v23, %v404_v24  ;;  %v408_v31 = vld [vmem:[#allocation5 + $0x300] sm:$0xff]  ;;  %v413_v34 = vld [vmem:[#allocation5 + $0x328] sm:$0xff]  ;;  %v6748_v35 = vcombine.low %v400_v23, %v404_v24 }
  0xb7   : > { %5034 = vmatprep.subr.bf16.mxu0 %v6709_v52  ;;  %5292 = vmatprep.subr.bf16.mxu1 %v6711_v53  ;;  %v412_v32 = vld [vmem:[#allocation5 + $0x320] sm:$0xff]  ;;  %v6759_v38 = vcombine.high %v409_v33, %v413_v34  ;;  %v417_v41 = vld [vmem:[#allocation5 + $0x348] sm:$0xff]  ;;  %v6758_v44 = vcombine.low %v409_v33, %v413_v34 }
  0xb8   : > { %v6757_v37 = vcombine.high %v408_v31, %v412_v32  ;;  %v416_v39 = vld [vmem:[#allocation5 + $0x340] sm:$0xff]  ;;  %v421_v42 = vld [vmem:[#allocation5 + $0x368] sm:$0xff]  ;;  %v6756_v43 = vcombine.low %v408_v31, %v412_v32 }
  0xb9   : > { %v420_v40 = vld [vmem:[#allocation5 + $0x360] sm:$0xff]  ;;  %v6767_v46 = vcombine.high %v417_v41, %v421_v42  ;;  %v425_v49 = vld [vmem:[#allocation5 + $0x388] sm:$0xff]  ;;  %v6766_v52 = vcombine.low %v417_v41, %v421_v42 }
  0xba   : > { %5035 = vmatpush1.bf16.msra.mxu0 %v6708_v59  ;;  %5293 = vmatpush1.bf16.msra.mxu1 %v6710_v60  ;;  %v6765_v45 = vcombine.high %v416_v39, %v420_v40  ;;  %v424_v47 = vld [vmem:[#allocation5 + $0x380] sm:$0xff]  ;;  %v429_v50 = vld [vmem:[#allocation5 + $0x3a8] sm:$0xff]  ;;  %v6764_v51 = vcombine.low %v416_v39, %v420_v40 }
  0xbb   : > { %5036 = vmatprep.subr.bf16.mxu0 %v6717_v61  ;;  %5294 = vmatprep.subr.bf16.mxu1 %v6719_v62  ;;  %v428_v48 = vld [vmem:[#allocation5 + $0x3a0] sm:$0xff]  ;;  %v6775_v54 = vcombine.high %v425_v49, %v429_v50  ;;  %v433_v57 = vld [vmem:[#allocation5 + $0x3c8] sm:$0xff]  ;;  %v6774_v60 = vcombine.low %v425_v49, %v429_v50 }
  0xbc   : > { %v6773_v53 = vcombine.high %v424_v47, %v428_v48  ;;  %v432_v55 = vld [vmem:[#allocation5 + $0x3c0] sm:$0xff]  ;;  %v437_v58 = vld [vmem:[#allocation5 + $0x3e8] sm:$0xff]  ;;  %v6772_v59 = vcombine.low %v424_v47, %v428_v48 }
  0xbd   : > { %v436_v56 = vld [vmem:[#allocation5 + $0x3e0] sm:$0xff]  ;;  %v6783_v62 = vcombine.high %v433_v57, %v437_v58  ;;  %v441_v1 = vld [vmem:[#allocation5 + $0x408] sm:$0xff] }
  0xbe   : > { %5037 = vmatpush1.bf16.msra.mxu0 %v6716_v3  ;;  %5295 = vmatpush1.bf16.msra.mxu1 %v6718_v4  ;;  %v6781_v61 = vcombine.high %v432_v55, %v436_v56  ;;  %v440_v63 = vld [vmem:[#allocation5 + $0x400] sm:$0xff]  ;;  %v445_v2 = vld [vmem:[#allocation5 + $0x428] sm:$0xff]  ;;  %v6780_v3 = vcombine.low %v432_v55, %v436_v56  ;;  %v6782_v4 = vcombine.low %v433_v57, %v437_v58 }
  0xbf   : > { %5038 = vmatprep.subr.bf16.mxu0 %v6725_v5  ;;  %5296 = vmatprep.subr.bf16.mxu1 %v6727_v6  ;;  %v444_v0 = vld [vmem:[#allocation5 + $0x420] sm:$0xff]  ;;  %v6791_v6 = vcombine.high %v441_v1, %v445_v2  ;;  %v449_v10 = vld [vmem:[#allocation5 + $0x448] sm:$0xff] }
  0xc0   : > { %v6789_v5 = vcombine.high %v440_v63, %v444_v0  ;;  %v448_v7 = vld [vmem:[#allocation5 + $0x440] sm:$0xff]  ;;  %v7912_v18 = vld [vmem:[%s8413_s8 + $0xc] ss:$48 sps:$4 sm:$0xff]  }
  0xc1   : > { %v452_v8 = vld [vmem:[#allocation5 + $0x460] sm:$0xff] }
  0xc2   : > { %5039 = vmatpush1.bf16.msra.mxu0 %v6724_v11  ;;  %5297 = vmatpush1.bf16.msra.mxu1 %v6726_v12  ;;  %v7911_v9 = vld [vmem:[%s8413_s8] ss:$48 sps:$4 sm:$0xff]   ;;  %v453_v11 = vld [vmem:[#allocation5 + $0x468] sm:$0xff]  ;;  %v6788_v12 = vcombine.low %v440_v63, %v444_v0 }
  0xc3   : > { %5040 = vmatprep.subr.bf16.mxu0 %v6733_v13  ;;  %5298 = vmatprep.subr.bf16.mxu1 %v6735_v14  ;;  %v6790_v13 = vcombine.low %v441_v1, %v445_v2  ;;  %v6797_v14 = vcombine.high %v448_v7, %v452_v8  ;;  %v456_v15 = vld [vmem:[#allocation5 + $0x480] sm:$0xff]  ;;  %v6799_v16 = vcombine.high %v449_v10, %v453_v11 }
  0xc4   : > { %v460_v17 = vld [vmem:[#allocation5 + $0x4a0] sm:$0xff] }
  0xc5   : > { %v6805_v23 = vcombine.high %v456_v15, %v460_v17  ;;  %v464_v24 = vld [vmem:[#allocation5 + $0x4c0] sm:$0xff] }
  0xc6   : > { %5041 = vmatpush1.bf16.msra.mxu0 %v6732_v19  ;;  %5299 = vmatpush1.bf16.msra.mxu1 %v6734_v20  ;;  %v457_v19 = vld [vmem:[#allocation5 + $0x488] sm:$0xff]  ;;  %v468_v25 = vld [vmem:[#allocation5 + $0x4e0] sm:$0xff] }
  0xc7   : > { %5042 = vmatprep.subr.bf16.mxu0 %v6741_v21  ;;  %5300 = vmatprep.subr.bf16.mxu1 %v6743_v22  ;;  %v461_v20 = vld [vmem:[#allocation5 + $0x4a8] sm:$0xff]  ;;  %v6796_v21 = vcombine.low %v448_v7, %v452_v8  ;;  %v6798_v22 = vcombine.low %v449_v10, %v453_v11  ;;  %v6813_v31 = vcombine.high %v464_v24, %v468_v25  ;;  %v472_v33 = vld [vmem:[#allocation5 + $0x500] sm:$0xff] }
  0xc8   : > { %v6807_v26 = vcombine.high %v457_v19, %v461_v20  ;;  %v476_v34 = vld [vmem:[#allocation5 + $0x520] sm:$0xff]  ;;  %v513_v11 = vld [vmem:[#allocation5 + $0x648] sm:$0xff] }
  0xc9   : > { %v6821_v39 = vcombine.high %v472_v33, %v476_v34  ;;  %v480_v41 = vld [vmem:[#allocation5 + $0x540] sm:$0xff] }
  0xca   : > { %5043 = vmatpush1.bf16.msra.mxu0 %v6740_v27  ;;  %5301 = vmatpush1.bf16.msra.mxu1 %v6742_v28  ;;  %v465_v27 = vld [vmem:[#allocation5 + $0x4c8] sm:$0xff]  ;;  %v484_v42 = vld [vmem:[#allocation5 + $0x560] sm:$0xff] }
  0xcb   : > { %5044 = vmatprep.subr.bf16.mxu0 %v6749_v29  ;;  %5302 = vmatprep.subr.bf16.mxu1 %v6751_v30  ;;  %v469_v28 = vld [vmem:[#allocation5 + $0x4e8] sm:$0xff]  ;;  %v6804_v29 = vcombine.low %v456_v15, %v460_v17  ;;  %v6806_v30 = vcombine.low %v457_v19, %v461_v20  ;;  %v6829_v47 = vcombine.high %v480_v41, %v484_v42  ;;  %v488_v49 = vld [vmem:[#allocation5 + $0x580] sm:$0xff] }
  0xcc   : > { %v6815_v32 = vcombine.high %v465_v27, %v469_v28  ;;  %v492_v50 = vld [vmem:[#allocation5 + $0x5a0] sm:$0xff]  ;;  %v521_v19 = vld [vmem:[#allocation5 + $0x688] sm:$0xff] }
  0xcd   : > { %v6837_v55 = vcombine.high %v488_v49, %v492_v50  ;;  %v496_v57 = vld [vmem:[#allocation5 + $0x5c0] sm:$0xff]  ;;  %v525_v20 = vld [vmem:[#allocation5 + $0x6a8] sm:$0xff] }
  0xce   : > { %5045 = vmatpush1.bf16.msra.mxu0 %v6748_v35  ;;  %5303 = vmatpush1.bf16.msra.mxu1 %v6750_v36  ;;  %v473_v35 = vld [vmem:[#allocation5 + $0x508] sm:$0xff]  ;;  %v500_v58 = vld [vmem:[#allocation5 + $0x5e0] sm:$0xff] }
  0xcf   : > { %5046 = vmatprep.subr.bf16.mxu0 %v6757_v37  ;;  %5304 = vmatprep.subr.bf16.mxu1 %v6759_v38  ;;  %v477_v36 = vld [vmem:[#allocation5 + $0x528] sm:$0xff]  ;;  %v6812_v37 = vcombine.low %v464_v24, %v468_v25  ;;  %v6814_v38 = vcombine.low %v465_v27, %v469_v28  ;;  %v6845_v63 = vcombine.high %v496_v57, %v500_v58  ;;  %v504_v1 = vld [vmem:[#allocation5 + $0x600] sm:$0xff] }
  0xd0   : > { %v6823_v40 = vcombine.high %v473_v35, %v477_v36  ;;  %v508_v2 = vld [vmem:[#allocation5 + $0x620] sm:$0xff]  ;;  %v6871_v24 = vcombine.high %v521_v19, %v525_v20  ;;  %v529_v27 = vld [vmem:[#allocation5 + $0x6c8] sm:$0xff] }
  0xd1   : > { %v6853_v7 = vcombine.high %v504_v1, %v508_v2  ;;  %v516_v10 = vld [vmem:[#allocation5 + $0x660] sm:$0xff]  ;;  %v533_v28 = vld [vmem:[#allocation5 + $0x6e8] sm:$0xff] }
  0xd2   : > { %5047 = vmatpush1.bf16.msra.mxu0 %v6756_v43  ;;  %5305 = vmatpush1.bf16.msra.mxu1 %v6758_v44  ;;  %v481_v43 = vld [vmem:[#allocation5 + $0x548] sm:$0xff]  ;;  %v520_v17 = vld [vmem:[#allocation5 + $0x680] sm:$0xff] }
  0xd3   : > { %5048 = vmatprep.subr.bf16.mxu0 %v6765_v45  ;;  %5306 = vmatprep.subr.bf16.mxu1 %v6767_v46  ;;  %v485_v44 = vld [vmem:[#allocation5 + $0x568] sm:$0xff]  ;;  %v6820_v45 = vcombine.low %v472_v33, %v476_v34  ;;  %v6822_v46 = vcombine.low %v473_v35, %v477_v36  ;;  %v528_v25 = vld [vmem:[#allocation5 + $0x6c0] sm:$0xff] }
  0xd4   : > { %v6831_v48 = vcombine.high %v481_v43, %v485_v44  ;;  %v536_v33 = vld [vmem:[#allocation5 + $0x700] sm:$0xff]  ;;  %v537_v35 = vld [vmem:[#allocation5 + $0x708] sm:$0xff] }
  0xd5   : > { %v540_v34 = vld [vmem:[#allocation5 + $0x720] sm:$0xff]  ;;  %v541_v36 = vld [vmem:[#allocation5 + $0x728] sm:$0xff] }
  0xd6   : > { %5049 = vmatpush1.bf16.msra.mxu0 %v6764_v51  ;;  %5307 = vmatpush1.bf16.msra.mxu1 %v6766_v52  ;;  %v489_v51 = vld [vmem:[#allocation5 + $0x588] sm:$0xff] }
  0xd7   : > { %5050 = vmatprep.subr.bf16.mxu0 %v6773_v53  ;;  %5308 = vmatprep.subr.bf16.mxu1 %v6775_v54  ;;  %v493_v52 = vld [vmem:[#allocation5 + $0x5a8] sm:$0xff]  ;;  %v6828_v53 = vcombine.low %v480_v41, %v484_v42  ;;  %v6830_v54 = vcombine.low %v481_v43, %v485_v44  ;;  %v544_v41 = vld [vmem:[#allocation5 + $0x740] sm:$0xff] }
  0xd8   : > { %v6839_v56 = vcombine.high %v489_v51, %v493_v52  ;;  %v548_v42 = vld [vmem:[#allocation5 + $0x760] sm:$0xff]  ;;  %v545_v43 = vld [vmem:[#allocation5 + $0x748] sm:$0xff] }
  0xd9   : > { %v549_v44 = vld [vmem:[#allocation5 + $0x768] sm:$0xff] }
  0xda   : > { %5051 = vmatpush1.bf16.msra.mxu0 %v6772_v59  ;;  %5309 = vmatpush1.bf16.msra.mxu1 %v6774_v60  ;;  %v497_v59 = vld [vmem:[#allocation5 + $0x5c8] sm:$0xff] }
  0xdb   : > { %5052 = vmatprep.subr.bf16.mxu0 %v6781_v61  ;;  %5310 = vmatprep.subr.bf16.mxu1 %v6783_v62  ;;  %v501_v60 = vld [vmem:[#allocation5 + $0x5e8] sm:$0xff]  ;;  %v6836_v61 = vcombine.low %v488_v49, %v492_v50  ;;  %v6838_v62 = vcombine.low %v489_v51, %v493_v52  ;;  %v552_v49 = vld [vmem:[#allocation5 + $0x780] sm:$0xff] }
  0xdc   : > { %v6847_v0 = vcombine.high %v497_v59, %v501_v60  ;;  %v556_v50 = vld [vmem:[#allocation5 + $0x7a0] sm:$0xff]  ;;  %v553_v51 = vld [vmem:[#allocation5 + $0x788] sm:$0xff] }
  0xdd   : > { %v557_v52 = vld [vmem:[#allocation5 + $0x7a8] sm:$0xff] }
  0xde   : > { %5053 = vmatpush1.bf16.msra.mxu0 %v6780_v3  ;;  %5311 = vmatpush1.bf16.msra.mxu1 %v6782_v4  ;;  %v505_v3 = vld [vmem:[#allocation5 + $0x608] sm:$0xff] }
  0xdf   : > { %5065 = vmatprep.subr.bf16.mxu0 %v6789_v5  ;;  %5323 = vmatprep.subr.bf16.mxu1 %v6791_v6  ;;  %v509_v4 = vld [vmem:[#allocation5 + $0x628] sm:$0xff]  ;;  %v6844_v5 = vcombine.low %v496_v57, %v500_v58  ;;  %v6846_v6 = vcombine.low %v497_v59, %v501_v60  ;;  %v560_v57 = vld [vmem:[#allocation5 + $0x7c0] sm:$0xff] }
  0xe0   : > { %v6855_v8 = vcombine.high %v505_v3, %v509_v4  ;;  %v564_v58 = vld [vmem:[#allocation5 + $0x7e0] sm:$0xff]  ;;  %v561_v59 = vld [vmem:[#allocation5 + $0x7c8] sm:$0xff] }
  0xe1   : > { %5055 = vmatmul.mubr.bf16.vlgmr.msra.gmra.mrb[0].mxu0 %v7911_v9  ;;  %5313 = vmatmul.mubr.bf16.vlgmr.msra.gmra.mrb[0].mxu1 %v7911_v9  ;;  %v512_v9 = vld [vmem:[#allocation5 + $0x640] sm:$0xff]  ;;  %v565_v60 = vld [vmem:[#allocation5 + $0x7e8] sm:$0xff] }
  0xe2   : > { %5066 = vmatpush1.bf16.msra.mxu0 %v6788_v12  ;;  %5324 = vmatpush1.bf16.msra.mxu1 %v6790_v13  ;;  %v517_v12 = vld [vmem:[#allocation5 + $0x668] sm:$0xff]  ;;  %v6852_v13 = vcombine.low %v504_v1, %v508_v2  ;;  %v6861_v15 = vcombine.high %v512_v9, %v516_v10  ;;  %v568_v1 = vld [vmem:[#allocation5 + $0x800] sm:$0xff] }
  0xe3   : > { %5067 = vmatprep.subr.bf16.mxu0 %v6797_v14  ;;  %5325 = vmatprep.subr.bf16.mxu1 %v6799_v16  ;;  %v6854_v14 = vcombine.low %v505_v3, %v509_v4  ;;  %v6863_v16 = vcombine.high %v513_v11, %v517_v12  ;;  %v572_v2 = vld [vmem:[#allocation5 + $0x820] sm:$0xff]  ;;  %v569_v3 = vld [vmem:[#allocation5 + $0x808] sm:$0xff] }
  0xe4   : > { %5097 = vmatprep.mubr.bf16.mxu0 %v7912_v18  ;;  %5355 = vmatprep.mubr.bf16.mxu1 %v7912_v18  ;;  %v524_v18 = vld [vmem:[#allocation5 + $0x6a0] sm:$0xff]  ;;  %v573_v4 = vld [vmem:[#allocation5 + $0x828] sm:$0xff] }
  0xe6   : > { %5068 = vmatpush1.bf16.msra.mxu0 %v6796_v21  ;;  %5326 = vmatpush1.bf16.msra.mxu1 %v6798_v22  ;;  %v6860_v21 = vcombine.low %v512_v9, %v516_v10  ;;  %v6862_v22 = vcombine.low %v513_v11, %v517_v12  ;;  %v576_v9 = vld [vmem:[#allocation5 + $0x840] sm:$0xff]  ;;  %v7914_v11 = vld [vmem:[%s8413_s8 + $0x8] ss:$48 sps:$4 sm:$0xff]  }
  0xe7   : > { %5069 = vmatprep.subr.bf16.mxu0 %v6805_v23  ;;  %5327 = vmatprep.subr.bf16.mxu1 %v6807_v26  ;;  %v6869_v23 = vcombine.high %v520_v17, %v524_v18  ;;  %v532_v26 = vld [vmem:[#allocation5 + $0x6e0] sm:$0xff]  ;;  %v577_v12 = vld [vmem:[#allocation5 + $0x848] sm:$0xff] }
  0xe8   : > { %v580_v10 = vld [vmem:[#allocation5 + $0x860] sm:$0xff] }
  0xea   : > { %5070 = vmatpush1.bf16.msra.mxu0 %v6804_v29  ;;  %5328 = vmatpush1.bf16.msra.mxu1 %v6806_v30  ;;  %v6868_v29 = vcombine.low %v520_v17, %v524_v18  ;;  %v6870_v30 = vcombine.low %v521_v19, %v525_v20  ;;  %v584_v18 = vld [vmem:[#allocation5 + $0x880] sm:$0xff] }
  0xeb   : > { %5071 = vmatprep.subr.bf16.mxu0 %v6813_v31  ;;  %5329 = vmatprep.subr.bf16.mxu1 %v6815_v32  ;;  %v6877_v31 = vcombine.high %v528_v25, %v532_v26  ;;  %v6879_v32 = vcombine.high %v529_v27, %v533_v28  ;;  %v588_v19 = vld [vmem:[#allocation5 + $0x8a0] sm:$0xff] }
  0xec   : > { %v7915_v20 = vld [vmem:[%s8413_s8 + $0x14] ss:$48 sps:$4 sm:$0xff]  }
  0xee   : > { %5072 = vmatpush1.bf16.msra.mxu0 %v6812_v37  ;;  %5330 = vmatpush1.bf16.msra.mxu1 %v6814_v38  ;;  %v6876_v37 = vcombine.low %v528_v25, %v532_v26  ;;  %v6878_v38 = vcombine.low %v529_v27, %v533_v28  ;;  %v6933_v25 = vcombine.high %v584_v18, %v588_v19  ;;  %v592_v27 = vld [vmem:[#allocation5 + $0x8c0] sm:$0xff] }
  0xef   : > { %5073 = vmatprep.subr.bf16.mxu0 %v6821_v39  ;;  %5331 = vmatprep.subr.bf16.mxu1 %v6823_v40  ;;  %v6885_v39 = vcombine.high %v536_v33, %v540_v34  ;;  %v6887_v40 = vcombine.high %v537_v35, %v541_v36  ;;  %v596_v28 = vld [vmem:[#allocation5 + $0x8e0] sm:$0xff] }
  0xf2   : > { %5074 = vmatpush1.bf16.msra.mxu0 %v6820_v45  ;;  %5332 = vmatpush1.bf16.msra.mxu1 %v6822_v46  ;;  %v6884_v45 = vcombine.low %v536_v33, %v540_v34  ;;  %v6886_v46 = vcombine.low %v537_v35, %v541_v36  ;;  %v6941_v33 = vcombine.high %v592_v27, %v596_v28  ;;  %v600_v35 = vld [vmem:[#allocation5 + $0x900] sm:$0xff] }
  0xf3   : > { %5075 = vmatprep.subr.bf16.mxu0 %v6829_v47  ;;  %5333 = vmatprep.subr.bf16.mxu1 %v6831_v48  ;;  %v6893_v47 = vcombine.high %v544_v41, %v548_v42  ;;  %v6895_v48 = vcombine.high %v545_v43, %v549_v44  ;;  %v604_v36 = vld [vmem:[#allocation5 + $0x920] sm:$0xff] }
  0xf6   : > { %5076 = vmatpush1.bf16.msra.mxu0 %v6828_v53  ;;  %5334 = vmatpush1.bf16.msra.mxu1 %v6830_v54  ;;  %v6892_v53 = vcombine.low %v544_v41, %v548_v42  ;;  %v6894_v54 = vcombine.low %v545_v43, %v549_v44  ;;  %v6949_v41 = vcombine.high %v600_v35, %v604_v36  ;;  %v608_v43 = vld [vmem:[#allocation5 + $0x940] sm:$0xff] }
  0xf7   : > { %5077 = vmatprep.subr.bf16.mxu0 %v6837_v55  ;;  %5335 = vmatprep.subr.bf16.mxu1 %v6839_v56  ;;  %v6901_v55 = vcombine.high %v552_v49, %v556_v50  ;;  %v6903_v56 = vcombine.high %v553_v51, %v557_v52  ;;  %v612_v44 = vld [vmem:[#allocation5 + $0x960] sm:$0xff] }
  0xfa   : > { %5078 = vmatpush1.bf16.msra.mxu0 %v6836_v61  ;;  %5336 = vmatpush1.bf16.msra.mxu1 %v6838_v62  ;;  %v6900_v61 = vcombine.low %v552_v49, %v556_v50  ;;  %v6902_v62 = vcombine.low %v553_v51, %v557_v52  ;;  %v6957_v49 = vcombine.high %v608_v43, %v612_v44  ;;  %v616_v51 = vld [vmem:[#allocation5 + $0x980] sm:$0xff] }
  0xfb   : > { %5079 = vmatprep.subr.bf16.mxu0 %v6845_v63  ;;  %5337 = vmatprep.subr.bf16.mxu1 %v6847_v0  ;;  %v6909_v63 = vcombine.high %v560_v57, %v564_v58  ;;  %v6911_v0 = vcombine.high %v561_v59, %v565_v60  ;;  %v620_v52 = vld [vmem:[#allocation5 + $0x9a0] sm:$0xff] }
  0xfe   : > { %5080 = vmatpush1.bf16.msra.mxu0 %v6844_v5  ;;  %5338 = vmatpush1.bf16.msra.mxu1 %v6846_v6  ;;  %v6908_v5 = vcombine.low %v560_v57, %v564_v58  ;;  %v6910_v6 = vcombine.low %v561_v59, %v565_v60  ;;  %v6965_v57 = vcombine.high %v616_v51, %v620_v52  ;;  %v624_v59 = vld [vmem:[#allocation5 + $0x9c0] sm:$0xff] }
  0xff   : > { %5081 = vmatprep.subr.bf16.mxu0 %v6853_v7  ;;  %5339 = vmatprep.subr.bf16.mxu1 %v6855_v8  ;;  %v6917_v7 = vcombine.high %v568_v1, %v572_v2  ;;  %v6919_v8 = vcombine.high %v569_v3, %v573_v4  ;;  %v628_v60 = vld [vmem:[#allocation5 + $0x9e0] sm:$0xff] }
 0x102   : > { %5082 = vmatpush1.bf16.msra.mxu0 %v6852_v13  ;;  %5340 = vmatpush1.bf16.msra.mxu1 %v6854_v14  ;;  %v581_v13 = vld [vmem:[#allocation5 + $0x868] sm:$0xff]  ;;  %v6916_v14 = vcombine.low %v568_v1, %v572_v2  ;;  %v6973_v1 = vcombine.high %v624_v59, %v628_v60 }
 0x103   : > { %5083 = vmatprep.subr.bf16.mxu0 %v6861_v15  ;;  %5341 = vmatprep.subr.bf16.mxu1 %v6863_v16  ;;  %v6918_v15 = vcombine.low %v569_v3, %v573_v4  ;;  %v6925_v16 = vcombine.high %v576_v9, %v580_v10  ;;  %v6927_v17 = vcombine.high %v577_v12, %v581_v13  ;;  %v632_v3 = vld [vmem:[#allocation5 + $0xa00] sm:$0xff] }
 0x104   : > { %v636_v4 = vld [vmem:[#allocation5 + $0xa20] sm:$0xff] }
 0x106   : > { %5084 = vmatpush1.bf16.msra.mxu0 %v6860_v21  ;;  %5342 = vmatpush1.bf16.msra.mxu1 %v6862_v22  ;;  %v585_v21 = vld [vmem:[#allocation5 + $0x888] sm:$0xff] }
 0x107   : > { %5085 = vmatprep.subr.bf16.mxu0 %v6869_v23  ;;  %5343 = vmatprep.subr.bf16.mxu1 %v6871_v24  ;;  %v589_v22 = vld [vmem:[#allocation5 + $0x8a8] sm:$0xff]  ;;  %v6924_v23 = vcombine.low %v576_v9, %v580_v10  ;;  %v6926_v24 = vcombine.low %v577_v12, %v581_v13  ;;  %v6981_v9 = vcombine.high %v632_v3, %v636_v4  ;;  %v644_v12 = vld [vmem:[#allocation5 + $0xa60] sm:$0xff] }
 0x108   : > { %v6935_v26 = vcombine.high %v585_v21, %v589_v22  ;;  %v641_v13 = vld [vmem:[#allocation5 + $0xa48] sm:$0xff] }
 0x10a   : > { %5086 = vmatpush1.bf16.msra.mxu0 %v6868_v29  ;;  %5344 = vmatpush1.bf16.msra.mxu1 %v6870_v30  ;;  %v593_v29 = vld [vmem:[#allocation5 + $0x8c8] sm:$0xff] }
 0x10b   : > { %5087 = vmatprep.subr.bf16.mxu0 %v6877_v31  ;;  %5345 = vmatprep.subr.bf16.mxu1 %v6879_v32  ;;  %v597_v30 = vld [vmem:[#allocation5 + $0x8e8] sm:$0xff]  ;;  %v6932_v31 = vcombine.low %v584_v18, %v588_v19  ;;  %v6934_v32 = vcombine.low %v585_v21, %v589_v22  ;;  %v648_v19 = vld [vmem:[#allocation5 + $0xa80] sm:$0xff] }
 0x10c   : > { %v6943_v34 = vcombine.high %v593_v29, %v597_v30  ;;  %v649_v21 = vld [vmem:[#allocation5 + $0xa88] sm:$0xff] }
 0x10d   : > { %v653_v22 = vld [vmem:[#allocation5 + $0xaa8] sm:$0xff] }
 0x10e   : > { %5088 = vmatpush1.bf16.msra.mxu0 %v6876_v37  ;;  %5346 = vmatpush1.bf16.msra.mxu1 %v6878_v38  ;;  %v601_v37 = vld [vmem:[#allocation5 + $0x908] sm:$0xff] }
 0x10f   : > { %5089 = vmatprep.subr.bf16.mxu0 %v6885_v39  ;;  %5347 = vmatprep.subr.bf16.mxu1 %v6887_v40  ;;  %v605_v38 = vld [vmem:[#allocation5 + $0x928] sm:$0xff]  ;;  %v6940_v39 = vcombine.low %v592_v27, %v596_v28  ;;  %v6942_v40 = vcombine.low %v593_v29, %v597_v30  ;;  %v656_v27 = vld [vmem:[#allocation5 + $0xac0] sm:$0xff] }
 0x110   : > { %v6951_v42 = vcombine.high %v601_v37, %v605_v38  ;;  %v660_v28 = vld [vmem:[#allocation5 + $0xae0] sm:$0xff]  ;;  %v657_v29 = vld [vmem:[#allocation5 + $0xac8] sm:$0xff] }
 0x111   : > { %v661_v30 = vld [vmem:[#allocation5 + $0xae8] sm:$0xff] }
 0x112   : > { %5090 = vmatpush1.bf16.msra.mxu0 %v6884_v45  ;;  %5348 = vmatpush1.bf16.msra.mxu1 %v6886_v46  ;;  %v609_v45 = vld [vmem:[#allocation5 + $0x948] sm:$0xff] }
 0x113   : > { %5091 = vmatprep.subr.bf16.mxu0 %v6893_v47  ;;  %5349 = vmatprep.subr.bf16.mxu1 %v6895_v48  ;;  %v613_v46 = vld [vmem:[#allocation5 + $0x968] sm:$0xff]  ;;  %v6948_v47 = vcombine.low %v600_v35, %v604_v36  ;;  %v6950_v48 = vcombine.low %v601_v37, %v605_v38  ;;  %v664_v35 = vld [vmem:[#allocation5 + $0xb00] sm:$0xff] }
 0x114   : > { %v6959_v50 = vcombine.high %v609_v45, %v613_v46  ;;  %v668_v36 = vld [vmem:[#allocation5 + $0xb20] sm:$0xff]  ;;  %v665_v37 = vld [vmem:[#allocation5 + $0xb08] sm:$0xff] }
 0x115   : > { %v669_v38 = vld [vmem:[#allocation5 + $0xb28] sm:$0xff] }
 0x116   : > { %5092 = vmatpush1.bf16.msra.mxu0 %v6892_v53  ;;  %5350 = vmatpush1.bf16.msra.mxu1 %v6894_v54  ;;  %v617_v53 = vld [vmem:[#allocation5 + $0x988] sm:$0xff] }
 0x117   : > { %5093 = vmatprep.subr.bf16.mxu0 %v6901_v55  ;;  %5351 = vmatprep.subr.bf16.mxu1 %v6903_v56  ;;  %v621_v54 = vld [vmem:[#allocation5 + $0x9a8] sm:$0xff]  ;;  %v6956_v55 = vcombine.low %v608_v43, %v612_v44  ;;  %v6958_v56 = vcombine.low %v609_v45, %v613_v46  ;;  %v672_v43 = vld [vmem:[#allocation5 + $0xb40] sm:$0xff] }
 0x118   : > { %v6967_v58 = vcombine.high %v617_v53, %v621_v54  ;;  %v676_v44 = vld [vmem:[#allocation5 + $0xb60] sm:$0xff]  ;;  %v673_v45 = vld [vmem:[#allocation5 + $0xb48] sm:$0xff] }
 0x119   : > { %v677_v46 = vld [vmem:[#allocation5 + $0xb68] sm:$0xff] }
 0x11a   : > { %5094 = vmatpush1.bf16.msra.mxu0 %v6900_v61  ;;  %5352 = vmatpush1.bf16.msra.mxu1 %v6902_v62  ;;  %v625_v61 = vld [vmem:[#allocation5 + $0x9c8] sm:$0xff] }
 0x11b   : > { %5095 = vmatprep.subr.bf16.mxu0 %v6909_v63  ;;  %5353 = vmatprep.subr.bf16.mxu1 %v6911_v0  ;;  %v629_v62 = vld [vmem:[#allocation5 + $0x9e8] sm:$0xff]  ;;  %v6964_v63 = vcombine.low %v616_v51, %v620_v52  ;;  %v6966_v0 = vcombine.low %v617_v53, %v621_v54  ;;  %v680_v51 = vld [vmem:[#allocation5 + $0xb80] sm:$0xff] }
 0x11c   : > { %v6975_v2 = vcombine.high %v625_v61, %v629_v62  ;;  %v684_v52 = vld [vmem:[#allocation5 + $0xba0] sm:$0xff]  ;;  %v681_v53 = vld [vmem:[#allocation5 + $0xb88] sm:$0xff] }
 0x11d   : > { %v685_v54 = vld [vmem:[#allocation5 + $0xba8] sm:$0xff] }
 0x11e   : > { %5096 = vmatpush1.bf16.msra.mxu0 %v6908_v5  ;;  %5354 = vmatpush1.bf16.msra.mxu1 %v6910_v6  ;;  %v633_v5 = vld [vmem:[#allocation5 + $0xa08] sm:$0xff] }
 0x11f   : > { %5108 = vmatprep.subr.bf16.mxu0 %v6917_v7  ;;  %5366 = vmatprep.subr.bf16.mxu1 %v6919_v8  ;;  %v637_v6 = vld [vmem:[#allocation5 + $0xa28] sm:$0xff]  ;;  %v6972_v7 = vcombine.low %v624_v59, %v628_v60  ;;  %v6974_v8 = vcombine.low %v625_v61, %v629_v62  ;;  %v688_v59 = vld [vmem:[#allocation5 + $0xbc0] sm:$0xff] }
 0x120   : > { %v6983_v10 = vcombine.high %v633_v5, %v637_v6  ;;  %v692_v60 = vld [vmem:[#allocation5 + $0xbe0] sm:$0xff]  ;;  %v689_v61 = vld [vmem:[#allocation5 + $0xbc8] sm:$0xff] }
 0x121   : > { %5098 = vmatmul.mubr.bf16.vlgmr.msra.gmra.mrb[0].mxu0 %v7914_v11  ;;  %5356 = vmatmul.mubr.bf16.vlgmr.msra.gmra.mrb[0].mxu1 %v7914_v11  ;;  %v640_v11 = vld [vmem:[#allocation5 + $0xa40] sm:$0xff]  ;;  %v693_v62 = vld [vmem:[#allocation5 + $0xbe8] sm:$0xff] }
 0x122   : > { %5109 = vmatpush1.bf16.msra.mxu0 %v6916_v14  ;;  %5367 = vmatpush1.bf16.msra.mxu1 %v6918_v15  ;;  %v645_v14 = vld [vmem:[#allocation5 + $0xa68] sm:$0xff]  ;;  %v6980_v15 = vcombine.low %v632_v3, %v636_v4  ;;  %v696_v3 = vld [vmem:[#allocation5 + $0xc00] sm:$0xff] }
 0x123   : > { %5110 = vmatprep.subr.bf16.mxu0 %v6925_v16  ;;  %5368 = vmatprep.subr.bf16.mxu1 %v6927_v17  ;;  %v6982_v16 = vcombine.low %v633_v5, %v637_v6  ;;  %v6989_v17 = vcombine.high %v640_v11, %v644_v12  ;;  %v6991_v18 = vcombine.high %v641_v13, %v645_v14  ;;  %v700_v4 = vld [vmem:[#allocation5 + $0xc20] sm:$0xff]  ;;  %v697_v5 = vld [vmem:[#allocation5 + $0xc08] sm:$0xff] }
 0x124   : > { %5140 = vmatprep.mubr.bf16.mxu0 %v7915_v20  ;;  %5398 = vmatprep.mubr.bf16.mxu1 %v7915_v20  ;;  %v652_v20 = vld [vmem:[#allocation5 + $0xaa0] sm:$0xff]  ;;  %v701_v6 = vld [vmem:[#allocation5 + $0xc28] sm:$0xff] }
 0x126   : > { %5111 = vmatpush1.bf16.msra.mxu0 %v6924_v23  ;;  %5369 = vmatpush1.bf16.msra.mxu1 %v6926_v24  ;;  %v6988_v23 = vcombine.low %v640_v11, %v644_v12  ;;  %v6990_v24 = vcombine.low %v641_v13, %v645_v14  ;;  %v704_v11 = vld [vmem:[#allocation5 + $0xc40] sm:$0xff]  ;;  %v705_v14 = vld [vmem:[#allocation5 + $0xc48] sm:$0xff] }
 0x127   : > { %5112 = vmatprep.subr.bf16.mxu0 %v6933_v25  ;;  %5370 = vmatprep.subr.bf16.mxu1 %v6935_v26  ;;  %v6997_v25 = vcombine.high %v648_v19, %v652_v20  ;;  %v6999_v26 = vcombine.high %v649_v21, %v653_v22  ;;  %v708_v12 = vld [vmem:[#allocation5 + $0xc60] sm:$0xff] }
 0x128   : > { %v7917_v13 = vld [vmem:[%s8413_s8 + $0x10] ss:$48 sps:$4 sm:$0xff]  }
 0x12a   : > { %5113 = vmatpush1.bf16.msra.mxu0 %v6932_v31  ;;  %5371 = vmatpush1.bf16.msra.mxu1 %v6934_v32  ;;  %v6996_v31 = vcombine.low %v648_v19, %v652_v20  ;;  %v6998_v32 = vcombine.low %v649_v21, %v653_v22  ;;  %v712_v20 = vld [vmem:[#allocation5 + $0xc80] sm:$0xff]  ;;  %v7918_v22 = vld [vmem:[%s8413_s8 + $0x1c] ss:$48 sps:$4 sm:$0xff]  }
 0x12b   : > { %5114 = vmatprep.subr.bf16.mxu0 %v6941_v33  ;;  %5372 = vmatprep.subr.bf16.mxu1 %v6943_v34  ;;  %v7005_v33 = vcombine.high %v656_v27, %v660_v28  ;;  %v7007_v34 = vcombine.high %v657_v29, %v661_v30  ;;  %v716_v21 = vld [vmem:[#allocation5 + $0xca0] sm:$0xff] }
 0x12e   : > { %5115 = vmatpush1.bf16.msra.mxu0 %v6940_v39  ;;  %5373 = vmatpush1.bf16.msra.mxu1 %v6942_v40  ;;  %v7004_v39 = vcombine.low %v656_v27, %v660_v28  ;;  %v7006_v40 = vcombine.low %v657_v29, %v661_v30  ;;  %v7061_v27 = vcombine.high %v712_v20, %v716_v21  ;;  %v720_v29 = vld [vmem:[#allocation5 + $0xcc0] sm:$0xff] }
 0x12f   : > { %5116 = vmatprep.subr.bf16.mxu0 %v6949_v41  ;;  %5374 = vmatprep.subr.bf16.mxu1 %v6951_v42  ;;  %v7013_v41 = vcombine.high %v664_v35, %v668_v36  ;;  %v7015_v42 = vcombine.high %v665_v37, %v669_v38  ;;  %v724_v30 = vld [vmem:[#allocation5 + $0xce0] sm:$0xff] }
 0x132   : > { %5117 = vmatpush1.bf16.msra.mxu0 %v6948_v47  ;;  %5375 = vmatpush1.bf16.msra.mxu1 %v6950_v48  ;;  %v7012_v47 = vcombine.low %v664_v35, %v668_v36  ;;  %v7014_v48 = vcombine.low %v665_v37, %v669_v38  ;;  %v7069_v35 = vcombine.high %v720_v29, %v724_v30  ;;  %v728_v37 = vld [vmem:[#allocation5 + $0xd00] sm:$0xff] }
 0x133   : > { %5118 = vmatprep.subr.bf16.mxu0 %v6957_v49  ;;  %5376 = vmatprep.subr.bf16.mxu1 %v6959_v50  ;;  %v7021_v49 = vcombine.high %v672_v43, %v676_v44  ;;  %v7023_v50 = vcombine.high %v673_v45, %v677_v46  ;;  %v732_v38 = vld [vmem:[#allocation5 + $0xd20] sm:$0xff] }
 0x136   : > { %5119 = vmatpush1.bf16.msra.mxu0 %v6956_v55  ;;  %5377 = vmatpush1.bf16.msra.mxu1 %v6958_v56  ;;  %v7020_v55 = vcombine.low %v672_v43, %v676_v44  ;;  %v7022_v56 = vcombine.low %v673_v45, %v677_v46  ;;  %v7077_v43 = vcombine.high %v728_v37, %v732_v38  ;;  %v736_v45 = vld [vmem:[#allocation5 + $0xd40] sm:$0xff] }
 0x137   : > { %5120 = vmatprep.subr.bf16.mxu0 %v6965_v57  ;;  %5378 = vmatprep.subr.bf16.mxu1 %v6967_v58  ;;  %v7029_v57 = vcombine.high %v680_v51, %v684_v52  ;;  %v7031_v58 = vcombine.high %v681_v53, %v685_v54  ;;  %v740_v46 = vld [vmem:[#allocation5 + $0xd60] sm:$0xff] }
 0x13a   : > { %5121 = vmatpush1.bf16.msra.mxu0 %v6964_v63  ;;  %5379 = vmatpush1.bf16.msra.mxu1 %v6966_v0  ;;  %v7028_v63 = vcombine.low %v680_v51, %v684_v52  ;;  %v7030_v0 = vcombine.low %v681_v53, %v685_v54  ;;  %v7085_v51 = vcombine.high %v736_v45, %v740_v46  ;;  %v744_v53 = vld [vmem:[#allocation5 + $0xd80] sm:$0xff] }
 0x13b   : > { %5122 = vmatprep.subr.bf16.mxu0 %v6973_v1  ;;  %5380 = vmatprep.subr.bf16.mxu1 %v6975_v2  ;;  %v7037_v1 = vcombine.high %v688_v59, %v692_v60  ;;  %v7039_v2 = vcombine.high %v689_v61, %v693_v62  ;;  %v748_v54 = vld [vmem:[#allocation5 + $0xda0] sm:$0xff] }
 0x13e   : > { %5123 = vmatpush1.bf16.msra.mxu0 %v6972_v7  ;;  %5381 = vmatpush1.bf16.msra.mxu1 %v6974_v8  ;;  %v7036_v7 = vcombine.low %v688_v59, %v692_v60  ;;  %v7038_v8 = vcombine.low %v689_v61, %v693_v62  ;;  %v7093_v59 = vcombine.high %v744_v53, %v748_v54  ;;  %v752_v61 = vld [vmem:[#allocation5 + $0xdc0] sm:$0xff] }
 0x13f   : > { %5124 = vmatprep.subr.bf16.mxu0 %v6981_v9  ;;  %5382 = vmatprep.subr.bf16.mxu1 %v6983_v10  ;;  %v7045_v9 = vcombine.high %v696_v3, %v700_v4  ;;  %v7047_v10 = vcombine.high %v697_v5, %v701_v6  ;;  %v756_v62 = vld [vmem:[#allocation5 + $0xde0] sm:$0xff] }
 0x142   : > { %5125 = vmatpush1.bf16.msra.mxu0 %v6980_v15  ;;  %5383 = vmatpush1.bf16.msra.mxu1 %v6982_v16  ;;  %v709_v15 = vld [vmem:[#allocation5 + $0xc68] sm:$0xff]  ;;  %v7044_v16 = vcombine.low %v696_v3, %v700_v4  ;;  %v7101_v3 = vcombine.high %v752_v61, %v756_v62 }
 0x143   : > { %5126 = vmatprep.subr.bf16.mxu0 %v6989_v17  ;;  %5384 = vmatprep.subr.bf16.mxu1 %v6991_v18  ;;  %v7046_v17 = vcombine.low %v697_v5, %v701_v6  ;;  %v7053_v18 = vcombine.high %v704_v11, %v708_v12  ;;  %v7055_v19 = vcombine.high %v705_v14, %v709_v15  ;;  %v760_v5 = vld [vmem:[#allocation5 + $0xe00] sm:$0xff] }
 0x144   : > { %v764_v6 = vld [vmem:[#allocation5 + $0xe20] sm:$0xff] }
 0x146   : > { %5127 = vmatpush1.bf16.msra.mxu0 %v6988_v23  ;;  %5385 = vmatpush1.bf16.msra.mxu1 %v6990_v24  ;;  %v713_v23 = vld [vmem:[#allocation5 + $0xc88] sm:$0xff] }
 0x147   : > { %5128 = vmatprep.subr.bf16.mxu0 %v6997_v25  ;;  %5386 = vmatprep.subr.bf16.mxu1 %v6999_v26  ;;  %v717_v24 = vld [vmem:[#allocation5 + $0xca8] sm:$0xff]  ;;  %v7052_v25 = vcombine.low %v704_v11, %v708_v12  ;;  %v7054_v26 = vcombine.low %v705_v14, %v709_v15  ;;  %v7109_v11 = vcombine.high %v760_v5, %v764_v6  ;;  %v772_v14 = vld [vmem:[#allocation5 + $0xe60] sm:$0xff] }
 0x148   : > { %v7063_v28 = vcombine.high %v713_v23, %v717_v24  ;;  %v769_v15 = vld [vmem:[#allocation5 + $0xe48] sm:$0xff] }
 0x14a   : > { %5129 = vmatpush1.bf16.msra.mxu0 %v6996_v31  ;;  %5387 = vmatpush1.bf16.msra.mxu1 %v6998_v32  ;;  %v721_v31 = vld [vmem:[#allocation5 + $0xcc8] sm:$0xff] }
 0x14b   : > { %5130 = vmatprep.subr.bf16.mxu0 %v7005_v33  ;;  %5388 = vmatprep.subr.bf16.mxu1 %v7007_v34  ;;  %v725_v32 = vld [vmem:[#allocation5 + $0xce8] sm:$0xff]  ;;  %v7060_v33 = vcombine.low %v712_v20, %v716_v21  ;;  %v7062_v34 = vcombine.low %v713_v23, %v717_v24  ;;  %v776_v21 = vld [vmem:[#allocation5 + $0xe80] sm:$0xff] }
 0x14c   : > { %v7071_v36 = vcombine.high %v721_v31, %v725_v32  ;;  %v777_v23 = vld [vmem:[#allocation5 + $0xe88] sm:$0xff] }
 0x14d   : > { %v781_v24 = vld [vmem:[#allocation5 + $0xea8] sm:$0xff] }
 0x14e   : > { %5131 = vmatpush1.bf16.msra.mxu0 %v7004_v39  ;;  %5389 = vmatpush1.bf16.msra.mxu1 %v7006_v40  ;;  %v729_v39 = vld [vmem:[#allocation5 + $0xd08] sm:$0xff] }
 0x14f   : > { %5132 = vmatprep.subr.bf16.mxu0 %v7013_v41  ;;  %5390 = vmatprep.subr.bf16.mxu1 %v7015_v42  ;;  %v733_v40 = vld [vmem:[#allocation5 + $0xd28] sm:$0xff]  ;;  %v7068_v41 = vcombine.low %v720_v29, %v724_v30  ;;  %v7070_v42 = vcombine.low %v721_v31, %v725_v32  ;;  %v784_v29 = vld [vmem:[#allocation5 + $0xec0] sm:$0xff] }
 0x150   : > { %v7079_v44 = vcombine.high %v729_v39, %v733_v40  ;;  %v788_v30 = vld [vmem:[#allocation5 + $0xee0] sm:$0xff]  ;;  %v785_v31 = vld [vmem:[#allocation5 + $0xec8] sm:$0xff] }
 0x151   : > { %v789_v32 = vld [vmem:[#allocation5 + $0xee8] sm:$0xff] }
 0x152   : > { %5133 = vmatpush1.bf16.msra.mxu0 %v7012_v47  ;;  %5391 = vmatpush1.bf16.msra.mxu1 %v7014_v48  ;;  %v737_v47 = vld [vmem:[#allocation5 + $0xd48] sm:$0xff] }
 0x153   : > { %5134 = vmatprep.subr.bf16.mxu0 %v7021_v49  ;;  %5392 = vmatprep.subr.bf16.mxu1 %v7023_v50  ;;  %v741_v48 = vld [vmem:[#allocation5 + $0xd68] sm:$0xff]  ;;  %v7076_v49 = vcombine.low %v728_v37, %v732_v38  ;;  %v7078_v50 = vcombine.low %v729_v39, %v733_v40  ;;  %v792_v37 = vld [vmem:[#allocation5 + $0xf00] sm:$0xff] }
 0x154   : > { %v7087_v52 = vcombine.high %v737_v47, %v741_v48  ;;  %v796_v38 = vld [vmem:[#allocation5 + $0xf20] sm:$0xff]  ;;  %v793_v39 = vld [vmem:[#allocation5 + $0xf08] sm:$0xff] }
 0x155   : > { %v797_v40 = vld [vmem:[#allocation5 + $0xf28] sm:$0xff] }
 0x156   : > { %5135 = vmatpush1.bf16.msra.mxu0 %v7020_v55  ;;  %5393 = vmatpush1.bf16.msra.mxu1 %v7022_v56  ;;  %v745_v55 = vld [vmem:[#allocation5 + $0xd88] sm:$0xff] }
 0x157   : > { %5136 = vmatprep.subr.bf16.mxu0 %v7029_v57  ;;  %5394 = vmatprep.subr.bf16.mxu1 %v7031_v58  ;;  %v749_v56 = vld [vmem:[#allocation5 + $0xda8] sm:$0xff]  ;;  %v7084_v57 = vcombine.low %v736_v45, %v740_v46  ;;  %v7086_v58 = vcombine.low %v737_v47, %v741_v48  ;;  %v800_v45 = vld [vmem:[#allocation5 + $0xf40] sm:$0xff] }
 0x158   : > { %v7095_v60 = vcombine.high %v745_v55, %v749_v56  ;;  %v804_v46 = vld [vmem:[#allocation5 + $0xf60] sm:$0xff]  ;;  %v801_v47 = vld [vmem:[#allocation5 + $0xf48] sm:$0xff] }
 0x159   : > { %v805_v48 = vld [vmem:[#allocation5 + $0xf68] sm:$0xff] }
 0x15a   : > { %5137 = vmatpush1.bf16.msra.mxu0 %v7028_v63  ;;  %5395 = vmatpush1.bf16.msra.mxu1 %v7030_v0  ;;  %v753_v63 = vld [vmem:[#allocation5 + $0xdc8] sm:$0xff] }
 0x15b   : > { %5138 = vmatprep.subr.bf16.mxu0 %v7037_v1  ;;  %5396 = vmatprep.subr.bf16.mxu1 %v7039_v2  ;;  %v757_v0 = vld [vmem:[#allocation5 + $0xde8] sm:$0xff]  ;;  %v7092_v1 = vcombine.low %v744_v53, %v748_v54  ;;  %v7094_v2 = vcombine.low %v745_v55, %v749_v56  ;;  %v808_v53 = vld [vmem:[#allocation5 + $0xf80] sm:$0xff] }
 0x15c   : > { %v7103_v4 = vcombine.high %v753_v63, %v757_v0  ;;  %v812_v54 = vld [vmem:[#allocation5 + $0xfa0] sm:$0xff]  ;;  %v809_v55 = vld [vmem:[#allocation5 + $0xf88] sm:$0xff] }
 0x15d   : > { %v813_v56 = vld [vmem:[#allocation5 + $0xfa8] sm:$0xff] }
 0x15e   : > { %5139 = vmatpush1.bf16.msra.mxu0 %v7036_v7  ;;  %5397 = vmatpush1.bf16.msra.mxu1 %v7038_v8  ;;  %v761_v7 = vld [vmem:[#allocation5 + $0xe08] sm:$0xff] }
 0x15f   : > { %5151 = vmatprep.subr.bf16.mxu0 %v7045_v9  ;;  %5409 = vmatprep.subr.bf16.mxu1 %v7047_v10  ;;  %v765_v8 = vld [vmem:[#allocation5 + $0xe28] sm:$0xff]  ;;  %v7100_v9 = vcombine.low %v752_v61, %v756_v62  ;;  %v7102_v10 = vcombine.low %v753_v63, %v757_v0  ;;  %v816_v61 = vld [vmem:[#allocation5 + $0xfc0] sm:$0xff] }
 0x160   : > { %v7111_v12 = vcombine.high %v761_v7, %v765_v8  ;;  %v820_v62 = vld [vmem:[#allocation5 + $0xfe0] sm:$0xff]  ;;  %v817_v63 = vld [vmem:[#allocation5 + $0xfc8] sm:$0xff] }
 0x161   : > { %5141 = vmatmul.mubr.bf16.vlgmr.msra.gmra.mrb[0].mxu0 %v7917_v13  ;;  %5399 = vmatmul.mubr.bf16.vlgmr.msra.gmra.mrb[0].mxu1 %v7917_v13  ;;  %v768_v13 = vld [vmem:[#allocation5 + $0xe40] sm:$0xff]  ;;  %v821_v0 = vld [vmem:[#allocation5 + $0xfe8] sm:$0xff] }
 0x162   : > { %5152 = vmatpush1.bf16.msra.mxu0 %v7044_v16  ;;  %5410 = vmatpush1.bf16.msra.mxu1 %v7046_v17  ;;  %v773_v16 = vld [vmem:[#allocation5 + $0xe68] sm:$0xff]  ;;  %v7108_v17 = vcombine.low %v760_v5, %v764_v6  ;;  %v824_v5 = vld [vmem:[#allocation5 + $0x1000] sm:$0xff] }
 0x163   : > { %5153 = vmatprep.subr.bf16.mxu0 %v7053_v18  ;;  %5411 = vmatprep.subr.bf16.mxu1 %v7055_v19  ;;  %v7110_v18 = vcombine.low %v761_v7, %v765_v8  ;;  %v7117_v19 = vcombine.high %v768_v13, %v772_v14  ;;  %v7119_v20 = vcombine.high %v769_v15, %v773_v16  ;;  %v828_v6 = vld [vmem:[#allocation5 + $0x1020] sm:$0xff]  ;;  %v825_v7 = vld [vmem:[#allocation5 + $0x1008] sm:$0xff] }
 0x164   : > { %5183 = vmatprep.mubr.bf16.mxu0 %v7918_v22  ;;  %5441 = vmatprep.mubr.bf16.mxu1 %v7918_v22  ;;  %v780_v22 = vld [vmem:[#allocation5 + $0xea0] sm:$0xff]  ;;  %v829_v8 = vld [vmem:[#allocation5 + $0x1028] sm:$0xff] }
 0x166   : > { %5154 = vmatpush1.bf16.msra.mxu0 %v7052_v25  ;;  %5412 = vmatpush1.bf16.msra.mxu1 %v7054_v26  ;;  %v7116_v25 = vcombine.low %v768_v13, %v772_v14  ;;  %v7118_v26 = vcombine.low %v769_v15, %v773_v16  ;;  %v832_v13 = vld [vmem:[#allocation5 + $0x1040] sm:$0xff]  ;;  %v7920_v15 = vld [vmem:[%s8413_s8 + $0x18] ss:$48 sps:$4 sm:$0xff]  }
 0x167   : > { %5155 = vmatprep.subr.bf16.mxu0 %v7061_v27  ;;  %5413 = vmatprep.subr.bf16.mxu1 %v7063_v28  ;;  %v7125_v27 = vcombine.high %v776_v21, %v780_v22  ;;  %v7127_v28 = vcombine.high %v777_v23, %v781_v24  ;;  %v836_v14 = vld [vmem:[#allocation5 + $0x1060] sm:$0xff]  ;;  %v833_v16 = vld [vmem:[#allocation5 + $0x1048] sm:$0xff] }
 0x16a   : > { %5156 = vmatpush1.bf16.msra.mxu0 %v7060_v33  ;;  %5414 = vmatpush1.bf16.msra.mxu1 %v7062_v34  ;;  %v7124_v33 = vcombine.low %v776_v21, %v780_v22  ;;  %v7126_v34 = vcombine.low %v777_v23, %v781_v24  ;;  %v840_v22 = vld [vmem:[#allocation5 + $0x1080] sm:$0xff] }
 0x16b   : > { %5157 = vmatprep.subr.bf16.mxu0 %v7069_v35  ;;  %5415 = vmatprep.subr.bf16.mxu1 %v7071_v36  ;;  %v7133_v35 = vcombine.high %v784_v29, %v788_v30  ;;  %v7135_v36 = vcombine.high %v785_v31, %v789_v32  ;;  %v844_v23 = vld [vmem:[#allocation5 + $0x10a0] sm:$0xff] }
 0x16c   : > { %v7921_v24 = vld [vmem:[%s8413_s8 + $0x24] ss:$48 sps:$4 sm:$0xff]  }
 0x16e   : > { %5158 = vmatpush1.bf16.msra.mxu0 %v7068_v41  ;;  %5416 = vmatpush1.bf16.msra.mxu1 %v7070_v42  ;;  %v7132_v41 = vcombine.low %v784_v29, %v788_v30  ;;  %v7134_v42 = vcombine.low %v785_v31, %v789_v32  ;;  %v7189_v29 = vcombine.high %v840_v22, %v844_v23  ;;  %v848_v31 = vld [vmem:[#allocation5 + $0x10c0] sm:$0xff] }
 0x16f   : > { %5159 = vmatprep.subr.bf16.mxu0 %v7077_v43  ;;  %5417 = vmatprep.subr.bf16.mxu1 %v7079_v44  ;;  %v7141_v43 = vcombine.high %v792_v37, %v796_v38  ;;  %v7143_v44 = vcombine.high %v793_v39, %v797_v40  ;;  %v852_v32 = vld [vmem:[#allocation5 + $0x10e0] sm:$0xff] }
 0x172   : > { %5160 = vmatpush1.bf16.msra.mxu0 %v7076_v49  ;;  %5418 = vmatpush1.bf16.msra.mxu1 %v7078_v50  ;;  %v7140_v49 = vcombine.low %v792_v37, %v796_v38  ;;  %v7142_v50 = vcombine.low %v793_v39, %v797_v40  ;;  %v7197_v37 = vcombine.high %v848_v31, %v852_v32  ;;  %v856_v39 = vld [vmem:[#allocation5 + $0x1100] sm:$0xff] }
 0x173   : > { %5161 = vmatprep.subr.bf16.mxu0 %v7085_v51  ;;  %5419 = vmatprep.subr.bf16.mxu1 %v7087_v52  ;;  %v7149_v51 = vcombine.high %v800_v45, %v804_v46  ;;  %v7151_v52 = vcombine.high %v801_v47, %v805_v48  ;;  %v860_v40 = vld [vmem:[#allocation5 + $0x1120] sm:$0xff] }
 0x176   : > { %5162 = vmatpush1.bf16.msra.mxu0 %v7084_v57  ;;  %5420 = vmatpush1.bf16.msra.mxu1 %v7086_v58  ;;  %v7148_v57 = vcombine.low %v800_v45, %v804_v46  ;;  %v7150_v58 = vcombine.low %v801_v47, %v805_v48  ;;  %v7205_v45 = vcombine.high %v856_v39, %v860_v40  ;;  %v864_v47 = vld [vmem:[#allocation5 + $0x1140] sm:$0xff] }
 0x177   : > { %5163 = vmatprep.subr.bf16.mxu0 %v7093_v59  ;;  %5421 = vmatprep.subr.bf16.mxu1 %v7095_v60  ;;  %v7157_v59 = vcombine.high %v808_v53, %v812_v54  ;;  %v7159_v60 = vcombine.high %v809_v55, %v813_v56  ;;  %v868_v48 = vld [vmem:[#allocation5 + $0x1160] sm:$0xff] }
 0x17a   : > { %5164 = vmatpush1.bf16.msra.mxu0 %v7092_v1  ;;  %5422 = vmatpush1.bf16.msra.mxu1 %v7094_v2  ;;  %v7156_v1 = vcombine.low %v808_v53, %v812_v54  ;;  %v7158_v2 = vcombine.low %v809_v55, %v813_v56  ;;  %v7213_v53 = vcombine.high %v864_v47, %v868_v48  ;;  %v872_v55 = vld [vmem:[#allocation5 + $0x1180] sm:$0xff] }
 0x17b   : > { %5165 = vmatprep.subr.bf16.mxu0 %v7101_v3  ;;  %5423 = vmatprep.subr.bf16.mxu1 %v7103_v4  ;;  %v7165_v3 = vcombine.high %v816_v61, %v820_v62  ;;  %v7167_v4 = vcombine.high %v817_v63, %v821_v0  ;;  %v876_v56 = vld [vmem:[#allocation5 + $0x11a0] sm:$0xff] }
 0x17e   : > { %5166 = vmatpush1.bf16.msra.mxu0 %v7100_v9  ;;  %5424 = vmatpush1.bf16.msra.mxu1 %v7102_v10  ;;  %v7164_v9 = vcombine.low %v816_v61, %v820_v62  ;;  %v7166_v10 = vcombine.low %v817_v63, %v821_v0  ;;  %v7221_v61 = vcombine.high %v872_v55, %v876_v56  ;;  %v880_v63 = vld [vmem:[#allocation5 + $0x11c0] sm:$0xff] }
 0x17f   : > { %5167 = vmatprep.subr.bf16.mxu0 %v7109_v11  ;;  %5425 = vmatprep.subr.bf16.mxu1 %v7111_v12  ;;  %v7173_v11 = vcombine.high %v824_v5, %v828_v6  ;;  %v7175_v12 = vcombine.high %v825_v7, %v829_v8  ;;  %v884_v0 = vld [vmem:[#allocation5 + $0x11e0] sm:$0xff] }
 0x182   : > { %5168 = vmatpush1.bf16.msra.mxu0 %v7108_v17  ;;  %5426 = vmatpush1.bf16.msra.mxu1 %v7110_v18  ;;  %v837_v17 = vld [vmem:[#allocation5 + $0x1068] sm:$0xff]  ;;  %v7172_v18 = vcombine.low %v824_v5, %v828_v6  ;;  %v7229_v5 = vcombine.high %v880_v63, %v884_v0 }
 0x183   : > { %5169 = vmatprep.subr.bf16.mxu0 %v7117_v19  ;;  %5427 = vmatprep.subr.bf16.mxu1 %v7119_v20  ;;  %v7174_v19 = vcombine.low %v825_v7, %v829_v8  ;;  %v7181_v20 = vcombine.high %v832_v13, %v836_v14  ;;  %v7183_v21 = vcombine.high %v833_v16, %v837_v17  ;;  %v888_v7 = vld [vmem:[#allocation5 + $0x1200] sm:$0xff] }
 0x184   : > { %v892_v8 = vld [vmem:[#allocation5 + $0x1220] sm:$0xff] }
 0x186   : > { %5170 = vmatpush1.bf16.msra.mxu0 %v7116_v25  ;;  %5428 = vmatpush1.bf16.msra.mxu1 %v7118_v26  ;;  %v841_v25 = vld [vmem:[#allocation5 + $0x1088] sm:$0xff] }
 0x187   : > { %5171 = vmatprep.subr.bf16.mxu0 %v7125_v27  ;;  %5429 = vmatprep.subr.bf16.mxu1 %v7127_v28  ;;  %v845_v26 = vld [vmem:[#allocation5 + $0x10a8] sm:$0xff]  ;;  %v7180_v27 = vcombine.low %v832_v13, %v836_v14  ;;  %v7182_v28 = vcombine.low %v833_v16, %v837_v17  ;;  %v7237_v13 = vcombine.high %v888_v7, %v892_v8  ;;  %v900_v16 = vld [vmem:[#allocation5 + $0x1260] sm:$0xff] }
 0x188   : > { %v7191_v30 = vcombine.high %v841_v25, %v845_v26  ;;  %v897_v17 = vld [vmem:[#allocation5 + $0x1248] sm:$0xff] }
 0x18a   : > { %5172 = vmatpush1.bf16.msra.mxu0 %v7124_v33  ;;  %5430 = vmatpush1.bf16.msra.mxu1 %v7126_v34  ;;  %v849_v33 = vld [vmem:[#allocation5 + $0x10c8] sm:$0xff] }
 0x18b   : > { %5173 = vmatprep.subr.bf16.mxu0 %v7133_v35  ;;  %5431 = vmatprep.subr.bf16.mxu1 %v7135_v36  ;;  %v853_v34 = vld [vmem:[#allocation5 + $0x10e8] sm:$0xff]  ;;  %v7188_v35 = vcombine.low %v840_v22, %v844_v23  ;;  %v7190_v36 = vcombine.low %v841_v25, %v845_v26  ;;  %v904_v23 = vld [vmem:[#allocation5 + $0x1280] sm:$0xff] }
 0x18c   : > { %v7199_v38 = vcombine.high %v849_v33, %v853_v34  ;;  %v905_v25 = vld [vmem:[#allocation5 + $0x1288] sm:$0xff] }
 0x18d   : > { %v909_v26 = vld [vmem:[#allocation5 + $0x12a8] sm:$0xff] }
 0x18e   : > { %5174 = vmatpush1.bf16.msra.mxu0 %v7132_v41  ;;  %5432 = vmatpush1.bf16.msra.mxu1 %v7134_v42  ;;  %v857_v41 = vld [vmem:[#allocation5 + $0x1108] sm:$0xff] }
 0x18f   : > { %5175 = vmatprep.subr.bf16.mxu0 %v7141_v43  ;;  %5433 = vmatprep.subr.bf16.mxu1 %v7143_v44  ;;  %v861_v42 = vld [vmem:[#allocation5 + $0x1128] sm:$0xff]  ;;  %v7196_v43 = vcombine.low %v848_v31, %v852_v32  ;;  %v7198_v44 = vcombine.low %v849_v33, %v853_v34  ;;  %v912_v31 = vld [vmem:[#allocation5 + $0x12c0] sm:$0xff] }
 0x190   : > { %v7207_v46 = vcombine.high %v857_v41, %v861_v42  ;;  %v916_v32 = vld [vmem:[#allocation5 + $0x12e0] sm:$0xff]  ;;  %v913_v33 = vld [vmem:[#allocation5 + $0x12c8] sm:$0xff] }
 0x191   : > { %v917_v34 = vld [vmem:[#allocation5 + $0x12e8] sm:$0xff] }
 0x192   : > { %5176 = vmatpush1.bf16.msra.mxu0 %v7140_v49  ;;  %5434 = vmatpush1.bf16.msra.mxu1 %v7142_v50  ;;  %v865_v49 = vld [vmem:[#allocation5 + $0x1148] sm:$0xff] }
 0x193   : > { %5177 = vmatprep.subr.bf16.mxu0 %v7149_v51  ;;  %5435 = vmatprep.subr.bf16.mxu1 %v7151_v52  ;;  %v869_v50 = vld [vmem:[#allocation5 + $0x1168] sm:$0xff]  ;;  %v7204_v51 = vcombine.low %v856_v39, %v860_v40  ;;  %v7206_v52 = vcombine.low %v857_v41, %v861_v42  ;;  %v920_v39 = vld [vmem:[#allocation5 + $0x1300] sm:$0xff] }
 0x194   : > { %v7215_v54 = vcombine.high %v865_v49, %v869_v50  ;;  %v924_v40 = vld [vmem:[#allocation5 + $0x1320] sm:$0xff]  ;;  %v921_v41 = vld [vmem:[#allocation5 + $0x1308] sm:$0xff] }
 0x195   : > { %v925_v42 = vld [vmem:[#allocation5 + $0x1328] sm:$0xff] }
 0x196   : > { %5178 = vmatpush1.bf16.msra.mxu0 %v7148_v57  ;;  %5436 = vmatpush1.bf16.msra.mxu1 %v7150_v58  ;;  %v873_v57 = vld [vmem:[#allocation5 + $0x1188] sm:$0xff] }
 0x197   : > { %5179 = vmatprep.subr.bf16.mxu0 %v7157_v59  ;;  %5437 = vmatprep.subr.bf16.mxu1 %v7159_v60  ;;  %v877_v58 = vld [vmem:[#allocation5 + $0x11a8] sm:$0xff]  ;;  %v7212_v59 = vcombine.low %v864_v47, %v868_v48  ;;  %v7214_v60 = vcombine.low %v865_v49, %v869_v50  ;;  %v928_v47 = vld [vmem:[#allocation5 + $0x1340] sm:$0xff] }
 0x198   : > { %v7223_v62 = vcombine.high %v873_v57, %v877_v58  ;;  %v932_v48 = vld [vmem:[#allocation5 + $0x1360] sm:$0xff]  ;;  %v929_v49 = vld [vmem:[#allocation5 + $0x1348] sm:$0xff] }
 0x199   : > { %v933_v50 = vld [vmem:[#allocation5 + $0x1368] sm:$0xff] }
 0x19a   : > { %5180 = vmatpush1.bf16.msra.mxu0 %v7156_v1  ;;  %5438 = vmatpush1.bf16.msra.mxu1 %v7158_v2  ;;  %v881_v1 = vld [vmem:[#allocation5 + $0x11c8] sm:$0xff] }
 0x19b   : > { %5181 = vmatprep.subr.bf16.mxu0 %v7165_v3  ;;  %5439 = vmatprep.subr.bf16.mxu1 %v7167_v4  ;;  %v885_v2 = vld [vmem:[#allocation5 + $0x11e8] sm:$0xff]  ;;  %v7220_v3 = vcombine.low %v872_v55, %v876_v56  ;;  %v7222_v4 = vcombine.low %v873_v57, %v877_v58  ;;  %v936_v55 = vld [vmem:[#allocation5 + $0x1380] sm:$0xff] }
 0x19c   : > { %v7231_v6 = vcombine.high %v881_v1, %v885_v2  ;;  %v940_v56 = vld [vmem:[#allocation5 + $0x13a0] sm:$0xff]  ;;  %v937_v57 = vld [vmem:[#allocation5 + $0x1388] sm:$0xff] }
 0x19d   : > { %v941_v58 = vld [vmem:[#allocation5 + $0x13a8] sm:$0xff] }
 0x19e   : > { %5182 = vmatpush1.bf16.msra.mxu0 %v7164_v9  ;;  %5440 = vmatpush1.bf16.msra.mxu1 %v7166_v10  ;;  %v889_v9 = vld [vmem:[#allocation5 + $0x1208] sm:$0xff] }
 0x19f   : > { %5194 = vmatprep.subr.bf16.mxu0 %v7173_v11  ;;  %5452 = vmatprep.subr.bf16.mxu1 %v7175_v12  ;;  %v893_v10 = vld [vmem:[#allocation5 + $0x1228] sm:$0xff]  ;;  %v7228_v11 = vcombine.low %v880_v63, %v884_v0  ;;  %v7230_v12 = vcombine.low %v881_v1, %v885_v2  ;;  %v944_v63 = vld [vmem:[#allocation5 + $0x13c0] sm:$0xff] }
 0x1a0   : > { %v7239_v14 = vcombine.high %v889_v9, %v893_v10  ;;  %v948_v0 = vld [vmem:[#allocation5 + $0x13e0] sm:$0xff]  ;;  %v945_v1 = vld [vmem:[#allocation5 + $0x13c8] sm:$0xff] }
 0x1a1   : > { %5184 = vmatmul.mubr.bf16.vlgmr.msra.gmra.mrb[0].mxu0 %v7920_v15  ;;  %5442 = vmatmul.mubr.bf16.vlgmr.msra.gmra.mrb[0].mxu1 %v7920_v15  ;;  %v896_v15 = vld [vmem:[#allocation5 + $0x1240] sm:$0xff]  ;;  %v949_v2 = vld [vmem:[#allocation5 + $0x13e8] sm:$0xff] }
 0x1a2   : > { %5195 = vmatpush1.bf16.msra.mxu0 %v7172_v18  ;;  %5453 = vmatpush1.bf16.msra.mxu1 %v7174_v19  ;;  %v901_v18 = vld [vmem:[#allocation5 + $0x1268] sm:$0xff]  ;;  %v7236_v19 = vcombine.low %v888_v7, %v892_v8  ;;  %v952_v7 = vld [vmem:[#allocation5 + $0x1400] sm:$0xff] }
 0x1a3   : > { %5196 = vmatprep.subr.bf16.mxu0 %v7181_v20  ;;  %5454 = vmatprep.subr.bf16.mxu1 %v7183_v21  ;;  %v7238_v20 = vcombine.low %v889_v9, %v893_v10  ;;  %v7245_v21 = vcombine.high %v896_v15, %v900_v16  ;;  %v7247_v22 = vcombine.high %v897_v17, %v901_v18  ;;  %v956_v8 = vld [vmem:[#allocation5 + $0x1420] sm:$0xff]  ;;  %v953_v9 = vld [vmem:[#allocation5 + $0x1408] sm:$0xff] }
 0x1a4   : > { %5226 = vmatprep.mubr.bf16.mxu0 %v7921_v24  ;;  %5484 = vmatprep.mubr.bf16.mxu1 %v7921_v24  ;;  %v908_v24 = vld [vmem:[#allocation5 + $0x12a0] sm:$0xff]  ;;  %v957_v10 = vld [vmem:[#allocation5 + $0x1428] sm:$0xff] }
 0x1a6   : > { %5197 = vmatpush1.bf16.msra.mxu0 %v7180_v27  ;;  %5455 = vmatpush1.bf16.msra.mxu1 %v7182_v28  ;;  %v7244_v27 = vcombine.low %v896_v15, %v900_v16  ;;  %v7246_v28 = vcombine.low %v897_v17, %v901_v18  ;;  %v960_v15 = vld [vmem:[#allocation5 + $0x1440] sm:$0xff]  ;;  %v961_v18 = vld [vmem:[#allocation5 + $0x1448] sm:$0xff] }
 0x1a7   : > { %5198 = vmatprep.subr.bf16.mxu0 %v7189_v29  ;;  %5456 = vmatprep.subr.bf16.mxu1 %v7191_v30  ;;  %v7253_v29 = vcombine.high %v904_v23, %v908_v24  ;;  %v7255_v30 = vcombine.high %v905_v25, %v909_v26  ;;  %v964_v16 = vld [vmem:[#allocation5 + $0x1460] sm:$0xff] }
 0x1a8   : > { %v7923_v17 = vld [vmem:[%s8413_s8 + $0x20] ss:$48 sps:$4 sm:$0xff]  }
 0x1aa   : > { %5199 = vmatpush1.bf16.msra.mxu0 %v7188_v35  ;;  %5457 = vmatpush1.bf16.msra.mxu1 %v7190_v36  ;;  %v7252_v35 = vcombine.low %v904_v23, %v908_v24  ;;  %v7254_v36 = vcombine.low %v905_v25, %v909_v26  ;;  %v968_v24 = vld [vmem:[#allocation5 + $0x1480] sm:$0xff]  ;;  %v7924_v26 = vld [vmem:[%s8413_s8 + $0x2c] ss:$48 sps:$4 sm:$0xff]  }
 0x1ab   : > { %5200 = vmatprep.subr.bf16.mxu0 %v7197_v37  ;;  %5458 = vmatprep.subr.bf16.mxu1 %v7199_v38  ;;  %v7261_v37 = vcombine.high %v912_v31, %v916_v32  ;;  %v7263_v38 = vcombine.high %v913_v33, %v917_v34  ;;  %v972_v25 = vld [vmem:[#allocation5 + $0x14a0] sm:$0xff] }
 0x1ae   : > { %5201 = vmatpush1.bf16.msra.mxu0 %v7196_v43  ;;  %5459 = vmatpush1.bf16.msra.mxu1 %v7198_v44  ;;  %v7260_v43 = vcombine.low %v912_v31, %v916_v32  ;;  %v7262_v44 = vcombine.low %v913_v33, %v917_v34  ;;  %v7317_v31 = vcombine.high %v968_v24, %v972_v25  ;;  %v976_v33 = vld [vmem:[#allocation5 + $0x14c0] sm:$0xff] }
 0x1af   : > { %5202 = vmatprep.subr.bf16.mxu0 %v7205_v45  ;;  %5460 = vmatprep.subr.bf16.mxu1 %v7207_v46  ;;  %v7269_v45 = vcombine.high %v920_v39, %v924_v40  ;;  %v7271_v46 = vcombine.high %v921_v41, %v925_v42  ;;  %v980_v34 = vld [vmem:[#allocation5 + $0x14e0] sm:$0xff] }
 0x1b2   : > { %5203 = vmatpush1.bf16.msra.mxu0 %v7204_v51  ;;  %5461 = vmatpush1.bf16.msra.mxu1 %v7206_v52  ;;  %v7268_v51 = vcombine.low %v920_v39, %v924_v40  ;;  %v7270_v52 = vcombine.low %v921_v41, %v925_v42  ;;  %v7325_v39 = vcombine.high %v976_v33, %v980_v34  ;;  %v984_v41 = vld [vmem:[#allocation5 + $0x1500] sm:$0xff] }
 0x1b3   : > { %5204 = vmatprep.subr.bf16.mxu0 %v7213_v53  ;;  %5462 = vmatprep.subr.bf16.mxu1 %v7215_v54  ;;  %v7277_v53 = vcombine.high %v928_v47, %v932_v48  ;;  %v7279_v54 = vcombine.high %v929_v49, %v933_v50  ;;  %v988_v42 = vld [vmem:[#allocation5 + $0x1520] sm:$0xff] }
 0x1b6   : > { %5205 = vmatpush1.bf16.msra.mxu0 %v7212_v59  ;;  %5463 = vmatpush1.bf16.msra.mxu1 %v7214_v60  ;;  %v7276_v59 = vcombine.low %v928_v47, %v932_v48  ;;  %v7278_v60 = vcombine.low %v929_v49, %v933_v50  ;;  %v7333_v47 = vcombine.high %v984_v41, %v988_v42  ;;  %v992_v49 = vld [vmem:[#allocation5 + $0x1540] sm:$0xff] }
 0x1b7   : > { %5206 = vmatprep.subr.bf16.mxu0 %v7221_v61  ;;  %5464 = vmatprep.subr.bf16.mxu1 %v7223_v62  ;;  %v7285_v61 = vcombine.high %v936_v55, %v940_v56  ;;  %v7287_v62 = vcombine.high %v937_v57, %v941_v58  ;;  %v996_v50 = vld [vmem:[#allocation5 + $0x1560] sm:$0xff] }
 0x1ba   : > { %5207 = vmatpush1.bf16.msra.mxu0 %v7220_v3  ;;  %5465 = vmatpush1.bf16.msra.mxu1 %v7222_v4  ;;  %v7284_v3 = vcombine.low %v936_v55, %v940_v56  ;;  %v7286_v4 = vcombine.low %v937_v57, %v941_v58  ;;  %v7341_v55 = vcombine.high %v992_v49, %v996_v50  ;;  %v1000_v57 = vld [vmem:[#allocation5 + $0x1580] sm:$0xff] }
 0x1bb   : > { %5208 = vmatprep.subr.bf16.mxu0 %v7229_v5  ;;  %5466 = vmatprep.subr.bf16.mxu1 %v7231_v6  ;;  %v7293_v5 = vcombine.high %v944_v63, %v948_v0  ;;  %v7295_v6 = vcombine.high %v945_v1, %v949_v2  ;;  %v1004_v58 = vld [vmem:[#allocation5 + $0x15a0] sm:$0xff] }
 0x1be   : > { %5209 = vmatpush1.bf16.msra.mxu0 %v7228_v11  ;;  %5467 = vmatpush1.bf16.msra.mxu1 %v7230_v12  ;;  %v7292_v11 = vcombine.low %v944_v63, %v948_v0  ;;  %v7294_v12 = vcombine.low %v945_v1, %v949_v2  ;;  %v7349_v63 = vcombine.high %v1000_v57, %v1004_v58  ;;  %v1008_v1 = vld [vmem:[#allocation5 + $0x15c0] sm:$0xff] }
 0x1bf   : > { %5210 = vmatprep.subr.bf16.mxu0 %v7237_v13  ;;  %5468 = vmatprep.subr.bf16.mxu1 %v7239_v14  ;;  %v7301_v13 = vcombine.high %v952_v7, %v956_v8  ;;  %v7303_v14 = vcombine.high %v953_v9, %v957_v10  ;;  %v1012_v2 = vld [vmem:[#allocation5 + $0x15e0] sm:$0xff] }
 0x1c2   : > { %5211 = vmatpush1.bf16.msra.mxu0 %v7236_v19  ;;  %5469 = vmatpush1.bf16.msra.mxu1 %v7238_v20  ;;  %v965_v19 = vld [vmem:[#allocation5 + $0x1468] sm:$0xff]  ;;  %v7300_v20 = vcombine.low %v952_v7, %v956_v8  ;;  %v7357_v7 = vcombine.high %v1008_v1, %v1012_v2 }
 0x1c3   : > { %5212 = vmatprep.subr.bf16.mxu0 %v7245_v21  ;;  %5470 = vmatprep.subr.bf16.mxu1 %v7247_v22  ;;  %v7302_v21 = vcombine.low %v953_v9, %v957_v10  ;;  %v7309_v22 = vcombine.high %v960_v15, %v964_v16  ;;  %v7311_v23 = vcombine.high %v961_v18, %v965_v19  ;;  %v1016_v9 = vld [vmem:[#allocation5 + $0x1600] sm:$0xff] }
 0x1c4   : > { %v1020_v10 = vld [vmem:[#allocation5 + $0x1620] sm:$0xff] }
 0x1c6   : > { %5213 = vmatpush1.bf16.msra.mxu0 %v7244_v27  ;;  %5471 = vmatpush1.bf16.msra.mxu1 %v7246_v28  ;;  %v969_v27 = vld [vmem:[#allocation5 + $0x1488] sm:$0xff] }
 0x1c7   : > { %5214 = vmatprep.subr.bf16.mxu0 %v7253_v29  ;;  %5472 = vmatprep.subr.bf16.mxu1 %v7255_v30  ;;  %v973_v28 = vld [vmem:[#allocation5 + $0x14a8] sm:$0xff]  ;;  %v7308_v29 = vcombine.low %v960_v15, %v964_v16  ;;  %v7310_v30 = vcombine.low %v961_v18, %v965_v19  ;;  %v7365_v15 = vcombine.high %v1016_v9, %v1020_v10  ;;  %v1028_v18 = vld [vmem:[#allocation5 + $0x1660] sm:$0xff] }
 0x1c8   : > { %v7319_v32 = vcombine.high %v969_v27, %v973_v28  ;;  %v1025_v19 = vld [vmem:[#allocation5 + $0x1648] sm:$0xff] }
 0x1ca   : > { %5215 = vmatpush1.bf16.msra.mxu0 %v7252_v35  ;;  %5473 = vmatpush1.bf16.msra.mxu1 %v7254_v36  ;;  %v977_v35 = vld [vmem:[#allocation5 + $0x14c8] sm:$0xff] }
 0x1cb   : > { %5216 = vmatprep.subr.bf16.mxu0 %v7261_v37  ;;  %5474 = vmatprep.subr.bf16.mxu1 %v7263_v38  ;;  %v981_v36 = vld [vmem:[#allocation5 + $0x14e8] sm:$0xff]  ;;  %v7316_v37 = vcombine.low %v968_v24, %v972_v25  ;;  %v7318_v38 = vcombine.low %v969_v27, %v973_v28  ;;  %v1032_v25 = vld [vmem:[#allocation5 + $0x1680] sm:$0xff] }
 0x1cc   : > { %v7327_v40 = vcombine.high %v977_v35, %v981_v36  ;;  %v1033_v27 = vld [vmem:[#allocation5 + $0x1688] sm:$0xff] }
 0x1cd   : > { %v1037_v28 = vld [vmem:[#allocation5 + $0x16a8] sm:$0xff] }
 0x1ce   : > { %5217 = vmatpush1.bf16.msra.mxu0 %v7260_v43  ;;  %5475 = vmatpush1.bf16.msra.mxu1 %v7262_v44  ;;  %v985_v43 = vld [vmem:[#allocation5 + $0x1508] sm:$0xff] }
 0x1cf   : > { %5218 = vmatprep.subr.bf16.mxu0 %v7269_v45  ;;  %5476 = vmatprep.subr.bf16.mxu1 %v7271_v46  ;;  %v989_v44 = vld [vmem:[#allocation5 + $0x1528] sm:$0xff]  ;;  %v7324_v45 = vcombine.low %v976_v33, %v980_v34  ;;  %v7326_v46 = vcombine.low %v977_v35, %v981_v36  ;;  %v1040_v33 = vld [vmem:[#allocation5 + $0x16c0] sm:$0xff] }
 0x1d0   : > { %v7335_v48 = vcombine.high %v985_v43, %v989_v44  ;;  %v1044_v34 = vld [vmem:[#allocation5 + $0x16e0] sm:$0xff]  ;;  %v1041_v35 = vld [vmem:[#allocation5 + $0x16c8] sm:$0xff] }
 0x1d1   : > { %v1045_v36 = vld [vmem:[#allocation5 + $0x16e8] sm:$0xff] }
 0x1d2   : > { %5219 = vmatpush1.bf16.msra.mxu0 %v7268_v51  ;;  %5477 = vmatpush1.bf16.msra.mxu1 %v7270_v52  ;;  %v993_v51 = vld [vmem:[#allocation5 + $0x1548] sm:$0xff] }
 0x1d3   : > { %5220 = vmatprep.subr.bf16.mxu0 %v7277_v53  ;;  %5478 = vmatprep.subr.bf16.mxu1 %v7279_v54  ;;  %v997_v52 = vld [vmem:[#allocation5 + $0x1568] sm:$0xff]  ;;  %v7332_v53 = vcombine.low %v984_v41, %v988_v42  ;;  %v7334_v54 = vcombine.low %v985_v43, %v989_v44  ;;  %v1048_v41 = vld [vmem:[#allocation5 + $0x1700] sm:$0xff] }
 0x1d4   : > { %v7343_v56 = vcombine.high %v993_v51, %v997_v52  ;;  %v1052_v42 = vld [vmem:[#allocation5 + $0x1720] sm:$0xff]  ;;  %v1049_v43 = vld [vmem:[#allocation5 + $0x1708] sm:$0xff] }
 0x1d5   : > { %v1053_v44 = vld [vmem:[#allocation5 + $0x1728] sm:$0xff] }
 0x1d6   : > { %5221 = vmatpush1.bf16.msra.mxu0 %v7276_v59  ;;  %5479 = vmatpush1.bf16.msra.mxu1 %v7278_v60  ;;  %v1001_v59 = vld [vmem:[#allocation5 + $0x1588] sm:$0xff] }
 0x1d7   : > { %5222 = vmatprep.subr.bf16.mxu0 %v7285_v61  ;;  %5480 = vmatprep.subr.bf16.mxu1 %v7287_v62  ;;  %v1005_v60 = vld [vmem:[#allocation5 + $0x15a8] sm:$0xff]  ;;  %v7340_v61 = vcombine.low %v992_v49, %v996_v50  ;;  %v7342_v62 = vcombine.low %v993_v51, %v997_v52  ;;  %v1056_v49 = vld [vmem:[#allocation5 + $0x1740] sm:$0xff] }
 0x1d8   : > { %v7351_v0 = vcombine.high %v1001_v59, %v1005_v60  ;;  %v1060_v50 = vld [vmem:[#allocation5 + $0x1760] sm:$0xff]  ;;  %v1057_v51 = vld [vmem:[#allocation5 + $0x1748] sm:$0xff] }
 0x1d9   : > { %v1061_v52 = vld [vmem:[#allocation5 + $0x1768] sm:$0xff] }
 0x1da   : > { %5223 = vmatpush1.bf16.msra.mxu0 %v7284_v3  ;;  %5481 = vmatpush1.bf16.msra.mxu1 %v7286_v4  ;;  %v1009_v3 = vld [vmem:[#allocation5 + $0x15c8] sm:$0xff] }
 0x1db   : > { %5224 = vmatprep.subr.bf16.mxu0 %v7293_v5  ;;  %5482 = vmatprep.subr.bf16.mxu1 %v7295_v6  ;;  %v1013_v4 = vld [vmem:[#allocation5 + $0x15e8] sm:$0xff]  ;;  %v7348_v5 = vcombine.low %v1000_v57, %v1004_v58  ;;  %v7350_v6 = vcombine.low %v1001_v59, %v1005_v60  ;;  %v1064_v57 = vld [vmem:[#allocation5 + $0x1780] sm:$0xff] }
 0x1dc   : > { %v7359_v8 = vcombine.high %v1009_v3, %v1013_v4  ;;  %v1068_v58 = vld [vmem:[#allocation5 + $0x17a0] sm:$0xff]  ;;  %v1065_v59 = vld [vmem:[#allocation5 + $0x1788] sm:$0xff] }
 0x1dd   : > { %v1069_v60 = vld [vmem:[#allocation5 + $0x17a8] sm:$0xff] }
 0x1de   : > { %5225 = vmatpush1.bf16.msra.mxu0 %v7292_v11  ;;  %5483 = vmatpush1.bf16.msra.mxu1 %v7294_v12  ;;  %v1017_v11 = vld [vmem:[#allocation5 + $0x1608] sm:$0xff] }
 0x1df   : > { %5237 = vmatprep.subr.bf16.mxu0 %v7301_v13  ;;  %5495 = vmatprep.subr.bf16.mxu1 %v7303_v14  ;;  %v1021_v12 = vld [vmem:[#allocation5 + $0x1628] sm:$0xff]  ;;  %v7356_v13 = vcombine.low %v1008_v1, %v1012_v2  ;;  %v7358_v14 = vcombine.low %v1009_v3, %v1013_v4  ;;  %v1072_v1 = vld [vmem:[#allocation5 + $0x17c0] sm:$0xff] }
 0x1e0   : > { %v7367_v16 = vcombine.high %v1017_v11, %v1021_v12  ;;  %v1076_v2 = vld [vmem:[#allocation5 + $0x17e0] sm:$0xff]  ;;  %v1073_v3 = vld [vmem:[#allocation5 + $0x17c8] sm:$0xff] }
 0x1e1   : > { %5227 = vmatmul.mubr.bf16.vlgmr.msra.gmra.mrb[0].mxu0 %v7923_v17  ;;  %5485 = vmatmul.mubr.bf16.vlgmr.msra.gmra.mrb[0].mxu1 %v7923_v17  ;;  %v1024_v17 = vld [vmem:[#allocation5 + $0x1640] sm:$0xff]  ;;  %v1077_v4 = vld [vmem:[#allocation5 + $0x17e8] sm:$0xff] }
 0x1e2   : > { %5238 = vmatpush1.bf16.msra.mxu0 %v7300_v20  ;;  %5496 = vmatpush1.bf16.msra.mxu1 %v7302_v21  ;;  %v1029_v20 = vld [vmem:[#allocation5 + $0x1668] sm:$0xff]  ;;  %v7364_v21 = vcombine.low %v1016_v9, %v1020_v10  ;;  %v314_v9 = vld [vmem:[#allocation5 + $0x10] sm:$0xff] }
 0x1e3   : > { %5239 = vmatprep.subr.bf16.mxu0 %v7309_v22  ;;  %5497 = vmatprep.subr.bf16.mxu1 %v7311_v23  ;;  %v7366_v22 = vcombine.low %v1017_v11, %v1021_v12  ;;  %v7373_v23 = vcombine.high %v1024_v17, %v1028_v18  ;;  %v7375_v24 = vcombine.high %v1025_v19, %v1029_v20  ;;  %v318_v10 = vld [vmem:[#allocation5 + $0x30] sm:$0xff]  ;;  %v315_v11 = vld [vmem:[#allocation5 + $0x18] sm:$0xff] }
 0x1e4   : > { %5269 = vmatprep.mubr.bf16.mxu0 %v7924_v26  ;;  %5527 = vmatprep.mubr.bf16.mxu1 %v7924_v26  ;;  %v1036_v26 = vld [vmem:[#allocation5 + $0x16a0] sm:$0xff]  ;;  %v319_v12 = vld [vmem:[#allocation5 + $0x38] sm:$0xff] }
 0x1e6   : > { %5240 = vmatpush1.bf16.msra.mxu0 %v7308_v29  ;;  %5498 = vmatpush1.bf16.msra.mxu1 %v7310_v30  ;;  %v7372_v29 = vcombine.low %v1024_v17, %v1028_v18  ;;  %v7374_v30 = vcombine.low %v1025_v19, %v1029_v20  ;;  %v322_v17 = vld [vmem:[#allocation5 + $0x50] sm:$0xff]  ;;  %v7926_v19 = vld [vmem:[%s8413_s8 + $0x28] ss:$48 sps:$4 sm:$0xff]  }
 0x1e7   : > { %5241 = vmatprep.subr.bf16.mxu0 %v7317_v31  ;;  %5499 = vmatprep.subr.bf16.mxu1 %v7319_v32  ;;  %v7381_v31 = vcombine.high %v1032_v25, %v1036_v26  ;;  %v7383_v32 = vcombine.high %v1033_v27, %v1037_v28  ;;  %v326_v18 = vld [vmem:[#allocation5 + $0x70] sm:$0xff]  ;;  %v323_v20 = vld [vmem:[#allocation5 + $0x58] sm:$0xff] }
 0x1ea   : > { %5242 = vmatpush1.bf16.msra.mxu0 %v7316_v37  ;;  %5500 = vmatpush1.bf16.msra.mxu1 %v7318_v38  ;;  %v7380_v37 = vcombine.low %v1032_v25, %v1036_v26  ;;  %v7382_v38 = vcombine.low %v1033_v27, %v1037_v28  ;;  %v330_v26 = vld [vmem:[#allocation5 + $0x90] sm:$0xff]  ;;  %v331_v28 = vld [vmem:[#allocation5 + $0x98] sm:$0xff] }
 0x1eb   : > { %5243 = vmatprep.subr.bf16.mxu0 %v7325_v39  ;;  %5501 = vmatprep.subr.bf16.mxu1 %v7327_v40  ;;  %v7389_v39 = vcombine.high %v1040_v33, %v1044_v34  ;;  %v7391_v40 = vcombine.high %v1041_v35, %v1045_v36  ;;  %v334_v27 = vld [vmem:[#allocation5 + $0xb0] sm:$0xff] }
 0x1ee   : > { %5244 = vmatpush1.bf16.msra.mxu0 %v7324_v45  ;;  %5502 = vmatpush1.bf16.msra.mxu1 %v7326_v46  ;;  %v7388_v45 = vcombine.low %v1040_v33, %v1044_v34  ;;  %v7390_v46 = vcombine.low %v1041_v35, %v1045_v36  ;;  %v338_v34 = vld [vmem:[#allocation5 + $0xd0] sm:$0xff] }
 0x1ef   : > { %5245 = vmatprep.subr.bf16.mxu0 %v7333_v47  ;;  %5503 = vmatprep.subr.bf16.mxu1 %v7335_v48  ;;  %v7397_v47 = vcombine.high %v1048_v41, %v1052_v42  ;;  %v7399_v48 = vcombine.high %v1049_v43, %v1053_v44  ;;  %v342_v35 = vld [vmem:[#allocation5 + $0xf0] sm:$0xff] }
 0x1f0   : > { %v7927_v36 = vld [vmem:[%s8413_s8 + $0x4] ss:$48 sps:$4 sm:$0xff]  }
 0x1f2   : > { %5246 = vmatpush1.bf16.msra.mxu0 %v7332_v53  ;;  %5504 = vmatpush1.bf16.msra.mxu1 %v7334_v54  ;;  %v7396_v53 = vcombine.low %v1048_v41, %v1052_v42  ;;  %v7398_v54 = vcombine.low %v1049_v43, %v1053_v44  ;;  %v6689_v41 = vcombine.high %v338_v34, %v342_v35  ;;  %v346_v43 = vld [vmem:[#allocation5 + $0x110] sm:$0xff] }
 0x1f3   : > { %5247 = vmatprep.subr.bf16.mxu0 %v7341_v55  ;;  %5505 = vmatprep.subr.bf16.mxu1 %v7343_v56  ;;  %v7405_v55 = vcombine.high %v1056_v49, %v1060_v50  ;;  %v7407_v56 = vcombine.high %v1057_v51, %v1061_v52  ;;  %v350_v44 = vld [vmem:[#allocation5 + $0x130] sm:$0xff] }
 0x1f6   : > { %5248 = vmatpush1.bf16.msra.mxu0 %v7340_v61  ;;  %5506 = vmatpush1.bf16.msra.mxu1 %v7342_v62  ;;  %v7404_v61 = vcombine.low %v1056_v49, %v1060_v50  ;;  %v7406_v62 = vcombine.low %v1057_v51, %v1061_v52  ;;  %v6697_v49 = vcombine.high %v346_v43, %v350_v44  ;;  %v354_v51 = vld [vmem:[#allocation5 + $0x150] sm:$0xff] }
 0x1f7   : > { %5249 = vmatprep.subr.bf16.mxu0 %v7349_v63  ;;  %5507 = vmatprep.subr.bf16.mxu1 %v7351_v0  ;;  %v7413_v63 = vcombine.high %v1064_v57, %v1068_v58  ;;  %v7415_v0 = vcombine.high %v1065_v59, %v1069_v60  ;;  %v358_v52 = vld [vmem:[#allocation5 + $0x170] sm:$0xff] }
 0x1fa   : > { %5250 = vmatpush1.bf16.msra.mxu0 %v7348_v5  ;;  %5508 = vmatpush1.bf16.msra.mxu1 %v7350_v6  ;;  %v7412_v5 = vcombine.low %v1064_v57, %v1068_v58  ;;  %v7414_v6 = vcombine.low %v1065_v59, %v1069_v60  ;;  %v6705_v57 = vcombine.high %v354_v51, %v358_v52  ;;  %v362_v59 = vld [vmem:[#allocation5 + $0x190] sm:$0xff] }
 0x1fb   : > { %5251 = vmatprep.subr.bf16.mxu0 %v7357_v7  ;;  %5509 = vmatprep.subr.bf16.mxu1 %v7359_v8  ;;  %v7421_v7 = vcombine.high %v1072_v1, %v1076_v2  ;;  %v7423_v8 = vcombine.high %v1073_v3, %v1077_v4  ;;  %v366_v60 = vld [vmem:[#allocation5 + $0x1b0] sm:$0xff] }
 0x1fe   : > { %5252 = vmatpush1.bf16.msra.mxu0 %v7356_v13  ;;  %5510 = vmatpush1.bf16.msra.mxu1 %v7358_v14  ;;  %v7420_v13 = vcombine.low %v1072_v1, %v1076_v2  ;;  %v7422_v14 = vcombine.low %v1073_v3, %v1077_v4  ;;  %v6713_v1 = vcombine.high %v362_v59, %v366_v60  ;;  %v370_v3 = vld [vmem:[#allocation5 + $0x1d0] sm:$0xff] }
 0x1ff   : > { %5253 = vmatprep.subr.bf16.mxu0 %v7365_v15  ;;  %5511 = vmatprep.subr.bf16.mxu1 %v7367_v16  ;;  %v6665_v15 = vcombine.high %v314_v9, %v318_v10  ;;  %v6667_v16 = vcombine.high %v315_v11, %v319_v12  ;;  %v374_v4 = vld [vmem:[#allocation5 + $0x1f0] sm:$0xff] }
 0x202   : > { %5254 = vmatpush1.bf16.msra.mxu0 %v7364_v21  ;;  %5512 = vmatpush1.bf16.msra.mxu1 %v7366_v22  ;;  %v327_v21 = vld [vmem:[#allocation5 + $0x78] sm:$0xff]  ;;  %v6664_v22 = vcombine.low %v314_v9, %v318_v10  ;;  %v6721_v9 = vcombine.high %v370_v3, %v374_v4 }
 0x203   : > { %5255 = vmatprep.subr.bf16.mxu0 %v7373_v23  ;;  %5513 = vmatprep.subr.bf16.mxu1 %v7375_v24  ;;  %v6666_v23 = vcombine.low %v315_v11, %v319_v12  ;;  %v6673_v24 = vcombine.high %v322_v17, %v326_v18  ;;  %v6675_v25 = vcombine.high %v323_v20, %v327_v21  ;;  %v378_v11 = vld [vmem:[#allocation5 + $0x210] sm:$0xff] }
 0x204   : > { %v382_v12 = vld [vmem:[#allocation5 + $0x230] sm:$0xff] }
 0x206   : > { %5256 = vmatpush1.bf16.msra.mxu0 %v7372_v29  ;;  %5514 = vmatpush1.bf16.msra.mxu1 %v7374_v30  ;;  %v335_v29 = vld [vmem:[#allocation5 + $0xb8] sm:$0xff]  ;;  %v6672_v30 = vcombine.low %v322_v17, %v326_v18  ;;  %v6729_v17 = vcombine.high %v378_v11, %v382_v12 }
 0x207   : > { %5257 = vmatprep.subr.bf16.mxu0 %v7381_v31  ;;  %5515 = vmatprep.subr.bf16.mxu1 %v7383_v32  ;;  %v6674_v31 = vcombine.low %v323_v20, %v327_v21  ;;  %v6681_v32 = vcombine.high %v330_v26, %v334_v27  ;;  %v6683_v33 = vcombine.high %v331_v28, %v335_v29  ;;  %v390_v20 = vld [vmem:[#allocation5 + $0x270] sm:$0xff]  ;;  %v387_v21 = vld [vmem:[#allocation5 + $0x258] sm:$0xff] }
 0x20a   : > { %5258 = vmatpush1.bf16.msra.mxu0 %v7380_v37  ;;  %5516 = vmatpush1.bf16.msra.mxu1 %v7382_v38  ;;  %v339_v37 = vld [vmem:[#allocation5 + $0xd8] sm:$0xff] }
 0x20b   : > { %5259 = vmatprep.subr.bf16.mxu0 %v7389_v39  ;;  %5517 = vmatprep.subr.bf16.mxu1 %v7391_v40  ;;  %v343_v38 = vld [vmem:[#allocation5 + $0xf8] sm:$0xff]  ;;  %v6680_v39 = vcombine.low %v330_v26, %v334_v27  ;;  %v6682_v40 = vcombine.low %v331_v28, %v335_v29  ;;  %v394_v27 = vld [vmem:[#allocation5 + $0x290] sm:$0xff] }
 0x20c   : > { %v6691_v42 = vcombine.high %v339_v37, %v343_v38  ;;  %v398_v28 = vld [vmem:[#allocation5 + $0x2b0] sm:$0xff]  ;;  %v395_v29 = vld [vmem:[#allocation5 + $0x298] sm:$0xff] }
 0x20e   : > { %5260 = vmatpush1.bf16.msra.mxu0 %v7388_v45  ;;  %5518 = vmatpush1.bf16.msra.mxu1 %v7390_v46  ;;  %v347_v45 = vld [vmem:[#allocation5 + $0x118] sm:$0xff] }
 0x20f   : > { %5261 = vmatprep.subr.bf16.mxu0 %v7397_v47  ;;  %5519 = vmatprep.subr.bf16.mxu1 %v7399_v48  ;;  %v351_v46 = vld [vmem:[#allocation5 + $0x138] sm:$0xff]  ;;  %v6688_v47 = vcombine.low %v338_v34, %v342_v35  ;;  %v6690_v48 = vcombine.low %v339_v37, %v343_v38  ;;  %v402_v35 = vld [vmem:[#allocation5 + $0x2d0] sm:$0xff] }
 0x210   : > { %v6699_v50 = vcombine.high %v347_v45, %v351_v46  ;;  %v403_v37 = vld [vmem:[#allocation5 + $0x2d8] sm:$0xff] }
 0x211   : > { %v407_v38 = vld [vmem:[#allocation5 + $0x2f8] sm:$0xff] }
 0x212   : > { %5262 = vmatpush1.bf16.msra.mxu0 %v7396_v53  ;;  %5520 = vmatpush1.bf16.msra.mxu1 %v7398_v54  ;;  %v355_v53 = vld [vmem:[#allocation5 + $0x158] sm:$0xff] }
 0x213   : > { %5263 = vmatprep.subr.bf16.mxu0 %v7405_v55  ;;  %5521 = vmatprep.subr.bf16.mxu1 %v7407_v56  ;;  %v359_v54 = vld [vmem:[#allocation5 + $0x178] sm:$0xff]  ;;  %v6696_v55 = vcombine.low %v346_v43, %v350_v44  ;;  %v6698_v56 = vcombine.low %v347_v45, %v351_v46  ;;  %v410_v43 = vld [vmem:[#allocation5 + $0x310] sm:$0xff] }
 0x214   : > { %v6707_v58 = vcombine.high %v355_v53, %v359_v54  ;;  %v414_v44 = vld [vmem:[#allocation5 + $0x330] sm:$0xff]  ;;  %v411_v45 = vld [vmem:[#allocation5 + $0x318] sm:$0xff] }
 0x215   : > { %v415_v46 = vld [vmem:[#allocation5 + $0x338] sm:$0xff] }
 0x216   : > { %5264 = vmatpush1.bf16.msra.mxu0 %v7404_v61  ;;  %5522 = vmatpush1.bf16.msra.mxu1 %v7406_v62  ;;  %v363_v61 = vld [vmem:[#allocation5 + $0x198] sm:$0xff] }
 0x217   : > { %5265 = vmatprep.subr.bf16.mxu0 %v7413_v63  ;;  %5523 = vmatprep.subr.bf16.mxu1 %v7415_v0  ;;  %v367_v62 = vld [vmem:[#allocation5 + $0x1b8] sm:$0xff]  ;;  %v6704_v63 = vcombine.low %v354_v51, %v358_v52  ;;  %v6706_v0 = vcombine.low %v355_v53, %v359_v54  ;;  %v418_v51 = vld [vmem:[#allocation5 + $0x350] sm:$0xff] }
 0x218   : > { %v6715_v2 = vcombine.high %v363_v61, %v367_v62  ;;  %v422_v52 = vld [vmem:[#allocation5 + $0x370] sm:$0xff]  ;;  %v419_v53 = vld [vmem:[#allocation5 + $0x358] sm:$0xff] }
 0x219   : > { %v423_v54 = vld [vmem:[#allocation5 + $0x378] sm:$0xff] }
 0x21a   : > { %5266 = vmatpush1.bf16.msra.mxu0 %v7412_v5  ;;  %5524 = vmatpush1.bf16.msra.mxu1 %v7414_v6  ;;  %v371_v5 = vld [vmem:[#allocation5 + $0x1d8] sm:$0xff] }
 0x21b   : > { %5267 = vmatprep.subr.bf16.mxu0 %v7421_v7  ;;  %5525 = vmatprep.subr.bf16.mxu1 %v7423_v8  ;;  %v375_v6 = vld [vmem:[#allocation5 + $0x1f8] sm:$0xff]  ;;  %v6712_v7 = vcombine.low %v362_v59, %v366_v60  ;;  %v6714_v8 = vcombine.low %v363_v61, %v367_v62  ;;  %v426_v59 = vld [vmem:[#allocation5 + $0x390] sm:$0xff] }
 0x21c   : > { %v6723_v10 = vcombine.high %v371_v5, %v375_v6  ;;  %v430_v60 = vld [vmem:[#allocation5 + $0x3b0] sm:$0xff]  ;;  %v427_v61 = vld [vmem:[#allocation5 + $0x398] sm:$0xff] }
 0x21d   : > { %v431_v62 = vld [vmem:[#allocation5 + $0x3b8] sm:$0xff] }
 0x21e   : > { %5268 = vmatpush1.bf16.msra.mxu0 %v7420_v13  ;;  %5526 = vmatpush1.bf16.msra.mxu1 %v7422_v14  ;;  %v379_v13 = vld [vmem:[#allocation5 + $0x218] sm:$0xff] }
 0x21f   : > { %5538 = vmatprep.subr.bf16.mxu0 %v6665_v15  ;;  %5796 = vmatprep.subr.bf16.mxu1 %v6667_v16  ;;  %v383_v14 = vld [vmem:[#allocation5 + $0x238] sm:$0xff]  ;;  %v6720_v15 = vcombine.low %v370_v3, %v374_v4  ;;  %v6722_v16 = vcombine.low %v371_v5, %v375_v6  ;;  %v434_v3 = vld [vmem:[#allocation5 + $0x3d0] sm:$0xff] }
 0x220   : > { %v6731_v18 = vcombine.high %v379_v13, %v383_v14  ;;  %v438_v4 = vld [vmem:[#allocation5 + $0x3f0] sm:$0xff]  ;;  %v435_v5 = vld [vmem:[#allocation5 + $0x3d8] sm:$0xff] }
 0x221   : > { %5270 = vmatmul.mubr.bf16.vlgmr.msra.gmra.mrb[0].mxu0 %v7926_v19  ;;  %5528 = vmatmul.mubr.bf16.vlgmr.msra.gmra.mrb[0].mxu1 %v7926_v19  ;;  %v386_v19 = vld [vmem:[#allocation5 + $0x250] sm:$0xff]  ;;  %v439_v6 = vld [vmem:[#allocation5 + $0x3f8] sm:$0xff] }
 0x222   : > { %5539 = vmatpush1.bf16.msra.mxu0 %v6664_v22  ;;  %5797 = vmatpush1.bf16.msra.mxu1 %v6666_v23  ;;  %v391_v22 = vld [vmem:[#allocation5 + $0x278] sm:$0xff]  ;;  %v6728_v23 = vcombine.low %v378_v11, %v382_v12  ;;  %v442_v11 = vld [vmem:[#allocation5 + $0x410] sm:$0xff] }
 0x223   : > { %5540 = vmatprep.subr.bf16.mxu0 %v6673_v24  ;;  %5798 = vmatprep.subr.bf16.mxu1 %v6675_v25  ;;  %v6730_v24 = vcombine.low %v379_v13, %v383_v14  ;;  %v6737_v25 = vcombine.high %v386_v19, %v390_v20  ;;  %v6739_v26 = vcombine.high %v387_v21, %v391_v22  ;;  %v446_v12 = vld [vmem:[#allocation5 + $0x430] sm:$0xff]  ;;  %v443_v13 = vld [vmem:[#allocation5 + $0x418] sm:$0xff] }
 0x224   : > { %5570 = vmatprep.mubr.bf16.mxu0 %v7927_v36  ;;  %5828 = vmatprep.mubr.bf16.mxu1 %v7927_v36  ;;  %v406_v36 = vld [vmem:[#allocation5 + $0x2f0] sm:$0xff]  ;;  %v447_v14 = vld [vmem:[#allocation5 + $0x438] sm:$0xff] }
 0x226   : > { %5541 = vmatpush1.bf16.msra.mxu0 %v6672_v30  ;;  %5799 = vmatpush1.bf16.msra.mxu1 %v6674_v31  ;;  %v399_v30 = vld [vmem:[#allocation5 + $0x2b8] sm:$0xff]  ;;  %v6736_v31 = vcombine.low %v386_v19, %v390_v20  ;;  %v450_v19 = vld [vmem:[#allocation5 + $0x450] sm:$0xff] }
 0x227   : > { %5542 = vmatprep.subr.bf16.mxu0 %v6681_v32  ;;  %5800 = vmatprep.subr.bf16.mxu1 %v6683_v33  ;;  %v6738_v32 = vcombine.low %v387_v21, %v391_v22  ;;  %v6745_v33 = vcombine.high %v394_v27, %v398_v28  ;;  %v6747_v34 = vcombine.high %v395_v29, %v399_v30  ;;  %v454_v20 = vld [vmem:[#allocation5 + $0x470] sm:$0xff]  ;;  %v451_v21 = vld [vmem:[#allocation5 + $0x458] sm:$0xff] }
 0x228   : > { %v455_v22 = vld [vmem:[#allocation5 + $0x478] sm:$0xff] }
 0x22a   : > { %5543 = vmatpush1.bf16.msra.mxu0 %v6680_v39  ;;  %5801 = vmatpush1.bf16.msra.mxu1 %v6682_v40  ;;  %v6744_v39 = vcombine.low %v394_v27, %v398_v28  ;;  %v6746_v40 = vcombine.low %v395_v29, %v399_v30  ;;  %v458_v27 = vld [vmem:[#allocation5 + $0x490] sm:$0xff]  ;;  %v459_v30 = vld [vmem:[#allocation5 + $0x498] sm:$0xff] }
 0x22b   : > { %5544 = vmatprep.subr.bf16.mxu0 %v6689_v41  ;;  %5802 = vmatprep.subr.bf16.mxu1 %v6691_v42  ;;  %v6753_v41 = vcombine.high %v402_v35, %v406_v36  ;;  %v6755_v42 = vcombine.high %v403_v37, %v407_v38  ;;  %v462_v28 = vld [vmem:[#allocation5 + $0x4b0] sm:$0xff] }
 0x22c   : > { %v7928_v29 = vld [vmem:[%s8413_s8] ss:$48 sps:$4 sm:$0xff]  }
 0x22e   : > { %5545 = vmatpush1.bf16.msra.mxu0 %v6688_v47  ;;  %5803 = vmatpush1.bf16.msra.mxu1 %v6690_v48  ;;  %v6752_v47 = vcombine.low %v402_v35, %v406_v36  ;;  %v6754_v48 = vcombine.low %v403_v37, %v407_v38  ;;  %v466_v36 = vld [vmem:[#allocation5 + $0x4d0] sm:$0xff]  ;;  %v7929_v38 = vld [vmem:[%s8413_s8 + $0xc] ss:$48 sps:$4 sm:$0xff]  }
 0x22f   : > { %5546 = vmatprep.subr.bf16.mxu0 %v6697_v49  ;;  %5804 = vmatprep.subr.bf16.mxu1 %v6699_v50  ;;  %v6761_v49 = vcombine.high %v410_v43, %v414_v44  ;;  %v6763_v50 = vcombine.high %v411_v45, %v415_v46  ;;  %v470_v37 = vld [vmem:[#allocation5 + $0x4f0] sm:$0xff] }
 0x232   : > { %5547 = vmatpush1.bf16.msra.mxu0 %v6696_v55  ;;  %5805 = vmatpush1.bf16.msra.mxu1 %v6698_v56  ;;  %v6760_v55 = vcombine.low %v410_v43, %v414_v44  ;;  %v6762_v56 = vcombine.low %v411_v45, %v415_v46  ;;  %v6817_v43 = vcombine.high %v466_v36, %v470_v37  ;;  %v474_v45 = vld [vmem:[#allocation5 + $0x510] sm:$0xff] }
 0x233   : > { %5548 = vmatprep.subr.bf16.mxu0 %v6705_v57  ;;  %5806 = vmatprep.subr.bf16.mxu1 %v6707_v58  ;;  %v6769_v57 = vcombine.high %v418_v51, %v422_v52  ;;  %v6771_v58 = vcombine.high %v419_v53, %v423_v54  ;;  %v478_v46 = vld [vmem:[#allocation5 + $0x530] sm:$0xff] }
 0x236   : > { %5549 = vmatpush1.bf16.msra.mxu0 %v6704_v63  ;;  %5807 = vmatpush1.bf16.msra.mxu1 %v6706_v0  ;;  %v6768_v63 = vcombine.low %v418_v51, %v422_v52  ;;  %v6770_v0 = vcombine.low %v419_v53, %v423_v54  ;;  %v6825_v51 = vcombine.high %v474_v45, %v478_v46  ;;  %v482_v53 = vld [vmem:[#allocation5 + $0x550] sm:$0xff] }
 0x237   : > { %5550 = vmatprep.subr.bf16.mxu0 %v6713_v1  ;;  %5808 = vmatprep.subr.bf16.mxu1 %v6715_v2  ;;  %v6777_v1 = vcombine.high %v426_v59, %v430_v60  ;;  %v6779_v2 = vcombine.high %v427_v61, %v431_v62  ;;  %v486_v54 = vld [vmem:[#allocation5 + $0x570] sm:$0xff] }
 0x23a   : > { %5551 = vmatpush1.bf16.msra.mxu0 %v6712_v7  ;;  %5809 = vmatpush1.bf16.msra.mxu1 %v6714_v8  ;;  %v6776_v7 = vcombine.low %v426_v59, %v430_v60  ;;  %v6778_v8 = vcombine.low %v427_v61, %v431_v62  ;;  %v6833_v59 = vcombine.high %v482_v53, %v486_v54  ;;  %v490_v61 = vld [vmem:[#allocation5 + $0x590] sm:$0xff] }
 0x23b   : > { %5552 = vmatprep.subr.bf16.mxu0 %v6721_v9  ;;  %5810 = vmatprep.subr.bf16.mxu1 %v6723_v10  ;;  %v6785_v9 = vcombine.high %v434_v3, %v438_v4  ;;  %v6787_v10 = vcombine.high %v435_v5, %v439_v6  ;;  %v494_v62 = vld [vmem:[#allocation5 + $0x5b0] sm:$0xff] }
 0x23e   : > { %5553 = vmatpush1.bf16.msra.mxu0 %v6720_v15  ;;  %5811 = vmatpush1.bf16.msra.mxu1 %v6722_v16  ;;  %v6784_v15 = vcombine.low %v434_v3, %v438_v4  ;;  %v6786_v16 = vcombine.low %v435_v5, %v439_v6  ;;  %v6841_v3 = vcombine.high %v490_v61, %v494_v62  ;;  %v498_v5 = vld [vmem:[#allocation5 + $0x5d0] sm:$0xff] }
 0x23f   : > { %5554 = vmatprep.subr.bf16.mxu0 %v6729_v17  ;;  %5812 = vmatprep.subr.bf16.mxu1 %v6731_v18  ;;  %v6793_v17 = vcombine.high %v442_v11, %v446_v12  ;;  %v6795_v18 = vcombine.high %v443_v13, %v447_v14  ;;  %v502_v6 = vld [vmem:[#allocation5 + $0x5f0] sm:$0xff] }
 0x242   : > { %5555 = vmatpush1.bf16.msra.mxu0 %v6728_v23  ;;  %5813 = vmatpush1.bf16.msra.mxu1 %v6730_v24  ;;  %v6792_v23 = vcombine.low %v442_v11, %v446_v12  ;;  %v6794_v24 = vcombine.low %v443_v13, %v447_v14  ;;  %v6849_v11 = vcombine.high %v498_v5, %v502_v6  ;;  %v506_v13 = vld [vmem:[#allocation5 + $0x610] sm:$0xff] }
 0x243   : > { %5556 = vmatprep.subr.bf16.mxu0 %v6737_v25  ;;  %5814 = vmatprep.subr.bf16.mxu1 %v6739_v26  ;;  %v6801_v25 = vcombine.high %v450_v19, %v454_v20  ;;  %v6803_v26 = vcombine.high %v451_v21, %v455_v22  ;;  %v510_v14 = vld [vmem:[#allocation5 + $0x630] sm:$0xff] }
 0x246   : > { %5557 = vmatpush1.bf16.msra.mxu0 %v6736_v31  ;;  %5815 = vmatpush1.bf16.msra.mxu1 %v6738_v32  ;;  %v463_v31 = vld [vmem:[#allocation5 + $0x4b8] sm:$0xff]  ;;  %v6800_v32 = vcombine.low %v450_v19, %v454_v20  ;;  %v6857_v19 = vcombine.high %v506_v13, %v510_v14 }
 0x247   : > { %5558 = vmatprep.subr.bf16.mxu0 %v6745_v33  ;;  %5816 = vmatprep.subr.bf16.mxu1 %v6747_v34  ;;  %v6802_v33 = vcombine.low %v451_v21, %v455_v22  ;;  %v6809_v34 = vcombine.high %v458_v27, %v462_v28  ;;  %v6811_v35 = vcombine.high %v459_v30, %v463_v31  ;;  %v514_v21 = vld [vmem:[#allocation5 + $0x650] sm:$0xff] }
 0x248   : > { %v518_v22 = vld [vmem:[#allocation5 + $0x670] sm:$0xff] }
 0x24a   : > { %5559 = vmatpush1.bf16.msra.mxu0 %v6744_v39  ;;  %5817 = vmatpush1.bf16.msra.mxu1 %v6746_v40  ;;  %v467_v39 = vld [vmem:[#allocation5 + $0x4d8] sm:$0xff] }
 0x24b   : > { %5560 = vmatprep.subr.bf16.mxu0 %v6753_v41  ;;  %5818 = vmatprep.subr.bf16.mxu1 %v6755_v42  ;;  %v471_v40 = vld [vmem:[#allocation5 + $0x4f8] sm:$0xff]  ;;  %v6808_v41 = vcombine.low %v458_v27, %v462_v28  ;;  %v6810_v42 = vcombine.low %v459_v30, %v463_v31  ;;  %v6865_v27 = vcombine.high %v514_v21, %v518_v22  ;;  %v526_v30 = vld [vmem:[#allocation5 + $0x6b0] sm:$0xff] }
 0x24c   : > { %v6819_v44 = vcombine.high %v467_v39, %v471_v40  ;;  %v523_v31 = vld [vmem:[#allocation5 + $0x698] sm:$0xff] }
 0x24e   : > { %5561 = vmatpush1.bf16.msra.mxu0 %v6752_v47  ;;  %5819 = vmatpush1.bf16.msra.mxu1 %v6754_v48  ;;  %v475_v47 = vld [vmem:[#allocation5 + $0x518] sm:$0xff] }
 0x24f   : > { %5562 = vmatprep.subr.bf16.mxu0 %v6761_v49  ;;  %5820 = vmatprep.subr.bf16.mxu1 %v6763_v50  ;;  %v479_v48 = vld [vmem:[#allocation5 + $0x538] sm:$0xff]  ;;  %v6816_v49 = vcombine.low %v466_v36, %v470_v37  ;;  %v6818_v50 = vcombine.low %v467_v39, %v471_v40  ;;  %v530_v37 = vld [vmem:[#allocation5 + $0x6d0] sm:$0xff] }
 0x250   : > { %v6827_v52 = vcombine.high %v475_v47, %v479_v48  ;;  %v531_v39 = vld [vmem:[#allocation5 + $0x6d8] sm:$0xff] }
 0x251   : > { %v535_v40 = vld [vmem:[#allocation5 + $0x6f8] sm:$0xff] }
 0x252   : > { %5563 = vmatpush1.bf16.msra.mxu0 %v6760_v55  ;;  %5821 = vmatpush1.bf16.msra.mxu1 %v6762_v56  ;;  %v483_v55 = vld [vmem:[#allocation5 + $0x558] sm:$0xff] }
 0x253   : > { %5564 = vmatprep.subr.bf16.mxu0 %v6769_v57  ;;  %5822 = vmatprep.subr.bf16.mxu1 %v6771_v58  ;;  %v487_v56 = vld [vmem:[#allocation5 + $0x578] sm:$0xff]  ;;  %v6824_v57 = vcombine.low %v474_v45, %v478_v46  ;;  %v6826_v58 = vcombine.low %v475_v47, %v479_v48  ;;  %v538_v45 = vld [vmem:[#allocation5 + $0x710] sm:$0xff] }
 0x254   : > { %v6835_v60 = vcombine.high %v483_v55, %v487_v56  ;;  %v542_v46 = vld [vmem:[#allocation5 + $0x730] sm:$0xff]  ;;  %v539_v47 = vld [vmem:[#allocation5 + $0x718] sm:$0xff] }
 0x255   : > { %v543_v48 = vld [vmem:[#allocation5 + $0x738] sm:$0xff] }
 0x256   : > { %5565 = vmatpush1.bf16.msra.mxu0 %v6768_v63  ;;  %5823 = vmatpush1.bf16.msra.mxu1 %v6770_v0  ;;  %v491_v63 = vld [vmem:[#allocation5 + $0x598] sm:$0xff] }
 0x257   : > { %5566 = vmatprep.subr.bf16.mxu0 %v6777_v1  ;;  %5824 = vmatprep.subr.bf16.mxu1 %v6779_v2  ;;  %v495_v0 = vld [vmem:[#allocation5 + $0x5b8] sm:$0xff]  ;;  %v6832_v1 = vcombine.low %v482_v53, %v486_v54  ;;  %v6834_v2 = vcombine.low %v483_v55, %v487_v56  ;;  %v546_v53 = vld [vmem:[#allocation5 + $0x750] sm:$0xff] }
 0x258   : > { %v6843_v4 = vcombine.high %v491_v63, %v495_v0  ;;  %v550_v54 = vld [vmem:[#allocation5 + $0x770] sm:$0xff]  ;;  %v547_v55 = vld [vmem:[#allocation5 + $0x758] sm:$0xff] }
 0x259   : > { %v551_v56 = vld [vmem:[#allocation5 + $0x778] sm:$0xff] }
 0x25a   : > { %5567 = vmatpush1.bf16.msra.mxu0 %v6776_v7  ;;  %5825 = vmatpush1.bf16.msra.mxu1 %v6778_v8  ;;  %v499_v7 = vld [vmem:[#allocation5 + $0x5d8] sm:$0xff] }
 0x25b   : > { %5568 = vmatprep.subr.bf16.mxu0 %v6785_v9  ;;  %5826 = vmatprep.subr.bf16.mxu1 %v6787_v10  ;;  %v503_v8 = vld [vmem:[#allocation5 + $0x5f8] sm:$0xff]  ;;  %v6840_v9 = vcombine.low %v490_v61, %v494_v62  ;;  %v6842_v10 = vcombine.low %v491_v63, %v495_v0  ;;  %v554_v61 = vld [vmem:[#allocation5 + $0x790] sm:$0xff] }
 0x25c   : > { %v6851_v12 = vcombine.high %v499_v7, %v503_v8  ;;  %v558_v62 = vld [vmem:[#allocation5 + $0x7b0] sm:$0xff]  ;;  %v555_v63 = vld [vmem:[#allocation5 + $0x798] sm:$0xff] }
 0x25d   : > { %v559_v0 = vld [vmem:[#allocation5 + $0x7b8] sm:$0xff] }
 0x25e   : > { %5569 = vmatpush1.bf16.msra.mxu0 %v6784_v15  ;;  %5827 = vmatpush1.bf16.msra.mxu1 %v6786_v16  ;;  %v507_v15 = vld [vmem:[#allocation5 + $0x618] sm:$0xff] }
 0x25f   : > { %5581 = vmatprep.subr.bf16.mxu0 %v6793_v17  ;;  %5839 = vmatprep.subr.bf16.mxu1 %v6795_v18  ;;  %v511_v16 = vld [vmem:[#allocation5 + $0x638] sm:$0xff]  ;;  %v6848_v17 = vcombine.low %v498_v5, %v502_v6  ;;  %v6850_v18 = vcombine.low %v499_v7, %v503_v8  ;;  %v562_v5 = vld [vmem:[#allocation5 + $0x7d0] sm:$0xff] }
 0x260   : > { %v6859_v20 = vcombine.high %v507_v15, %v511_v16  ;;  %v566_v6 = vld [vmem:[#allocation5 + $0x7f0] sm:$0xff]  ;;  %v563_v7 = vld [vmem:[#allocation5 + $0x7d8] sm:$0xff] }
 0x261   : > { %5571 = vmatmul.mubr.bf16.vlgmr.msra.gmra.mrb[4].mxu0 %v7928_v29  ;;  %5829 = vmatmul.mubr.bf16.vlgmr.msra.gmra.mrb[4].mxu1 %v7928_v29  ;;  %v522_v29 = vld [vmem:[#allocation5 + $0x690] sm:$0xff]  ;;  %v567_v8 = vld [vmem:[#allocation5 + $0x7f8] sm:$0xff] }
 0x262   : > { %5582 = vmatpush1.bf16.msra.mxu0 %v6792_v23  ;;  %5840 = vmatpush1.bf16.msra.mxu1 %v6794_v24  ;;  %v515_v23 = vld [vmem:[#allocation5 + $0x658] sm:$0xff] }
 0x263   : > { %5583 = vmatprep.subr.bf16.mxu0 %v6801_v25  ;;  %5841 = vmatprep.subr.bf16.mxu1 %v6803_v26  ;;  %v519_v24 = vld [vmem:[#allocation5 + $0x678] sm:$0xff]  ;;  %v6856_v25 = vcombine.low %v506_v13, %v510_v14  ;;  %v6858_v26 = vcombine.low %v507_v15, %v511_v16  ;;  %v570_v13 = vld [vmem:[#allocation5 + $0x810] sm:$0xff] }
 0x264   : > { %5613 = vmatprep.mubr.bf16.mxu0 %v7929_v38  ;;  %5871 = vmatprep.mubr.bf16.mxu1 %v7929_v38  ;;  %v6867_v28 = vcombine.high %v515_v23, %v519_v24  ;;  %v534_v38 = vld [vmem:[#allocation5 + $0x6f0] sm:$0xff]  ;;  %v571_v15 = vld [vmem:[#allocation5 + $0x818] sm:$0xff] }
 0x265   : > { %v574_v14 = vld [vmem:[#allocation5 + $0x830] sm:$0xff]  ;;  %v575_v16 = vld [vmem:[#allocation5 + $0x838] sm:$0xff] }
 0x266   : > { %5584 = vmatpush1.bf16.msra.mxu0 %v6800_v32  ;;  %5842 = vmatpush1.bf16.msra.mxu1 %v6802_v33  ;;  %v527_v32 = vld [vmem:[#allocation5 + $0x6b8] sm:$0xff]  ;;  %v6864_v33 = vcombine.low %v514_v21, %v518_v22  ;;  %v578_v21 = vld [vmem:[#allocation5 + $0x850] sm:$0xff] }
 0x267   : > { %5585 = vmatprep.subr.bf16.mxu0 %v6809_v34  ;;  %5843 = vmatprep.subr.bf16.mxu1 %v6811_v35  ;;  %v6866_v34 = vcombine.low %v515_v23, %v519_v24  ;;  %v6873_v35 = vcombine.high %v522_v29, %v526_v30  ;;  %v6875_v36 = vcombine.high %v523_v31, %v527_v32  ;;  %v582_v22 = vld [vmem:[#allocation5 + $0x870] sm:$0xff]  ;;  %v579_v23 = vld [vmem:[#allocation5 + $0x858] sm:$0xff] }
 0x268   : > { %v583_v24 = vld [vmem:[#allocation5 + $0x878] sm:$0xff] }
 0x26a   : > { %5586 = vmatpush1.bf16.msra.mxu0 %v6808_v41  ;;  %5844 = vmatpush1.bf16.msra.mxu1 %v6810_v42  ;;  %v6872_v41 = vcombine.low %v522_v29, %v526_v30  ;;  %v6874_v42 = vcombine.low %v523_v31, %v527_v32  ;;  %v586_v29 = vld [vmem:[#allocation5 + $0x890] sm:$0xff]  ;;  %v7930_v31 = vld [vmem:[%s8413_s8 + $0x8] ss:$48 sps:$4 sm:$0xff]  }
 0x26b   : > { %5587 = vmatprep.subr.bf16.mxu0 %v6817_v43  ;;  %5845 = vmatprep.subr.bf16.mxu1 %v6819_v44  ;;  %v6881_v43 = vcombine.high %v530_v37, %v534_v38  ;;  %v6883_v44 = vcombine.high %v531_v39, %v535_v40  ;;  %v590_v30 = vld [vmem:[#allocation5 + $0x8b0] sm:$0xff]  ;;  %v587_v32 = vld [vmem:[#allocation5 + $0x898] sm:$0xff] }
 0x26e   : > { %5588 = vmatpush1.bf16.msra.mxu0 %v6816_v49  ;;  %5846 = vmatpush1.bf16.msra.mxu1 %v6818_v50  ;;  %v6880_v49 = vcombine.low %v530_v37, %v534_v38  ;;  %v6882_v50 = vcombine.low %v531_v39, %v535_v40  ;;  %v594_v38 = vld [vmem:[#allocation5 + $0x8d0] sm:$0xff] }
 0x26f   : > { %5589 = vmatprep.subr.bf16.mxu0 %v6825_v51  ;;  %5847 = vmatprep.subr.bf16.mxu1 %v6827_v52  ;;  %v6889_v51 = vcombine.high %v538_v45, %v542_v46  ;;  %v6891_v52 = vcombine.high %v539_v47, %v543_v48  ;;  %v598_v39 = vld [vmem:[#allocation5 + $0x8f0] sm:$0xff] }
 0x270   : > { %v7931_v40 = vld [vmem:[%s8413_s8 + $0x14] ss:$48 sps:$4 sm:$0xff]  }
 0x272   : > { %5590 = vmatpush1.bf16.msra.mxu0 %v6824_v57  ;;  %5848 = vmatpush1.bf16.msra.mxu1 %v6826_v58  ;;  %v6888_v57 = vcombine.low %v538_v45, %v542_v46  ;;  %v6890_v58 = vcombine.low %v539_v47, %v543_v48  ;;  %v6945_v45 = vcombine.high %v594_v38, %v598_v39  ;;  %v602_v47 = vld [vmem:[#allocation5 + $0x910] sm:$0xff] }
 0x273   : > { %5591 = vmatprep.subr.bf16.mxu0 %v6833_v59  ;;  %5849 = vmatprep.subr.bf16.mxu1 %v6835_v60  ;;  %v6897_v59 = vcombine.high %v546_v53, %v550_v54  ;;  %v6899_v60 = vcombine.high %v547_v55, %v551_v56  ;;  %v606_v48 = vld [vmem:[#allocation5 + $0x930] sm:$0xff] }
 0x276   : > { %5592 = vmatpush1.bf16.msra.mxu0 %v6832_v1  ;;  %5850 = vmatpush1.bf16.msra.mxu1 %v6834_v2  ;;  %v6896_v1 = vcombine.low %v546_v53, %v550_v54  ;;  %v6898_v2 = vcombine.low %v547_v55, %v551_v56  ;;  %v6953_v53 = vcombine.high %v602_v47, %v606_v48  ;;  %v610_v55 = vld [vmem:[#allocation5 + $0x950] sm:$0xff] }
 0x277   : > { %5593 = vmatprep.subr.bf16.mxu0 %v6841_v3  ;;  %5851 = vmatprep.subr.bf16.mxu1 %v6843_v4  ;;  %v6905_v3 = vcombine.high %v554_v61, %v558_v62  ;;  %v6907_v4 = vcombine.high %v555_v63, %v559_v0  ;;  %v614_v56 = vld [vmem:[#allocation5 + $0x970] sm:$0xff] }
 0x27a   : > { %5594 = vmatpush1.bf16.msra.mxu0 %v6840_v9  ;;  %5852 = vmatpush1.bf16.msra.mxu1 %v6842_v10  ;;  %v6904_v9 = vcombine.low %v554_v61, %v558_v62  ;;  %v6906_v10 = vcombine.low %v555_v63, %v559_v0  ;;  %v6961_v61 = vcombine.high %v610_v55, %v614_v56  ;;  %v618_v63 = vld [vmem:[#allocation5 + $0x990] sm:$0xff] }
 0x27b   : > { %5595 = vmatprep.subr.bf16.mxu0 %v6849_v11  ;;  %5853 = vmatprep.subr.bf16.mxu1 %v6851_v12  ;;  %v6913_v11 = vcombine.high %v562_v5, %v566_v6  ;;  %v6915_v12 = vcombine.high %v563_v7, %v567_v8  ;;  %v622_v0 = vld [vmem:[#allocation5 + $0x9b0] sm:$0xff] }
 0x27e   : > { %5596 = vmatpush1.bf16.msra.mxu0 %v6848_v17  ;;  %5854 = vmatpush1.bf16.msra.mxu1 %v6850_v18  ;;  %v6912_v17 = vcombine.low %v562_v5, %v566_v6  ;;  %v6914_v18 = vcombine.low %v563_v7, %v567_v8  ;;  %v6969_v5 = vcombine.high %v618_v63, %v622_v0  ;;  %v626_v7 = vld [vmem:[#allocation5 + $0x9d0] sm:$0xff] }
 0x27f   : > { %5597 = vmatprep.subr.bf16.mxu0 %v6857_v19  ;;  %5855 = vmatprep.subr.bf16.mxu1 %v6859_v20  ;;  %v6921_v19 = vcombine.high %v570_v13, %v574_v14  ;;  %v6923_v20 = vcombine.high %v571_v15, %v575_v16  ;;  %v630_v8 = vld [vmem:[#allocation5 + $0x9f0] sm:$0xff] }
 0x282   : > { %5598 = vmatpush1.bf16.msra.mxu0 %v6856_v25  ;;  %5856 = vmatpush1.bf16.msra.mxu1 %v6858_v26  ;;  %v6920_v25 = vcombine.low %v570_v13, %v574_v14  ;;  %v6922_v26 = vcombine.low %v571_v15, %v575_v16  ;;  %v6977_v13 = vcombine.high %v626_v7, %v630_v8  ;;  %v634_v15 = vld [vmem:[#allocation5 + $0xa10] sm:$0xff] }
 0x283   : > { %5599 = vmatprep.subr.bf16.mxu0 %v6865_v27  ;;  %5857 = vmatprep.subr.bf16.mxu1 %v6867_v28  ;;  %v6929_v27 = vcombine.high %v578_v21, %v582_v22  ;;  %v6931_v28 = vcombine.high %v579_v23, %v583_v24  ;;  %v638_v16 = vld [vmem:[#allocation5 + $0xa30] sm:$0xff] }
 0x286   : > { %5600 = vmatpush1.bf16.msra.mxu0 %v6864_v33  ;;  %5858 = vmatpush1.bf16.msra.mxu1 %v6866_v34  ;;  %v591_v33 = vld [vmem:[#allocation5 + $0x8b8] sm:$0xff]  ;;  %v6928_v34 = vcombine.low %v578_v21, %v582_v22  ;;  %v6985_v21 = vcombine.high %v634_v15, %v638_v16 }
 0x287   : > { %5601 = vmatprep.subr.bf16.mxu0 %v6873_v35  ;;  %5859 = vmatprep.subr.bf16.mxu1 %v6875_v36  ;;  %v6930_v35 = vcombine.low %v579_v23, %v583_v24  ;;  %v6937_v36 = vcombine.high %v586_v29, %v590_v30  ;;  %v6939_v37 = vcombine.high %v587_v32, %v591_v33  ;;  %v642_v23 = vld [vmem:[#allocation5 + $0xa50] sm:$0xff] }
 0x288   : > { %v646_v24 = vld [vmem:[#allocation5 + $0xa70] sm:$0xff] }
 0x28a   : > { %5602 = vmatpush1.bf16.msra.mxu0 %v6872_v41  ;;  %5860 = vmatpush1.bf16.msra.mxu1 %v6874_v42  ;;  %v595_v41 = vld [vmem:[#allocation5 + $0x8d8] sm:$0xff] }
 0x28b   : > { %5603 = vmatprep.subr.bf16.mxu0 %v6881_v43  ;;  %5861 = vmatprep.subr.bf16.mxu1 %v6883_v44  ;;  %v599_v42 = vld [vmem:[#allocation5 + $0x8f8] sm:$0xff]  ;;  %v6936_v43 = vcombine.low %v586_v29, %v590_v30  ;;  %v6938_v44 = vcombine.low %v587_v32, %v591_v33  ;;  %v6993_v29 = vcombine.high %v642_v23, %v646_v24  ;;  %v654_v32 = vld [vmem:[#allocation5 + $0xab0] sm:$0xff] }
 0x28c   : > { %v6947_v46 = vcombine.high %v595_v41, %v599_v42  ;;  %v651_v33 = vld [vmem:[#allocation5 + $0xa98] sm:$0xff] }
 0x28e   : > { %5604 = vmatpush1.bf16.msra.mxu0 %v6880_v49  ;;  %5862 = vmatpush1.bf16.msra.mxu1 %v6882_v50  ;;  %v603_v49 = vld [vmem:[#allocation5 + $0x918] sm:$0xff] }
 0x28f   : > { %5605 = vmatprep.subr.bf16.mxu0 %v6889_v51  ;;  %5863 = vmatprep.subr.bf16.mxu1 %v6891_v52  ;;  %v607_v50 = vld [vmem:[#allocation5 + $0x938] sm:$0xff]  ;;  %v6944_v51 = vcombine.low %v594_v38, %v598_v39  ;;  %v6946_v52 = vcombine.low %v595_v41, %v599_v42  ;;  %v658_v39 = vld [vmem:[#allocation5 + $0xad0] sm:$0xff] }
 0x290   : > { %v6955_v54 = vcombine.high %v603_v49, %v607_v50  ;;  %v659_v41 = vld [vmem:[#allocation5 + $0xad8] sm:$0xff] }
 0x291   : > { %v663_v42 = vld [vmem:[#allocation5 + $0xaf8] sm:$0xff] }
 0x292   : > { %5606 = vmatpush1.bf16.msra.mxu0 %v6888_v57  ;;  %5864 = vmatpush1.bf16.msra.mxu1 %v6890_v58  ;;  %v611_v57 = vld [vmem:[#allocation5 + $0x958] sm:$0xff] }
 0x293   : > { %5607 = vmatprep.subr.bf16.mxu0 %v6897_v59  ;;  %5865 = vmatprep.subr.bf16.mxu1 %v6899_v60  ;;  %v615_v58 = vld [vmem:[#allocation5 + $0x978] sm:$0xff]  ;;  %v6952_v59 = vcombine.low %v602_v47, %v606_v48  ;;  %v6954_v60 = vcombine.low %v603_v49, %v607_v50  ;;  %v666_v47 = vld [vmem:[#allocation5 + $0xb10] sm:$0xff] }
 0x294   : > { %v6963_v62 = vcombine.high %v611_v57, %v615_v58  ;;  %v670_v48 = vld [vmem:[#allocation5 + $0xb30] sm:$0xff]  ;;  %v667_v49 = vld [vmem:[#allocation5 + $0xb18] sm:$0xff] }
 0x295   : > { %v671_v50 = vld [vmem:[#allocation5 + $0xb38] sm:$0xff] }
 0x296   : > { %5608 = vmatpush1.bf16.msra.mxu0 %v6896_v1  ;;  %5866 = vmatpush1.bf16.msra.mxu1 %v6898_v2  ;;  %v619_v1 = vld [vmem:[#allocation5 + $0x998] sm:$0xff] }
 0x297   : > { %5609 = vmatprep.subr.bf16.mxu0 %v6905_v3  ;;  %5867 = vmatprep.subr.bf16.mxu1 %v6907_v4  ;;  %v623_v2 = vld [vmem:[#allocation5 + $0x9b8] sm:$0xff]  ;;  %v6960_v3 = vcombine.low %v610_v55, %v614_v56  ;;  %v6962_v4 = vcombine.low %v611_v57, %v615_v58  ;;  %v674_v55 = vld [vmem:[#allocation5 + $0xb50] sm:$0xff] }
 0x298   : > { %v6971_v6 = vcombine.high %v619_v1, %v623_v2  ;;  %v678_v56 = vld [vmem:[#allocation5 + $0xb70] sm:$0xff]  ;;  %v675_v57 = vld [vmem:[#allocation5 + $0xb58] sm:$0xff] }
 0x299   : > { %v679_v58 = vld [vmem:[#allocation5 + $0xb78] sm:$0xff] }
 0x29a   : > { %5610 = vmatpush1.bf16.msra.mxu0 %v6904_v9  ;;  %5868 = vmatpush1.bf16.msra.mxu1 %v6906_v10  ;;  %v627_v9 = vld [vmem:[#allocation5 + $0x9d8] sm:$0xff] }
 0x29b   : > { %5611 = vmatprep.subr.bf16.mxu0 %v6913_v11  ;;  %5869 = vmatprep.subr.bf16.mxu1 %v6915_v12  ;;  %v631_v10 = vld [vmem:[#allocation5 + $0x9f8] sm:$0xff]  ;;  %v6968_v11 = vcombine.low %v618_v63, %v622_v0  ;;  %v6970_v12 = vcombine.low %v619_v1, %v623_v2  ;;  %v682_v63 = vld [vmem:[#allocation5 + $0xb90] sm:$0xff] }
 0x29c   : > { %v6979_v14 = vcombine.high %v627_v9, %v631_v10  ;;  %v686_v0 = vld [vmem:[#allocation5 + $0xbb0] sm:$0xff]  ;;  %v683_v1 = vld [vmem:[#allocation5 + $0xb98] sm:$0xff] }
 0x29d   : > { %v687_v2 = vld [vmem:[#allocation5 + $0xbb8] sm:$0xff] }
 0x29e   : > { %5612 = vmatpush1.bf16.msra.mxu0 %v6912_v17  ;;  %5870 = vmatpush1.bf16.msra.mxu1 %v6914_v18  ;;  %v635_v17 = vld [vmem:[#allocation5 + $0xa18] sm:$0xff] }
 0x29f   : > { %5624 = vmatprep.subr.bf16.mxu0 %v6921_v19  ;;  %5882 = vmatprep.subr.bf16.mxu1 %v6923_v20  ;;  %v639_v18 = vld [vmem:[#allocation5 + $0xa38] sm:$0xff]  ;;  %v6976_v19 = vcombine.low %v626_v7, %v630_v8  ;;  %v6978_v20 = vcombine.low %v627_v9, %v631_v10  ;;  %v690_v7 = vld [vmem:[#allocation5 + $0xbd0] sm:$0xff] }
 0x2a0   : > { %v6987_v22 = vcombine.high %v635_v17, %v639_v18  ;;  %v694_v8 = vld [vmem:[#allocation5 + $0xbf0] sm:$0xff]  ;;  %v691_v9 = vld [vmem:[#allocation5 + $0xbd8] sm:$0xff] }
 0x2a1   : > { %5614 = vmatmul.mubr.bf16.vlgmr.msra.gmra.mrb[4].mxu0 %v7930_v31  ;;  %5872 = vmatmul.mubr.bf16.vlgmr.msra.gmra.mrb[4].mxu1 %v7930_v31  ;;  %v650_v31 = vld [vmem:[#allocation5 + $0xa90] sm:$0xff]  ;;  %v695_v10 = vld [vmem:[#allocation5 + $0xbf8] sm:$0xff] }
 0x2a2   : > { %5625 = vmatpush1.bf16.msra.mxu0 %v6920_v25  ;;  %5883 = vmatpush1.bf16.msra.mxu1 %v6922_v26  ;;  %v643_v25 = vld [vmem:[#allocation5 + $0xa58] sm:$0xff] }
 0x2a3   : > { %5626 = vmatprep.subr.bf16.mxu0 %v6929_v27  ;;  %5884 = vmatprep.subr.bf16.mxu1 %v6931_v28  ;;  %v647_v26 = vld [vmem:[#allocation5 + $0xa78] sm:$0xff]  ;;  %v6984_v27 = vcombine.low %v634_v15, %v638_v16  ;;  %v6986_v28 = vcombine.low %v635_v17, %v639_v18  ;;  %v698_v15 = vld [vmem:[#allocation5 + $0xc10] sm:$0xff] }
 0x2a4   : > { %5656 = vmatprep.mubr.bf16.mxu0 %v7931_v40  ;;  %5914 = vmatprep.mubr.bf16.mxu1 %v7931_v40  ;;  %v6995_v30 = vcombine.high %v643_v25, %v647_v26  ;;  %v662_v40 = vld [vmem:[#allocation5 + $0xaf0] sm:$0xff]  ;;  %v699_v17 = vld [vmem:[#allocation5 + $0xc18] sm:$0xff] }
 0x2a5   : > { %v702_v16 = vld [vmem:[#allocation5 + $0xc30] sm:$0xff]  ;;  %v703_v18 = vld [vmem:[#allocation5 + $0xc38] sm:$0xff] }
 0x2a6   : > { %5627 = vmatpush1.bf16.msra.mxu0 %v6928_v34  ;;  %5885 = vmatpush1.bf16.msra.mxu1 %v6930_v35  ;;  %v655_v34 = vld [vmem:[#allocation5 + $0xab8] sm:$0xff]  ;;  %v6992_v35 = vcombine.low %v642_v23, %v646_v24  ;;  %v706_v23 = vld [vmem:[#allocation5 + $0xc50] sm:$0xff] }
 0x2a7   : > { %5628 = vmatprep.subr.bf16.mxu0 %v6937_v36  ;;  %5886 = vmatprep.subr.bf16.mxu1 %v6939_v37  ;;  %v6994_v36 = vcombine.low %v643_v25, %v647_v26  ;;  %v7001_v37 = vcombine.high %v650_v31, %v654_v32  ;;  %v7003_v38 = vcombine.high %v651_v33, %v655_v34  ;;  %v710_v24 = vld [vmem:[#allocation5 + $0xc70] sm:$0xff]  ;;  %v707_v25 = vld [vmem:[#allocation5 + $0xc58] sm:$0xff] }
 0x2a8   : > { %v711_v26 = vld [vmem:[#allocation5 + $0xc78] sm:$0xff] }
 0x2aa   : > { %5629 = vmatpush1.bf16.msra.mxu0 %v6936_v43  ;;  %5887 = vmatpush1.bf16.msra.mxu1 %v6938_v44  ;;  %v7000_v43 = vcombine.low %v650_v31, %v654_v32  ;;  %v7002_v44 = vcombine.low %v651_v33, %v655_v34  ;;  %v714_v31 = vld [vmem:[#allocation5 + $0xc90] sm:$0xff]  ;;  %v715_v34 = vld [vmem:[#allocation5 + $0xc98] sm:$0xff] }
 0x2ab   : > { %5630 = vmatprep.subr.bf16.mxu0 %v6945_v45  ;;  %5888 = vmatprep.subr.bf16.mxu1 %v6947_v46  ;;  %v7009_v45 = vcombine.high %v658_v39, %v662_v40  ;;  %v7011_v46 = vcombine.high %v659_v41, %v663_v42  ;;  %v718_v32 = vld [vmem:[#allocation5 + $0xcb0] sm:$0xff] }
 0x2ac   : > { %v7932_v33 = vld [vmem:[%s8413_s8 + $0x10] ss:$48 sps:$4 sm:$0xff]  }
 0x2ae   : > { %5631 = vmatpush1.bf16.msra.mxu0 %v6944_v51  ;;  %5889 = vmatpush1.bf16.msra.mxu1 %v6946_v52  ;;  %v7008_v51 = vcombine.low %v658_v39, %v662_v40  ;;  %v7010_v52 = vcombine.low %v659_v41, %v663_v42  ;;  %v722_v40 = vld [vmem:[#allocation5 + $0xcd0] sm:$0xff]  ;;  %v7933_v42 = vld [vmem:[%s8413_s8 + $0x1c] ss:$48 sps:$4 sm:$0xff]  }
 0x2af   : > { %5632 = vmatprep.subr.bf16.mxu0 %v6953_v53  ;;  %5890 = vmatprep.subr.bf16.mxu1 %v6955_v54  ;;  %v7017_v53 = vcombine.high %v666_v47, %v670_v48  ;;  %v7019_v54 = vcombine.high %v667_v49, %v671_v50  ;;  %v726_v41 = vld [vmem:[#allocation5 + $0xcf0] sm:$0xff] }
 0x2b2   : > { %5633 = vmatpush1.bf16.msra.mxu0 %v6952_v59  ;;  %5891 = vmatpush1.bf16.msra.mxu1 %v6954_v60  ;;  %v7016_v59 = vcombine.low %v666_v47, %v670_v48  ;;  %v7018_v60 = vcombine.low %v667_v49, %v671_v50  ;;  %v7073_v47 = vcombine.high %v722_v40, %v726_v41  ;;  %v730_v49 = vld [vmem:[#allocation5 + $0xd10] sm:$0xff] }
 0x2b3   : > { %5634 = vmatprep.subr.bf16.mxu0 %v6961_v61  ;;  %5892 = vmatprep.subr.bf16.mxu1 %v6963_v62  ;;  %v7025_v61 = vcombine.high %v674_v55, %v678_v56  ;;  %v7027_v62 = vcombine.high %v675_v57, %v679_v58  ;;  %v734_v50 = vld [vmem:[#allocation5 + $0xd30] sm:$0xff] }
 0x2b6   : > { %5635 = vmatpush1.bf16.msra.mxu0 %v6960_v3  ;;  %5893 = vmatpush1.bf16.msra.mxu1 %v6962_v4  ;;  %v7024_v3 = vcombine.low %v674_v55, %v678_v56  ;;  %v7026_v4 = vcombine.low %v675_v57, %v679_v58  ;;  %v7081_v55 = vcombine.high %v730_v49, %v734_v50  ;;  %v738_v57 = vld [vmem:[#allocation5 + $0xd50] sm:$0xff] }
 0x2b7   : > { %5636 = vmatprep.subr.bf16.mxu0 %v6969_v5  ;;  %5894 = vmatprep.subr.bf16.mxu1 %v6971_v6  ;;  %v7033_v5 = vcombine.high %v682_v63, %v686_v0  ;;  %v7035_v6 = vcombine.high %v683_v1, %v687_v2  ;;  %v742_v58 = vld [vmem:[#allocation5 + $0xd70] sm:$0xff] }
 0x2ba   : > { %5637 = vmatpush1.bf16.msra.mxu0 %v6968_v11  ;;  %5895 = vmatpush1.bf16.msra.mxu1 %v6970_v12  ;;  %v7032_v11 = vcombine.low %v682_v63, %v686_v0  ;;  %v7034_v12 = vcombine.low %v683_v1, %v687_v2  ;;  %v7089_v63 = vcombine.high %v738_v57, %v742_v58  ;;  %v746_v1 = vld [vmem:[#allocation5 + $0xd90] sm:$0xff] }
 0x2bb   : > { %5638 = vmatprep.subr.bf16.mxu0 %v6977_v13  ;;  %5896 = vmatprep.subr.bf16.mxu1 %v6979_v14  ;;  %v7041_v13 = vcombine.high %v690_v7, %v694_v8  ;;  %v7043_v14 = vcombine.high %v691_v9, %v695_v10  ;;  %v750_v2 = vld [vmem:[#allocation5 + $0xdb0] sm:$0xff] }
 0x2be   : > { %5639 = vmatpush1.bf16.msra.mxu0 %v6976_v19  ;;  %5897 = vmatpush1.bf16.msra.mxu1 %v6978_v20  ;;  %v7040_v19 = vcombine.low %v690_v7, %v694_v8  ;;  %v7042_v20 = vcombine.low %v691_v9, %v695_v10  ;;  %v7097_v7 = vcombine.high %v746_v1, %v750_v2  ;;  %v754_v10 = vld [vmem:[#allocation5 + $0xdd0] sm:$0xff] }
 0x2bf   : > { %5640 = vmatprep.subr.bf16.mxu0 %v6985_v21  ;;  %5898 = vmatprep.subr.bf16.mxu1 %v6987_v22  ;;  %v7049_v21 = vcombine.high %v698_v15, %v702_v16  ;;  %v7051_v22 = vcombine.high %v699_v17, %v703_v18 }
 0x2c2   : > { %5641 = vmatpush1.bf16.msra.mxu0 %v6984_v27  ;;  %5899 = vmatpush1.bf16.msra.mxu1 %v6986_v28  ;;  %v7048_v27 = vcombine.low %v698_v15, %v702_v16  ;;  %v7050_v28 = vcombine.low %v699_v17, %v703_v18  ;;  %v759_v15 = vld [vmem:[#allocation5 + $0xdf8] sm:$0xff]  ;;  %v7096_v18 = vcombine.low %v746_v1, %v750_v2  ;;  %v802_v1 = vld [vmem:[#allocation5 + $0xf50] sm:$0xff] }
 0x2c3   : > { %5642 = vmatprep.subr.bf16.mxu0 %v6993_v29  ;;  %5900 = vmatprep.subr.bf16.mxu1 %v6995_v30  ;;  %v7057_v29 = vcombine.high %v706_v23, %v710_v24  ;;  %v7059_v30 = vcombine.high %v707_v25, %v711_v26  ;;  %v806_v2 = vld [vmem:[#allocation5 + $0xf70] sm:$0xff] }
 0x2c6   : > { %5643 = vmatpush1.bf16.msra.mxu0 %v6992_v35  ;;  %5901 = vmatpush1.bf16.msra.mxu1 %v6994_v36  ;;  %v719_v35 = vld [vmem:[#allocation5 + $0xcb8] sm:$0xff]  ;;  %v7056_v36 = vcombine.low %v706_v23, %v710_v24 }
 0x2c7   : > { %5644 = vmatprep.subr.bf16.mxu0 %v7001_v37  ;;  %5902 = vmatprep.subr.bf16.mxu1 %v7003_v38  ;;  %v7058_v37 = vcombine.low %v707_v25, %v711_v26  ;;  %v7065_v38 = vcombine.high %v714_v31, %v718_v32  ;;  %v7067_v39 = vcombine.high %v715_v34, %v719_v35  ;;  %v762_v25 = vld [vmem:[#allocation5 + $0xe10] sm:$0xff] }
 0x2c8   : > { %v766_v26 = vld [vmem:[#allocation5 + $0xe30] sm:$0xff] }
 0x2ca   : > { %5645 = vmatpush1.bf16.msra.mxu0 %v7000_v43  ;;  %5903 = vmatpush1.bf16.msra.mxu1 %v7002_v44  ;;  %v723_v43 = vld [vmem:[#allocation5 + $0xcd8] sm:$0xff] }
 0x2cb   : > { %5646 = vmatprep.subr.bf16.mxu0 %v7009_v45  ;;  %5904 = vmatprep.subr.bf16.mxu1 %v7011_v46  ;;  %v727_v44 = vld [vmem:[#allocation5 + $0xcf8] sm:$0xff]  ;;  %v7064_v45 = vcombine.low %v714_v31, %v718_v32  ;;  %v7066_v46 = vcombine.low %v715_v34, %v719_v35  ;;  %v7113_v31 = vcombine.high %v762_v25, %v766_v26  ;;  %v774_v34 = vld [vmem:[#allocation5 + $0xe70] sm:$0xff] }
 0x2cc   : > { %v7075_v48 = vcombine.high %v723_v43, %v727_v44  ;;  %v771_v35 = vld [vmem:[#allocation5 + $0xe58] sm:$0xff] }
 0x2ce   : > { %5647 = vmatpush1.bf16.msra.mxu0 %v7008_v51  ;;  %5905 = vmatpush1.bf16.msra.mxu1 %v7010_v52  ;;  %v731_v51 = vld [vmem:[#allocation5 + $0xd18] sm:$0xff] }
 0x2cf   : > { %5648 = vmatprep.subr.bf16.mxu0 %v7017_v53  ;;  %5906 = vmatprep.subr.bf16.mxu1 %v7019_v54  ;;  %v735_v52 = vld [vmem:[#allocation5 + $0xd38] sm:$0xff]  ;;  %v7072_v53 = vcombine.low %v722_v40, %v726_v41  ;;  %v7074_v54 = vcombine.low %v723_v43, %v727_v44  ;;  %v778_v41 = vld [vmem:[#allocation5 + $0xe90] sm:$0xff] }
 0x2d0   : > { %v7083_v56 = vcombine.high %v731_v51, %v735_v52  ;;  %v779_v43 = vld [vmem:[#allocation5 + $0xe98] sm:$0xff] }
 0x2d1   : > { %v783_v44 = vld [vmem:[#allocation5 + $0xeb8] sm:$0xff] }
 0x2d2   : > { %5649 = vmatpush1.bf16.msra.mxu0 %v7016_v59  ;;  %5907 = vmatpush1.bf16.msra.mxu1 %v7018_v60  ;;  %v739_v59 = vld [vmem:[#allocation5 + $0xd58] sm:$0xff] }
 0x2d3   : > { %5650 = vmatprep.subr.bf16.mxu0 %v7025_v61  ;;  %5908 = vmatprep.subr.bf16.mxu1 %v7027_v62  ;;  %v743_v60 = vld [vmem:[#allocation5 + $0xd78] sm:$0xff]  ;;  %v7080_v61 = vcombine.low %v730_v49, %v734_v50  ;;  %v7082_v62 = vcombine.low %v731_v51, %v735_v52  ;;  %v786_v49 = vld [vmem:[#allocation5 + $0xed0] sm:$0xff] }
 0x2d4   : > { %v7091_v0 = vcombine.high %v739_v59, %v743_v60  ;;  %v790_v50 = vld [vmem:[#allocation5 + $0xef0] sm:$0xff]  ;;  %v787_v51 = vld [vmem:[#allocation5 + $0xed8] sm:$0xff] }
 0x2d5   : > { %v791_v52 = vld [vmem:[#allocation5 + $0xef8] sm:$0xff] }
 0x2d6   : > { %5651 = vmatpush1.bf16.msra.mxu0 %v7024_v3  ;;  %5909 = vmatpush1.bf16.msra.mxu1 %v7026_v4  ;;  %v747_v3 = vld [vmem:[#allocation5 + $0xd98] sm:$0xff] }
 0x2d7   : > { %5652 = vmatprep.subr.bf16.mxu0 %v7033_v5  ;;  %5910 = vmatprep.subr.bf16.mxu1 %v7035_v6  ;;  %v751_v4 = vld [vmem:[#allocation5 + $0xdb8] sm:$0xff]  ;;  %v7088_v5 = vcombine.low %v738_v57, %v742_v58  ;;  %v7090_v6 = vcombine.low %v739_v59, %v743_v60  ;;  %v794_v57 = vld [vmem:[#allocation5 + $0xf10] sm:$0xff] }
 0x2d8   : > { %v7099_v9 = vcombine.high %v747_v3, %v751_v4  ;;  %v798_v58 = vld [vmem:[#allocation5 + $0xf30] sm:$0xff]  ;;  %v795_v59 = vld [vmem:[#allocation5 + $0xf18] sm:$0xff] }
 0x2d9   : > { %v799_v60 = vld [vmem:[#allocation5 + $0xf38] sm:$0xff] }
 0x2da   : > { %5653 = vmatpush1.bf16.msra.mxu0 %v7032_v11  ;;  %5911 = vmatpush1.bf16.msra.mxu1 %v7034_v12  ;;  %v758_v11 = vld [vmem:[#allocation5 + $0xdf0] sm:$0xff] }
 0x2db   : > { %5654 = vmatprep.subr.bf16.mxu0 %v7041_v13  ;;  %5912 = vmatprep.subr.bf16.mxu1 %v7043_v14  ;;  %v755_v14 = vld [vmem:[#allocation5 + $0xdd8] sm:$0xff] }
 0x2dc   : > { %v7107_v24 = vcombine.high %v755_v14, %v759_v15 }
 0x2de   : > { %5655 = vmatpush1.bf16.msra.mxu0 %v7040_v19  ;;  %5913 = vmatpush1.bf16.msra.mxu1 %v7042_v20 }
 0x2df   : > { %5667 = vmatprep.subr.bf16.mxu0 %v7049_v21  ;;  %5925 = vmatprep.subr.bf16.mxu1 %v7051_v22  ;;  %v7098_v21 = vcombine.low %v747_v3, %v751_v4  ;;  %v7105_v22 = vcombine.high %v754_v10, %v758_v11  ;;  %v803_v3 = vld [vmem:[#allocation5 + $0xf58] sm:$0xff] }
 0x2e0   : > { %v807_v4 = vld [vmem:[#allocation5 + $0xf78] sm:$0xff] }
 0x2e1   : > { %5657 = vmatmul.mubr.bf16.vlgmr.msra.gmra.mrb[4].mxu0 %v7932_v33  ;;  %5915 = vmatmul.mubr.bf16.vlgmr.msra.gmra.mrb[4].mxu1 %v7932_v33  ;;  %v770_v33 = vld [vmem:[#allocation5 + $0xe50] sm:$0xff] }
 0x2e2   : > { %5668 = vmatpush1.bf16.msra.mxu0 %v7048_v27  ;;  %5926 = vmatpush1.bf16.msra.mxu1 %v7050_v28  ;;  %v763_v27 = vld [vmem:[#allocation5 + $0xe18] sm:$0xff] }
 0x2e3   : > { %5669 = vmatprep.subr.bf16.mxu0 %v7057_v29  ;;  %5927 = vmatprep.subr.bf16.mxu1 %v7059_v30  ;;  %v767_v28 = vld [vmem:[#allocation5 + $0xe38] sm:$0xff]  ;;  %v7104_v29 = vcombine.low %v754_v10, %v758_v11  ;;  %v7106_v30 = vcombine.low %v755_v14, %v759_v15  ;;  %v810_v10 = vld [vmem:[#allocation5 + $0xf90] sm:$0xff] }
 0x2e4   : > { %5699 = vmatprep.mubr.bf16.mxu0 %v7933_v42  ;;  %5957 = vmatprep.mubr.bf16.mxu1 %v7933_v42  ;;  %v7115_v32 = vcombine.high %v763_v27, %v767_v28  ;;  %v782_v42 = vld [vmem:[#allocation5 + $0xeb0] sm:$0xff]  ;;  %v811_v14 = vld [vmem:[#allocation5 + $0xf98] sm:$0xff] }
 0x2e5   : > { %v814_v11 = vld [vmem:[#allocation5 + $0xfb0] sm:$0xff]  ;;  %v815_v15 = vld [vmem:[#allocation5 + $0xfb8] sm:$0xff] }
 0x2e6   : > { %5670 = vmatpush1.bf16.msra.mxu0 %v7056_v36  ;;  %5928 = vmatpush1.bf16.msra.mxu1 %v7058_v37  ;;  %v775_v36 = vld [vmem:[#allocation5 + $0xe78] sm:$0xff]  ;;  %v7112_v37 = vcombine.low %v762_v25, %v766_v26  ;;  %v818_v25 = vld [vmem:[#allocation5 + $0xfd0] sm:$0xff] }
 0x2e7   : > { %5671 = vmatprep.subr.bf16.mxu0 %v7065_v38  ;;  %5929 = vmatprep.subr.bf16.mxu1 %v7067_v39  ;;  %v7114_v38 = vcombine.low %v763_v27, %v767_v28  ;;  %v7121_v39 = vcombine.high %v770_v33, %v774_v34  ;;  %v7123_v40 = vcombine.high %v771_v35, %v775_v36  ;;  %v822_v26 = vld [vmem:[#allocation5 + $0xff0] sm:$0xff]  ;;  %v819_v27 = vld [vmem:[#allocation5 + $0xfd8] sm:$0xff] }
 0x2e8   : > { %v823_v28 = vld [vmem:[#allocation5 + $0xff8] sm:$0xff] }
 0x2ea   : > { %5672 = vmatpush1.bf16.msra.mxu0 %v7064_v45  ;;  %5930 = vmatpush1.bf16.msra.mxu1 %v7066_v46  ;;  %v7120_v45 = vcombine.low %v770_v33, %v774_v34  ;;  %v7122_v46 = vcombine.low %v771_v35, %v775_v36  ;;  %v826_v33 = vld [vmem:[#allocation5 + $0x1010] sm:$0xff]  ;;  %v827_v35 = vld [vmem:[#allocation5 + $0x1018] sm:$0xff] }
 0x2eb   : > { %5673 = vmatprep.subr.bf16.mxu0 %v7073_v47  ;;  %5931 = vmatprep.subr.bf16.mxu1 %v7075_v48  ;;  %v7129_v47 = vcombine.high %v778_v41, %v782_v42  ;;  %v7131_v48 = vcombine.high %v779_v43, %v783_v44  ;;  %v830_v34 = vld [vmem:[#allocation5 + $0x1030] sm:$0xff]  ;;  %v831_v36 = vld [vmem:[#allocation5 + $0x1038] sm:$0xff] }
 0x2ee   : > { %5674 = vmatpush1.bf16.msra.mxu0 %v7072_v53  ;;  %5932 = vmatpush1.bf16.msra.mxu1 %v7074_v54  ;;  %v7128_v53 = vcombine.low %v778_v41, %v782_v42  ;;  %v7130_v54 = vcombine.low %v779_v43, %v783_v44  ;;  %v834_v41 = vld [vmem:[#allocation5 + $0x1050] sm:$0xff]  ;;  %v835_v43 = vld [vmem:[#allocation5 + $0x1058] sm:$0xff] }
 0x2ef   : > { %5675 = vmatprep.subr.bf16.mxu0 %v7081_v55  ;;  %5933 = vmatprep.subr.bf16.mxu1 %v7083_v56  ;;  %v7137_v55 = vcombine.high %v786_v49, %v790_v50  ;;  %v7139_v56 = vcombine.high %v787_v51, %v791_v52  ;;  %v838_v42 = vld [vmem:[#allocation5 + $0x1070] sm:$0xff]  ;;  %v839_v44 = vld [vmem:[#allocation5 + $0x1078] sm:$0xff] }
 0x2f2   : > { %5676 = vmatpush1.bf16.msra.mxu0 %v7080_v61  ;;  %5934 = vmatpush1.bf16.msra.mxu1 %v7082_v62  ;;  %v7136_v61 = vcombine.low %v786_v49, %v790_v50  ;;  %v7138_v62 = vcombine.low %v787_v51, %v791_v52  ;;  %v842_v49 = vld [vmem:[#allocation5 + $0x1090] sm:$0xff]  ;;  %v7934_v51 = vld [vmem:[%s8413_s8 + $0x18] ss:$48 sps:$4 sm:$0xff]  }
 0x2f3   : > { %5677 = vmatprep.subr.bf16.mxu0 %v7089_v63  ;;  %5935 = vmatprep.subr.bf16.mxu1 %v7091_v0  ;;  %v7145_v63 = vcombine.high %v794_v57, %v798_v58  ;;  %v7147_v0 = vcombine.high %v795_v59, %v799_v60  ;;  %v846_v50 = vld [vmem:[#allocation5 + $0x10b0] sm:$0xff]  ;;  %v843_v52 = vld [vmem:[#allocation5 + $0x1098] sm:$0xff] }
 0x2f4   : > { %v8446_v8 = vpop.f32.mrb[0].mxu0  ;;  %v8448_v12 = vpop.f32.mrb[0].mxu1 }
 0x2f5   : > { %v8450_v13 = vpop.f32.mrb[1].mxu0  ;;  %v8452_v16 = vpop.f32.mrb[1].mxu1 }
 0x2f6   : > { %v8454_v17 = vpop.f32.mrb[2].mxu0  ;;  %5678 = vmatpush1.bf16.msra.mxu0 %v7088_v5  ;;  %v8456_v19 = vpop.f32.mrb[2].mxu1  ;;  %5936 = vmatpush1.bf16.msra.mxu1 %v7090_v6  ;;  %v7144_v5 = vcombine.low %v794_v57, %v798_v58  ;;  %v7146_v6 = vcombine.low %v795_v59, %v799_v60  ;;  %v850_v58 = vld [vmem:[#allocation5 + $0x10d0] sm:$0xff] }
 0x2f7   : > { %v8458_v20 = vpop.f32.mrb[3].mxu0  ;;  %5679 = vmatprep.subr.bf16.mxu0 %v7097_v7  ;;  %v8460_v23 = vpop.f32.mrb[3].mxu1  ;;  %5937 = vmatprep.subr.bf16.mxu1 %v7099_v9  ;;  %v7153_v7 = vcombine.high %v802_v1, %v806_v2  ;;  %v7155_v9 = vcombine.high %v803_v3, %v807_v4  ;;  %v854_v59 = vld [vmem:[#allocation5 + $0x10f0] sm:$0xff] }
 0x2f8   : > { %v7935_v60 = vld [vmem:[%s8413_s8 + $0x24] ss:$48 sps:$4 sm:$0xff]  }
 0x2fa   : > { %5680 = vmatpush1.bf16.msra.mxu0 %v7096_v18  ;;  %5938 = vmatpush1.bf16.msra.mxu1 %v7098_v21  ;;  %v7152_v18 = vcombine.low %v802_v1, %v806_v2  ;;  %v7154_v21 = vcombine.low %v803_v3, %v807_v4  ;;  %v7201_v1 = vcombine.high %v850_v58, %v854_v59  ;;  %v858_v3 = vld [vmem:[#allocation5 + $0x1110] sm:$0xff] }
 0x2fb   : > { %5681 = vmatprep.subr.bf16.mxu0 %v7105_v22  ;;  %5939 = vmatprep.subr.bf16.mxu1 %v7107_v24  ;;  %v7161_v22 = vcombine.high %v810_v10, %v814_v11  ;;  %v7163_v24 = vcombine.high %v811_v14, %v815_v15  ;;  %v862_v4 = vld [vmem:[#allocation5 + $0x1130] sm:$0xff] }
 0x2fe   : > { %5682 = vmatpush1.bf16.msra.mxu0 %v7104_v29  ;;  %5940 = vmatpush1.bf16.msra.mxu1 %v7106_v30  ;;  %v7160_v29 = vcombine.low %v810_v10, %v814_v11  ;;  %v7162_v30 = vcombine.low %v811_v14, %v815_v15  ;;  %v7209_v10 = vcombine.high %v858_v3, %v862_v4  ;;  %v866_v14 = vld [vmem:[#allocation5 + $0x1150] sm:$0xff] }
 0x2ff   : > { %5683 = vmatprep.subr.bf16.mxu0 %v7113_v31  ;;  %5941 = vmatprep.subr.bf16.mxu1 %v7115_v32  ;;  %v7169_v31 = vcombine.high %v818_v25, %v822_v26  ;;  %v7171_v32 = vcombine.high %v819_v27, %v823_v28  ;;  %v870_v15 = vld [vmem:[#allocation5 + $0x1170] sm:$0xff] }
 0x302   : > { %5684 = vmatpush1.bf16.msra.mxu0 %v7112_v37  ;;  %5942 = vmatpush1.bf16.msra.mxu1 %v7114_v38  ;;  %v7168_v37 = vcombine.low %v818_v25, %v822_v26  ;;  %v7170_v38 = vcombine.low %v819_v27, %v823_v28  ;;  %v7217_v25 = vcombine.high %v866_v14, %v870_v15  ;;  %v874_v27 = vld [vmem:[#allocation5 + $0x1190] sm:$0xff] }
 0x303   : > { %5685 = vmatprep.subr.bf16.mxu0 %v7121_v39  ;;  %5943 = vmatprep.subr.bf16.mxu1 %v7123_v40  ;;  %v7177_v39 = vcombine.high %v826_v33, %v830_v34  ;;  %v7179_v40 = vcombine.high %v827_v35, %v831_v36  ;;  %v878_v28 = vld [vmem:[#allocation5 + $0x11b0] sm:$0xff] }
 0x306   : > { %5686 = vmatpush1.bf16.msra.mxu0 %v7120_v45  ;;  %5944 = vmatpush1.bf16.msra.mxu1 %v7122_v46  ;;  %v7176_v45 = vcombine.low %v826_v33, %v830_v34  ;;  %v7178_v46 = vcombine.low %v827_v35, %v831_v36  ;;  %v7225_v33 = vcombine.high %v874_v27, %v878_v28  ;;  %v882_v35 = vld [vmem:[#allocation5 + $0x11d0] sm:$0xff] }
 0x307   : > { %5687 = vmatprep.subr.bf16.mxu0 %v7129_v47  ;;  %5945 = vmatprep.subr.bf16.mxu1 %v7131_v48  ;;  %v7185_v47 = vcombine.high %v834_v41, %v838_v42  ;;  %v7187_v48 = vcombine.high %v835_v43, %v839_v44  ;;  %v886_v36 = vld [vmem:[#allocation5 + $0x11f0] sm:$0xff] }
 0x30a   : > { %5688 = vmatpush1.bf16.msra.mxu0 %v7128_v53  ;;  %5946 = vmatpush1.bf16.msra.mxu1 %v7130_v54  ;;  %v847_v53 = vld [vmem:[#allocation5 + $0x10b8] sm:$0xff]  ;;  %v7184_v54 = vcombine.low %v834_v41, %v838_v42  ;;  %v7233_v41 = vcombine.high %v882_v35, %v886_v36 }
 0x30b   : > { %5689 = vmatprep.subr.bf16.mxu0 %v7137_v55  ;;  %5947 = vmatprep.subr.bf16.mxu1 %v7139_v56  ;;  %v7186_v55 = vcombine.low %v835_v43, %v839_v44  ;;  %v7193_v56 = vcombine.high %v842_v49, %v846_v50  ;;  %v7195_v57 = vcombine.high %v843_v52, %v847_v53  ;;  %v890_v43 = vld [vmem:[#allocation5 + $0x1210] sm:$0xff] }
 0x30c   : > { %v894_v44 = vld [vmem:[#allocation5 + $0x1230] sm:$0xff] }
 0x30e   : > { %5690 = vmatpush1.bf16.msra.mxu0 %v7136_v61  ;;  %5948 = vmatpush1.bf16.msra.mxu1 %v7138_v62  ;;  %v851_v61 = vld [vmem:[#allocation5 + $0x10d8] sm:$0xff] }
 0x30f   : > { %5691 = vmatprep.subr.bf16.mxu0 %v7145_v63  ;;  %5949 = vmatprep.subr.bf16.mxu1 %v7147_v0  ;;  %v855_v62 = vld [vmem:[#allocation5 + $0x10f8] sm:$0xff]  ;;  %v7192_v63 = vcombine.low %v842_v49, %v846_v50  ;;  %v7194_v0 = vcombine.low %v843_v52, %v847_v53  ;;  %v7241_v49 = vcombine.high %v890_v43, %v894_v44  ;;  %v902_v52 = vld [vmem:[#allocation5 + $0x1270] sm:$0xff] }
 0x310   : > { %v7203_v2 = vcombine.high %v851_v61, %v855_v62  ;;  %v899_v53 = vld [vmem:[#allocation5 + $0x1258] sm:$0xff] }
 0x312   : > { %5692 = vmatpush1.bf16.msra.mxu0 %v7144_v5  ;;  %5950 = vmatpush1.bf16.msra.mxu1 %v7146_v6  ;;  %v859_v5 = vld [vmem:[#allocation5 + $0x1118] sm:$0xff] }
 0x313   : > { %5693 = vmatprep.subr.bf16.mxu0 %v7153_v7  ;;  %5951 = vmatprep.subr.bf16.mxu1 %v7155_v9  ;;  %v863_v6 = vld [vmem:[#allocation5 + $0x1138] sm:$0xff]  ;;  %v7200_v7 = vcombine.low %v850_v58, %v854_v59  ;;  %v7202_v9 = vcombine.low %v851_v61, %v855_v62  ;;  %v906_v59 = vld [vmem:[#allocation5 + $0x1290] sm:$0xff] }
 0x314   : > { %v7211_v11 = vcombine.high %v859_v5, %v863_v6  ;;  %v907_v61 = vld [vmem:[#allocation5 + $0x1298] sm:$0xff] }
 0x315   : > { %v911_v62 = vld [vmem:[#allocation5 + $0x12b8] sm:$0xff] }
 0x316   : > { %5694 = vmatpush1.bf16.msra.mxu0 %v7152_v18  ;;  %5952 = vmatpush1.bf16.msra.mxu1 %v7154_v21  ;;  %v867_v18 = vld [vmem:[#allocation5 + $0x1158] sm:$0xff] }
 0x317   : > { %5695 = vmatprep.subr.bf16.mxu0 %v7161_v22  ;;  %5953 = vmatprep.subr.bf16.mxu1 %v7163_v24  ;;  %v871_v21 = vld [vmem:[#allocation5 + $0x1178] sm:$0xff]  ;;  %v7208_v22 = vcombine.low %v858_v3, %v862_v4  ;;  %v7210_v24 = vcombine.low %v859_v5, %v863_v6  ;;  %v914_v3 = vld [vmem:[#allocation5 + $0x12d0] sm:$0xff] }
 0x318   : > { %v7219_v26 = vcombine.high %v867_v18, %v871_v21  ;;  %v918_v4 = vld [vmem:[#allocation5 + $0x12f0] sm:$0xff]  ;;  %v915_v5 = vld [vmem:[#allocation5 + $0x12d8] sm:$0xff] }
 0x319   : > { %v919_v6 = vld [vmem:[#allocation5 + $0x12f8] sm:$0xff] }
 0x31a   : > { %5696 = vmatpush1.bf16.msra.mxu0 %v7160_v29  ;;  %5954 = vmatpush1.bf16.msra.mxu1 %v7162_v30  ;;  %v875_v29 = vld [vmem:[#allocation5 + $0x1198] sm:$0xff] }
 0x31b   : > { %5697 = vmatprep.subr.bf16.mxu0 %v7169_v31  ;;  %5955 = vmatprep.subr.bf16.mxu1 %v7171_v32  ;;  %v879_v30 = vld [vmem:[#allocation5 + $0x11b8] sm:$0xff]  ;;  %v7216_v31 = vcombine.low %v866_v14, %v870_v15  ;;  %v7218_v32 = vcombine.low %v867_v18, %v871_v21  ;;  %v922_v14 = vld [vmem:[#allocation5 + $0x1310] sm:$0xff] }
 0x31c   : > { %v7227_v34 = vcombine.high %v875_v29, %v879_v30  ;;  %v926_v15 = vld [vmem:[#allocation5 + $0x1330] sm:$0xff]  ;;  %v923_v18 = vld [vmem:[#allocation5 + $0x1318] sm:$0xff] }
 0x31d   : > { %v927_v21 = vld [vmem:[#allocation5 + $0x1338] sm:$0xff] }
 0x31e   : > { %5698 = vmatpush1.bf16.msra.mxu0 %v7168_v37  ;;  %5956 = vmatpush1.bf16.msra.mxu1 %v7170_v38  ;;  %v883_v37 = vld [vmem:[#allocation5 + $0x11d8] sm:$0xff] }
 0x31f   : > { %5710 = vmatprep.subr.bf16.mxu0 %v7177_v39  ;;  %5968 = vmatprep.subr.bf16.mxu1 %v7179_v40  ;;  %v887_v38 = vld [vmem:[#allocation5 + $0x11f8] sm:$0xff]  ;;  %v7224_v39 = vcombine.low %v874_v27, %v878_v28  ;;  %v7226_v40 = vcombine.low %v875_v29, %v879_v30  ;;  %v930_v27 = vld [vmem:[#allocation5 + $0x1350] sm:$0xff] }
 0x320   : > { %v7235_v42 = vcombine.high %v883_v37, %v887_v38  ;;  %v934_v28 = vld [vmem:[#allocation5 + $0x1370] sm:$0xff]  ;;  %v931_v29 = vld [vmem:[#allocation5 + $0x1358] sm:$0xff] }
 0x321   : > { %5700 = vmatmul.mubr.bf16.vlgmr.msra.gmra.mrb[4].mxu0 %v7934_v51  ;;  %5958 = vmatmul.mubr.bf16.vlgmr.msra.gmra.mrb[4].mxu1 %v7934_v51  ;;  %v898_v51 = vld [vmem:[#allocation5 + $0x1250] sm:$0xff]  ;;  %v935_v30 = vld [vmem:[#allocation5 + $0x1378] sm:$0xff] }
 0x322   : > { %5711 = vmatpush1.bf16.msra.mxu0 %v7176_v45  ;;  %5969 = vmatpush1.bf16.msra.mxu1 %v7178_v46  ;;  %v891_v45 = vld [vmem:[#allocation5 + $0x1218] sm:$0xff] }
 0x323   : > { %5712 = vmatprep.subr.bf16.mxu0 %v7185_v47  ;;  %5970 = vmatprep.subr.bf16.mxu1 %v7187_v48  ;;  %v895_v46 = vld [vmem:[#allocation5 + $0x1238] sm:$0xff]  ;;  %v7232_v47 = vcombine.low %v882_v35, %v886_v36  ;;  %v7234_v48 = vcombine.low %v883_v37, %v887_v38  ;;  %v938_v35 = vld [vmem:[#allocation5 + $0x1390] sm:$0xff] }
 0x324   : > { %5742 = vmatprep.mubr.bf16.mxu0 %v7935_v60  ;;  %6000 = vmatprep.mubr.bf16.mxu1 %v7935_v60  ;;  %v7243_v50 = vcombine.high %v891_v45, %v895_v46  ;;  %v910_v60 = vld [vmem:[#allocation5 + $0x12b0] sm:$0xff]  ;;  %v939_v37 = vld [vmem:[#allocation5 + $0x1398] sm:$0xff] }
 0x325   : > { %v942_v36 = vld [vmem:[#allocation5 + $0x13b0] sm:$0xff]  ;;  %v943_v38 = vld [vmem:[#allocation5 + $0x13b8] sm:$0xff] }
 0x326   : > { %5713 = vmatpush1.bf16.msra.mxu0 %v7184_v54  ;;  %5971 = vmatpush1.bf16.msra.mxu1 %v7186_v55  ;;  %v903_v54 = vld [vmem:[#allocation5 + $0x1278] sm:$0xff]  ;;  %v7240_v55 = vcombine.low %v890_v43, %v894_v44  ;;  %v946_v43 = vld [vmem:[#allocation5 + $0x13d0] sm:$0xff] }
 0x327   : > { %5714 = vmatprep.subr.bf16.mxu0 %v7193_v56  ;;  %5972 = vmatprep.subr.bf16.mxu1 %v7195_v57  ;;  %v7242_v56 = vcombine.low %v891_v45, %v895_v46  ;;  %v7249_v57 = vcombine.high %v898_v51, %v902_v52  ;;  %v7251_v58 = vcombine.high %v899_v53, %v903_v54  ;;  %v950_v44 = vld [vmem:[#allocation5 + $0x13f0] sm:$0xff]  ;;  %v947_v45 = vld [vmem:[#allocation5 + $0x13d8] sm:$0xff] }
 0x328   : > { %v951_v46 = vld [vmem:[#allocation5 + $0x13f8] sm:$0xff] }
 0x32a   : > { %5715 = vmatpush1.bf16.msra.mxu0 %v7192_v63  ;;  %5973 = vmatpush1.bf16.msra.mxu1 %v7194_v0  ;;  %v7248_v63 = vcombine.low %v898_v51, %v902_v52  ;;  %v7250_v0 = vcombine.low %v899_v53, %v903_v54  ;;  %v954_v51 = vld [vmem:[#allocation5 + $0x1410] sm:$0xff]  ;;  %v955_v53 = vld [vmem:[#allocation5 + $0x1418] sm:$0xff] }
 0x32b   : > { %5716 = vmatprep.subr.bf16.mxu0 %v7201_v1  ;;  %5974 = vmatprep.subr.bf16.mxu1 %v7203_v2  ;;  %v7257_v1 = vcombine.high %v906_v59, %v910_v60  ;;  %v7259_v2 = vcombine.high %v907_v61, %v911_v62  ;;  %v958_v52 = vld [vmem:[#allocation5 + $0x1430] sm:$0xff]  ;;  %v959_v54 = vld [vmem:[#allocation5 + $0x1438] sm:$0xff] }
 0x32e   : > { %5717 = vmatpush1.bf16.msra.mxu0 %v7200_v7  ;;  %5975 = vmatpush1.bf16.msra.mxu1 %v7202_v9  ;;  %v7256_v7 = vcombine.low %v906_v59, %v910_v60  ;;  %v7258_v9 = vcombine.low %v907_v61, %v911_v62  ;;  %v962_v59 = vld [vmem:[#allocation5 + $0x1450] sm:$0xff]  ;;  %v963_v61 = vld [vmem:[#allocation5 + $0x1458] sm:$0xff] }
 0x32f   : > { %5718 = vmatprep.subr.bf16.mxu0 %v7209_v10  ;;  %5976 = vmatprep.subr.bf16.mxu1 %v7211_v11  ;;  %v7265_v10 = vcombine.high %v914_v3, %v918_v4  ;;  %v7267_v11 = vcombine.high %v915_v5, %v919_v6  ;;  %v966_v60 = vld [vmem:[#allocation5 + $0x1470] sm:$0xff]  ;;  %v967_v62 = vld [vmem:[#allocation5 + $0x1478] sm:$0xff] }
 0x332   : > { %5719 = vmatpush1.bf16.msra.mxu0 %v7208_v22  ;;  %5977 = vmatpush1.bf16.msra.mxu1 %v7210_v24  ;;  %v7264_v22 = vcombine.low %v914_v3, %v918_v4  ;;  %v7266_v24 = vcombine.low %v915_v5, %v919_v6  ;;  %v970_v3 = vld [vmem:[#allocation5 + $0x1490] sm:$0xff]  ;;  %v971_v6 = vld [vmem:[#allocation5 + $0x1498] sm:$0xff] }
 0x333   : > { %5720 = vmatprep.subr.bf16.mxu0 %v7217_v25  ;;  %5978 = vmatprep.subr.bf16.mxu1 %v7219_v26  ;;  %v7273_v25 = vcombine.high %v922_v14, %v926_v15  ;;  %v7275_v26 = vcombine.high %v923_v18, %v927_v21  ;;  %v974_v4 = vld [vmem:[#allocation5 + $0x14b0] sm:$0xff] }
 0x334   : > { %v7936_v5 = vld [vmem:[%s8413_s8 + $0x20] ss:$48 sps:$4 sm:$0xff]  }
 0x336   : > { %5721 = vmatpush1.bf16.msra.mxu0 %v7216_v31  ;;  %5979 = vmatpush1.bf16.msra.mxu1 %v7218_v32  ;;  %v7272_v31 = vcombine.low %v922_v14, %v926_v15  ;;  %v7274_v32 = vcombine.low %v923_v18, %v927_v21  ;;  %v978_v15 = vld [vmem:[#allocation5 + $0x14d0] sm:$0xff]  ;;  %v7937_v21 = vld [vmem:[%s8413_s8 + $0x2c] ss:$48 sps:$4 sm:$0xff]  }
 0x337   : > { %5722 = vmatprep.subr.bf16.mxu0 %v7225_v33  ;;  %5980 = vmatprep.subr.bf16.mxu1 %v7227_v34  ;;  %v7281_v33 = vcombine.high %v930_v27, %v934_v28  ;;  %v7283_v34 = vcombine.high %v931_v29, %v935_v30  ;;  %v982_v18 = vld [vmem:[#allocation5 + $0x14f0] sm:$0xff] }
 0x33a   : > { %5723 = vmatpush1.bf16.msra.mxu0 %v7224_v39  ;;  %5981 = vmatpush1.bf16.msra.mxu1 %v7226_v40  ;;  %v7280_v39 = vcombine.low %v930_v27, %v934_v28  ;;  %v7282_v40 = vcombine.low %v931_v29, %v935_v30  ;;  %v7329_v27 = vcombine.high %v978_v15, %v982_v18  ;;  %v986_v29 = vld [vmem:[#allocation5 + $0x1510] sm:$0xff] }
 0x33b   : > { %5724 = vmatprep.subr.bf16.mxu0 %v7233_v41  ;;  %5982 = vmatprep.subr.bf16.mxu1 %v7235_v42  ;;  %v7289_v41 = vcombine.high %v938_v35, %v942_v36  ;;  %v7291_v42 = vcombine.high %v939_v37, %v943_v38  ;;  %v990_v30 = vld [vmem:[#allocation5 + $0x1530] sm:$0xff] }
 0x33e   : > { %5725 = vmatpush1.bf16.msra.mxu0 %v7232_v47  ;;  %5983 = vmatpush1.bf16.msra.mxu1 %v7234_v48  ;;  %v7288_v47 = vcombine.low %v938_v35, %v942_v36  ;;  %v7290_v48 = vcombine.low %v939_v37, %v943_v38  ;;  %v7337_v35 = vcombine.high %v986_v29, %v990_v30  ;;  %v994_v37 = vld [vmem:[#allocation5 + $0x1550] sm:$0xff] }
 0x33f   : > { %5726 = vmatprep.subr.bf16.mxu0 %v7241_v49  ;;  %5984 = vmatprep.subr.bf16.mxu1 %v7243_v50  ;;  %v7297_v49 = vcombine.high %v946_v43, %v950_v44  ;;  %v7299_v50 = vcombine.high %v947_v45, %v951_v46  ;;  %v998_v38 = vld [vmem:[#allocation5 + $0x1570] sm:$0xff] }
 0x342   : > { %5727 = vmatpush1.bf16.msra.mxu0 %v7240_v55  ;;  %5985 = vmatpush1.bf16.msra.mxu1 %v7242_v56  ;;  %v7296_v55 = vcombine.low %v946_v43, %v950_v44  ;;  %v7298_v56 = vcombine.low %v947_v45, %v951_v46  ;;  %v7345_v43 = vcombine.high %v994_v37, %v998_v38  ;;  %v1002_v45 = vld [vmem:[#allocation5 + $0x1590] sm:$0xff] }
 0x343   : > { %5728 = vmatprep.subr.bf16.mxu0 %v7249_v57  ;;  %5986 = vmatprep.subr.bf16.mxu1 %v7251_v58  ;;  %v7305_v57 = vcombine.high %v954_v51, %v958_v52  ;;  %v7307_v58 = vcombine.high %v955_v53, %v959_v54  ;;  %v1006_v46 = vld [vmem:[#allocation5 + $0x15b0] sm:$0xff] }
 0x346   : > { %5729 = vmatpush1.bf16.msra.mxu0 %v7248_v63  ;;  %5987 = vmatpush1.bf16.msra.mxu1 %v7250_v0  ;;  %v7304_v63 = vcombine.low %v954_v51, %v958_v52  ;;  %v7306_v0 = vcombine.low %v955_v53, %v959_v54  ;;  %v7353_v51 = vcombine.high %v1002_v45, %v1006_v46  ;;  %v1010_v53 = vld [vmem:[#allocation5 + $0x15d0] sm:$0xff] }
 0x347   : > { %5730 = vmatprep.subr.bf16.mxu0 %v7257_v1  ;;  %5988 = vmatprep.subr.bf16.mxu1 %v7259_v2  ;;  %v7313_v1 = vcombine.high %v962_v59, %v966_v60  ;;  %v7315_v2 = vcombine.high %v963_v61, %v967_v62  ;;  %v1014_v54 = vld [vmem:[#allocation5 + $0x15f0] sm:$0xff] }
 0x34a   : > { %5731 = vmatpush1.bf16.msra.mxu0 %v7256_v7  ;;  %5989 = vmatpush1.bf16.msra.mxu1 %v7258_v9  ;;  %v975_v7 = vld [vmem:[#allocation5 + $0x14b8] sm:$0xff]  ;;  %v7312_v9 = vcombine.low %v962_v59, %v966_v60  ;;  %v7361_v59 = vcombine.high %v1010_v53, %v1014_v54 }
 0x34b   : > { %5732 = vmatprep.subr.bf16.mxu0 %v7265_v10  ;;  %5990 = vmatprep.subr.bf16.mxu1 %v7267_v11  ;;  %v7314_v10 = vcombine.low %v963_v61, %v967_v62  ;;  %v7321_v11 = vcombine.high %v970_v3, %v974_v4  ;;  %v7323_v14 = vcombine.high %v971_v6, %v975_v7  ;;  %v1018_v61 = vld [vmem:[#allocation5 + $0x1610] sm:$0xff] }
 0x34c   : > { %v1022_v62 = vld [vmem:[#allocation5 + $0x1630] sm:$0xff] }
 0x34e   : > { %5733 = vmatpush1.bf16.msra.mxu0 %v7264_v22  ;;  %5991 = vmatpush1.bf16.msra.mxu1 %v7266_v24  ;;  %v979_v22 = vld [vmem:[#allocation5 + $0x14d8] sm:$0xff] }
 0x34f   : > { %5734 = vmatprep.subr.bf16.mxu0 %v7273_v25  ;;  %5992 = vmatprep.subr.bf16.mxu1 %v7275_v26  ;;  %v983_v24 = vld [vmem:[#allocation5 + $0x14f8] sm:$0xff]  ;;  %v7320_v25 = vcombine.low %v970_v3, %v974_v4  ;;  %v7322_v26 = vcombine.low %v971_v6, %v975_v7  ;;  %v7369_v3 = vcombine.high %v1018_v61, %v1022_v62  ;;  %v1030_v6 = vld [vmem:[#allocation5 + $0x1670] sm:$0xff] }
 0x350   : > { %v7331_v28 = vcombine.high %v979_v22, %v983_v24  ;;  %v1027_v7 = vld [vmem:[#allocation5 + $0x1658] sm:$0xff] }
 0x352   : > { %5735 = vmatpush1.bf16.msra.mxu0 %v7272_v31  ;;  %5993 = vmatpush1.bf16.msra.mxu1 %v7274_v32  ;;  %v987_v31 = vld [vmem:[#allocation5 + $0x1518] sm:$0xff] }
 0x353   : > { %5736 = vmatprep.subr.bf16.mxu0 %v7281_v33  ;;  %5994 = vmatprep.subr.bf16.mxu1 %v7283_v34  ;;  %v991_v32 = vld [vmem:[#allocation5 + $0x1538] sm:$0xff]  ;;  %v7328_v33 = vcombine.low %v978_v15, %v982_v18  ;;  %v7330_v34 = vcombine.low %v979_v22, %v983_v24  ;;  %v1034_v18 = vld [vmem:[#allocation5 + $0x1690] sm:$0xff] }
 0x354   : > { %v7339_v36 = vcombine.high %v987_v31, %v991_v32  ;;  %v1035_v22 = vld [vmem:[#allocation5 + $0x1698] sm:$0xff] }
 0x355   : > { %v1039_v24 = vld [vmem:[#allocation5 + $0x16b8] sm:$0xff] }
 0x356   : > { %5737 = vmatpush1.bf16.msra.mxu0 %v7280_v39  ;;  %5995 = vmatpush1.bf16.msra.mxu1 %v7282_v40  ;;  %v995_v39 = vld [vmem:[#allocation5 + $0x1558] sm:$0xff] }
 0x357   : > { %5738 = vmatprep.subr.bf16.mxu0 %v7289_v41  ;;  %5996 = vmatprep.subr.bf16.mxu1 %v7291_v42  ;;  %v999_v40 = vld [vmem:[#allocation5 + $0x1578] sm:$0xff]  ;;  %v7336_v41 = vcombine.low %v986_v29, %v990_v30  ;;  %v7338_v42 = vcombine.low %v987_v31, %v991_v32  ;;  %v1042_v29 = vld [vmem:[#allocation5 + $0x16d0] sm:$0xff] }
 0x358   : > { %v7347_v44 = vcombine.high %v995_v39, %v999_v40  ;;  %v1046_v30 = vld [vmem:[#allocation5 + $0x16f0] sm:$0xff]  ;;  %v1043_v31 = vld [vmem:[#allocation5 + $0x16d8] sm:$0xff] }
 0x359   : > { %v1047_v32 = vld [vmem:[#allocation5 + $0x16f8] sm:$0xff] }
 0x35a   : > { %5739 = vmatpush1.bf16.msra.mxu0 %v7288_v47  ;;  %5997 = vmatpush1.bf16.msra.mxu1 %v7290_v48  ;;  %v1003_v47 = vld [vmem:[#allocation5 + $0x1598] sm:$0xff] }
 0x35b   : > { %5740 = vmatprep.subr.bf16.mxu0 %v7297_v49  ;;  %5998 = vmatprep.subr.bf16.mxu1 %v7299_v50  ;;  %v1007_v48 = vld [vmem:[#allocation5 + $0x15b8] sm:$0xff]  ;;  %v7344_v49 = vcombine.low %v994_v37, %v998_v38  ;;  %v7346_v50 = vcombine.low %v995_v39, %v999_v40  ;;  %v1050_v37 = vld [vmem:[#allocation5 + $0x1710] sm:$0xff] }
 0x35c   : > { %v7355_v52 = vcombine.high %v1003_v47, %v1007_v48  ;;  %v1054_v38 = vld [vmem:[#allocation5 + $0x1730] sm:$0xff]  ;;  %v1051_v39 = vld [vmem:[#allocation5 + $0x1718] sm:$0xff] }
 0x35d   : > { %v1055_v40 = vld [vmem:[#allocation5 + $0x1738] sm:$0xff] }
 0x35e   : > { %5741 = vmatpush1.bf16.msra.mxu0 %v7296_v55  ;;  %5999 = vmatpush1.bf16.msra.mxu1 %v7298_v56  ;;  %v1011_v55 = vld [vmem:[#allocation5 + $0x15d8] sm:$0xff] }
 0x35f   : > { %5753 = vmatprep.subr.bf16.mxu0 %v7305_v57  ;;  %6011 = vmatprep.subr.bf16.mxu1 %v7307_v58  ;;  %v1015_v56 = vld [vmem:[#allocation5 + $0x15f8] sm:$0xff]  ;;  %v7352_v57 = vcombine.low %v1002_v45, %v1006_v46  ;;  %v7354_v58 = vcombine.low %v1003_v47, %v1007_v48  ;;  %v1058_v45 = vld [vmem:[#allocation5 + $0x1750] sm:$0xff]  ;;  %v1082_v47 = vlaneseq }
 0x360   : > { %v7363_v60 = vcombine.high %v1011_v55, %v1015_v56  ;;  %v1062_v46 = vld [vmem:[#allocation5 + $0x1770] sm:$0xff]  ;;  %v1059_v48 = vld [vmem:[#allocation5 + $0x1758] sm:$0xff] }
 0x361   : > { %5743 = vmatmul.mubr.bf16.vlgmr.msra.gmra.mrb[4].mxu0 %v7936_v5  ;;  %6001 = vmatmul.mubr.bf16.vlgmr.msra.gmra.mrb[4].mxu1 %v7936_v5  ;;  %v1026_v5 = vld [vmem:[#allocation5 + $0x1650] sm:$0xff] }
 0x362   : > { %5754 = vmatpush1.bf16.msra.mxu0 %v7304_v63  ;;  %6012 = vmatpush1.bf16.msra.mxu1 %v7306_v0  ;;  %v1019_v63 = vld [vmem:[#allocation5 + $0x1618] sm:$0xff] }
 0x363   : > { %5755 = vmatprep.subr.bf16.mxu0 %v7313_v1  ;;  %6013 = vmatprep.subr.bf16.mxu1 %v7315_v2  ;;  %v1023_v0 = vld [vmem:[#allocation5 + $0x1638] sm:$0xff]  ;;  %v7360_v1 = vcombine.low %v1010_v53, %v1014_v54  ;;  %v7362_v2 = vcombine.low %v1011_v55, %v1015_v56  ;;  %v1066_v54 = vld [vmem:[#allocation5 + $0x1790] sm:$0xff]  ;;  %v8466_v56 = vshrl.u32 %v1082_v47, 7 }
 0x364   : > { %5785 = vmatprep.mubr.bf16.mxu0 %v7937_v21  ;;  %6043 = vmatprep.mubr.bf16.mxu1 %v7937_v21  ;;  %v7371_v4 = vcombine.high %v1019_v63, %v1023_v0  ;;  %v1038_v21 = vld [vmem:[#allocation5 + $0x16b0] sm:$0xff]  ;;  %v7938_v47 = vld [vmem:[%s8413_s8 + $0x28] ss:$48 sps:$4 sm:$0xff]  }
 0x365   : > { %v1070_v55 = vld [vmem:[#allocation5 + $0x17b0] sm:$0xff] }
 0x366   : > { %5756 = vmatpush1.bf16.msra.mxu0 %v7312_v9  ;;  %6014 = vmatpush1.bf16.msra.mxu1 %v7314_v10  ;;  %v1031_v9 = vld [vmem:[#allocation5 + $0x1678] sm:$0xff]  ;;  %v7368_v10 = vcombine.low %v1018_v61, %v1022_v62  ;;  %v7417_v61 = vcombine.high %v1066_v54, %v1070_v55 }
 0x367   : > { %5757 = vmatprep.subr.bf16.mxu0 %v7321_v11  ;;  %6015 = vmatprep.subr.bf16.mxu1 %v7323_v14  ;;  %v7370_v11 = vcombine.low %v1019_v63, %v1023_v0  ;;  %v7377_v14 = vcombine.high %v1026_v5, %v1030_v6  ;;  %v7379_v15 = vcombine.high %v1027_v7, %v1031_v9  ;;  %v1074_v63 = vld [vmem:[#allocation5 + $0x17d0] sm:$0xff] }
 0x368   : > { %v1078_v0 = vld [vmem:[#allocation5 + $0x17f0] sm:$0xff] }
 0x36a   : > { %5758 = vmatpush1.bf16.msra.mxu0 %v7320_v25  ;;  %6016 = vmatpush1.bf16.msra.mxu1 %v7322_v26  ;;  %v7376_v25 = vcombine.low %v1026_v5, %v1030_v6  ;;  %v7378_v26 = vcombine.low %v1027_v7, %v1031_v9  ;;  %v1096_v5 = vsub.s32 3, %v8466_v56  ;;  %v7416_v6 = vcombine.low %v1066_v54, %v1070_v55  ;;  %v6074_v54 = vld [vmem:[#allocation8 + $0x20] sm:$0xff]  ;;  %v6075_v55 = vld [vmem:[#allocation8 + $0x28] sm:$0xff] }
 0x36b   : > { %5759 = vmatprep.subr.bf16.mxu0 %v7329_v27  ;;  %6017 = vmatprep.subr.bf16.mxu1 %v7331_v28  ;;  %v7385_v27 = vcombine.high %v1034_v18, %v1038_v21  ;;  %v7387_v28 = vcombine.high %v1035_v22, %v1039_v24  ;;  %v7425_v9 = vcombine.high %v1074_v63, %v1078_v0 }
 0x36e   : > { %5760 = vmatpush1.bf16.msra.mxu0 %v7328_v33  ;;  %6018 = vmatpush1.bf16.msra.mxu1 %v7330_v34  ;;  %v7384_v33 = vcombine.low %v1034_v18, %v1038_v21  ;;  %v7386_v34 = vcombine.low %v1035_v22, %v1039_v24  ;;  %v6118_v18 = vld [vmem:[#allocation8 + $0x180] sm:$0xff]  ;;  %v6119_v21 = vld [vmem:[#allocation8 + $0x188] sm:$0xff]  ;;  %v7424_v24 = vcombine.low %v1074_v63, %v1078_v0  ;;  %v6125_v63 = vld [vmem:[#allocation8 + $0x1b8] sm:$0xff] }
 0x36f   : > { %5761 = vmatprep.subr.bf16.mxu0 %v7337_v35  ;;  %6019 = vmatprep.subr.bf16.mxu1 %v7339_v36  ;;  %v7393_v35 = vcombine.high %v1042_v29, %v1046_v30  ;;  %v7395_v36 = vcombine.high %v1043_v31, %v1047_v32  ;;  %v7597_v0 = vpack.c.bf16 %v6075_v55, %v6074_v54  ;;  %v6115_v54 = vld [vmem:[#allocation8 + $0x168] sm:$0xff]  ;;  %v6100_v55 = vld [vmem:[#allocation8 + $0xf0] sm:$0xff] }
 0x372   : > { %5762 = vmatpush1.bf16.msra.mxu0 %v7336_v41  ;;  %6020 = vmatpush1.bf16.msra.mxu1 %v7338_v42  ;;  %v7392_v41 = vcombine.low %v1042_v29, %v1046_v30  ;;  %v7394_v42 = vcombine.low %v1043_v31, %v1047_v32  ;;  %v7619_v29 = vpack.c.bf16 %v6119_v21, %v6118_v18  ;;  %v6102_v30 = vld [vmem:[#allocation8 + $0x100] sm:$0xff]  ;;  %v6103_v31 = vld [vmem:[#allocation8 + $0x108] sm:$0xff] }
 0x373   : > { %5763 = vmatprep.subr.bf16.mxu0 %v7345_v43  ;;  %6021 = vmatprep.subr.bf16.mxu1 %v7347_v44  ;;  %v7401_v43 = vcombine.high %v1050_v37, %v1054_v38  ;;  %v7403_v44 = vcombine.high %v1051_v39, %v1055_v40  ;;  %v6127_v18 = vld [vmem:[#allocation8 + $0x1c8] sm:$0xff] }
 0x376   : > { %5764 = vmatpush1.bf16.msra.mxu0 %v7344_v49  ;;  %6022 = vmatpush1.bf16.msra.mxu1 %v7346_v50  ;;  %v1063_v49 = vld [vmem:[#allocation5 + $0x1778] sm:$0xff]  ;;  %v7400_v50 = vcombine.low %v1050_v37, %v1054_v38  ;;  %v6121_v38 = vld [vmem:[#allocation8 + $0x198] sm:$0xff] }
 0x377   : > { %5765 = vmatprep.subr.bf16.mxu0 %v7353_v51  ;;  %6023 = vmatprep.subr.bf16.mxu1 %v7355_v52  ;;  %v7402_v51 = vcombine.low %v1051_v39, %v1055_v40  ;;  %v7409_v52 = vcombine.high %v1058_v45, %v1062_v46  ;;  %v7411_v53 = vcombine.high %v1059_v48, %v1063_v49  ;;  %v6120_v37 = vld [vmem:[#allocation8 + $0x190] sm:$0xff] }
 0x378   : > { %v7621_v39 = vpack.c.bf16 %v6103_v31, %v6102_v30  ;;  %v6072_v40 = vld [vmem:[#allocation8 + $0x10] sm:$0xff]  ;;  %v6111_v30 = vld [vmem:[#allocation8 + $0x148] sm:$0xff] }
 0x379   : > { %v6096_v31 = vld [vmem:[#allocation8 + $0xd0] sm:$0xff] }
 0x37a   : > { %5766 = vmatpush1.bf16.msra.mxu0 %v7352_v57  ;;  %6024 = vmatpush1.bf16.msra.mxu1 %v7354_v58  ;;  %v1067_v57 = vld [vmem:[#allocation5 + $0x1798] sm:$0xff] }
 0x37b   : > { %5767 = vmatprep.subr.bf16.mxu0 %v7361_v59  ;;  %6025 = vmatprep.subr.bf16.mxu1 %v7363_v60  ;;  %v1071_v58 = vld [vmem:[#allocation5 + $0x17b8] sm:$0xff]  ;;  %v7408_v59 = vcombine.low %v1058_v45, %v1062_v46  ;;  %v7410_v60 = vcombine.low %v1059_v48, %v1063_v49  ;;  %v6091_v45 = vld [vmem:[#allocation8 + $0xa8] sm:$0xff]  ;;  %v6122_v48 = vld [vmem:[#allocation8 + $0x1a0] sm:$0xff] }
 0x37c   : > { %v7419_v62 = vcombine.high %v1067_v57, %v1071_v58  ;;  %v7418_v7 = vcombine.low %v1067_v57, %v1071_v58  ;;  %v6123_v49 = vld [vmem:[#allocation8 + $0x1a8] sm:$0xff]  ;;  %v6106_v57 = vld [vmem:[#allocation8 + $0x120] sm:$0xff] }
 0x37d   : > { %v7627_v58 = vpack.c.bf16 %v6123_v49, %v6122_v48 }
 0x37e   : > { %5768 = vmatpush1.bf16.msra.mxu0 %v7360_v1  ;;  %6026 = vmatpush1.bf16.msra.mxu1 %v7362_v2  ;;  %v1088_v1 = vsub.s32 1, %v8466_v56  ;;  %v1075_v2 = vld [vmem:[#allocation5 + $0x17d8] sm:$0xff] }
 0x37f   : > { %5769 = vmatprep.subr.bf16.mxu0 %v7369_v3  ;;  %6027 = vmatprep.subr.bf16.mxu1 %v7371_v4  ;;  %v1079_v3 = vld [vmem:[#allocation5 + $0x17f8] sm:$0xff]  ;;  %v8469_v4 = vld [vmem:[#allocation7] sm:$0xff] }
 0x380   : > { %v8476_v22 = vrot.slane %v8469_v4, %v1096_v5  ;;  %v6077_v5 = vld [vmem:[#allocation8 + $0x38] sm:$0xff] }
 0x382   : > { %5770 = vmatpush1.bf16.msra.mxu0 %v7368_v10  ;;  %6028 = vmatpush1.bf16.msra.mxu1 %v7370_v11  ;;  %v7427_v10 = vcombine.high %v1075_v2, %v1079_v3  ;;  %v6086_v11 = vld [vmem:[#allocation8 + $0x80] sm:$0xff] }
 0x383   : > { %5771 = vmatprep.subr.bf16.mxu0 %v7377_v14  ;;  %6029 = vmatprep.subr.bf16.mxu1 %v7379_v15  ;;  %v6087_v14 = vld [vmem:[#allocation8 + $0x88] sm:$0xff]  ;;  %v8473_v15 = vrot.slane %v8469_v4, %v1088_v1 }
 0x385   : > { %v7716_v32 = vadd.f32 %v8450_v13, %v8473_v15  ;;  %v6090_v13 = vld [vmem:[#allocation8 + $0xa0] sm:$0xff] }
 0x386   : > { %5772 = vmatpush1.bf16.msra.mxu0 %v7376_v25  ;;  %6030 = vmatpush1.bf16.msra.mxu1 %v7378_v26  ;;  %v7426_v25 = vcombine.low %v1075_v2, %v1079_v3  ;;  %v7587_v26 = vpack.c.bf16 %v6087_v14, %v6086_v11  ;;  %v6076_v3 = vld [vmem:[#allocation8 + $0x30] sm:$0xff]  ;;  %v6095_v11 = vld [vmem:[#allocation8 + $0xc8] sm:$0xff]  ;;  %v6126_v14 = vld [vmem:[#allocation8 + $0x1c0] sm:$0xff] }
 0x387   : > { %5773 = vmatprep.subr.bf16.mxu0 %v7385_v27  ;;  %6031 = vmatprep.subr.bf16.mxu1 %v7387_v28  ;;  %v6070_v27 = vld [vmem:[#allocation8] sm:$0xff]  ;;  %v6071_v28 = vld [vmem:[#allocation8 + $0x8] sm:$0xff]  ;;  %v6055_v46 = vmax.f32 %v7716_v32, 0.0  ;;  %v7601_v21 = vpack.c.bf16 %v6077_v5, %v6076_v3  ;;  %v6097_v32 = vld [vmem:[#allocation8 + $0xd8] sm:$0xff] }
 0x388   : > { %v6116_v3 = vld [vmem:[#allocation8 + $0x170] sm:$0xff] }
 0x38a   : > { %5774 = vmatpush1.bf16.msra.mxu0 %v7384_v33  ;;  %6032 = vmatpush1.bf16.msra.mxu1 %v7386_v34  ;;  %v6088_v33 = vld [vmem:[#allocation8 + $0x90] sm:$0xff]  ;;  %v6089_v34 = vld [vmem:[#allocation8 + $0x98] sm:$0xff] }
 0x38b   : > { %5775 = vmatprep.subr.bf16.mxu0 %v7393_v35  ;;  %6033 = vmatprep.subr.bf16.mxu1 %v7395_v36  ;;  %v7720_v35 = vadd.f32 %v8452_v16, %v8476_v22  ;;  %v7589_v36 = vpack.c.bf16 %v6071_v28, %v6070_v27  ;;  %v7623_v16 = vpack.c.bf16 %v6121_v38, %v6120_v37  ;;  %v6079_v27 = vld [vmem:[#allocation8 + $0x48] sm:$0xff]  ;;  %v6110_v28 = vld [vmem:[#allocation8 + $0x140] sm:$0xff]  ;;  %v6080_v38 = vld [vmem:[#allocation8 + $0x50] sm:$0xff] }
 0x38c   : > { %v7607_v37 = vpack.c.bf16 %v6097_v32, %v6096_v31  ;;  %v7722_v31 = vadd.f32 %v8460_v23, %v8476_v22  ;;  %v6152_v32 = vld [vmem:[#allocation8 + $0x290] sm:$0xff]  ;;  %v6137_v22 = vld [vmem:[#allocation8 + $0x218] sm:$0xff] }
 0x38d   : > { %v6136_v23 = vld [vmem:[#allocation8 + $0x210] sm:$0xff] }
 0x38e   : > { %5776 = vmatpush1.bf16.msra.mxu0 %v7392_v41  ;;  %6034 = vmatpush1.bf16.msra.mxu1 %v7394_v42  ;;  %v6073_v41 = vld [vmem:[#allocation8 + $0x18] sm:$0xff]  ;;  %v6104_v42 = vld [vmem:[#allocation8 + $0x110] sm:$0xff] }
 0x38f   : > { %5777 = vmatprep.subr.bf16.mxu0 %v7401_v43  ;;  %6035 = vmatprep.subr.bf16.mxu1 %v7403_v44  ;;  %v7591_v43 = vpack.c.bf16 %v6089_v34, %v6088_v33  ;;  %v6105_v44 = vld [vmem:[#allocation8 + $0x118] sm:$0xff]  ;;  %v6128_v33 = vld [vmem:[#allocation8 + $0x1d0] sm:$0xff] }
 0x390   : > { %v6129_v34 = vld [vmem:[#allocation8 + $0x1d8] sm:$0xff] }
 0x392   : > { %5778 = vmatpush1.bf16.msra.mxu0 %v7400_v50  ;;  %6036 = vmatpush1.bf16.msra.mxu1 %v7402_v51  ;;  %v6057_v50 = vmax.f32 %v7720_v35, 0.0  ;;  %v7593_v51 = vpack.c.bf16 %v6073_v41, %v6072_v40  ;;  %v6112_v40 = vld [vmem:[#allocation8 + $0x150] sm:$0xff]  ;;  %v7639_v41 = vpack.c.bf16 %v6129_v34, %v6128_v33  ;;  %v6153_v33 = vld [vmem:[#allocation8 + $0x298] sm:$0xff] }
 0x393   : > { %5779 = vmatprep.subr.bf16.mxu0 %v7409_v52  ;;  %6037 = vmatprep.subr.bf16.mxu1 %v7411_v53  ;;  %v7625_v52 = vpack.c.bf16 %v6105_v44, %v6104_v42  ;;  %v7595_v53 = vpack.c.bf16 %v6091_v45, %v6090_v13  ;;  %v6113_v42 = vld [vmem:[#allocation8 + $0x158] sm:$0xff]  ;;  %v6099_v44 = vld [vmem:[#allocation8 + $0xe8] sm:$0xff]  ;;  %v6130_v13 = vld [vmem:[#allocation8 + $0x1e0] sm:$0xff] }
 0x394   : > { %v6131_v45 = vld [vmem:[#allocation8 + $0x1e8] sm:$0xff]  ;;  %v7641_v48 = vpack.c.bf16 %v6113_v42, %v6112_v40  ;;  %v6185_v34 = vld [vmem:[#allocation8 + $0x398] sm:$0xff]  ;;  %v7655_v40 = vpack.c.bf16 %v6153_v33, %v6152_v32  ;;  %v6065_v42 = vmax.f32 %v7722_v31, 0.0  ;;  %v6144_v33 = vld [vmem:[#allocation8 + $0x250] sm:$0xff] }
 0x396   : > { %5780 = vmatpush1.bf16.msra.mxu0 %v7408_v59  ;;  %6038 = vmatpush1.bf16.msra.mxu1 %v7410_v60  ;;  %v6107_v59 = vld [vmem:[#allocation8 + $0x128] sm:$0xff]  ;;  %v6092_v60 = vld [vmem:[#allocation8 + $0xb0] sm:$0xff] }
 0x397   : > { %5781 = vmatprep.subr.bf16.mxu0 %v7417_v61  ;;  %6039 = vmatprep.subr.bf16.mxu1 %v7419_v62  ;;  %v6093_v61 = vld [vmem:[#allocation8 + $0xb8] sm:$0xff]  ;;  %v6124_v62 = vld [vmem:[#allocation8 + $0x1b0] sm:$0xff]  ;;  %v7629_v1 = vpack.c.bf16 %v6107_v59, %v6106_v57 }
 0x398   : > { %v7599_v2 = vpack.c.bf16 %v6093_v61, %v6092_v60  ;;  %v6101_v57 = vld [vmem:[#allocation8 + $0xf8] sm:$0xff] }
 0x399   : > { %v6133_v59 = vld [vmem:[#allocation8 + $0x1f8] sm:$0xff] }
 0x39a   : > { %5782 = vmatpush1.bf16.msra.mxu0 %v7416_v6  ;;  %6040 = vmatpush1.bf16.msra.mxu1 %v7418_v7  ;;  %v6108_v6 = vld [vmem:[#allocation8 + $0x130] sm:$0xff]  ;;  %v7631_v7 = vpack.c.bf16 %v6125_v63, %v6124_v62 }
 0x39b   : > { %5783 = vmatprep.subr.bf16.mxu0 %v7425_v9  ;;  %6041 = vmatprep.subr.bf16.mxu1 %v7427_v10  ;;  %v6109_v9 = vld [vmem:[#allocation8 + $0x138] sm:$0xff]  ;;  %v6094_v10 = vld [vmem:[#allocation8 + $0xc0] sm:$0xff] }
 0x39e   : > { %5784 = vmatpush1.bf16.msra.mxu0 %v7424_v24  ;;  %6042 = vmatpush1.bf16.msra.mxu1 %v7426_v25  ;;  %v7633_v24 = vpack.c.bf16 %v6109_v9, %v6108_v6  ;;  %v7603_v25 = vpack.c.bf16 %v6095_v11, %v6094_v10  ;;  %v6117_v6 = vld [vmem:[#allocation8 + $0x178] sm:$0xff]  ;;  %v6151_v9 = vld [vmem:[#allocation8 + $0x288] sm:$0xff]  ;;  %v6182_v10 = vld [vmem:[#allocation8 + $0x380] sm:$0xff] }
 0x39f   : > { %7588 = vmatprep.subr.bf16.mxu0 %v7587_v26  ;;  %7620 = vmatprep.subr.bf16.mxu1 %v7619_v29  ;;  %v6078_v26 = vld [vmem:[#allocation8 + $0x40] sm:$0xff]  ;;  %v7635_v29 = vpack.c.bf16 %v6127_v18, %v6126_v14  ;;  %v6183_v11 = vld [vmem:[#allocation8 + $0x388] sm:$0xff] }
 0x3a0   : > { %v7605_v35 = vpack.c.bf16 %v6079_v27, %v6078_v26  ;;  %v7718_v26 = vadd.f32 %v8458_v20, %v8473_v15  ;;  %v7683_v27 = vpack.c.bf16 %v6183_v11, %v6182_v10 }
 0x3a1   : > { %5786 = vmatmul.mubr.bf16.vlgmr.msra.gmra.mrb[4].mxu0 %v7938_v47  ;;  %6044 = vmatmul.mubr.bf16.vlgmr.msra.gmra.mrb[4].mxu1 %v7938_v47 }
 0x3a2   : > { %7590 = vmatpush3.bf16.msra.mxu0 %v7589_v36  ;;  %6269 = vmatprep.mubr.f32.mxu0 %v6055_v46  ;;  %v7637_v36 = vpack.c.bf16 %v6111_v30, %v6110_v28  ;;  %v1084_v46 = vsub.s32 0, %v8466_v56  ;;  %v6134_v28 = vld [vmem:[#allocation8 + $0x200] sm:$0xff] }
 0x3a3   : > { %7622 = vmatpush3.bf16.msra.mxu1 %v7621_v39  ;;  %6344 = vmatprep.mubr.f32.mxu1 %v6057_v50  ;;  %v6081_v39 = vld [vmem:[#allocation8 + $0x58] sm:$0xff]  ;;  %v6082_v50 = vld [vmem:[#allocation8 + $0x60] sm:$0xff] }
 0x3a4   : > { %7592 = vmatprep.subr.bf16.mxu0 %v7591_v43  ;;  %7624 = vmatprep.subr.bf16.mxu1 %v7623_v16  ;;  %v6098_v43 = vld [vmem:[#allocation8 + $0xe0] sm:$0xff]  ;;  %v7609_v47 = vpack.c.bf16 %v6081_v39, %v6080_v38  ;;  %v1092_v16 = vsub.s32 2, %v8466_v56  ;;  %v1085_v60 = vrot.slane %v8469_v4, %v1084_v46  ;;  %v6063_v38 = vmax.f32 %v7718_v26, 0.0  ;;  %v6187_v46 = vld [vmem:[#allocation8 + $0x3a8] sm:$0xff] }
 0x3a5   : > { %v7611_v49 = vpack.c.bf16 %v6099_v44, %v6098_v43  ;;  %v6166_v30 = vld [vmem:[#allocation8 + $0x300] sm:$0xff]  ;;  %v6169_v44 = vld [vmem:[#allocation8 + $0x318] sm:$0xff]  ;;  %v6175_v26 = vld [vmem:[#allocation8 + $0x348] sm:$0xff] }
 0x3a6   : > { %7594 = vmatpush3.bf16.msra.mxu0 %v7593_v51  ;;  %v6083_v51 = vld [vmem:[#allocation8 + $0x68] sm:$0xff]  ;;  %v1093_v62 = vrot.slane %v8469_v4, %v1092_v16  ;;  %v7715_v14 = vadd.f32 %v8446_v8, %v1085_v60 }
 0x3a7   : > { %7626 = vmatpush3.bf16.msra.mxu1 %v7625_v52  ;;  %7596 = vmatprep.subr.bf16.mxu0 %v7595_v53  ;;  %v6114_v52 = vld [vmem:[#allocation8 + $0x160] sm:$0xff]  ;;  %v7643_v53 = vpack.c.bf16 %v6131_v45, %v6130_v13  ;;  %v7613_v61 = vpack.c.bf16 %v6083_v51, %v6082_v50  ;;  %v6167_v8 = vld [vmem:[#allocation8 + $0x308] sm:$0xff] }
 0x3a8   : > { %7628 = vmatprep.subr.bf16.mxu1 %v7627_v58  ;;  %v6132_v58 = vld [vmem:[#allocation8 + $0x1f0] sm:$0xff]  ;;  %v7645_v63 = vpack.c.bf16 %v6115_v54, %v6114_v52  ;;  %v7721_v15 = vadd.f32 %v8456_v19, %v1093_v62  ;;  %v7685_v39 = vpack.c.bf16 %v6167_v8, %v6166_v30  ;;  %v6154_v13 = vld [vmem:[#allocation8 + $0x2a0] sm:$0xff]  ;;  %v6155_v45 = vld [vmem:[#allocation8 + $0x2a8] sm:$0xff]  ;;  %v7657_v19 = vpack.c.bf16 %v6137_v22, %v6136_v23 }
 0x3a9   : > { %v7647_v5 = vpack.c.bf16 %v6133_v59, %v6132_v58  ;;  %v6138_v50 = vld [vmem:[#allocation8 + $0x220] sm:$0xff]  ;;  %v6139_v51 = vld [vmem:[#allocation8 + $0x228] sm:$0xff]  ;;  %v6188_v58 = vld [vmem:[#allocation8 + $0x3b0] sm:$0xff] }
 0x3aa   : > { %7598 = vmatpush3.bf16.msra.mxu0 %v7597_v0  ;;  %v7615_v0 = vpack.c.bf16 %v6101_v57, %v6100_v55  ;;  %v6064_v16 = vmax.f32 %v7721_v15, 0.0  ;;  %v6170_v52 = vld [vmem:[#allocation8 + $0x320] sm:$0xff]  ;;  %v6171_v54 = vld [vmem:[#allocation8 + $0x328] sm:$0xff]  ;;  %v6156_v55 = vld [vmem:[#allocation8 + $0x2b0] sm:$0xff] }
 0x3ab   : > { %7630 = vmatpush3.bf16.msra.mxu1 %v7629_v1  ;;  %7600 = vmatprep.subr.bf16.mxu0 %v7599_v2  ;;  %v6084_v1 = vld [vmem:[#allocation8 + $0x70] sm:$0xff]  ;;  %v6085_v2 = vld [vmem:[#allocation8 + $0x78] sm:$0xff]  ;;  %v6194_v15 = vld [vmem:[#allocation8 + $0x3e0] sm:$0xff] }
 0x3ac   : > { %7632 = vmatprep.subr.bf16.mxu1 %v7631_v7  ;;  %v6150_v7 = vld [vmem:[#allocation8 + $0x280] sm:$0xff]  ;;  %v7617_v18 = vpack.c.bf16 %v6085_v2, %v6084_v1  ;;  %v6157_v57 = vld [vmem:[#allocation8 + $0x2b8] sm:$0xff]  ;;  %v6172_v1 = vld [vmem:[#allocation8 + $0x330] sm:$0xff] }
 0x3ad   : > { %v6189_v59 = vld [vmem:[#allocation8 + $0x3b8] sm:$0xff] }
 0x3ae   : > { %7602 = vmatpush3.bf16.msra.mxu0 %v7601_v21  ;;  %v7719_v21 = vadd.f32 %v8448_v12, %v1093_v62  ;;  %v6184_v12 = vld [vmem:[#allocation8 + $0x390] sm:$0xff]  ;;  %v7663_v62 = vpack.c.bf16 %v6157_v57, %v6156_v55  ;;  %v7695_v2 = vpack.c.bf16 %v6189_v59, %v6188_v58  ;;  %v6193_v30 = vld [vmem:[#allocation8 + $0x3d8] sm:$0xff]  ;;  %v1100_v55 = vsub.s32 4, %v8466_v56 }
 0x3af   : > { %7634 = vmatpush3.bf16.msra.mxu1 %v7633_v24  ;;  %7604 = vmatprep.subr.bf16.mxu0 %v7603_v25  ;;  %v7649_v24 = vpack.c.bf16 %v6117_v6, %v6116_v3  ;;  %v7651_v25 = vpack.c.bf16 %v6151_v9, %v6150_v7  ;;  %v7687_v43 = vpack.c.bf16 %v6185_v34, %v6184_v12  ;;  %v6173_v3 = vld [vmem:[#allocation8 + $0x338] sm:$0xff]  ;;  %v6159_v6 = vld [vmem:[#allocation8 + $0x2c8] sm:$0xff]  ;;  %v6190_v7 = vld [vmem:[#allocation8 + $0x3c0] sm:$0xff]  ;;  %v1108_v57 = vsub.s32 6, %v8466_v56 }
 0x3b0   : > { %7636 = vmatprep.subr.bf16.mxu1 %v7635_v29  ;;  %v6135_v29 = vld [vmem:[#allocation8 + $0x208] sm:$0xff]  ;;  %v7697_v11 = vpack.c.bf16 %v6173_v3, %v6172_v1  ;;  %v6145_v12 = vld [vmem:[#allocation8 + $0x258] sm:$0xff]  ;;  %v6176_v34 = vld [vmem:[#allocation8 + $0x350] sm:$0xff]  ;;  %v1104_v58 = vsub.s32 5, %v8466_v56  ;;  %v1112_v59 = vsub.s32 7, %v8466_v56 }
 0x3b1   : > { %v7653_v20 = vpack.c.bf16 %v6135_v29, %v6134_v28  ;;  %v6191_v9 = vld [vmem:[#allocation8 + $0x3c8] sm:$0xff]  ;;  %v6161_v28 = vld [vmem:[#allocation8 + $0x2d8] sm:$0xff]  ;;  %v6192_v29 = vld [vmem:[#allocation8 + $0x3d0] sm:$0xff] }
 0x3b2   : > { %7606 = vmatpush3.bf16.msra.mxu0 %v7605_v35  ;;  %v6054_v35 = vmax.f32 %v7715_v14, 0.0 }
 0x3b3   : > { %7638 = vmatpush3.bf16.msra.mxu1 %v7637_v36  ;;  %7608 = vmatprep.subr.bf16.mxu0 %v7607_v37  ;;  %v6056_v36 = vmax.f32 %v7719_v21, 0.0  ;;  %v7717_v37 = vadd.f32 %v8454_v17, %v1085_v60  ;;  %v6186_v17 = vld [vmem:[#allocation8 + $0x3a0] sm:$0xff]  ;;  %v7661_v60 = vpack.c.bf16 %v6139_v51, %v6138_v50  ;;  %v6143_v21 = vld [vmem:[#allocation8 + $0x248] sm:$0xff] }
 0x3b4   : > { %7640 = vmatprep.subr.bf16.mxu1 %v7639_v41  ;;  %v6168_v41 = vld [vmem:[#allocation8 + $0x310] sm:$0xff] }
 0x3b6   : > { %7610 = vmatpush3.bf16.msra.mxu0 %v7609_v47  ;;  %v6062_v47 = vmax.f32 %v7717_v37, 0.0  ;;  %v6162_v37 = vld [vmem:[#allocation8 + $0x2e0] sm:$0xff] }
 0x3b7   : > { %7642 = vmatpush3.bf16.msra.mxu1 %v7641_v48  ;;  %7612 = vmatprep.subr.bf16.mxu0 %v7611_v49  ;;  %v7689_v48 = vpack.c.bf16 %v6169_v44, %v6168_v41  ;;  %v7659_v49 = vpack.c.bf16 %v6155_v45, %v6154_v13  ;;  %v6146_v41 = vld [vmem:[#allocation8 + $0x260] sm:$0xff]  ;;  %v6179_v13 = vld [vmem:[#allocation8 + $0x368] sm:$0xff] }
 0x3b8   : > { %7644 = vmatprep.subr.bf16.mxu1 %v7643_v53  ;;  %v7691_v53 = vpack.c.bf16 %v6187_v46, %v6186_v17  ;;  %v6164_v17 = vld [vmem:[#allocation8 + $0x2f0] sm:$0xff]  ;;  %v6165_v46 = vld [vmem:[#allocation8 + $0x2f8] sm:$0xff] }
 0x3ba   : > { %7614 = vmatpush3.bf16.msra.mxu0 %v7613_v61  ;;  %v7693_v61 = vpack.c.bf16 %v6171_v54, %v6170_v52  ;;  %v6180_v52 = vld [vmem:[#allocation8 + $0x370] sm:$0xff] }
 0x3bb   : > { %7646 = vmatpush3.bf16.msra.mxu1 %v7645_v63  ;;  %7616 = vmatprep.subr.bf16.mxu0 %v7615_v0  ;;  %v6140_v63 = vld [vmem:[#allocation8 + $0x230] sm:$0xff]  ;;  %v6141_v0 = vld [vmem:[#allocation8 + $0x238] sm:$0xff] }
 0x3bc   : > { %7648 = vmatprep.subr.bf16.mxu1 %v7647_v5  ;;  %v6158_v5 = vld [vmem:[#allocation8 + $0x2c0] sm:$0xff]  ;;  %v7665_v10 = vpack.c.bf16 %v6141_v0, %v6140_v63  ;;  %v1113_v63 = vrot.slane %v8469_v4, %v1112_v59 }
 0x3bd   : > { %v7667_v14 = vpack.c.bf16 %v6159_v6, %v6158_v5 }
 0x3be   : > { %7618 = vmatpush3.bf16.msra.mxu0 %v7617_v18  ;;  %v6142_v18 = vld [vmem:[#allocation8 + $0x240] sm:$0xff] }
 0x3bf   : > { %7650 = vmatpush3.bf16.msra.mxu1 %v7649_v24  ;;  %7652 = vmatprep.subr.bf16.mxu0 %v7651_v25  ;;  %v6174_v24 = vld [vmem:[#allocation8 + $0x340] sm:$0xff]  ;;  %v7699_v25 = vpack.c.bf16 %v6191_v9, %v6190_v7  ;;  %v7669_v31 = vpack.c.bf16 %v6143_v21, %v6142_v18 }
 0x3c0   : > { %7684 = vmatprep.subr.bf16.mxu1 %v7683_v27  ;;  %v6160_v27 = vld [vmem:[#allocation8 + $0x2d0] sm:$0xff]  ;;  %v7701_v8 = vpack.c.bf16 %v6175_v26, %v6174_v24 }
 0x3c1   : > { %6270 = vmatmul.mubr.f32.vlgmr.msra.gmra.mrb[8].mxu0 %v6054_v35  ;;  %v7671_v32 = vpack.c.bf16 %v6161_v28, %v6160_v27  ;;  %v7703_v35 = vpack.c.bf16 %v6193_v30, %v6192_v29 }
 0x3c2   : > { %6345 = vmatmul.mubr.f32.vlgmr.msra.gmra.mrb[8].mxu1 %v6056_v36  ;;  %6274 = vmatprep.mubr.f32.mxu0 %v6063_v38  ;;  %v6177_v36 = vld [vmem:[#allocation8 + $0x358] sm:$0xff]  ;;  %v6195_v38 = vld [vmem:[#allocation8 + $0x3e8] sm:$0xff] }
 0x3c3   : > { %6349 = vmatprep.mubr.f32.mxu1 %v6065_v42  ;;  %7654 = vmatpush3.bf16.msra.mxu0 %v7653_v20  ;;  %v6163_v20 = vld [vmem:[#allocation8 + $0x2e8] sm:$0xff]  ;;  %v7707_v22 = vpack.c.bf16 %v6195_v38, %v6194_v15 }
 0x3c4   : > { %7686 = vmatpush3.bf16.msra.mxu1 %v7685_v39  ;;  %7656 = vmatprep.subr.bf16.mxu0 %v7655_v40  ;;  %v7673_v39 = vpack.c.bf16 %v6145_v12, %v6144_v33  ;;  %v7705_v40 = vpack.c.bf16 %v6177_v36, %v6176_v34  ;;  %v7675_v23 = vpack.c.bf16 %v6163_v20, %v6162_v37  ;;  %v6147_v42 = vld [vmem:[#allocation8 + $0x268] sm:$0xff]  ;;  %v7428_v12 = vld [vmem:[#allocation10] ss:$0 sm:$0xff] }
 0x3c5   : > { %6275 = vmatmul.mubr.f32.gmra.mrb[10].mxu0 %v6062_v47  ;;  %7688 = vmatprep.subr.bf16.mxu1 %v7687_v43  ;;  %v6178_v43 = vld [vmem:[#allocation8 + $0x360] sm:$0xff]  ;;  %v7677_v44 = vpack.c.bf16 %v6147_v42, %v6146_v41  ;;  %v6196_v47 = vld [vmem:[#allocation8 + $0x3f0] sm:$0xff] }
 0x3c6   : > { %6350 = vmatmul.mubr.f32.gmra.mrb[10].mxu1 %v6064_v16  ;;  %v7709_v45 = vpack.c.bf16 %v6179_v13, %v6178_v43  ;;  %v6197_v16 = vld [vmem:[#allocation8 + $0x3f8] sm:$0xff] }
 0x3c7   : > { %7658 = vmatpush3.bf16.msra.mxu0 %v7657_v19  ;;  %v7679_v19 = vpack.c.bf16 %v6165_v46, %v6164_v17  ;;  %v7711_v50 = vpack.c.bf16 %v6197_v16, %v6196_v47 }
 0x3c8   : > { %7690 = vmatpush3.bf16.msra.mxu1 %v7689_v48  ;;  %7660 = vmatprep.subr.bf16.mxu0 %v7659_v49  ;;  %v6148_v48 = vld [vmem:[#allocation8 + $0x270] sm:$0xff]  ;;  %v6149_v49 = vld [vmem:[#allocation8 + $0x278] sm:$0xff] }
 0x3c9   : > { %7692 = vmatprep.subr.bf16.mxu1 %v7691_v53  ;;  %v7681_v51 = vpack.c.bf16 %v6149_v49, %v6148_v48  ;;  %v6181_v53 = vld [vmem:[#allocation8 + $0x378] sm:$0xff] }
 0x3ca   : > { %v7713_v54 = vpack.c.bf16 %v6181_v53, %v6180_v52 }
 0x3cb   : > { %7662 = vmatpush3.bf16.msra.mxu0 %v7661_v60  ;;  %v1101_v60 = vrot.slane %v8469_v4, %v1100_v55 }
 0x3cc   : > { %7694 = vmatpush3.bf16.msra.mxu1 %v7693_v61  ;;  %7664 = vmatprep.subr.bf16.mxu0 %v7663_v62  ;;  %v1109_v61 = vrot.slane %v8469_v4, %v1108_v57  ;;  %v1105_v62 = vrot.slane %v8469_v4, %v1104_v58 }
 0x3cd   : > { %7696 = vmatprep.subr.bf16.mxu1 %v7695_v2 }
 0x3cf   : > { %7666 = vmatpush3.bf16.msra.mxu0 %v7665_v10 }
 0x3d0   : > { %7698 = vmatpush3.bf16.msra.mxu1 %v7697_v11  ;;  %7668 = vmatprep.subr.bf16.mxu0 %v7667_v14 }
 0x3d1   : > { %7700 = vmatprep.subr.bf16.mxu1 %v7699_v25 }
 0x3d3   : > { %7670 = vmatpush3.bf16.msra.mxu0 %v7669_v31 }
 0x3d4   : > { %7702 = vmatpush3.bf16.msra.mxu1 %v7701_v8  ;;  %7672 = vmatprep.subr.bf16.mxu0 %v7671_v32 }
 0x3d5   : > { %7704 = vmatprep.subr.bf16.mxu1 %v7703_v35 }
 0x3d7   : > { %7674 = vmatpush3.bf16.msra.mxu0 %v7673_v39 }
 0x3d8   : > { %7706 = vmatpush3.bf16.msra.mxu1 %v7705_v40  ;;  %7676 = vmatprep.subr.bf16.mxu0 %v7675_v23 }
 0x3d9   : > { %7708 = vmatprep.subr.bf16.mxu1 %v7707_v22 }
 0x3db   : > { %7678 = vmatpush3.bf16.msra.mxu0 %v7677_v44 }
 0x3dc   : > { %7710 = vmatpush3.bf16.msra.mxu1 %v7709_v45  ;;  %7680 = vmatprep.subr.bf16.mxu0 %v7679_v19 }
 0x3dd   : > { %7712 = vmatprep.subr.bf16.mxu1 %v7711_v50 }
 0x3df   : > { %7682 = vmatpush3.bf16.msra.mxu0 %v7681_v51 }
 0x3e0   : > { %7714 = vmatpush3.bf16.msra.mxu1 %v7713_v54 }
 0x474   : > { %v5787_v0 = vpop.f32.mrb[4].mxu0  ;;  %v6045_v2 = vpop.f32.mrb[4].mxu1 }
 0x475   : > { %v7723_v1 = vadd.f32 %v5787_v0, %v1101_v60  ;;  %v5789_v3 = vpop.f32.mrb[5].mxu0  ;;  %v7727_v5 = vadd.f32 %v6045_v2, %v1109_v61  ;;  %v6047_v7 = vpop.f32.mrb[5].mxu1 }
 0x476   : > { %v7724_v6 = vadd.f32 %v5789_v3, %v1105_v62  ;;  %v5791_v9 = vpop.f32.mrb[6].mxu0  ;;  %v7728_v10 = vadd.f32 %v6047_v7, %v1113_v63  ;;  %v6049_v11 = vpop.f32.mrb[6].mxu1 }
 0x477   : > { %v5793_v14 = vpop.f32.mrb[7].mxu0  ;;  %v6051_v21 = vpop.f32.mrb[7].mxu1  ;;  %v6058_v24 = vmax.f32 %v7723_v1, 0.0  ;;  %v7725_v26 = vadd.f32 %v5791_v9, %v1101_v60  ;;  %v6060_v28 = vmax.f32 %v7727_v5, 0.0  ;;  %v7729_v4 = vadd.f32 %v6049_v11, %v1109_v61 }
 0x478   : > { %v6059_v56 = vmax.f32 %v7724_v6, 0.0  ;;  %v7726_v18 = vadd.f32 %v5793_v14, %v1105_v62  ;;  %v6061_v25 = vmax.f32 %v7728_v10, 0.0  ;;  %v7730_v27 = vadd.f32 %v6051_v21, %v1113_v63 }
 0x479   : > { %v6066_v31 = vmax.f32 %v7725_v26, 0.0  ;;  %v6068_v8 = vmax.f32 %v7729_v4, 0.0 }
 0x47a   : > { %v6067_v29 = vmax.f32 %v7726_v18, 0.0  ;;  %6419 = vmatprep.mubr.f32.mxu0 %v6059_v56  ;;  %v6069_v30 = vmax.f32 %v7730_v27, 0.0  ;;  %6494 = vmatprep.mubr.f32.mxu1 %v6061_v25 }
 0x47b   : > { %6420 = vmatmul.mubr.f32.vlgmr.msra.gmra.mrb[12].mxu0 %v6058_v24  ;;  %6495 = vmatmul.mubr.f32.vlgmr.msra.gmra.mrb[12].mxu1 %v6060_v28 }
 0x47c   : > { %6424 = vmatprep.mubr.f32.mxu0 %v6067_v29  ;;  %6499 = vmatprep.mubr.f32.mxu1 %v6069_v30 }
 0x47f   : > { %6425 = vmatmul.mubr.f32.gmra.mrb[14].mxu0 %v6066_v31  ;;  %6500 = vmatmul.mubr.f32.gmra.mrb[14].mxu1 %v6068_v8 }
 0x494   : > { %v7467_v32 = vpop.f32.mrb[8].mxu0 }
 0x495   : > { %v7505_v33 = vpop.f32.mrb[8].mxu1  ;;  %v7468_v34 = vpop.f32.mrb[9].mxu0 }
 0x496   : > { %v7469_v35 = vadd.f32 %v7468_v34, %v7467_v32  ;;  %v7506_v36 = vpop.f32.mrb[9].mxu1 }
 0x497   : > { %v7507_v37 = vadd.f32 %v7506_v36, %v7505_v33 }
 0x498   : > { %v6272_v20 = vadd.f32 %v7469_v35, %v7428_v12  ;;  %v7470_v15 = vpop.f32.mrb[10].mxu0 }
 0x499   : > { %v7508_v38 = vpop.f32.mrb[10].mxu1  ;;  %v7471_v39 = vpop.f32.mrb[11].mxu0 }
 0x49a   : > { %v6347_v40 = vadd.f32 %v7507_v37, %v6272_v20  ;;  %v7472_v23 = vadd.f32 %v7471_v39, %v7470_v15  ;;  %v7509_v22 = vpop.f32.mrb[11].mxu1 }
 0x49b   : > { %v7510_v41 = vadd.f32 %v7509_v22, %v7508_v38 }
 0x49c   : > { %v6277_v42 = vadd.f32 %v7472_v23, %v7428_v12 }
 0x49e   : > { %v6352_v43 = vadd.f32 %v7510_v41, %v6277_v42 }
 0x54e   : > { %v7543_v44 = vpop.f32.mrb[12].mxu0  ;;  %v7581_v13 = vpop.f32.mrb[12].mxu1 }
 0x54f   : > { %v7544_v45 = vpop.f32.mrb[13].mxu0  ;;  %v7582_v46 = vpop.f32.mrb[13].mxu1 }
 0x550   : > { %v7545_v17 = vadd.f32 %v7544_v45, %v7543_v44  ;;  %v7583_v47 = vadd.f32 %v7582_v46, %v7581_v13 }
 0x552   : > { %v6422_v19 = vadd.f32 %v7545_v17, %v6347_v40  ;;  %v7546_v16 = vpop.f32.mrb[14].mxu0  ;;  %v7584_v48 = vpop.f32.mrb[14].mxu1 }
 0x553   : > { %v7547_v49 = vpop.f32.mrb[15].mxu0  ;;  %v7585_v52 = vpop.f32.mrb[15].mxu1 }
 0x554   : > { %v6497_v50 = vadd.f32 %v7583_v47, %v6422_v19  ;;  %v7548_v51 = vadd.f32 %v7547_v49, %v7546_v16  ;;  %v7586_v53 = vadd.f32 %v7585_v52, %v7584_v48 }
 0x556   : > { %6505 = vst [vmem:[%s297_s26] sm:$0xff] %v6497_v50  ;;  %v6427_v54 = vadd.f32 %v7548_v51, %v6352_v43 }
 0x558   : > { %v6502_v55 = vadd.f32 %v7586_v53, %v6427_v54 }
 0x55a   : > { %6506 = vst [vmem:[%s297_s26 + $0x8] sm:$0xff] %v6502_v55 }
 0x55b   : > { %8094 = shalt.err (!%p8091_p12)
}
 0x55c   : > { %s8095_s6 = scalar_lea.hbm %s8510_s17, 256  ;;  %s8099_s8 = scalar_lea.hbm %s8558_s5, 768 }
 0x55d   : > { %p8096_p0 = scmp.ne.s32.totalorder %s8510_s17, %s8095_s6  ;;  %p8100_p11 = scmp.lt.u32.totalorder %s8510_s17, %s8558_s5 }
 0x55e   : > { %p8101_p1 = scmp.lt.u32.totalorder %s8099_s8, %s8095_s6  ;;  %p8103_p4 = scmp.lt.u32.totalorder %s8095_s6, %s8510_s17 }
 0x55f   : > { %p8097_p5 = pnand %p8096_p0, %p8360_p6 }
 0x560   : > { %p8102_p2 = por %p8101_p1, %p8100_p11 }
 0x561   : > { %p8098_p10 = pneg %p8097_p5 }
 0x562   : > { %p8104_p8 = por %p8103_p4, %p8102_p2 }
 0x564   : > { %p8105_p13 = pnand %p8104_p8, %p8098_p10 }
 0x566   : > { %8108 = shalt.err (!%p8105_p13)
}
 0x567   : > { %s8169_s10 = smov 128   ;;  %s8170_s27 = smov 8  }
 0x568   : > { %7832 = dma.vmem_to_hbm [thread:$0]  (%p8360_p6), %s8505_s30, 256, %s8510_s17, %s6508_s23, %s8169_s10, %s8169_s10, %s8170_s27  }
 0x569 PF: > { %p7864_p3 = scmp.ge.s32.totalorder %s8155_s21, 2  ;;  %s6536_s13 = sand.u32 1, %s8143_s18  }
 0x56a   : > { %p8576_p7 = scmp.ne.s32.totalorder %s8563_s25, 0  ;;  %s6537_s9 = scalar_lea.sflag [#allocation4], %s6536_s13 }
 0x56c   : > { %p7852_p9 = pnand %p7864_p3, %p8576_p7 }
 0x56e   : > { %8138 = dma.done.wait (!%p7852_p9), %s6537_s9, 256  }
 0x56f   : > { %8140 = vsyncadd (!%p7852_p9), %s6537_s9, 4294967040  ;;  %p20_p12 = scmp.ge.s32.totalorder %s8347_s12, 5   ;;  %s8577_s18 = smov %s8147_s19 }
 0x570   : > { %s8578_s19 = smov %s8151_s20  ;;  %s8579_s20 = smov %s8356_s15 }
 0x571   : > { %s8580_s21 = smov %s8347_s12  ;;  %22 = sbr.rel (!%p20_p12) target bundleno = 7 (0x7), region = 101 }
 0x578   :  { %6542 = vsyncpa [#allocation3], 1 }
 0x579   :  { %6544 = vsyncpa [#allocation3 + $0x1], 1 }
 0x57a   :  { %6545 = vsyncpa [#allocation6], 1 }
 0x57b   :  { %6546 = vsyncpa [#allocation9], 1 }
 0x57c   :  { %6547 = vsyncpa [#allocation4], 1 }
 0x57d   :  { %6549 = vsyncpa [#allocation4 + $0x1], 1 }

// kernel: tpu_custom_call.1
= control target key start
LH: loop header
LB: loop body
LE: loop exit
PB: predicated region body
PF: predicated region fallthrough
CT: control target
= control target key end

     0   :  { %10 = vsyncpa [#allocation3], 0  ;;  %s8553_s0 = inlined_call_operand.hbm [shape: bf16[48,1536], index: 0, kind: input, shape index: {}]   ;;  %s8554_s1 = inlined_call_operand.hbm [shape: bf16[1536,1024], index: 1, kind: input, shape index: {}]   ;;  %s8555_s2 = inlined_call_operand.hbm [shape: f32[1,1024], index: 2, kind: input, shape index: {}]   ;;  %s8556_s3 = inlined_call_operand.hbm [shape: f32[1024,128], index: 3, kind: input, shape index: {}]   ;;  %s8557_s4 = inlined_call_operand.hbm [shape: f32[1,128], index: 4, kind: input, shape index: {}]   ;;  %s8558_s5 = inlined_call_operand.hbm [shape: f32[48,128], index: 5, kind: output, shape index: {}]  }
   0x1   :  { %12 = vsyncpa [#allocation3 + $0x1], 0 }
   0x2   :  { %13 = vsyncpa [#allocation6], 0 }
   0x3   :  { %14 = vsyncpa [#allocation9], 0 }
   0x4   :  { %15 = vsyncpa [#allocation4], 0 }
   0x5   :  { %17 = vsyncpa [#allocation4 + $0x1], 0  ;;  %s8201_s18 = smov 0   ;;  %s8203_s19 = smov 0  }
   0x6   :  { %s8205_s20 = smov 0   ;;  %s8207_s21 = smov 0  }
   0x7 LB: > { %s8222_s22 = sadd.s32 4294967295, %s8155_s21   ;;  %s6632_s23 = sadd.s32 4294967294, %s8155_s21   ;;  %s8155_s21 = sphi %s8207_s21, %s8580_s21   ;;  %s8151_s20 = sphi %s8205_s20, %s8579_s20   ;;  %s8147_s19 = sphi %s8203_s19, %s8578_s19   ;;  %s8143_s18 = sphi %s8201_s18, %s8577_s18  }
   0x8   : > { %p43_p0 = scmp.ne.s32.totalorder %s8147_s19, %s8143_s18  ;;  %p8559_p1 = scmp.eq.s32.totalorder %s8222_s22, 0 }
   0x9   : > { %p157_p3 = scmp.eq.s32.totalorder %s6632_s23, 2  ;;  %p6633_p5 = scmp.ge.s32.totalorder %s8155_s21, 1 }
   0xa   : > { %p8231_p4 = por %p8559_p1, %p43_p0  ;;  %p164_p7 = scmp.lt.s32.totalorder %s8155_s21, 4 }
   0xb   : > { %p8236_p6 = por %p157_p3, %p43_p0  ;;  %s8157_s27 = smov [#allocation5]  }
   0xc   : > { %s8562_s24 = scalar_select %p8231_p4, 1, 0 }
   0xd   : > { %s8563_s25 = scalar_select %p8236_p6, 1, 0 }
   0xe   : > { %p8241_p8 = pnand %p6633_p5, %p164_p7  ;;  %s176_s28 = sshll.u32 %s8157_s27, 4  ;;  %s177_s28 = int_to_ptr.vmem [resolvable:$true] %s176_s28 }
   0xf   : > { %s8158_s30 = smov [#allocation8]   ;;  %s7939_s9 = scalar_lea.hbm %s8554_s1, 98304 }
  0x10   : > { %s8564_s26 = scalar_select %p8241_p8, 1, 0 }
  0x11   : > { %p7834_p9 = pneg %p8241_p8  ;;  %s200_s6 = sshll.u32 %s8158_s30, 4  ;;  %s8253_s6 = int_to_ptr.vmem [resolvable:$true] %s200_s6 }
  0x12   : > { %p7940_p11 = scmp.ne.s32.totalorder %s8554_s1, %s7939_s9  ;;  %p7946_p3 = scmp.lt.u32.totalorder %s7939_s9, %s8554_s1 }
  0x13   : > { %p8249_p10 = pnand %p7834_p9, %p8559_p1 }
  0x15   : > { %p8263_p12 = pneg %p8249_p10 }
  0x17   : > { %p7942_p13 = pnand %p8263_p12, %p7940_p11 }
  0x19   : > { %p7943_p0 = pneg %p7942_p13 }
  0x1b   : > { %p7948_p5 = pnand %p7946_p3, %p7943_p0 }
  0x1d   : > { %7951 = shalt.err (!%p7948_p5)
}
  0x1e   : > { %s7952_s15 = scalar_lea.vmem %s177_s28, 98304  ;;  %p7960_p2 = scmp.lt.s32.totalorder %s177_s28, %s177_s28 }
  0x1f   : > { %p7953_p7 = scmp.ne.s32.totalorder %s177_s28, %s7952_s15  ;;  %p7961_p6 = scmp.lt.s32.totalorder %s7952_s15, %s7952_s15 }
  0x21   : > { %p7955_p9 = pnand %p7953_p7, %p8263_p12  ;;  %p7962_p4 = por %p7961_p6, %p7960_p2 }
  0x23   : > { %p7956_p1 = pneg %p7955_p9 }
  0x25   : > { %p7963_p8 = pnand %p7962_p4, %p7956_p1 }
  0x27   : > { %7966 = shalt.err (!%p7963_p8)
}
  0x28   : > { %s8159_s16 = smov 512   ;;  %s8160_s17 = smov 32  }
  0x29   : > { %7837 = dma.hbm_to_vmem [thread:$0]  (!%p8249_p10), %s8554_s1, 98304, %s177_s28, [#allocation6], %s8159_s16, %s8159_s16, %s8160_s17  }
  0x2a   : > { %s7967_s8 = scalar_lea.hbm %s8556_s3, 16384 }
  0x2b   : > { %p7968_p11 = scmp.ne.s32.totalorder %s8556_s3, %s7967_s8  ;;  %p7974_p4 = scmp.lt.u32.totalorder %s7967_s8, %s8556_s3 }
  0x2d   : > { %p7970_p1 = pnand %p7968_p11, %p8263_p12 }
  0x2f   : > { %p7971_p2 = pneg %p7970_p1 }
  0x31   : > { %p7976_p6 = pnand %p7974_p4, %p7971_p2 }
  0x33   : > { %7979 = shalt.err (!%p7976_p6)
}
  0x34   : > { %s7980_s28 = scalar_lea.vmem %s8253_s6, 16384  ;;  %p7988_p3 = scmp.lt.s32.totalorder %s8253_s6, %s8253_s6 }
  0x35   : > { %p7981_p8 = scmp.ne.s32.totalorder %s8253_s6, %s7980_s28  ;;  %p7989_p5 = scmp.lt.s32.totalorder %s7980_s28, %s7980_s28 }
  0x37   : > { %p7983_p13 = pnand %p7981_p8, %p8263_p12  ;;  %p7990_p7 = por %p7989_p5, %p7988_p3 }
  0x39   : > { %p7984_p0 = pneg %p7983_p13 }
  0x3b   : > { %p7991_p9 = pnand %p7990_p7, %p7984_p0 }
  0x3d   : > { %7994 = shalt.err (!%p7991_p9)
}
  0x3e   : > { %s8161_s14 = smov 128   ;;  %s8162_s15 = smov 8  }
  0x3f   : > { %7843 = dma.hbm_to_vmem [thread:$0]  (!%p8249_p10), %s8556_s3, 16384, %s8253_s6, [#allocation9], %s8161_s14, %s8161_s14, %s8162_s15  }
  0x40   : > { %s8163_s23 = smov [#allocation7]   ;;  %s8164_s30 = smov [#allocation10]  }
  0x41   : > { %s190_s27 = sshll.u32 %s8163_s23, 4  ;;  %s214_s7 = sshll.u32 %s8164_s30, 4  ;;  %s191_s27 = int_to_ptr.vmem [resolvable:$true] %s190_s27  ;;  %s8302_s7 = int_to_ptr.vmem [resolvable:$true] %s214_s7 }
  0x42   : > { %s7995_s10 = scalar_lea.hbm %s8555_s2, 128 }
  0x43   : > { %p7996_p11 = scmp.ne.s32.totalorder %s8555_s2, %s7995_s10  ;;  %p8002_p4 = scmp.lt.u32.totalorder %s7995_s10, %s8555_s2 }
  0x45   : > { %p7998_p1 = pnand %p7996_p11, %p8263_p12 }
  0x47   : > { %p7999_p2 = pneg %p7998_p1 }
  0x49   : > { %p8004_p6 = pnand %p8002_p4, %p7999_p2 }
  0x4b   : > { %8007 = shalt.err (!%p8004_p6)
}
  0x4c   : > { %s8008_s14 = scalar_lea.vmem %s191_s27, 128  ;;  %p8016_p3 = scmp.lt.s32.totalorder %s191_s27, %s191_s27 }
  0x4d   : > { %p8009_p8 = scmp.ne.s32.totalorder %s191_s27, %s8008_s14  ;;  %p8017_p5 = scmp.lt.s32.totalorder %s8008_s14, %s8008_s14 }
  0x4f   : > { %p8011_p13 = pnand %p8009_p8, %p8263_p12  ;;  %p8018_p7 = por %p8017_p5, %p8016_p3 }
  0x51   : > { %p8012_p0 = pneg %p8011_p13 }
  0x53   : > { %p8019_p9 = pnand %p8018_p7, %p8012_p0 }
  0x55   : > { %8022 = shalt.err (!%p8019_p9)
}
  0x56   : > { %7840 = dma.hbm_to_vmem [thread:$0]  (!%p8249_p10), %s8555_s2, 128, %s191_s27, [#allocation6]  }
  0x57   : > { %s8023_s30 = scalar_lea.hbm %s8557_s4, 16 }
  0x58   : > { %p8024_p11 = scmp.ne.s32.totalorder %s8557_s4, %s8023_s30  ;;  %p8030_p4 = scmp.lt.u32.totalorder %s8023_s30, %s8557_s4 }
  0x5a   : > { %p8026_p1 = pnand %p8024_p11, %p8263_p12 }
  0x5c   : > { %p8027_p2 = pneg %p8026_p1 }
  0x5e   : > { %p8032_p6 = pnand %p8030_p4, %p8027_p2 }
  0x60   : > { %8035 = shalt.err (!%p8032_p6)
}
  0x61   : > { %s8036_s27 = scalar_lea.vmem %s8302_s7, 16  ;;  %s8043_s13 = scalar_lea.vmem %s8302_s7, 32 }
  0x62   : > { %p8037_p8 = scmp.ne.s32.totalorder %s8302_s7, %s8036_s27  ;;  %p8044_p3 = scmp.lt.s32.totalorder %s8302_s7, %s8302_s7 }
  0x63   : > { %p8045_p5 = scmp.lt.s32.totalorder %s8043_s13, %s8036_s27 }
  0x64   : > { %p8039_p13 = pnand %p8037_p8, %p8263_p12 }
  0x65   : > { %p8046_p7 = por %p8045_p5, %p8044_p3 }
  0x66   : > { %p8040_p0 = pneg %p8039_p13 }
  0x68   : > { %p8047_p9 = pnand %p8046_p7, %p8040_p0 }
  0x6a   : > { %8050 = shalt.err (!%p8047_p9)
}
  0x6b   : > { %7846 = dma.hbm_to_vmem [thread:$0]  (!%p8249_p10), %s8557_s4, 16, %s8302_s7, [#allocation9]  }
  0x6c   : > { %s8347_s12 = sadd.s32 1, %s8155_s21   ;;  %s30_s14 = sadd.s32 1, %s8151_s20 }
  0x6d   : > { %s27_s29 = ssub.s32 %s8155_s21, %s8347_s12  ;;  %p37_p11 = scmp.ne.s32.totalorder %s8151_s20, %s8147_s19 }
  0x6e   : > { %p28_p12 = scmp.eq.s32.totalorder %s27_s29, 0  ;;  %p38_p1 = scmp.eq.s32.totalorder %s8155_s21, 0 }
  0x6f   : > { %p8567_p4 = scmp.eq.s32.totalorder %s8222_s22, 2  ;;  %p7859_p8 = scmp.lt.s32.totalorder %s8155_s21, 3 }
  0x70   : > { %s8356_s15 = scalar_select %p28_p12, %s8151_s20, %s30_s14  }
  0x71   : > { %p39_p2 = por %p38_p1, %p37_p11  ;;  %p8360_p6 = por %p8567_p4, %p37_p11 }
  0x72   : > { %s225_s17 = sand.u32 1, %s8151_s20   ;;  %s7812_s7 = smul.u32 1536, %s8155_s21 }
  0x73   : > { %s7811_s23 = smul.u32 96, %s225_s17  ;;  %p8367_p10 = pnand %p7859_p8, %p39_p2 }
  0x74   : > { %s8374_s10 = scalar_lea.hbm %s8553_s0, %s7812_s7  ;;  %s8378_s13 = scalar_lea.sflag [#allocation3], %s225_s17 }
  0x75   : > { %s229_s11 = scalar_lea.vmem [#allocation2], %s7811_s23  ;;  %s8051_s28 = scalar_lea.hbm %s8374_s10, 1536 }
  0x76   : > { %s237_s27 = sshll.u32 %s229_s11, 4  ;;  %p8052_p13 = scmp.ne.s32.totalorder %s8374_s10, %s8051_s28  ;;  %s8376_s27 = int_to_ptr.vmem [resolvable:$true] %s237_s27 }
  0x77   : > { %p8053_p0 = pneg %p8367_p10  ;;  %s8056_s14 = scalar_lea.hbm %s8553_s0, 4608 }
  0x78   : > { %p8057_p7 = scmp.lt.u32.totalorder %s8374_s10, %s8553_s0  ;;  %p8058_p9 = scmp.lt.u32.totalorder %s8056_s14, %s8051_s28 }
  0x79   : > { %p8054_p3 = pnand %p8053_p0, %p8052_p13  ;;  %p8060_p11 = scmp.lt.u32.totalorder %s8051_s28, %s8374_s10 }
  0x7a   : > { %p8059_p12 = por %p8058_p9, %p8057_p7 }
  0x7b   : > { %p8055_p5 = pneg %p8054_p3 }
  0x7c   : > { %p8061_p1 = por %p8060_p11, %p8059_p12 }
  0x7e   : > { %p8062_p2 = pnand %p8061_p1, %p8055_p5 }
  0x80   : > { %8065 = shalt.err (!%p8062_p2)
}
  0x81   : > { %s8066_s17 = scalar_lea.vmem %s8376_s27, 1536  ;;  %s8165_s23 = smov [#allocation2]  }
  0x82   : > { %p8067_p4 = scmp.ne.s32.totalorder %s8376_s27, %s8066_s17  ;;  %s8071_s9 = sshll.u32 %s8165_s23, 4  ;;  %s8072_s9 = int_to_ptr.vmem [resolvable:$false] %s8071_s9 }
  0x83   : > { %s8073_s11 = scalar_lea.vmem %s8072_s9, 3072  ;;  %p8074_p3 = scmp.lt.s32.totalorder %s8376_s27, %s8072_s9 }
  0x84   : > { %p8069_p8 = pnand %p8067_p4, %p8053_p0  ;;  %p8075_p7 = scmp.lt.s32.totalorder %s8073_s11, %s8066_s17 }
  0x86   : > { %p8070_p13 = pneg %p8069_p8  ;;  %p8076_p9 = por %p8075_p7, %p8074_p3 }
  0x88   : > { %p8077_p12 = pnand %p8076_p9, %p8070_p13 }
  0x8a   : > { %8080 = shalt.err (!%p8077_p12)
}
  0x8b   : > { %s8166_s28 = smov 768   ;;  %s8167_s6 = smov 48  }
  0x8c   : > { %7850 = dma.hbm_to_vmem [thread:$0]  (!%p8367_p10), %s8374_s10, 1536, %s8376_s27, %s8378_s13, %s8166_s28, %s8166_s28, %s8167_s6  }
  0x8d   : > { %p8570_p0 = scmp.ne.s32.totalorder %s8564_s26, 0 }
  0x8e   : > { %s8409_s29 = sand.u32 (!%p8570_p0), 1, %s8147_s19   ;;  %p8571_p5 = scmp.ne.s32.totalorder (!%p8570_p0), %s8562_s24, 0 }
  0x8f   : > { %249 = sbr.rel (%p8570_p0) target bundleno = 1385 (0x569), region = 40  ;;  %s252_s7 = scalar_lea.sflag (!%p8570_p0), [#allocation3], %s8409_s29 }
  0x90   : > { %s7813_s14 = smul.u32 (!%p8570_p0), 96, %s8409_s29 }
  0x92   : > { %s8413_s8 = scalar_lea.vmem (!%p8570_p0), [#allocation2], %s7813_s14 }
  0x96   : > { %8126 = dma.done.wait (%p8571_p5), %s252_s7, 1536  }
  0x97   : > { %8128 = vsyncadd (%p8571_p5), %s252_s7, 4294965760  ;;  %p8572_p10 = scmp.eq.s32.totalorder %s8222_s22, 0 }
  0x99   : > { %8130 = dma.done.wait (%p8572_p10), [#allocation6], 98432   ;;  %p8573_p11 = pmov %p8572_p10 }
  0x9a   : > { %p8574_p1 = pmov %p8572_p10 }
  0x9b   : > { %8132 = vsyncadd (%p8573_p11), [#allocation6], 4294868864 }
  0x9c   : > { %8134 = dma.done.wait (%p8574_p1), [#allocation9], 16400   ;;  %p8575_p2 = pmov %p8574_p1 }
  0x9d   : > { %v312_v0 = vld [vmem:[#allocation5] sm:$0xff]  ;;  %v313_v2 = vld [vmem:[#allocation5 + $0x8] sm:$0xff]  ;;  %s6647_s24 = sshll.u32 %s8409_s29, 4  ;;  %s7434_s10 = sshll.u32 %s8222_s22, 8 }
  0x9e   : > { %8136 = vsyncadd (%p8575_p2), [#allocation9], 4294950896  ;;  %v316_v1 = vld [vmem:[#allocation5 + $0x20] sm:$0xff]  ;;  %v317_v4 = vld [vmem:[#allocation5 + $0x28] sm:$0xff]  ;;  %s297_s26 = scalar_lea.vmem [#allocation11], %s6647_s24  ;;  %s8510_s17 = scalar_lea.hbm %s8558_s5, %s7434_s10 }
  0x9f   : > { %v6661_v3 = vcombine.high %v312_v0, %v316_v1  ;;  %v6660_v5 = vcombine.low %v312_v0, %v316_v1  ;;  %v320_v6 = vld [vmem:[#allocation5 + $0x40] sm:$0xff]  ;;  %v6663_v8 = vcombine.high %v313_v2, %v317_v4  ;;  %v6662_v9 = vcombine.low %v313_v2, %v317_v4  ;;  %v321_v11 = vld [vmem:[#allocation5 + $0x48] sm:$0xff]  ;;  %s6521_s30 = sshll.u32 %s297_s26, 4  ;;  %s6508_s23 = scalar_lea.sflag [#allocation4], %s8409_s29  ;;  %s8505_s30 = int_to_ptr.vmem [resolvable:$true] %s6521_s30 }
  0xa0   : > { %v324_v7 = vld [vmem:[#allocation5 + $0x60] sm:$0xff]  ;;  %v325_v12 = vld [vmem:[#allocation5 + $0x68] sm:$0xff]  ;;  %s8081_s9 = scalar_lea.vmem %s8505_s30, 256  ;;  %s8168_s22 = smov [#allocation11]  }
  0xa1   : > { %v6669_v10 = vcombine.high %v320_v6, %v324_v7  ;;  %v328_v13 = vld [vmem:[#allocation5 + $0x80] sm:$0xff]  ;;  %5022 = vmatprep.subr.bf16.mxu0 %v6661_v3  ;;  %v6671_v14 = vcombine.high %v321_v11, %v325_v12  ;;  %v329_v16 = vld [vmem:[#allocation5 + $0x88] sm:$0xff]  ;;  %5280 = vmatprep.subr.bf16.mxu1 %v6663_v8  ;;  %v6668_v18 = vcombine.low %v320_v6, %v324_v7  ;;  %p8082_p4 = scmp.ne.s32.totalorder %s8505_s30, %s8081_s9  ;;  %s8085_s11 = sshll.u32 %s8168_s22, 4  ;;  %s8086_s11 = int_to_ptr.vmem [resolvable:$false] %s8085_s11 }
  0xa2   : > { %v332_v15 = vld [vmem:[#allocation5 + $0xa0] sm:$0xff]  ;;  %v333_v17 = vld [vmem:[#allocation5 + $0xa8] sm:$0xff]  ;;  %5023 = vmatpush1.bf16.msra.mxu0 %v6660_v5  ;;  %5281 = vmatpush1.bf16.msra.mxu1 %v6662_v9  ;;  %v6670_v19 = vcombine.low %v321_v11, %v325_v12  ;;  %s8087_s28 = scalar_lea.vmem %s8086_s11, 512  ;;  %p8088_p3 = scmp.lt.s32.totalorder %s8505_s30, %s8086_s11 }
  0xa3   : > { %5024 = vmatprep.subr.bf16.mxu0 %v6669_v10  ;;  %v6677_v20 = vcombine.high %v328_v13, %v332_v15  ;;  %5282 = vmatprep.subr.bf16.mxu1 %v6671_v14  ;;  %v6679_v21 = vcombine.high %v329_v16, %v333_v17  ;;  %v336_v22 = vld [vmem:[#allocation5 + $0xc0] sm:$0xff]  ;;  %v337_v24 = vld [vmem:[#allocation5 + $0xc8] sm:$0xff]  ;;  %v6676_v26 = vcombine.low %v328_v13, %v332_v15  ;;  %p8083_p8 = pnand %p8082_p4, %p8360_p6  ;;  %p8089_p7 = scmp.lt.s32.totalorder %s8087_s28, %s8081_s9 }
  0xa4   : > { %v340_v23 = vld [vmem:[#allocation5 + $0xe0] sm:$0xff]  ;;  %v341_v25 = vld [vmem:[#allocation5 + $0xe8] sm:$0xff]  ;;  %v6678_v27 = vcombine.low %v329_v16, %v333_v17 }
  0xa5   : > { %v6685_v28 = vcombine.high %v336_v22, %v340_v23  ;;  %v6687_v29 = vcombine.high %v337_v24, %v341_v25  ;;  %v344_v30 = vld [vmem:[#allocation5 + $0x100] sm:$0xff]  ;;  %v345_v32 = vld [vmem:[#allocation5 + $0x108] sm:$0xff]  ;;  %v6684_v34 = vcombine.low %v336_v22, %v340_v23  ;;  %v6686_v35 = vcombine.low %v337_v24, %v341_v25  ;;  %p8084_p13 = pneg %p8083_p8  ;;  %p8090_p9 = por %p8089_p7, %p8088_p3 }
  0xa6   : > { %5025 = vmatpush1.bf16.msra.mxu0 %v6668_v18  ;;  %5283 = vmatpush1.bf16.msra.mxu1 %v6670_v19  ;;  %v348_v31 = vld [vmem:[#allocation5 + $0x120] sm:$0xff]  ;;  %v349_v33 = vld [vmem:[#allocation5 + $0x128] sm:$0xff] }
  0xa7   : > { %5026 = vmatprep.subr.bf16.mxu0 %v6677_v20  ;;  %5284 = vmatprep.subr.bf16.mxu1 %v6679_v21  ;;  %v6693_v36 = vcombine.high %v344_v30, %v348_v31  ;;  %v6695_v37 = vcombine.high %v345_v32, %v349_v33  ;;  %v352_v38 = vld [vmem:[#allocation5 + $0x140] sm:$0xff]  ;;  %v353_v40 = vld [vmem:[#allocation5 + $0x148] sm:$0xff]  ;;  %v6692_v42 = vcombine.low %v344_v30, %v348_v31  ;;  %p8091_p12 = pnand %p8090_p9, %p8084_p13 }
  0xa8   : > { %v356_v39 = vld [vmem:[#allocation5 + $0x160] sm:$0xff]  ;;  %v357_v41 = vld [vmem:[#allocation5 + $0x168] sm:$0xff]  ;;  %v6694_v43 = vcombine.low %v345_v32, %v349_v33 }
  0xa9   : > { %v6701_v44 = vcombine.high %v352_v38, %v356_v39  ;;  %v6703_v45 = vcombine.high %v353_v40, %v357_v41  ;;  %v360_v46 = vld [vmem:[#allocation5 + $0x180] sm:$0xff]  ;;  %v361_v48 = vld [vmem:[#allocation5 + $0x188] sm:$0xff]  ;;  %v6700_v50 = vcombine.low %v352_v38, %v356_v39  ;;  %v6702_v51 = vcombine.low %v353_v40, %v357_v41 }
  0xaa   : > { %5027 = vmatpush1.bf16.msra.mxu0 %v6676_v26  ;;  %5285 = vmatpush1.bf16.msra.mxu1 %v6678_v27  ;;  %v364_v47 = vld [vmem:[#allocation5 + $0x1a0] sm:$0xff]  ;;  %v365_v49 = vld [vmem:[#allocation5 + $0x1a8] sm:$0xff] }
  0xab   : > { %5028 = vmatprep.subr.bf16.mxu0 %v6685_v28  ;;  %5286 = vmatprep.subr.bf16.mxu1 %v6687_v29  ;;  %v6709_v52 = vcombine.high %v360_v46, %v364_v47  ;;  %v6711_v53 = vcombine.high %v361_v48, %v365_v49  ;;  %v368_v54 = vld [vmem:[#allocation5 + $0x1c0] sm:$0xff]  ;;  %v369_v57 = vld [vmem:[#allocation5 + $0x1c8] sm:$0xff]  ;;  %v6708_v59 = vcombine.low %v360_v46, %v364_v47 }
  0xac   : > { %v372_v55 = vld [vmem:[#allocation5 + $0x1e0] sm:$0xff]  ;;  %v373_v58 = vld [vmem:[#allocation5 + $0x1e8] sm:$0xff]  ;;  %v6710_v60 = vcombine.low %v361_v48, %v365_v49 }
  0xad   : > { %v7909_v56 = vld [vmem:[%s8413_s8 + $0x4] ss:$48 sps:$4 sm:$0xff]   ;;  %v6717_v61 = vcombine.high %v368_v54, %v372_v55  ;;  %v6719_v62 = vcombine.high %v369_v57, %v373_v58  ;;  %v377_v1 = vld [vmem:[#allocation5 + $0x208] sm:$0xff]  ;;  %v6716_v3 = vcombine.low %v368_v54, %v372_v55  ;;  %v6718_v4 = vcombine.low %v369_v57, %v373_v58 }
  0xae   : > { %5029 = vmatpush1.bf16.msra.mxu0 %v6684_v34  ;;  %5287 = vmatpush1.bf16.msra.mxu1 %v6686_v35  ;;  %v376_v63 = vld [vmem:[#allocation5 + $0x200] sm:$0xff]  ;;  %v381_v2 = vld [vmem:[#allocation5 + $0x228] sm:$0xff] }
  0xaf   : > { %5030 = vmatprep.subr.bf16.mxu0 %v6693_v36  ;;  %5288 = vmatprep.subr.bf16.mxu1 %v6695_v37  ;;  %v380_v0 = vld [vmem:[#allocation5 + $0x220] sm:$0xff]  ;;  %v6727_v6 = vcombine.high %v377_v1, %v381_v2  ;;  %v385_v9 = vld [vmem:[#allocation5 + $0x248] sm:$0xff]  ;;  %v6726_v12 = vcombine.low %v377_v1, %v381_v2 }
  0xb0   : > { %5054 = vmatprep.mubr.bf16.mxu0 %v7909_v56  ;;  %5312 = vmatprep.mubr.bf16.mxu1 %v7909_v56  ;;  %v6725_v5 = vcombine.high %v376_v63, %v380_v0  ;;  %v384_v7 = vld [vmem:[#allocation5 + $0x240] sm:$0xff]  ;;  %v389_v10 = vld [vmem:[#allocation5 + $0x268] sm:$0xff]  ;;  %v6724_v11 = vcombine.low %v376_v63, %v380_v0 }
  0xb1   : > { %v388_v8 = vld [vmem:[#allocation5 + $0x260] sm:$0xff]  ;;  %v6735_v14 = vcombine.high %v385_v9, %v389_v10  ;;  %v393_v17 = vld [vmem:[#allocation5 + $0x288] sm:$0xff]  ;;  %v6734_v20 = vcombine.low %v385_v9, %v389_v10 }
  0xb2   : > { %5031 = vmatpush1.bf16.msra.mxu0 %v6692_v42  ;;  %5289 = vmatpush1.bf16.msra.mxu1 %v6694_v43  ;;  %v6733_v13 = vcombine.high %v384_v7, %v388_v8  ;;  %v392_v15 = vld [vmem:[#allocation5 + $0x280] sm:$0xff]  ;;  %v397_v18 = vld [vmem:[#allocation5 + $0x2a8] sm:$0xff]  ;;  %v6732_v19 = vcombine.low %v384_v7, %v388_v8 }
  0xb3   : > { %5032 = vmatprep.subr.bf16.mxu0 %v6701_v44  ;;  %5290 = vmatprep.subr.bf16.mxu1 %v6703_v45  ;;  %v396_v16 = vld [vmem:[#allocation5 + $0x2a0] sm:$0xff]  ;;  %v6743_v22 = vcombine.high %v393_v17, %v397_v18  ;;  %v401_v25 = vld [vmem:[#allocation5 + $0x2c8] sm:$0xff]  ;;  %v6742_v28 = vcombine.low %v393_v17, %v397_v18 }
  0xb4   : > { %v6741_v21 = vcombine.high %v392_v15, %v396_v16  ;;  %v400_v23 = vld [vmem:[#allocation5 + $0x2c0] sm:$0xff]  ;;  %v405_v26 = vld [vmem:[#allocation5 + $0x2e8] sm:$0xff]  ;;  %v6740_v27 = vcombine.low %v392_v15, %v396_v16 }
  0xb5   : > { %v404_v24 = vld [vmem:[#allocation5 + $0x2e0] sm:$0xff]  ;;  %v6751_v30 = vcombine.high %v401_v25, %v405_v26  ;;  %v409_v33 = vld [vmem:[#allocation5 + $0x308] sm:$0xff]  ;;  %v6750_v36 = vcombine.low %v401_v25, %v405_v26 }
  0xb6   : > { %5033 = vmatpush1.bf16.msra.mxu0 %v6700_v50  ;;  %5291 = vmatpush1.bf16.msra.mxu1 %v6702_v51  ;;  %v6749_v29 = vcombine.high %v400_v23, %v404_v24  ;;  %v408_v31 = vld [vmem:[#allocation5 + $0x300] sm:$0xff]  ;;  %v413_v34 = vld [vmem:[#allocation5 + $0x328] sm:$0xff]  ;;  %v6748_v35 = vcombine.low %v400_v23, %v404_v24 }
  0xb7   : > { %5034 = vmatprep.subr.bf16.mxu0 %v6709_v52  ;;  %5292 = vmatprep.subr.bf16.mxu1 %v6711_v53  ;;  %v412_v32 = vld [vmem:[#allocation5 + $0x320] sm:$0xff]  ;;  %v6759_v38 = vcombine.high %v409_v33, %v413_v34  ;;  %v417_v41 = vld [vmem:[#allocation5 + $0x348] sm:$0xff]  ;;  %v6758_v44 = vcombine.low %v409_v33, %v413_v34 }
  0xb8   : > { %v6757_v37 = vcombine.high %v408_v31, %v412_v32  ;;  %v416_v39 = vld [vmem:[#allocation5 + $0x340] sm:$0xff]  ;;  %v421_v42 = vld [vmem:[#allocation5 + $0x368] sm:$0xff]  ;;  %v6756_v43 = vcombine.low %v408_v31, %v412_v32 }
  0xb9   : > { %v420_v40 = vld [vmem:[#allocation5 + $0x360] sm:$0xff]  ;;  %v6767_v46 = vcombine.high %v417_v41, %v421_v42  ;;  %v425_v49 = vld [vmem:[#allocation5 + $0x388] sm:$0xff]  ;;  %v6766_v52 = vcombine.low %v417_v41, %v421_v42 }
  0xba   : > { %5035 = vmatpush1.bf16.msra.mxu0 %v6708_v59  ;;  %5293 = vmatpush1.bf16.msra.mxu1 %v6710_v60  ;;  %v6765_v45 = vcombine.high %v416_v39, %v420_v40  ;;  %v424_v47 = vld [vmem:[#allocation5 + $0x380] sm:$0xff]  ;;  %v429_v50 = vld [vmem:[#allocation5 + $0x3a8] sm:$0xff]  ;;  %v6764_v51 = vcombine.low %v416_v39, %v420_v40 }
  0xbb   : > { %5036 = vmatprep.subr.bf16.mxu0 %v6717_v61  ;;  %5294 = vmatprep.subr.bf16.mxu1 %v6719_v62  ;;  %v428_v48 = vld [vmem:[#allocation5 + $0x3a0] sm:$0xff]  ;;  %v6775_v54 = vcombine.high %v425_v49, %v429_v50  ;;  %v433_v57 = vld [vmem:[#allocation5 + $0x3c8] sm:$0xff]  ;;  %v6774_v60 = vcombine.low %v425_v49, %v429_v50 }
  0xbc   : > { %v6773_v53 = vcombine.high %v424_v47, %v428_v48  ;;  %v432_v55 = vld [vmem:[#allocation5 + $0x3c0] sm:$0xff]  ;;  %v437_v58 = vld [vmem:[#allocation5 + $0x3e8] sm:$0xff]  ;;  %v6772_v59 = vcombine.low %v424_v47, %v428_v48 }
  0xbd   : > { %v436_v56 = vld [vmem:[#allocation5 + $0x3e0] sm:$0xff]  ;;  %v6783_v62 = vcombine.high %v433_v57, %v437_v58  ;;  %v441_v1 = vld [vmem:[#allocation5 + $0x408] sm:$0xff] }
  0xbe   : > { %5037 = vmatpush1.bf16.msra.mxu0 %v6716_v3  ;;  %5295 = vmatpush1.bf16.msra.mxu1 %v6718_v4  ;;  %v6781_v61 = vcombine.high %v432_v55, %v436_v56  ;;  %v440_v63 = vld [vmem:[#allocation5 + $0x400] sm:$0xff]  ;;  %v445_v2 = vld [vmem:[#allocation5 + $0x428] sm:$0xff]  ;;  %v6780_v3 = vcombine.low %v432_v55, %v436_v56  ;;  %v6782_v4 = vcombine.low %v433_v57, %v437_v58 }
  0xbf   : > { %5038 = vmatprep.subr.bf16.mxu0 %v6725_v5  ;;  %5296 = vmatprep.subr.bf16.mxu1 %v6727_v6  ;;  %v444_v0 = vld [vmem:[#allocation5 + $0x420] sm:$0xff]  ;;  %v6791_v6 = vcombine.high %v441_v1, %v445_v2  ;;  %v449_v10 = vld [vmem:[#allocation5 + $0x448] sm:$0xff] }
  0xc0   : > { %v6789_v5 = vcombine.high %v440_v63, %v444_v0  ;;  %v448_v7 = vld [vmem:[#allocation5 + $0x440] sm:$0xff]  ;;  %v7912_v18 = vld [vmem:[%s8413_s8 + $0xc] ss:$48 sps:$4 sm:$0xff]  }
  0xc1   : > { %v452_v8 = vld [vmem:[#allocation5 + $0x460] sm:$0xff] }
  0xc2   : > { %5039 = vmatpush1.bf16.msra.mxu0 %v6724_v11  ;;  %5297 = vmatpush1.bf16.msra.mxu1 %v6726_v12  ;;  %v7911_v9 = vld [vmem:[%s8413_s8] ss:$48 sps:$4 sm:$0xff]   ;;  %v453_v11 = vld [vmem:[#allocation5 + $0x468] sm:$0xff]  ;;  %v6788_v12 = vcombine.low %v440_v63, %v444_v0 }
  0xc3   : > { %5040 = vmatprep.subr.bf16.mxu0 %v6733_v13  ;;  %5298 = vmatprep.subr.bf16.mxu1 %v6735_v14  ;;  %v6790_v13 = vcombine.low %v441_v1, %v445_v2  ;;  %v6797_v14 = vcombine.high %v448_v7, %v452_v8  ;;  %v456_v15 = vld [vmem:[#allocation5 + $0x480] sm:$0xff]  ;;  %v6799_v16 = vcombine.high %v449_v10, %v453_v11 }
  0xc4   : > { %v460_v17 = vld [vmem:[#allocation5 + $0x4a0] sm:$0xff] }
  0xc5   : > { %v6805_v23 = vcombine.high %v456_v15, %v460_v17  ;;  %v464_v24 = vld [vmem:[#allocation5 + $0x4c0] sm:$0xff] }
  0xc6   : > { %5041 = vmatpush1.bf16.msra.mxu0 %v6732_v19  ;;  %5299 = vmatpush1.bf16.msra.mxu1 %v6734_v20  ;;  %v457_v19 = vld [vmem:[#allocation5 + $0x488] sm:$0xff]  ;;  %v468_v25 = vld [vmem:[#allocation5 + $0x4e0] sm:$0xff] }
  0xc7   : > { %5042 = vmatprep.subr.bf16.mxu0 %v6741_v21  ;;  %5300 = vmatprep.subr.bf16.mxu1 %v6743_v22  ;;  %v461_v20 = vld [vmem:[#allocation5 + $0x4a8] sm:$0xff]  ;;  %v6796_v21 = vcombine.low %v448_v7, %v452_v8  ;;  %v6798_v22 = vcombine.low %v449_v10, %v453_v11  ;;  %v6813_v31 = vcombine.high %v464_v24, %v468_v25  ;;  %v472_v33 = vld [vmem:[#allocation5 + $0x500] sm:$0xff] }
  0xc8   : > { %v6807_v26 = vcombine.high %v457_v19, %v461_v20  ;;  %v476_v34 = vld [vmem:[#allocation5 + $0x520] sm:$0xff]  ;;  %v513_v11 = vld [vmem:[#allocation5 + $0x648] sm:$0xff] }
  0xc9   : > { %v6821_v39 = vcombine.high %v472_v33, %v476_v34  ;;  %v480_v41 = vld [vmem:[#allocation5 + $0x540] sm:$0xff] }
  0xca   : > { %5043 = vmatpush1.bf16.msra.mxu0 %v6740_v27  ;;  %5301 = vmatpush1.bf16.msra.mxu1 %v6742_v28  ;;  %v465_v27 = vld [vmem:[#allocation5 + $0x4c8] sm:$0xff]  ;;  %v484_v42 = vld [vmem:[#allocation5 + $0x560] sm:$0xff] }
  0xcb   : > { %5044 = vmatprep.subr.bf16.mxu0 %v6749_v29  ;;  %5302 = vmatprep.subr.bf16.mxu1 %v6751_v30  ;;  %v469_v28 = vld [vmem:[#allocation5 + $0x4e8] sm:$0xff]  ;;  %v6804_v29 = vcombine.low %v456_v15, %v460_v17  ;;  %v6806_v30 = vcombine.low %v457_v19, %v461_v20  ;;  %v6829_v47 = vcombine.high %v480_v41, %v484_v42  ;;  %v488_v49 = vld [vmem:[#allocation5 + $0x580] sm:$0xff] }
  0xcc   : > { %v6815_v32 = vcombine.high %v465_v27, %v469_v28  ;;  %v492_v50 = vld [vmem:[#allocation5 + $0x5a0] sm:$0xff]  ;;  %v521_v19 = vld [vmem:[#allocation5 + $0x688] sm:$0xff] }
  0xcd   : > { %v6837_v55 = vcombine.high %v488_v49, %v492_v50  ;;  %v496_v57 = vld [vmem:[#allocation5 + $0x5c0] sm:$0xff]  ;;  %v525_v20 = vld [vmem:[#allocation5 + $0x6a8] sm:$0xff] }
  0xce   : > { %5045 = vmatpush1.bf16.msra.mxu0 %v6748_v35  ;;  %5303 = vmatpush1.bf16.msra.mxu1 %v6750_v36  ;;  %v473_v35 = vld [vmem:[#allocation5 + $0x508] sm:$0xff]  ;;  %v500_v58 = vld [vmem:[#allocation5 + $0x5e0] sm:$0xff] }
  0xcf   : > { %5046 = vmatprep.subr.bf16.mxu0 %v6757_v37  ;;  %5304 = vmatprep.subr.bf16.mxu1 %v6759_v38  ;;  %v477_v36 = vld [vmem:[#allocation5 + $0x528] sm:$0xff]  ;;  %v6812_v37 = vcombine.low %v464_v24, %v468_v25  ;;  %v6814_v38 = vcombine.low %v465_v27, %v469_v28  ;;  %v6845_v63 = vcombine.high %v496_v57, %v500_v58  ;;  %v504_v1 = vld [vmem:[#allocation5 + $0x600] sm:$0xff] }
  0xd0   : > { %v6823_v40 = vcombine.high %v473_v35, %v477_v36  ;;  %v508_v2 = vld [vmem:[#allocation5 + $0x620] sm:$0xff]  ;;  %v6871_v24 = vcombine.high %v521_v19, %v525_v20  ;;  %v529_v27 = vld [vmem:[#allocation5 + $0x6c8] sm:$0xff] }
  0xd1   : > { %v6853_v7 = vcombine.high %v504_v1, %v508_v2  ;;  %v516_v10 = vld [vmem:[#allocation5 + $0x660] sm:$0xff]  ;;  %v533_v28 = vld [vmem:[#allocation5 + $0x6e8] sm:$0xff] }
  0xd2   : > { %5047 = vmatpush1.bf16.msra.mxu0 %v6756_v43  ;;  %5305 = vmatpush1.bf16.msra.mxu1 %v6758_v44  ;;  %v481_v43 = vld [vmem:[#allocation5 + $0x548] sm:$0xff]  ;;  %v520_v17 = vld [vmem:[#allocation5 + $0x680] sm:$0xff] }
  0xd3   : > { %5048 = vmatprep.subr.bf16.mxu0 %v6765_v45  ;;  %5306 = vmatprep.subr.bf16.mxu1 %v6767_v46  ;;  %v485_v44 = vld [vmem:[#allocation5 + $0x568] sm:$0xff]  ;;  %v6820_v45 = vcombine.low %v472_v33, %v476_v34  ;;  %v6822_v46 = vcombine.low %v473_v35, %v477_v36  ;;  %v528_v25 = vld [vmem:[#allocation5 + $0x6c0] sm:$0xff] }
  0xd4   : > { %v6831_v48 = vcombine.high %v481_v43, %v485_v44  ;;  %v536_v33 = vld [vmem:[#allocation5 + $0x700] sm:$0xff]  ;;  %v537_v35 = vld [vmem:[#allocation5 + $0x708] sm:$0xff] }
  0xd5   : > { %v540_v34 = vld [vmem:[#allocation5 + $0x720] sm:$0xff]  ;;  %v541_v36 = vld [vmem:[#allocation5 + $0x728] sm:$0xff] }
  0xd6   : > { %5049 = vmatpush1.bf16.msra.mxu0 %v6764_v51  ;;  %5307 = vmatpush1.bf16.msra.mxu1 %v6766_v52  ;;  %v489_v51 = vld [vmem:[#allocation5 + $0x588] sm:$0xff] }
  0xd7   : > { %5050 = vmatprep.subr.bf16.mxu0 %v6773_v53  ;;  %5308 = vmatprep.subr.bf16.mxu1 %v6775_v54  ;;  %v493_v52 = vld [vmem:[#allocation5 + $0x5a8] sm:$0xff]  ;;  %v6828_v53 = vcombine.low %v480_v41, %v484_v42  ;;  %v6830_v54 = vcombine.low %v481_v43, %v485_v44  ;;  %v544_v41 = vld [vmem:[#allocation5 + $0x740] sm:$0xff] }
  0xd8   : > { %v6839_v56 = vcombine.high %v489_v51, %v493_v52  ;;  %v548_v42 = vld [vmem:[#allocation5 + $0x760] sm:$0xff]  ;;  %v545_v43 = vld [vmem:[#allocation5 + $0x748] sm:$0xff] }
  0xd9   : > { %v549_v44 = vld [vmem:[#allocation5 + $0x768] sm:$0xff] }
  0xda   : > { %5051 = vmatpush1.bf16.msra.mxu0 %v6772_v59  ;;  %5309 = vmatpush1.bf16.msra.mxu1 %v6774_v60  ;;  %v497_v59 = vld [vmem:[#allocation5 + $0x5c8] sm:$0xff] }
  0xdb   : > { %5052 = vmatprep.subr.bf16.mxu0 %v6781_v61  ;;  %5310 = vmatprep.subr.bf16.mxu1 %v6783_v62  ;;  %v501_v60 = vld [vmem:[#allocation5 + $0x5e8] sm:$0xff]  ;;  %v6836_v61 = vcombine.low %v488_v49, %v492_v50  ;;  %v6838_v62 = vcombine.low %v489_v51, %v493_v52  ;;  %v552_v49 = vld [vmem:[#allocation5 + $0x780] sm:$0xff] }
  0xdc   : > { %v6847_v0 = vcombine.high %v497_v59, %v501_v60  ;;  %v556_v50 = vld [vmem:[#allocation5 + $0x7a0] sm:$0xff]  ;;  %v553_v51 = vld [vmem:[#allocation5 + $0x788] sm:$0xff] }
  0xdd   : > { %v557_v52 = vld [vmem:[#allocation5 + $0x7a8] sm:$0xff] }
  0xde   : > { %5053 = vmatpush1.bf16.msra.mxu0 %v6780_v3  ;;  %5311 = vmatpush1.bf16.msra.mxu1 %v6782_v4  ;;  %v505_v3 = vld [vmem:[#allocation5 + $0x608] sm:$0xff] }
  0xdf   : > { %5065 = vmatprep.subr.bf16.mxu0 %v6789_v5  ;;  %5323 = vmatprep.subr.bf16.mxu1 %v6791_v6  ;;  %v509_v4 = vld [vmem:[#allocation5 + $0x628] sm:$0xff]  ;;  %v6844_v5 = vcombine.low %v496_v57, %v500_v58  ;;  %v6846_v6 = vcombine.low %v497_v59, %v501_v60  ;;  %v560_v57 = vld [vmem:[#allocation5 + $0x7c0] sm:$0xff] }
  0xe0   : > { %v6855_v8 = vcombine.high %v505_v3, %v509_v4  ;;  %v564_v58 = vld [vmem:[#allocation5 + $0x7e0] sm:$0xff]  ;;  %v561_v59 = vld [vmem:[#allocation5 + $0x7c8] sm:$0xff] }
  0xe1   : > { %5055 = vmatmul.mubr.bf16.vlgmr.msra.gmra.mrb[0].mxu0 %v7911_v9  ;;  %5313 = vmatmul.mubr.bf16.vlgmr.msra.gmra.mrb[0].mxu1 %v7911_v9  ;;  %v512_v9 = vld [vmem:[#allocation5 + $0x640] sm:$0xff]  ;;  %v565_v60 = vld [vmem:[#allocation5 + $0x7e8] sm:$0xff] }
  0xe2   : > { %5066 = vmatpush1.bf16.msra.mxu0 %v6788_v12  ;;  %5324 = vmatpush1.bf16.msra.mxu1 %v6790_v13  ;;  %v517_v12 = vld [vmem:[#allocation5 + $0x668] sm:$0xff]  ;;  %v6852_v13 = vcombine.low %v504_v1, %v508_v2  ;;  %v6861_v15 = vcombine.high %v512_v9, %v516_v10  ;;  %v568_v1 = vld [vmem:[#allocation5 + $0x800] sm:$0xff] }
  0xe3   : > { %5067 = vmatprep.subr.bf16.mxu0 %v6797_v14  ;;  %5325 = vmatprep.subr.bf16.mxu1 %v6799_v16  ;;  %v6854_v14 = vcombine.low %v505_v3, %v509_v4  ;;  %v6863_v16 = vcombine.high %v513_v11, %v517_v12  ;;  %v572_v2 = vld [vmem:[#allocation5 + $0x820] sm:$0xff]  ;;  %v569_v3 = vld [vmem:[#allocation5 + $0x808] sm:$0xff] }
  0xe4   : > { %5097 = vmatprep.mubr.bf16.mxu0 %v7912_v18  ;;  %5355 = vmatprep.mubr.bf16.mxu1 %v7912_v18  ;;  %v524_v18 = vld [vmem:[#allocation5 + $0x6a0] sm:$0xff]  ;;  %v573_v4 = vld [vmem:[#allocation5 + $0x828] sm:$0xff] }
  0xe6   : > { %5068 = vmatpush1.bf16.msra.mxu0 %v6796_v21  ;;  %5326 = vmatpush1.bf16.msra.mxu1 %v6798_v22  ;;  %v6860_v21 = vcombine.low %v512_v9, %v516_v10  ;;  %v6862_v22 = vcombine.low %v513_v11, %v517_v12  ;;  %v576_v9 = vld [vmem:[#allocation5 + $0x840] sm:$0xff]  ;;  %v7914_v11 = vld [vmem:[%s8413_s8 + $0x8] ss:$48 sps:$4 sm:$0xff]  }
  0xe7   : > { %5069 = vmatprep.subr.bf16.mxu0 %v6805_v23  ;;  %5327 = vmatprep.subr.bf16.mxu1 %v6807_v26  ;;  %v6869_v23 = vcombine.high %v520_v17, %v524_v18  ;;  %v532_v26 = vld [vmem:[#allocation5 + $0x6e0] sm:$0xff]  ;;  %v577_v12 = vld [vmem:[#allocation5 + $0x848] sm:$0xff] }
  0xe8   : > { %v580_v10 = vld [vmem:[#allocation5 + $0x860] sm:$0xff] }
  0xea   : > { %5070 = vmatpush1.bf16.msra.mxu0 %v6804_v29  ;;  %5328 = vmatpush1.bf16.msra.mxu1 %v6806_v30  ;;  %v6868_v29 = vcombine.low %v520_v17, %v524_v18  ;;  %v6870_v30 = vcombine.low %v521_v19, %v525_v20  ;;  %v584_v18 = vld [vmem:[#allocation5 + $0x880] sm:$0xff] }
  0xeb   : > { %5071 = vmatprep.subr.bf16.mxu0 %v6813_v31  ;;  %5329 = vmatprep.subr.bf16.mxu1 %v6815_v32  ;;  %v6877_v31 = vcombine.high %v528_v25, %v532_v26  ;;  %v6879_v32 = vcombine.high %v529_v27, %v533_v28  ;;  %v588_v19 = vld [vmem:[#allocation5 + $0x8a0] sm:$0xff] }
  0xec   : > { %v7915_v20 = vld [vmem:[%s8413_s8 + $0x14] ss:$48 sps:$4 sm:$0xff]  }
  0xee   : > { %5072 = vmatpush1.bf16.msra.mxu0 %v6812_v37  ;;  %5330 = vmatpush1.bf16.msra.mxu1 %v6814_v38  ;;  %v6876_v37 = vcombine.low %v528_v25, %v532_v26  ;;  %v6878_v38 = vcombine.low %v529_v27, %v533_v28  ;;  %v6933_v25 = vcombine.high %v584_v18, %v588_v19  ;;  %v592_v27 = vld [vmem:[#allocation5 + $0x8c0] sm:$0xff] }
  0xef   : > { %5073 = vmatprep.subr.bf16.mxu0 %v6821_v39  ;;  %5331 = vmatprep.subr.bf16.mxu1 %v6823_v40  ;;  %v6885_v39 = vcombine.high %v536_v33, %v540_v34  ;;  %v6887_v40 = vcombine.high %v537_v35, %v541_v36  ;;  %v596_v28 = vld [vmem:[#allocation5 + $0x8e0] sm:$0xff] }
  0xf2   : > { %5074 = vmatpush1.bf16.msra.mxu0 %v6820_v45  ;;  %5332 = vmatpush1.bf16.msra.mxu1 %v6822_v46  ;;  %v6884_v45 = vcombine.low %v536_v33, %v540_v34  ;;  %v6886_v46 = vcombine.low %v537_v35, %v541_v36  ;;  %v6941_v33 = vcombine.high %v592_v27, %v596_v28  ;;  %v600_v35 = vld [vmem:[#allocation5 + $0x900] sm:$0xff] }
  0xf3   : > { %5075 = vmatprep.subr.bf16.mxu0 %v6829_v47  ;;  %5333 = vmatprep.subr.bf16.mxu1 %v6831_v48  ;;  %v6893_v47 = vcombine.high %v544_v41, %v548_v42  ;;  %v6895_v48 = vcombine.high %v545_v43, %v549_v44  ;;  %v604_v36 = vld [vmem:[#allocation5 + $0x920] sm:$0xff] }
  0xf6   : > { %5076 = vmatpush1.bf16.msra.mxu0 %v6828_v53  ;;  %5334 = vmatpush1.bf16.msra.mxu1 %v6830_v54  ;;  %v6892_v53 = vcombine.low %v544_v41, %v548_v42  ;;  %v6894_v54 = vcombine.low %v545_v43, %v549_v44  ;;  %v6949_v41 = vcombine.high %v600_v35, %v604_v36  ;;  %v608_v43 = vld [vmem:[#allocation5 + $0x940] sm:$0xff] }
  0xf7   : > { %5077 = vmatprep.subr.bf16.mxu0 %v6837_v55  ;;  %5335 = vmatprep.subr.bf16.mxu1 %v6839_v56  ;;  %v6901_v55 = vcombine.high %v552_v49, %v556_v50  ;;  %v6903_v56 = vcombine.high %v553_v51, %v557_v52  ;;  %v612_v44 = vld [vmem:[#allocation5 + $0x960] sm:$0xff] }
  0xfa   : > { %5078 = vmatpush1.bf16.msra.mxu0 %v6836_v61  ;;  %5336 = vmatpush1.bf16.msra.mxu1 %v6838_v62  ;;  %v6900_v61 = vcombine.low %v552_v49, %v556_v50  ;;  %v6902_v62 = vcombine.low %v553_v51, %v557_v52  ;;  %v6957_v49 = vcombine.high %v608_v43, %v612_v44  ;;  %v616_v51 = vld [vmem:[#allocation5 + $0x980] sm:$0xff] }
  0xfb   : > { %5079 = vmatprep.subr.bf16.mxu0 %v6845_v63  ;;  %5337 = vmatprep.subr.bf16.mxu1 %v6847_v0  ;;  %v6909_v63 = vcombine.high %v560_v57, %v564_v58  ;;  %v6911_v0 = vcombine.high %v561_v59, %v565_v60  ;;  %v620_v52 = vld [vmem:[#allocation5 + $0x9a0] sm:$0xff] }
  0xfe   : > { %5080 = vmatpush1.bf16.msra.mxu0 %v6844_v5  ;;  %5338 = vmatpush1.bf16.msra.mxu1 %v6846_v6  ;;  %v6908_v5 = vcombine.low %v560_v57, %v564_v58  ;;  %v6910_v6 = vcombine.low %v561_v59, %v565_v60  ;;  %v6965_v57 = vcombine.high %v616_v51, %v620_v52  ;;  %v624_v59 = vld [vmem:[#allocation5 + $0x9c0] sm:$0xff] }
  0xff   : > { %5081 = vmatprep.subr.bf16.mxu0 %v6853_v7  ;;  %5339 = vmatprep.subr.bf16.mxu1 %v6855_v8  ;;  %v6917_v7 = vcombine.high %v568_v1, %v572_v2  ;;  %v6919_v8 = vcombine.high %v569_v3, %v573_v4  ;;  %v628_v60 = vld [vmem:[#allocation5 + $0x9e0] sm:$0xff] }
 0x102   : > { %5082 = vmatpush1.bf16.msra.mxu0 %v6852_v13  ;;  %5340 = vmatpush1.bf16.msra.mxu1 %v6854_v14  ;;  %v581_v13 = vld [vmem:[#allocation5 + $0x868] sm:$0xff]  ;;  %v6916_v14 = vcombine.low %v568_v1, %v572_v2  ;;  %v6973_v1 = vcombine.high %v624_v59, %v628_v60 }
 0x103   : > { %5083 = vmatprep.subr.bf16.mxu0 %v6861_v15  ;;  %5341 = vmatprep.subr.bf16.mxu1 %v6863_v16  ;;  %v6918_v15 = vcombine.low %v569_v3, %v573_v4  ;;  %v6925_v16 = vcombine.high %v576_v9, %v580_v10  ;;  %v6927_v17 = vcombine.high %v577_v12, %v581_v13  ;;  %v632_v3 = vld [vmem:[#allocation5 + $0xa00] sm:$0xff] }
 0x104   : > { %v636_v4 = vld [vmem:[#allocation5 + $0xa20] sm:$0xff] }
 0x106   : > { %5084 = vmatpush1.bf16.msra.mxu0 %v6860_v21  ;;  %5342 = vmatpush1.bf16.msra.mxu1 %v6862_v22  ;;  %v585_v21 = vld [vmem:[#allocation5 + $0x888] sm:$0xff] }
 0x107   : > { %5085 = vmatprep.subr.bf16.mxu0 %v6869_v23  ;;  %5343 = vmatprep.subr.bf16.mxu1 %v6871_v24  ;;  %v589_v22 = vld [vmem:[#allocation5 + $0x8a8] sm:$0xff]  ;;  %v6924_v23 = vcombine.low %v576_v9, %v580_v10  ;;  %v6926_v24 = vcombine.low %v577_v12, %v581_v13  ;;  %v6981_v9 = vcombine.high %v632_v3, %v636_v4  ;;  %v644_v12 = vld [vmem:[#allocation5 + $0xa60] sm:$0xff] }
 0x108   : > { %v6935_v26 = vcombine.high %v585_v21, %v589_v22  ;;  %v641_v13 = vld [vmem:[#allocation5 + $0xa48] sm:$0xff] }
 0x10a   : > { %5086 = vmatpush1.bf16.msra.mxu0 %v6868_v29  ;;  %5344 = vmatpush1.bf16.msra.mxu1 %v6870_v30  ;;  %v593_v29 = vld [vmem:[#allocation5 + $0x8c8] sm:$0xff] }
 0x10b   : > { %5087 = vmatprep.subr.bf16.mxu0 %v6877_v31  ;;  %5345 = vmatprep.subr.bf16.mxu1 %v6879_v32  ;;  %v597_v30 = vld [vmem:[#allocation5 + $0x8e8] sm:$0xff]  ;;  %v6932_v31 = vcombine.low %v584_v18, %v588_v19  ;;  %v6934_v32 = vcombine.low %v585_v21, %v589_v22  ;;  %v648_v19 = vld [vmem:[#allocation5 + $0xa80] sm:$0xff] }
 0x10c   : > { %v6943_v34 = vcombine.high %v593_v29, %v597_v30  ;;  %v649_v21 = vld [vmem:[#allocation5 + $0xa88] sm:$0xff] }
 0x10d   : > { %v653_v22 = vld [vmem:[#allocation5 + $0xaa8] sm:$0xff] }
 0x10e   : > { %5088 = vmatpush1.bf16.msra.mxu0 %v6876_v37  ;;  %5346 = vmatpush1.bf16.msra.mxu1 %v6878_v38  ;;  %v601_v37 = vld [vmem:[#allocation5 + $0x908] sm:$0xff] }
 0x10f   : > { %5089 = vmatprep.subr.bf16.mxu0 %v6885_v39  ;;  %5347 = vmatprep.subr.bf16.mxu1 %v6887_v40  ;;  %v605_v38 = vld [vmem:[#allocation5 + $0x928] sm:$0xff]  ;;  %v6940_v39 = vcombine.low %v592_v27, %v596_v28  ;;  %v6942_v40 = vcombine.low %v593_v29, %v597_v30  ;;  %v656_v27 = vld [vmem:[#allocation5 + $0xac0] sm:$0xff] }
 0x110   : > { %v6951_v42 = vcombine.high %v601_v37, %v605_v38  ;;  %v660_v28 = vld [vmem:[#allocation5 + $0xae0] sm:$0xff]  ;;  %v657_v29 = vld [vmem:[#allocation5 + $0xac8] sm:$0xff] }
 0x111   : > { %v661_v30 = vld [vmem:[#allocation5 + $0xae8] sm:$0xff] }
 0x112   : > { %5090 = vmatpush1.bf16.msra.mxu0 %v6884_v45  ;;  %5348 = vmatpush1.bf16.msra.mxu1 %v6886_v46  ;;  %v609_v45 = vld [vmem:[#allocation5 + $0x948] sm:$0xff] }
 0x113   : > { %5091 = vmatprep.subr.bf16.mxu0 %v6893_v47  ;;  %5349 = vmatprep.subr.bf16.mxu1 %v6895_v48  ;;  %v613_v46 = vld [vmem:[#allocation5 + $0x968] sm:$0xff]  ;;  %v6948_v47 = vcombine.low %v600_v35, %v604_v36  ;;  %v6950_v48 = vcombine.low %v601_v37, %v605_v38  ;;  %v664_v35 = vld [vmem:[#allocation5 + $0xb00] sm:$0xff] }
 0x114   : > { %v6959_v50 = vcombine.high %v609_v45, %v613_v46  ;;  %v668_v36 = vld [vmem:[#allocation5 + $0xb20] sm:$0xff]  ;;  %v665_v37 = vld [vmem:[#allocation5 + $0xb08] sm:$0xff] }
 0x115   : > { %v669_v38 = vld [vmem:[#allocation5 + $0xb28] sm:$0xff] }
 0x116   : > { %5092 = vmatpush1.bf16.msra.mxu0 %v6892_v53  ;;  %5350 = vmatpush1.bf16.msra.mxu1 %v6894_v54  ;;  %v617_v53 = vld [vmem:[#allocation5 + $0x988] sm:$0xff] }
 0x117   : > { %5093 = vmatprep.subr.bf16.mxu0 %v6901_v55  ;;  %5351 = vmatprep.subr.bf16.mxu1 %v6903_v56  ;;  %v621_v54 = vld [vmem:[#allocation5 + $0x9a8] sm:$0xff]  ;;  %v6956_v55 = vcombine.low %v608_v43, %v612_v44  ;;  %v6958_v56 = vcombine.low %v609_v45, %v613_v46  ;;  %v672_v43 = vld [vmem:[#allocation5 + $0xb40] sm:$0xff] }
 0x118   : > { %v6967_v58 = vcombine.high %v617_v53, %v621_v54  ;;  %v676_v44 = vld [vmem:[#allocation5 + $0xb60] sm:$0xff]  ;;  %v673_v45 = vld [vmem:[#allocation5 + $0xb48] sm:$0xff] }
 0x119   : > { %v677_v46 = vld [vmem:[#allocation5 + $0xb68] sm:$0xff] }
 0x11a   : > { %5094 = vmatpush1.bf16.msra.mxu0 %v6900_v61  ;;  %5352 = vmatpush1.bf16.msra.mxu1 %v6902_v62  ;;  %v625_v61 = vld [vmem:[#allocation5 + $0x9c8] sm:$0xff] }
 0x11b   : > { %5095 = vmatprep.subr.bf16.mxu0 %v6909_v63  ;;  %5353 = vmatprep.subr.bf16.mxu1 %v6911_v0  ;;  %v629_v62 = vld [vmem:[#allocation5 + $0x9e8] sm:$0xff]  ;;  %v6964_v63 = vcombine.low %v616_v51, %v620_v52  ;;  %v6966_v0 = vcombine.low %v617_v53, %v621_v54  ;;  %v680_v51 = vld [vmem:[#allocation5 + $0xb80] sm:$0xff] }
 0x11c   : > { %v6975_v2 = vcombine.high %v625_v61, %v629_v62  ;;  %v684_v52 = vld [vmem:[#allocation5 + $0xba0] sm:$0xff]  ;;  %v681_v53 = vld [vmem:[#allocation5 + $0xb88] sm:$0xff] }
 0x11d   : > { %v685_v54 = vld [vmem:[#allocation5 + $0xba8] sm:$0xff] }
 0x11e   : > { %5096 = vmatpush1.bf16.msra.mxu0 %v6908_v5  ;;  %5354 = vmatpush1.bf16.msra.mxu1 %v6910_v6  ;;  %v633_v5 = vld [vmem:[#allocation5 + $0xa08] sm:$0xff] }
 0x11f   : > { %5108 = vmatprep.subr.bf16.mxu0 %v6917_v7  ;;  %5366 = vmatprep.subr.bf16.mxu1 %v6919_v8  ;;  %v637_v6 = vld [vmem:[#allocation5 + $0xa28] sm:$0xff]  ;;  %v6972_v7 = vcombine.low %v624_v59, %v628_v60  ;;  %v6974_v8 = vcombine.low %v625_v61, %v629_v62  ;;  %v688_v59 = vld [vmem:[#allocation5 + $0xbc0] sm:$0xff] }
 0x120   : > { %v6983_v10 = vcombine.high %v633_v5, %v637_v6  ;;  %v692_v60 = vld [vmem:[#allocation5 + $0xbe0] sm:$0xff]  ;;  %v689_v61 = vld [vmem:[#allocation5 + $0xbc8] sm:$0xff] }
 0x121   : > { %5098 = vmatmul.mubr.bf16.vlgmr.msra.gmra.mrb[0].mxu0 %v7914_v11  ;;  %5356 = vmatmul.mubr.bf16.vlgmr.msra.gmra.mrb[0].mxu1 %v7914_v11  ;;  %v640_v11 = vld [vmem:[#allocation5 + $0xa40] sm:$0xff]  ;;  %v693_v62 = vld [vmem:[#allocation5 + $0xbe8] sm:$0xff] }
 0x122   : > { %5109 = vmatpush1.bf16.msra.mxu0 %v6916_v14  ;;  %5367 = vmatpush1.bf16.msra.mxu1 %v6918_v15  ;;  %v645_v14 = vld [vmem:[#allocation5 + $0xa68] sm:$0xff]  ;;  %v6980_v15 = vcombine.low %v632_v3, %v636_v4  ;;  %v696_v3 = vld [vmem:[#allocation5 + $0xc00] sm:$0xff] }
 0x123   : > { %5110 = vmatprep.subr.bf16.mxu0 %v6925_v16  ;;  %5368 = vmatprep.subr.bf16.mxu1 %v6927_v17  ;;  %v6982_v16 = vcombine.low %v633_v5, %v637_v6  ;;  %v6989_v17 = vcombine.high %v640_v11, %v644_v12  ;;  %v6991_v18 = vcombine.high %v641_v13, %v645_v14  ;;  %v700_v4 = vld [vmem:[#allocation5 + $0xc20] sm:$0xff]  ;;  %v697_v5 = vld [vmem:[#allocation5 + $0xc08] sm:$0xff] }
 0x124   : > { %5140 = vmatprep.mubr.bf16.mxu0 %v7915_v20  ;;  %5398 = vmatprep.mubr.bf16.mxu1 %v7915_v20  ;;  %v652_v20 = vld [vmem:[#allocation5 + $0xaa0] sm:$0xff]  ;;  %v701_v6 = vld [vmem:[#allocation5 + $0xc28] sm:$0xff] }
 0x126   : > { %5111 = vmatpush1.bf16.msra.mxu0 %v6924_v23  ;;  %5369 = vmatpush1.bf16.msra.mxu1 %v6926_v24  ;;  %v6988_v23 = vcombine.low %v640_v11, %v644_v12  ;;  %v6990_v24 = vcombine.low %v641_v13, %v645_v14  ;;  %v704_v11 = vld [vmem:[#allocation5 + $0xc40] sm:$0xff]  ;;  %v705_v14 = vld [vmem:[#allocation5 + $0xc48] sm:$0xff] }
 0x127   : > { %5112 = vmatprep.subr.bf16.mxu0 %v6933_v25  ;;  %5370 = vmatprep.subr.bf16.mxu1 %v6935_v26  ;;  %v6997_v25 = vcombine.high %v648_v19, %v652_v20  ;;  %v6999_v26 = vcombine.high %v649_v21, %v653_v22  ;;  %v708_v12 = vld [vmem:[#allocation5 + $0xc60] sm:$0xff] }
 0x128   : > { %v7917_v13 = vld [vmem:[%s8413_s8 + $0x10] ss:$48 sps:$4 sm:$0xff]  }
 0x12a   : > { %5113 = vmatpush1.bf16.msra.mxu0 %v6932_v31  ;;  %5371 = vmatpush1.bf16.msra.mxu1 %v6934_v32  ;;  %v6996_v31 = vcombine.low %v648_v19, %v652_v20  ;;  %v6998_v32 = vcombine.low %v649_v21, %v653_v22  ;;  %v712_v20 = vld [vmem:[#allocation5 + $0xc80] sm:$0xff]  ;;  %v7918_v22 = vld [vmem:[%s8413_s8 + $0x1c] ss:$48 sps:$4 sm:$0xff]  }
 0x12b   : > { %5114 = vmatprep.subr.bf16.mxu0 %v6941_v33  ;;  %5372 = vmatprep.subr.bf16.mxu1 %v6943_v34  ;;  %v7005_v33 = vcombine.high %v656_v27, %v660_v28  ;;  %v7007_v34 = vcombine.high %v657_v29, %v661_v30  ;;  %v716_v21 = vld [vmem:[#allocation5 + $0xca0] sm:$0xff] }
 0x12e   : > { %5115 = vmatpush1.bf16.msra.mxu0 %v6940_v39  ;;  %5373 = vmatpush1.bf16.msra.mxu1 %v6942_v40  ;;  %v7004_v39 = vcombine.low %v656_v27, %v660_v28  ;;  %v7006_v40 = vcombine.low %v657_v29, %v661_v30  ;;  %v7061_v27 = vcombine.high %v712_v20, %v716_v21  ;;  %v720_v29 = vld [vmem:[#allocation5 + $0xcc0] sm:$0xff] }
 0x12f   : > { %5116 = vmatprep.subr.bf16.mxu0 %v6949_v41  ;;  %5374 = vmatprep.subr.bf16.mxu1 %v6951_v42  ;;  %v7013_v41 = vcombine.high %v664_v35, %v668_v36  ;;  %v7015_v42 = vcombine.high %v665_v37, %v669_v38  ;;  %v724_v30 = vld [vmem:[#allocation5 + $0xce0] sm:$0xff] }
 0x132   : > { %5117 = vmatpush1.bf16.msra.mxu0 %v6948_v47  ;;  %5375 = vmatpush1.bf16.msra.mxu1 %v6950_v48  ;;  %v7012_v47 = vcombine.low %v664_v35, %v668_v36  ;;  %v7014_v48 = vcombine.low %v665_v37, %v669_v38  ;;  %v7069_v35 = vcombine.high %v720_v29, %v724_v30  ;;  %v728_v37 = vld [vmem:[#allocation5 + $0xd00] sm:$0xff] }
 0x133   : > { %5118 = vmatprep.subr.bf16.mxu0 %v6957_v49  ;;  %5376 = vmatprep.subr.bf16.mxu1 %v6959_v50  ;;  %v7021_v49 = vcombine.high %v672_v43, %v676_v44  ;;  %v7023_v50 = vcombine.high %v673_v45, %v677_v46  ;;  %v732_v38 = vld [vmem:[#allocation5 + $0xd20] sm:$0xff] }
 0x136   : > { %5119 = vmatpush1.bf16.msra.mxu0 %v6956_v55  ;;  %5377 = vmatpush1.bf16.msra.mxu1 %v6958_v56  ;;  %v7020_v55 = vcombine.low %v672_v43, %v676_v44  ;;  %v7022_v56 = vcombine.low %v673_v45, %v677_v46  ;;  %v7077_v43 = vcombine.high %v728_v37, %v732_v38  ;;  %v736_v45 = vld [vmem:[#allocation5 + $0xd40] sm:$0xff] }
 0x137   : > { %5120 = vmatprep.subr.bf16.mxu0 %v6965_v57  ;;  %5378 = vmatprep.subr.bf16.mxu1 %v6967_v58  ;;  %v7029_v57 = vcombine.high %v680_v51, %v684_v52  ;;  %v7031_v58 = vcombine.high %v681_v53, %v685_v54  ;;  %v740_v46 = vld [vmem:[#allocation5 + $0xd60] sm:$0xff] }
 0x13a   : > { %5121 = vmatpush1.bf16.msra.mxu0 %v6964_v63  ;;  %5379 = vmatpush1.bf16.msra.mxu1 %v6966_v0  ;;  %v7028_v63 = vcombine.low %v680_v51, %v684_v52  ;;  %v7030_v0 = vcombine.low %v681_v53, %v685_v54  ;;  %v7085_v51 = vcombine.high %v736_v45, %v740_v46  ;;  %v744_v53 = vld [vmem:[#allocation5 + $0xd80] sm:$0xff] }
 0x13b   : > { %5122 = vmatprep.subr.bf16.mxu0 %v6973_v1  ;;  %5380 = vmatprep.subr.bf16.mxu1 %v6975_v2  ;;  %v7037_v1 = vcombine.high %v688_v59, %v692_v60  ;;  %v7039_v2 = vcombine.high %v689_v61, %v693_v62  ;;  %v748_v54 = vld [vmem:[#allocation5 + $0xda0] sm:$0xff] }
 0x13e   : > { %5123 = vmatpush1.bf16.msra.mxu0 %v6972_v7  ;;  %5381 = vmatpush1.bf16.msra.mxu1 %v6974_v8  ;;  %v7036_v7 = vcombine.low %v688_v59, %v692_v60  ;;  %v7038_v8 = vcombine.low %v689_v61, %v693_v62  ;;  %v7093_v59 = vcombine.high %v744_v53, %v748_v54  ;;  %v752_v61 = vld [vmem:[#allocation5 + $0xdc0] sm:$0xff] }
 0x13f   : > { %5124 = vmatprep.subr.bf16.mxu0 %v6981_v9  ;;  %5382 = vmatprep.subr.bf16.mxu1 %v6983_v10  ;;  %v7045_v9 = vcombine.high %v696_v3, %v700_v4  ;;  %v7047_v10 = vcombine.high %v697_v5, %v701_v6  ;;  %v756_v62 = vld [vmem:[#allocation5 + $0xde0] sm:$0xff] }
 0x142   : > { %5125 = vmatpush1.bf16.msra.mxu0 %v6980_v15  ;;  %5383 = vmatpush1.bf16.msra.mxu1 %v6982_v16  ;;  %v709_v15 = vld [vmem:[#allocation5 + $0xc68] sm:$0xff]  ;;  %v7044_v16 = vcombine.low %v696_v3, %v700_v4  ;;  %v7101_v3 = vcombine.high %v752_v61, %v756_v62 }
 0x143   : > { %5126 = vmatprep.subr.bf16.mxu0 %v6989_v17  ;;  %5384 = vmatprep.subr.bf16.mxu1 %v6991_v18  ;;  %v7046_v17 = vcombine.low %v697_v5, %v701_v6  ;;  %v7053_v18 = vcombine.high %v704_v11, %v708_v12  ;;  %v7055_v19 = vcombine.high %v705_v14, %v709_v15  ;;  %v760_v5 = vld [vmem:[#allocation5 + $0xe00] sm:$0xff] }
 0x144   : > { %v764_v6 = vld [vmem:[#allocation5 + $0xe20] sm:$0xff] }
 0x146   : > { %5127 = vmatpush1.bf16.msra.mxu0 %v6988_v23  ;;  %5385 = vmatpush1.bf16.msra.mxu1 %v6990_v24  ;;  %v713_v23 = vld [vmem:[#allocation5 + $0xc88] sm:$0xff] }
 0x147   : > { %5128 = vmatprep.subr.bf16.mxu0 %v6997_v25  ;;  %5386 = vmatprep.subr.bf16.mxu1 %v6999_v26  ;;  %v717_v24 = vld [vmem:[#allocation5 + $0xca8] sm:$0xff]  ;;  %v7052_v25 = vcombine.low %v704_v11, %v708_v12  ;;  %v7054_v26 = vcombine.low %v705_v14, %v709_v15  ;;  %v7109_v11 = vcombine.high %v760_v5, %v764_v6  ;;  %v772_v14 = vld [vmem:[#allocation5 + $0xe60] sm:$0xff] }
 0x148   : > { %v7063_v28 = vcombine.high %v713_v23, %v717_v24  ;;  %v769_v15 = vld [vmem:[#allocation5 + $0xe48] sm:$0xff] }
 0x14a   : > { %5129 = vmatpush1.bf16.msra.mxu0 %v6996_v31  ;;  %5387 = vmatpush1.bf16.msra.mxu1 %v6998_v32  ;;  %v721_v31 = vld [vmem:[#allocation5 + $0xcc8] sm:$0xff] }
 0x14b   : > { %5130 = vmatprep.subr.bf16.mxu0 %v7005_v33  ;;  %5388 = vmatprep.subr.bf16.mxu1 %v7007_v34  ;;  %v725_v32 = vld [vmem:[#allocation5 + $0xce8] sm:$0xff]  ;;  %v7060_v33 = vcombine.low %v712_v20, %v716_v21  ;;  %v7062_v34 = vcombine.low %v713_v23, %v717_v24  ;;  %v776_v21 = vld [vmem:[#allocation5 + $0xe80] sm:$0xff] }
 0x14c   : > { %v7071_v36 = vcombine.high %v721_v31, %v725_v32  ;;  %v777_v23 = vld [vmem:[#allocation5 + $0xe88] sm:$0xff] }
 0x14d   : > { %v781_v24 = vld [vmem:[#allocation5 + $0xea8] sm:$0xff] }
 0x14e   : > { %5131 = vmatpush1.bf16.msra.mxu0 %v7004_v39  ;;  %5389 = vmatpush1.bf16.msra.mxu1 %v7006_v40  ;;  %v729_v39 = vld [vmem:[#allocation5 + $0xd08] sm:$0xff] }
 0x14f   : > { %5132 = vmatprep.subr.bf16.mxu0 %v7013_v41  ;;  %5390 = vmatprep.subr.bf16.mxu1 %v7015_v42  ;;  %v733_v40 = vld [vmem:[#allocation5 + $0xd28] sm:$0xff]  ;;  %v7068_v41 = vcombine.low %v720_v29, %v724_v30  ;;  %v7070_v42 = vcombine.low %v721_v31, %v725_v32  ;;  %v784_v29 = vld [vmem:[#allocation5 + $0xec0] sm:$0xff] }
 0x150   : > { %v7079_v44 = vcombine.high %v729_v39, %v733_v40  ;;  %v788_v30 = vld [vmem:[#allocation5 + $0xee0] sm:$0xff]  ;;  %v785_v31 = vld [vmem:[#allocation5 + $0xec8] sm:$0xff] }
 0x151   : > { %v789_v32 = vld [vmem:[#allocation5 + $0xee8] sm:$0xff] }
 0x152   : > { %5133 = vmatpush1.bf16.msra.mxu0 %v7012_v47  ;;  %5391 = vmatpush1.bf16.msra.mxu1 %v7014_v48  ;;  %v737_v47 = vld [vmem:[#allocation5 + $0xd48] sm:$0xff] }
 0x153   : > { %5134 = vmatprep.subr.bf16.mxu0 %v7021_v49  ;;  %5392 = vmatprep.subr.bf16.mxu1 %v7023_v50  ;;  %v741_v48 = vld [vmem:[#allocation5 + $0xd68] sm:$0xff]  ;;  %v7076_v49 = vcombine.low %v728_v37, %v732_v38  ;;  %v7078_v50 = vcombine.low %v729_v39, %v733_v40  ;;  %v792_v37 = vld [vmem:[#allocation5 + $0xf00] sm:$0xff] }
 0x154   : > { %v7087_v52 = vcombine.high %v737_v47, %v741_v48  ;;  %v796_v38 = vld [vmem:[#allocation5 + $0xf20] sm:$0xff]  ;;  %v793_v39 = vld [vmem:[#allocation5 + $0xf08] sm:$0xff] }
 0x155   : > { %v797_v40 = vld [vmem:[#allocation5 + $0xf28] sm:$0xff] }
 0x156   : > { %5135 = vmatpush1.bf16.msra.mxu0 %v7020_v55  ;;  %5393 = vmatpush1.bf16.msra.mxu1 %v7022_v56  ;;  %v745_v55 = vld [vmem:[#allocation5 + $0xd88] sm:$0xff] }
 0x157   : > { %5136 = vmatprep.subr.bf16.mxu0 %v7029_v57  ;;  %5394 = vmatprep.subr.bf16.mxu1 %v7031_v58  ;;  %v749_v56 = vld [vmem:[#allocation5 + $0xda8] sm:$0xff]  ;;  %v7084_v57 = vcombine.low %v736_v45, %v740_v46  ;;  %v7086_v58 = vcombine.low %v737_v47, %v741_v48  ;;  %v800_v45 = vld [vmem:[#allocation5 + $0xf40] sm:$0xff] }
 0x158   : > { %v7095_v60 = vcombine.high %v745_v55, %v749_v56  ;;  %v804_v46 = vld [vmem:[#allocation5 + $0xf60] sm:$0xff]  ;;  %v801_v47 = vld [vmem:[#allocation5 + $0xf48] sm:$0xff] }
 0x159   : > { %v805_v48 = vld [vmem:[#allocation5 + $0xf68] sm:$0xff] }
 0x15a   : > { %5137 = vmatpush1.bf16.msra.mxu0 %v7028_v63  ;;  %5395 = vmatpush1.bf16.msra.mxu1 %v7030_v0  ;;  %v753_v63 = vld [vmem:[#allocation5 + $0xdc8] sm:$0xff] }
 0x15b   : > { %5138 = vmatprep.subr.bf16.mxu0 %v7037_v1  ;;  %5396 = vmatprep.subr.bf16.mxu1 %v7039_v2  ;;  %v757_v0 = vld [vmem:[#allocation5 + $0xde8] sm:$0xff]  ;;  %v7092_v1 = vcombine.low %v744_v53, %v748_v54  ;;  %v7094_v2 = vcombine.low %v745_v55, %v749_v56  ;;  %v808_v53 = vld [vmem:[#allocation5 + $0xf80] sm:$0xff] }
 0x15c   : > { %v7103_v4 = vcombine.high %v753_v63, %v757_v0  ;;  %v812_v54 = vld [vmem:[#allocation5 + $0xfa0] sm:$0xff]  ;;  %v809_v55 = vld [vmem:[#allocation5 + $0xf88] sm:$0xff] }
 0x15d   : > { %v813_v56 = vld [vmem:[#allocation5 + $0xfa8] sm:$0xff] }
 0x15e   : > { %5139 = vmatpush1.bf16.msra.mxu0 %v7036_v7  ;;  %5397 = vmatpush1.bf16.msra.mxu1 %v7038_v8  ;;  %v761_v7 = vld [vmem:[#allocation5 + $0xe08] sm:$0xff] }
 0x15f   : > { %5151 = vmatprep.subr.bf16.mxu0 %v7045_v9  ;;  %5409 = vmatprep.subr.bf16.mxu1 %v7047_v10  ;;  %v765_v8 = vld [vmem:[#allocation5 + $0xe28] sm:$0xff]  ;;  %v7100_v9 = vcombine.low %v752_v61, %v756_v62  ;;  %v7102_v10 = vcombine.low %v753_v63, %v757_v0  ;;  %v816_v61 = vld [vmem:[#allocation5 + $0xfc0] sm:$0xff] }
 0x160   : > { %v7111_v12 = vcombine.high %v761_v7, %v765_v8  ;;  %v820_v62 = vld [vmem:[#allocation5 + $0xfe0] sm:$0xff]  ;;  %v817_v63 = vld [vmem:[#allocation5 + $0xfc8] sm:$0xff] }
 0x161   : > { %5141 = vmatmul.mubr.bf16.vlgmr.msra.gmra.mrb[0].mxu0 %v7917_v13  ;;  %5399 = vmatmul.mubr.bf16.vlgmr.msra.gmra.mrb[0].mxu1 %v7917_v13  ;;  %v768_v13 = vld [vmem:[#allocation5 + $0xe40] sm:$0xff]  ;;  %v821_v0 = vld [vmem:[#allocation5 + $0xfe8] sm:$0xff] }
 0x162   : > { %5152 = vmatpush1.bf16.msra.mxu0 %v7044_v16  ;;  %5410 = vmatpush1.bf16.msra.mxu1 %v7046_v17  ;;  %v773_v16 = vld [vmem:[#allocation5 + $0xe68] sm:$0xff]  ;;  %v7108_v17 = vcombine.low %v760_v5, %v764_v6  ;;  %v824_v5 = vld [vmem:[#allocation5 + $0x1000] sm:$0xff] }
 0x163   : > { %5153 = vmatprep.subr.bf16.mxu0 %v7053_v18  ;;  %5411 = vmatprep.subr.bf16.mxu1 %v7055_v19  ;;  %v7110_v18 = vcombine.low %v761_v7, %v765_v8  ;;  %v7117_v19 = vcombine.high %v768_v13, %v772_v14  ;;  %v7119_v20 = vcombine.high %v769_v15, %v773_v16  ;;  %v828_v6 = vld [vmem:[#allocation5 + $0x1020] sm:$0xff]  ;;  %v825_v7 = vld [vmem:[#allocation5 + $0x1008] sm:$0xff] }
 0x164   : > { %5183 = vmatprep.mubr.bf16.mxu0 %v7918_v22  ;;  %5441 = vmatprep.mubr.bf16.mxu1 %v7918_v22  ;;  %v780_v22 = vld [vmem:[#allocation5 + $0xea0] sm:$0xff]  ;;  %v829_v8 = vld [vmem:[#allocation5 + $0x1028] sm:$0xff] }
 0x166   : > { %5154 = vmatpush1.bf16.msra.mxu0 %v7052_v25  ;;  %5412 = vmatpush1.bf16.msra.mxu1 %v7054_v26  ;;  %v7116_v25 = vcombine.low %v768_v13, %v772_v14  ;;  %v7118_v26 = vcombine.low %v769_v15, %v773_v16  ;;  %v832_v13 = vld [vmem:[#allocation5 + $0x1040] sm:$0xff]  ;;  %v7920_v15 = vld [vmem:[%s8413_s8 + $0x18] ss:$48 sps:$4 sm:$0xff]  }
 0x167   : > { %5155 = vmatprep.subr.bf16.mxu0 %v7061_v27  ;;  %5413 = vmatprep.subr.bf16.mxu1 %v7063_v28  ;;  %v7125_v27 = vcombine.high %v776_v21, %v780_v22  ;;  %v7127_v28 = vcombine.high %v777_v23, %v781_v24  ;;  %v836_v14 = vld [vmem:[#allocation5 + $0x1060] sm:$0xff]  ;;  %v833_v16 = vld [vmem:[#allocation5 + $0x1048] sm:$0xff] }
 0x16a   : > { %5156 = vmatpush1.bf16.msra.mxu0 %v7060_v33  ;;  %5414 = vmatpush1.bf16.msra.mxu1 %v7062_v34  ;;  %v7124_v33 = vcombine.low %v776_v21, %v780_v22  ;;  %v7126_v34 = vcombine.low %v777_v23, %v781_v24  ;;  %v840_v22 = vld [vmem:[#allocation5 + $0x1080] sm:$0xff] }
 0x16b   : > { %5157 = vmatprep.subr.bf16.mxu0 %v7069_v35  ;;  %5415 = vmatprep.subr.bf16.mxu1 %v7071_v36  ;;  %v7133_v35 = vcombine.high %v784_v29, %v788_v30  ;;  %v7135_v36 = vcombine.high %v785_v31, %v789_v32  ;;  %v844_v23 = vld [vmem:[#allocation5 + $0x10a0] sm:$0xff] }
 0x16c   : > { %v7921_v24 = vld [vmem:[%s8413_s8 + $0x24] ss:$48 sps:$4 sm:$0xff]  }
 0x16e   : > { %5158 = vmatpush1.bf16.msra.mxu0 %v7068_v41  ;;  %5416 = vmatpush1.bf16.msra.mxu1 %v7070_v42  ;;  %v7132_v41 = vcombine.low %v784_v29, %v788_v30  ;;  %v7134_v42 = vcombine.low %v785_v31, %v789_v32  ;;  %v7189_v29 = vcombine.high %v840_v22, %v844_v23  ;;  %v848_v31 = vld [vmem:[#allocation5 + $0x10c0] sm:$0xff] }
 0x16f   : > { %5159 = vmatprep.subr.bf16.mxu0 %v7077_v43  ;;  %5417 = vmatprep.subr.bf16.mxu1 %v7079_v44  ;;  %v7141_v43 = vcombine.high %v792_v37, %v796_v38  ;;  %v7143_v44 = vcombine.high %v793_v39, %v797_v40  ;;  %v852_v32 = vld [vmem:[#allocation5 + $0x10e0] sm:$0xff] }
 0x172   : > { %5160 = vmatpush1.bf16.msra.mxu0 %v7076_v49  ;;  %5418 = vmatpush1.bf16.msra.mxu1 %v7078_v50  ;;  %v7140_v49 = vcombine.low %v792_v37, %v796_v38  ;;  %v7142_v50 = vcombine.low %v793_v39, %v797_v40  ;;  %v7197_v37 = vcombine.high %v848_v31, %v852_v32  ;;  %v856_v39 = vld [vmem:[#allocation5 + $0x1100] sm:$0xff] }
 0x173   : > { %5161 = vmatprep.subr.bf16.mxu0 %v7085_v51  ;;  %5419 = vmatprep.subr.bf16.mxu1 %v7087_v52  ;;  %v7149_v51 = vcombine.high %v800_v45, %v804_v46  ;;  %v7151_v52 = vcombine.high %v801_v47, %v805_v48  ;;  %v860_v40 = vld [vmem:[#allocation5 + $0x1120] sm:$0xff] }
 0x176   : > { %5162 = vmatpush1.bf16.msra.mxu0 %v7084_v57  ;;  %5420 = vmatpush1.bf16.msra.mxu1 %v7086_v58  ;;  %v7148_v57 = vcombine.low %v800_v45, %v804_v46  ;;  %v7150_v58 = vcombine.low %v801_v47, %v805_v48  ;;  %v7205_v45 = vcombine.high %v856_v39, %v860_v40  ;;  %v864_v47 = vld [vmem:[#allocation5 + $0x1140] sm:$0xff] }
 0x177   : > { %5163 = vmatprep.subr.bf16.mxu0 %v7093_v59  ;;  %5421 = vmatprep.subr.bf16.mxu1 %v7095_v60  ;;  %v7157_v59 = vcombine.high %v808_v53, %v812_v54  ;;  %v7159_v60 = vcombine.high %v809_v55, %v813_v56  ;;  %v868_v48 = vld [vmem:[#allocation5 + $0x1160] sm:$0xff] }
 0x17a   : > { %5164 = vmatpush1.bf16.msra.mxu0 %v7092_v1  ;;  %5422 = vmatpush1.bf16.msra.mxu1 %v7094_v2  ;;  %v7156_v1 = vcombine.low %v808_v53, %v812_v54  ;;  %v7158_v2 = vcombine.low %v809_v55, %v813_v56  ;;  %v7213_v53 = vcombine.high %v864_v47, %v868_v48  ;;  %v872_v55 = vld [vmem:[#allocation5 + $0x1180] sm:$0xff] }
 0x17b   : > { %5165 = vmatprep.subr.bf16.mxu0 %v7101_v3  ;;  %5423 = vmatprep.subr.bf16.mxu1 %v7103_v4  ;;  %v7165_v3 = vcombine.high %v816_v61, %v820_v62  ;;  %v7167_v4 = vcombine.high %v817_v63, %v821_v0  ;;  %v876_v56 = vld [vmem:[#allocation5 + $0x11a0] sm:$0xff] }
 0x17e   : > { %5166 = vmatpush1.bf16.msra.mxu0 %v7100_v9  ;;  %5424 = vmatpush1.bf16.msra.mxu1 %v7102_v10  ;;  %v7164_v9 = vcombine.low %v816_v61, %v820_v62  ;;  %v7166_v10 = vcombine.low %v817_v63, %v821_v0  ;;  %v7221_v61 = vcombine.high %v872_v55, %v876_v56  ;;  %v880_v63 = vld [vmem:[#allocation5 + $0x11c0] sm:$0xff] }
 0x17f   : > { %5167 = vmatprep.subr.bf16.mxu0 %v7109_v11  ;;  %5425 = vmatprep.subr.bf16.mxu1 %v7111_v12  ;;  %v7173_v11 = vcombine.high %v824_v5, %v828_v6  ;;  %v7175_v12 = vcombine.high %v825_v7, %v829_v8  ;;  %v884_v0 = vld [vmem:[#allocation5 + $0x11e0] sm:$0xff] }
 0x182   : > { %5168 = vmatpush1.bf16.msra.mxu0 %v7108_v17  ;;  %5426 = vmatpush1.bf16.msra.mxu1 %v7110_v18  ;;  %v837_v17 = vld [vmem:[#allocation5 + $0x1068] sm:$0xff]  ;;  %v7172_v18 = vcombine.low %v824_v5, %v828_v6  ;;  %v7229_v5 = vcombine.high %v880_v63, %v884_v0 }
 0x183   : > { %5169 = vmatprep.subr.bf16.mxu0 %v7117_v19  ;;  %5427 = vmatprep.subr.bf16.mxu1 %v7119_v20  ;;  %v7174_v19 = vcombine.low %v825_v7, %v829_v8  ;;  %v7181_v20 = vcombine.high %v832_v13, %v836_v14  ;;  %v7183_v21 = vcombine.high %v833_v16, %v837_v17  ;;  %v888_v7 = vld [vmem:[#allocation5 + $0x1200] sm:$0xff] }
 0x184   : > { %v892_v8 = vld [vmem:[#allocation5 + $0x1220] sm:$0xff] }
 0x186   : > { %5170 = vmatpush1.bf16.msra.mxu0 %v7116_v25  ;;  %5428 = vmatpush1.bf16.msra.mxu1 %v7118_v26  ;;  %v841_v25 = vld [vmem:[#allocation5 + $0x1088] sm:$0xff] }
 0x187   : > { %5171 = vmatprep.subr.bf16.mxu0 %v7125_v27  ;;  %5429 = vmatprep.subr.bf16.mxu1 %v7127_v28  ;;  %v845_v26 = vld [vmem:[#allocation5 + $0x10a8] sm:$0xff]  ;;  %v7180_v27 = vcombine.low %v832_v13, %v836_v14  ;;  %v7182_v28 = vcombine.low %v833_v16, %v837_v17  ;;  %v7237_v13 = vcombine.high %v888_v7, %v892_v8  ;;  %v900_v16 = vld [vmem:[#allocation5 + $0x1260] sm:$0xff] }
 0x188   : > { %v7191_v30 = vcombine.high %v841_v25, %v845_v26  ;;  %v897_v17 = vld [vmem:[#allocation5 + $0x1248] sm:$0xff] }
 0x18a   : > { %5172 = vmatpush1.bf16.msra.mxu0 %v7124_v33  ;;  %5430 = vmatpush1.bf16.msra.mxu1 %v7126_v34  ;;  %v849_v33 = vld [vmem:[#allocation5 + $0x10c8] sm:$0xff] }
 0x18b   : > { %5173 = vmatprep.subr.bf16.mxu0 %v7133_v35  ;;  %5431 = vmatprep.subr.bf16.mxu1 %v7135_v36  ;;  %v853_v34 = vld [vmem:[#allocation5 + $0x10e8] sm:$0xff]  ;;  %v7188_v35 = vcombine.low %v840_v22, %v844_v23  ;;  %v7190_v36 = vcombine.low %v841_v25, %v845_v26  ;;  %v904_v23 = vld [vmem:[#allocation5 + $0x1280] sm:$0xff] }
 0x18c   : > { %v7199_v38 = vcombine.high %v849_v33, %v853_v34  ;;  %v905_v25 = vld [vmem:[#allocation5 + $0x1288] sm:$0xff] }
 0x18d   : > { %v909_v26 = vld [vmem:[#allocation5 + $0x12a8] sm:$0xff] }
 0x18e   : > { %5174 = vmatpush1.bf16.msra.mxu0 %v7132_v41  ;;  %5432 = vmatpush1.bf16.msra.mxu1 %v7134_v42  ;;  %v857_v41 = vld [vmem:[#allocation5 + $0x1108] sm:$0xff] }
 0x18f   : > { %5175 = vmatprep.subr.bf16.mxu0 %v7141_v43  ;;  %5433 = vmatprep.subr.bf16.mxu1 %v7143_v44  ;;  %v861_v42 = vld [vmem:[#allocation5 + $0x1128] sm:$0xff]  ;;  %v7196_v43 = vcombine.low %v848_v31, %v852_v32  ;;  %v7198_v44 = vcombine.low %v849_v33, %v853_v34  ;;  %v912_v31 = vld [vmem:[#allocation5 + $0x12c0] sm:$0xff] }
 0x190   : > { %v7207_v46 = vcombine.high %v857_v41, %v861_v42  ;;  %v916_v32 = vld [vmem:[#allocation5 + $0x12e0] sm:$0xff]  ;;  %v913_v33 = vld [vmem:[#allocation5 + $0x12c8] sm:$0xff] }
 0x191   : > { %v917_v34 = vld [vmem:[#allocation5 + $0x12e8] sm:$0xff] }
 0x192   : > { %5176 = vmatpush1.bf16.msra.mxu0 %v7140_v49  ;;  %5434 = vmatpush1.bf16.msra.mxu1 %v7142_v50  ;;  %v865_v49 = vld [vmem:[#allocation5 + $0x1148] sm:$0xff] }
 0x193   : > { %5177 = vmatprep.subr.bf16.mxu0 %v7149_v51  ;;  %5435 = vmatprep.subr.bf16.mxu1 %v7151_v52  ;;  %v869_v50 = vld [vmem:[#allocation5 + $0x1168] sm:$0xff]  ;;  %v7204_v51 = vcombine.low %v856_v39, %v860_v40  ;;  %v7206_v52 = vcombine.low %v857_v41, %v861_v42  ;;  %v920_v39 = vld [vmem:[#allocation5 + $0x1300] sm:$0xff] }
 0x194   : > { %v7215_v54 = vcombine.high %v865_v49, %v869_v50  ;;  %v924_v40 = vld [vmem:[#allocation5 + $0x1320] sm:$0xff]  ;;  %v921_v41 = vld [vmem:[#allocation5 + $0x1308] sm:$0xff] }
 0x195   : > { %v925_v42 = vld [vmem:[#allocation5 + $0x1328] sm:$0xff] }
 0x196   : > { %5178 = vmatpush1.bf16.msra.mxu0 %v7148_v57  ;;  %5436 = vmatpush1.bf16.msra.mxu1 %v7150_v58  ;;  %v873_v57 = vld [vmem:[#allocation5 + $0x1188] sm:$0xff] }
 0x197   : > { %5179 = vmatprep.subr.bf16.mxu0 %v7157_v59  ;;  %5437 = vmatprep.subr.bf16.mxu1 %v7159_v60  ;;  %v877_v58 = vld [vmem:[#allocation5 + $0x11a8] sm:$0xff]  ;;  %v7212_v59 = vcombine.low %v864_v47, %v868_v48  ;;  %v7214_v60 = vcombine.low %v865_v49, %v869_v50  ;;  %v928_v47 = vld [vmem:[#allocation5 + $0x1340] sm:$0xff] }
 0x198   : > { %v7223_v62 = vcombine.high %v873_v57, %v877_v58  ;;  %v932_v48 = vld [vmem:[#allocation5 + $0x1360] sm:$0xff]  ;;  %v929_v49 = vld [vmem:[#allocation5 + $0x1348] sm:$0xff] }
 0x199   : > { %v933_v50 = vld [vmem:[#allocation5 + $0x1368] sm:$0xff] }
 0x19a   : > { %5180 = vmatpush1.bf16.msra.mxu0 %v7156_v1  ;;  %5438 = vmatpush1.bf16.msra.mxu1 %v7158_v2  ;;  %v881_v1 = vld [vmem:[#allocation5 + $0x11c8] sm:$0xff] }
 0x19b   : > { %5181 = vmatprep.subr.bf16.mxu0 %v7165_v3  ;;  %5439 = vmatprep.subr.bf16.mxu1 %v7167_v4  ;;  %v885_v2 = vld [vmem:[#allocation5 + $0x11e8] sm:$0xff]  ;;  %v7220_v3 = vcombine.low %v872_v55, %v876_v56  ;;  %v7222_v4 = vcombine.low %v873_v57, %v877_v58  ;;  %v936_v55 = vld [vmem:[#allocation5 + $0x1380] sm:$0xff] }
 0x19c   : > { %v7231_v6 = vcombine.high %v881_v1, %v885_v2  ;;  %v940_v56 = vld [vmem:[#allocation5 + $0x13a0] sm:$0xff]  ;;  %v937_v57 = vld [vmem:[#allocation5 + $0x1388] sm:$0xff] }
 0x19d   : > { %v941_v58 = vld [vmem:[#allocation5 + $0x13a8] sm:$0xff] }
 0x19e   : > { %5182 = vmatpush1.bf16.msra.mxu0 %v7164_v9  ;;  %5440 = vmatpush1.bf16.msra.mxu1 %v7166_v10  ;;  %v889_v9 = vld [vmem:[#allocation5 + $0x1208] sm:$0xff] }
 0x19f   : > { %5194 = vmatprep.subr.bf16.mxu0 %v7173_v11  ;;  %5452 = vmatprep.subr.bf16.mxu1 %v7175_v12  ;;  %v893_v10 = vld [vmem:[#allocation5 + $0x1228] sm:$0xff]  ;;  %v7228_v11 = vcombine.low %v880_v63, %v884_v0  ;;  %v7230_v12 = vcombine.low %v881_v1, %v885_v2  ;;  %v944_v63 = vld [vmem:[#allocation5 + $0x13c0] sm:$0xff] }
 0x1a0   : > { %v7239_v14 = vcombine.high %v889_v9, %v893_v10  ;;  %v948_v0 = vld [vmem:[#allocation5 + $0x13e0] sm:$0xff]  ;;  %v945_v1 = vld [vmem:[#allocation5 + $0x13c8] sm:$0xff] }
 0x1a1   : > { %5184 = vmatmul.mubr.bf16.vlgmr.msra.gmra.mrb[0].mxu0 %v7920_v15  ;;  %5442 = vmatmul.mubr.bf16.vlgmr.msra.gmra.mrb[0].mxu1 %v7920_v15  ;;  %v896_v15 = vld [vmem:[#allocation5 + $0x1240] sm:$0xff]  ;;  %v949_v2 = vld [vmem:[#allocation5 + $0x13e8] sm:$0xff] }
 0x1a2   : > { %5195 = vmatpush1.bf16.msra.mxu0 %v7172_v18  ;;  %5453 = vmatpush1.bf16.msra.mxu1 %v7174_v19  ;;  %v901_v18 = vld [vmem:[#allocation5 + $0x1268] sm:$0xff]  ;;  %v7236_v19 = vcombine.low %v888_v7, %v892_v8  ;;  %v952_v7 = vld [vmem:[#allocation5 + $0x1400] sm:$0xff] }
 0x1a3   : > { %5196 = vmatprep.subr.bf16.mxu0 %v7181_v20  ;;  %5454 = vmatprep.subr.bf16.mxu1 %v7183_v21  ;;  %v7238_v20 = vcombine.low %v889_v9, %v893_v10  ;;  %v7245_v21 = vcombine.high %v896_v15, %v900_v16  ;;  %v7247_v22 = vcombine.high %v897_v17, %v901_v18  ;;  %v956_v8 = vld [vmem:[#allocation5 + $0x1420] sm:$0xff]  ;;  %v953_v9 = vld [vmem:[#allocation5 + $0x1408] sm:$0xff] }
 0x1a4   : > { %5226 = vmatprep.mubr.bf16.mxu0 %v7921_v24  ;;  %5484 = vmatprep.mubr.bf16.mxu1 %v7921_v24  ;;  %v908_v24 = vld [vmem:[#allocation5 + $0x12a0] sm:$0xff]  ;;  %v957_v10 = vld [vmem:[#allocation5 + $0x1428] sm:$0xff] }
 0x1a6   : > { %5197 = vmatpush1.bf16.msra.mxu0 %v7180_v27  ;;  %5455 = vmatpush1.bf16.msra.mxu1 %v7182_v28  ;;  %v7244_v27 = vcombine.low %v896_v15, %v900_v16  ;;  %v7246_v28 = vcombine.low %v897_v17, %v901_v18  ;;  %v960_v15 = vld [vmem:[#allocation5 + $0x1440] sm:$0xff]  ;;  %v961_v18 = vld [vmem:[#allocation5 + $0x1448] sm:$0xff] }
 0x1a7   : > { %5198 = vmatprep.subr.bf16.mxu0 %v7189_v29  ;;  %5456 = vmatprep.subr.bf16.mxu1 %v7191_v30  ;;  %v7253_v29 = vcombine.high %v904_v23, %v908_v24  ;;  %v7255_v30 = vcombine.high %v905_v25, %v909_v26  ;;  %v964_v16 = vld [vmem:[#allocation5 + $0x1460] sm:$0xff] }
 0x1a8   : > { %v7923_v17 = vld [vmem:[%s8413_s8 + $0x20] ss:$48 sps:$4 sm:$0xff]  }
 0x1aa   : > { %5199 = vmatpush1.bf16.msra.mxu0 %v7188_v35  ;;  %5457 = vmatpush1.bf16.msra.mxu1 %v7190_v36  ;;  %v7252_v35 = vcombine.low %v904_v23, %v908_v24  ;;  %v7254_v36 = vcombine.low %v905_v25, %v909_v26  ;;  %v968_v24 = vld [vmem:[#allocation5 + $0x1480] sm:$0xff]  ;;  %v7924_v26 = vld [vmem:[%s8413_s8 + $0x2c] ss:$48 sps:$4 sm:$0xff]  }
 0x1ab   : > { %5200 = vmatprep.subr.bf16.mxu0 %v7197_v37  ;;  %5458 = vmatprep.subr.bf16.mxu1 %v7199_v38  ;;  %v7261_v37 = vcombine.high %v912_v31, %v916_v32  ;;  %v7263_v38 = vcombine.high %v913_v33, %v917_v34  ;;  %v972_v25 = vld [vmem:[#allocation5 + $0x14a0] sm:$0xff] }
 0x1ae   : > { %5201 = vmatpush1.bf16.msra.mxu0 %v7196_v43  ;;  %5459 = vmatpush1.bf16.msra.mxu1 %v7198_v44  ;;  %v7260_v43 = vcombine.low %v912_v31, %v916_v32  ;;  %v7262_v44 = vcombine.low %v913_v33, %v917_v34  ;;  %v7317_v31 = vcombine.high %v968_v24, %v972_v25  ;;  %v976_v33 = vld [vmem:[#allocation5 + $0x14c0] sm:$0xff] }
 0x1af   : > { %5202 = vmatprep.subr.bf16.mxu0 %v7205_v45  ;;  %5460 = vmatprep.subr.bf16.mxu1 %v7207_v46  ;;  %v7269_v45 = vcombine.high %v920_v39, %v924_v40  ;;  %v7271_v46 = vcombine.high %v921_v41, %v925_v42  ;;  %v980_v34 = vld [vmem:[#allocation5 + $0x14e0] sm:$0xff] }
 0x1b2   : > { %5203 = vmatpush1.bf16.msra.mxu0 %v7204_v51  ;;  %5461 = vmatpush1.bf16.msra.mxu1 %v7206_v52  ;;  %v7268_v51 = vcombine.low %v920_v39, %v924_v40  ;;  %v7270_v52 = vcombine.low %v921_v41, %v925_v42  ;;  %v7325_v39 = vcombine.high %v976_v33, %v980_v34  ;;  %v984_v41 = vld [vmem:[#allocation5 + $0x1500] sm:$0xff] }
 0x1b3   : > { %5204 = vmatprep.subr.bf16.mxu0 %v7213_v53  ;;  %5462 = vmatprep.subr.bf16.mxu1 %v7215_v54  ;;  %v7277_v53 = vcombine.high %v928_v47, %v932_v48  ;;  %v7279_v54 = vcombine.high %v929_v49, %v933_v50  ;;  %v988_v42 = vld [vmem:[#allocation5 + $0x1520] sm:$0xff] }
 0x1b6   : > { %5205 = vmatpush1.bf16.msra.mxu0 %v7212_v59  ;;  %5463 = vmatpush1.bf16.msra.mxu1 %v7214_v60  ;;  %v7276_v59 = vcombine.low %v928_v47, %v932_v48  ;;  %v7278_v60 = vcombine.low %v929_v49, %v933_v50  ;;  %v7333_v47 = vcombine.high %v984_v41, %v988_v42  ;;  %v992_v49 = vld [vmem:[#allocation5 + $0x1540] sm:$0xff] }
 0x1b7   : > { %5206 = vmatprep.subr.bf16.mxu0 %v7221_v61  ;;  %5464 = vmatprep.subr.bf16.mxu1 %v7223_v62  ;;  %v7285_v61 = vcombine.high %v936_v55, %v940_v56  ;;  %v7287_v62 = vcombine.high %v937_v57, %v941_v58  ;;  %v996_v50 = vld [vmem:[#allocation5 + $0x1560] sm:$0xff] }
 0x1ba   : > { %5207 = vmatpush1.bf16.msra.mxu0 %v7220_v3  ;;  %5465 = vmatpush1.bf16.msra.mxu1 %v7222_v4  ;;  %v7284_v3 = vcombine.low %v936_v55, %v940_v56  ;;  %v7286_v4 = vcombine.low %v937_v57, %v941_v58  ;;  %v7341_v55 = vcombine.high %v992_v49, %v996_v50  ;;  %v1000_v57 = vld [vmem:[#allocation5 + $0x1580] sm:$0xff] }
 0x1bb   : > { %5208 = vmatprep.subr.bf16.mxu0 %v7229_v5  ;;  %5466 = vmatprep.subr.bf16.mxu1 %v7231_v6  ;;  %v7293_v5 = vcombine.high %v944_v63, %v948_v0  ;;  %v7295_v6 = vcombine.high %v945_v1, %v949_v2  ;;  %v1004_v58 = vld [vmem:[#allocation5 + $0x15a0] sm:$0xff] }
 0x1be   : > { %5209 = vmatpush1.bf16.msra.mxu0 %v7228_v11  ;;  %5467 = vmatpush1.bf16.msra.mxu1 %v7230_v12  ;;  %v7292_v11 = vcombine.low %v944_v63, %v948_v0  ;;  %v7294_v12 = vcombine.low %v945_v1, %v949_v2  ;;  %v7349_v63 = vcombine.high %v1000_v57, %v1004_v58  ;;  %v1008_v1 = vld [vmem:[#allocation5 + $0x15c0] sm:$0xff] }
 0x1bf   : > { %5210 = vmatprep.subr.bf16.mxu0 %v7237_v13  ;;  %5468 = vmatprep.subr.bf16.mxu1 %v7239_v14  ;;  %v7301_v13 = vcombine.high %v952_v7, %v956_v8  ;;  %v7303_v14 = vcombine.high %v953_v9, %v957_v10  ;;  %v1012_v2 = vld [vmem:[#allocation5 + $0x15e0] sm:$0xff] }
 0x1c2   : > { %5211 = vmatpush1.bf16.msra.mxu0 %v7236_v19  ;;  %5469 = vmatpush1.bf16.msra.mxu1 %v7238_v20  ;;  %v965_v19 = vld [vmem:[#allocation5 + $0x1468] sm:$0xff]  ;;  %v7300_v20 = vcombine.low %v952_v7, %v956_v8  ;;  %v7357_v7 = vcombine.high %v1008_v1, %v1012_v2 }
 0x1c3   : > { %5212 = vmatprep.subr.bf16.mxu0 %v7245_v21  ;;  %5470 = vmatprep.subr.bf16.mxu1 %v7247_v22  ;;  %v7302_v21 = vcombine.low %v953_v9, %v957_v10  ;;  %v7309_v22 = vcombine.high %v960_v15, %v964_v16  ;;  %v7311_v23 = vcombine.high %v961_v18, %v965_v19  ;;  %v1016_v9 = vld [vmem:[#allocation5 + $0x1600] sm:$0xff] }
 0x1c4   : > { %v1020_v10 = vld [vmem:[#allocation5 + $0x1620] sm:$0xff] }
 0x1c6   : > { %5213 = vmatpush1.bf16.msra.mxu0 %v7244_v27  ;;  %5471 = vmatpush1.bf16.msra.mxu1 %v7246_v28  ;;  %v969_v27 = vld [vmem:[#allocation5 + $0x1488] sm:$0xff] }
 0x1c7   : > { %5214 = vmatprep.subr.bf16.mxu0 %v7253_v29  ;;  %5472 = vmatprep.subr.bf16.mxu1 %v7255_v30  ;;  %v973_v28 = vld [vmem:[#allocation5 + $0x14a8] sm:$0xff]  ;;  %v7308_v29 = vcombine.low %v960_v15, %v964_v16  ;;  %v7310_v30 = vcombine.low %v961_v18, %v965_v19  ;;  %v7365_v15 = vcombine.high %v1016_v9, %v1020_v10  ;;  %v1028_v18 = vld [vmem:[#allocation5 + $0x1660] sm:$0xff] }
 0x1c8   : > { %v7319_v32 = vcombine.high %v969_v27, %v973_v28  ;;  %v1025_v19 = vld [vmem:[#allocation5 + $0x1648] sm:$0xff] }
 0x1ca   : > { %5215 = vmatpush1.bf16.msra.mxu0 %v7252_v35  ;;  %5473 = vmatpush1.bf16.msra.mxu1 %v7254_v36  ;;  %v977_v35 = vld [vmem:[#allocation5 + $0x14c8] sm:$0xff] }
 0x1cb   : > { %5216 = vmatprep.subr.bf16.mxu0 %v7261_v37  ;;  %5474 = vmatprep.subr.bf16.mxu1 %v7263_v38  ;;  %v981_v36 = vld [vmem:[#allocation5 + $0x14e8] sm:$0xff]  ;;  %v7316_v37 = vcombine.low %v968_v24, %v972_v25  ;;  %v7318_v38 = vcombine.low %v969_v27, %v973_v28  ;;  %v1032_v25 = vld [vmem:[#allocation5 + $0x1680] sm:$0xff] }
 0x1cc   : > { %v7327_v40 = vcombine.high %v977_v35, %v981_v36  ;;  %v1033_v27 = vld [vmem:[#allocation5 + $0x1688] sm:$0xff] }
 0x1cd   : > { %v1037_v28 = vld [vmem:[#allocation5 + $0x16a8] sm:$0xff] }
 0x1ce   : > { %5217 = vmatpush1.bf16.msra.mxu0 %v7260_v43  ;;  %5475 = vmatpush1.bf16.msra.mxu1 %v7262_v44  ;;  %v985_v43 = vld [vmem:[#allocation5 + $0x1508] sm:$0xff] }
 0x1cf   : > { %5218 = vmatprep.subr.bf16.mxu0 %v7269_v45  ;;  %5476 = vmatprep.subr.bf16.mxu1 %v7271_v46  ;;  %v989_v44 = vld [vmem:[#allocation5 + $0x1528] sm:$0xff]  ;;  %v7324_v45 = vcombine.low %v976_v33, %v980_v34  ;;  %v7326_v46 = vcombine.low %v977_v35, %v981_v36  ;;  %v1040_v33 = vld [vmem:[#allocation5 + $0x16c0] sm:$0xff] }
 0x1d0   : > { %v7335_v48 = vcombine.high %v985_v43, %v989_v44  ;;  %v1044_v34 = vld [vmem:[#allocation5 + $0x16e0] sm:$0xff]  ;;  %v1041_v35 = vld [vmem:[#allocation5 + $0x16c8] sm:$0xff] }
 0x1d1   : > { %v1045_v36 = vld [vmem:[#allocation5 + $0x16e8] sm:$0xff] }
 0x1d2   : > { %5219 = vmatpush1.bf16.msra.mxu0 %v7268_v51  ;;  %5477 = vmatpush1.bf16.msra.mxu1 %v7270_v52  ;;  %v993_v51 = vld [vmem:[#allocation5 + $0x1548] sm:$0xff] }
 0x1d3   : > { %5220 = vmatprep.subr.bf16.mxu0 %v7277_v53  ;;  %5478 = vmatprep.subr.bf16.mxu1 %v7279_v54  ;;  %v997_v52 = vld [vmem:[#allocation5 + $0x1568] sm:$0xff]  ;;  %v7332_v53 = vcombine.low %v984_v41, %v988_v42  ;;  %v7334_v54 = vcombine.low %v985_v43, %v989_v44  ;;  %v1048_v41 = vld [vmem:[#allocation5 + $0x1700] sm:$0xff] }
 0x1d4   : > { %v7343_v56 = vcombine.high %v993_v51, %v997_v52  ;;  %v1052_v42 = vld [vmem:[#allocation5 + $0x1720] sm:$0xff]  ;;  %v1049_v43 = vld [vmem:[#allocation5 + $0x1708] sm:$0xff] }
 0x1d5   : > { %v1053_v44 = vld [vmem:[#allocation5 + $0x1728] sm:$0xff] }
 0x1d6   : > { %5221 = vmatpush1.bf16.msra.mxu0 %v7276_v59  ;;  %5479 = vmatpush1.bf16.msra.mxu1 %v7278_v60  ;;  %v1001_v59 = vld [vmem:[#allocation5 + $0x1588] sm:$0xff] }
 0x1d7   : > { %5222 = vmatprep.subr.bf16.mxu0 %v7285_v61  ;;  %5480 = vmatprep.subr.bf16.mxu1 %v7287_v62  ;;  %v1005_v60 = vld [vmem:[#allocation5 + $0x15a8] sm:$0xff]  ;;  %v7340_v61 = vcombine.low %v992_v49, %v996_v50  ;;  %v7342_v62 = vcombine.low %v993_v51, %v997_v52  ;;  %v1056_v49 = vld [vmem:[#allocation5 + $0x1740] sm:$0xff] }
 0x1d8   : > { %v7351_v0 = vcombine.high %v1001_v59, %v1005_v60  ;;  %v1060_v50 = vld [vmem:[#allocation5 + $0x1760] sm:$0xff]  ;;  %v1057_v51 = vld [vmem:[#allocation5 + $0x1748] sm:$0xff] }
 0x1d9   : > { %v1061_v52 = vld [vmem:[#allocation5 + $0x1768] sm:$0xff] }
 0x1da   : > { %5223 = vmatpush1.bf16.msra.mxu0 %v7284_v3  ;;  %5481 = vmatpush1.bf16.msra.mxu1 %v7286_v4  ;;  %v1009_v3 = vld [vmem:[#allocation5 + $0x15c8] sm:$0xff] }
 0x1db   : > { %5224 = vmatprep.subr.bf16.mxu0 %v7293_v5  ;;  %5482 = vmatprep.subr.bf16.mxu1 %v7295_v6  ;;  %v1013_v4 = vld [vmem:[#allocation5 + $0x15e8] sm:$0xff]  ;;  %v7348_v5 = vcombine.low %v1000_v57, %v1004_v58  ;;  %v7350_v6 = vcombine.low %v1001_v59, %v1005_v60  ;;  %v1064_v57 = vld [vmem:[#allocation5 + $0x1780] sm:$0xff] }
 0x1dc   : > { %v7359_v8 = vcombine.high %v1009_v3, %v1013_v4  ;;  %v1068_v58 = vld [vmem:[#allocation5 + $0x17a0] sm:$0xff]  ;;  %v1065_v59 = vld [vmem:[#allocation5 + $0x1788] sm:$0xff] }
 0x1dd   : > { %v1069_v60 = vld [vmem:[#allocation5 + $0x17a8] sm:$0xff] }
 0x1de   : > { %5225 = vmatpush1.bf16.msra.mxu0 %v7292_v11  ;;  %5483 = vmatpush1.bf16.msra.mxu1 %v7294_v12  ;;  %v1017_v11 = vld [vmem:[#allocation5 + $0x1608] sm:$0xff] }
 0x1df   : > { %5237 = vmatprep.subr.bf16.mxu0 %v7301_v13  ;;  %5495 = vmatprep.subr.bf16.mxu1 %v7303_v14  ;;  %v1021_v12 = vld [vmem:[#allocation5 + $0x1628] sm:$0xff]  ;;  %v7356_v13 = vcombine.low %v1008_v1, %v1012_v2  ;;  %v7358_v14 = vcombine.low %v1009_v3, %v1013_v4  ;;  %v1072_v1 = vld [vmem:[#allocation5 + $0x17c0] sm:$0xff] }
 0x1e0   : > { %v7367_v16 = vcombine.high %v1017_v11, %v1021_v12  ;;  %v1076_v2 = vld [vmem:[#allocation5 + $0x17e0] sm:$0xff]  ;;  %v1073_v3 = vld [vmem:[#allocation5 + $0x17c8] sm:$0xff] }
 0x1e1   : > { %5227 = vmatmul.mubr.bf16.vlgmr.msra.gmra.mrb[0].mxu0 %v7923_v17  ;;  %5485 = vmatmul.mubr.bf16.vlgmr.msra.gmra.mrb[0].mxu1 %v7923_v17  ;;  %v1024_v17 = vld [vmem:[#allocation5 + $0x1640] sm:$0xff]  ;;  %v1077_v4 = vld [vmem:[#allocation5 + $0x17e8] sm:$0xff] }
 0x1e2   : > { %5238 = vmatpush1.bf16.msra.mxu0 %v7300_v20  ;;  %5496 = vmatpush1.bf16.msra.mxu1 %v7302_v21  ;;  %v1029_v20 = vld [vmem:[#allocation5 + $0x1668] sm:$0xff]  ;;  %v7364_v21 = vcombine.low %v1016_v9, %v1020_v10  ;;  %v314_v9 = vld [vmem:[#allocation5 + $0x10] sm:$0xff] }
 0x1e3   : > { %5239 = vmatprep.subr.bf16.mxu0 %v7309_v22  ;;  %5497 = vmatprep.subr.bf16.mxu1 %v7311_v23  ;;  %v7366_v22 = vcombine.low %v1017_v11, %v1021_v12  ;;  %v7373_v23 = vcombine.high %v1024_v17, %v1028_v18  ;;  %v7375_v24 = vcombine.high %v1025_v19, %v1029_v20  ;;  %v318_v10 = vld [vmem:[#allocation5 + $0x30] sm:$0xff]  ;;  %v315_v11 = vld [vmem:[#allocation5 + $0x18] sm:$0xff] }
 0x1e4   : > { %5269 = vmatprep.mubr.bf16.mxu0 %v7924_v26  ;;  %5527 = vmatprep.mubr.bf16.mxu1 %v7924_v26  ;;  %v1036_v26 = vld [vmem:[#allocation5 + $0x16a0] sm:$0xff]  ;;  %v319_v12 = vld [vmem:[#allocation5 + $0x38] sm:$0xff] }
 0x1e6   : > { %5240 = vmatpush1.bf16.msra.mxu0 %v7308_v29  ;;  %5498 = vmatpush1.bf16.msra.mxu1 %v7310_v30  ;;  %v7372_v29 = vcombine.low %v1024_v17, %v1028_v18  ;;  %v7374_v30 = vcombine.low %v1025_v19, %v1029_v20  ;;  %v322_v17 = vld [vmem:[#allocation5 + $0x50] sm:$0xff]  ;;  %v7926_v19 = vld [vmem:[%s8413_s8 + $0x28] ss:$48 sps:$4 sm:$0xff]  }
 0x1e7   : > { %5241 = vmatprep.subr.bf16.mxu0 %v7317_v31  ;;  %5499 = vmatprep.subr.bf16.mxu1 %v7319_v32  ;;  %v7381_v31 = vcombine.high %v1032_v25, %v1036_v26  ;;  %v7383_v32 = vcombine.high %v1033_v27, %v1037_v28  ;;  %v326_v18 = vld [vmem:[#allocation5 + $0x70] sm:$0xff]  ;;  %v323_v20 = vld [vmem:[#allocation5 + $0x58] sm:$0xff] }
 0x1ea   : > { %5242 = vmatpush1.bf16.msra.mxu0 %v7316_v37  ;;  %5500 = vmatpush1.bf16.msra.mxu1 %v7318_v38  ;;  %v7380_v37 = vcombine.low %v1032_v25, %v1036_v26  ;;  %v7382_v38 = vcombine.low %v1033_v27, %v1037_v28  ;;  %v330_v26 = vld [vmem:[#allocation5 + $0x90] sm:$0xff]  ;;  %v331_v28 = vld [vmem:[#allocation5 + $0x98] sm:$0xff] }
 0x1eb   : > { %5243 = vmatprep.subr.bf16.mxu0 %v7325_v39  ;;  %5501 = vmatprep.subr.bf16.mxu1 %v7327_v40  ;;  %v7389_v39 = vcombine.high %v1040_v33, %v1044_v34  ;;  %v7391_v40 = vcombine.high %v1041_v35, %v1045_v36  ;;  %v334_v27 = vld [vmem:[#allocation5 + $0xb0] sm:$0xff] }
 0x1ee   : > { %5244 = vmatpush1.bf16.msra.mxu0 %v7324_v45  ;;  %5502 = vmatpush1.bf16.msra.mxu1 %v7326_v46  ;;  %v7388_v45 = vcombine.low %v1040_v33, %v1044_v34  ;;  %v7390_v46 = vcombine.low %v1041_v35, %v1045_v36  ;;  %v338_v34 = vld [vmem:[#allocation5 + $0xd0] sm:$0xff] }
 0x1ef   : > { %5245 = vmatprep.subr.bf16.mxu0 %v7333_v47  ;;  %5503 = vmatprep.subr.bf16.mxu1 %v7335_v48  ;;  %v7397_v47 = vcombine.high %v1048_v41, %v1052_v42  ;;  %v7399_v48 = vcombine.high %v1049_v43, %v1053_v44  ;;  %v342_v35 = vld [vmem:[#allocation5 + $0xf0] sm:$0xff] }
 0x1f0   : > { %v7927_v36 = vld [vmem:[%s8413_s8 + $0x4] ss:$48 sps:$4 sm:$0xff]  }
 0x1f2   : > { %5246 = vmatpush1.bf16.msra.mxu0 %v7332_v53  ;;  %5504 = vmatpush1.bf16.msra.mxu1 %v7334_v54  ;;  %v7396_v53 = vcombine.low %v1048_v41, %v1052_v42  ;;  %v7398_v54 = vcombine.low %v1049_v43, %v1053_v44  ;;  %v6689_v41 = vcombine.high %v338_v34, %v342_v35  ;;  %v346_v43 = vld [vmem:[#allocation5 + $0x110] sm:$0xff] }
 0x1f3   : > { %5247 = vmatprep.subr.bf16.mxu0 %v7341_v55  ;;  %5505 = vmatprep.subr.bf16.mxu1 %v7343_v56  ;;  %v7405_v55 = vcombine.high %v1056_v49, %v1060_v50  ;;  %v7407_v56 = vcombine.high %v1057_v51, %v1061_v52  ;;  %v350_v44 = vld [vmem:[#allocation5 + $0x130] sm:$0xff] }
 0x1f6   : > { %5248 = vmatpush1.bf16.msra.mxu0 %v7340_v61  ;;  %5506 = vmatpush1.bf16.msra.mxu1 %v7342_v62  ;;  %v7404_v61 = vcombine.low %v1056_v49, %v1060_v50  ;;  %v7406_v62 = vcombine.low %v1057_v51, %v1061_v52  ;;  %v6697_v49 = vcombine.high %v346_v43, %v350_v44  ;;  %v354_v51 = vld [vmem:[#allocation5 + $0x150] sm:$0xff] }
 0x1f7   : > { %5249 = vmatprep.subr.bf16.mxu0 %v7349_v63  ;;  %5507 = vmatprep.subr.bf16.mxu1 %v7351_v0  ;;  %v7413_v63 = vcombine.high %v1064_v57, %v1068_v58  ;;  %v7415_v0 = vcombine.high %v1065_v59, %v1069_v60  ;;  %v358_v52 = vld [vmem:[#allocation5 + $0x170] sm:$0xff] }
 0x1fa   : > { %5250 = vmatpush1.bf16.msra.mxu0 %v7348_v5  ;;  %5508 = vmatpush1.bf16.msra.mxu1 %v7350_v6  ;;  %v7412_v5 = vcombine.low %v1064_v57, %v1068_v58  ;;  %v7414_v6 = vcombine.low %v1065_v59, %v1069_v60  ;;  %v6705_v57 = vcombine.high %v354_v51, %v358_v52  ;;  %v362_v59 = vld [vmem:[#allocation5 + $0x190] sm:$0xff] }
 0x1fb   : > { %5251 = vmatprep.subr.bf16.mxu0 %v7357_v7  ;;  %5509 = vmatprep.subr.bf16.mxu1 %v7359_v8  ;;  %v7421_v7 = vcombine.high %v1072_v1, %v1076_v2  ;;  %v7423_v8 = vcombine.high %v1073_v3, %v1077_v4  ;;  %v366_v60 = vld [vmem:[#allocation5 + $0x1b0] sm:$0xff] }
 0x1fe   : > { %5252 = vmatpush1.bf16.msra.mxu0 %v7356_v13  ;;  %5510 = vmatpush1.bf16.msra.mxu1 %v7358_v14  ;;  %v7420_v13 = vcombine.low %v1072_v1, %v1076_v2  ;;  %v7422_v14 = vcombine.low %v1073_v3, %v1077_v4  ;;  %v6713_v1 = vcombine.high %v362_v59, %v366_v60  ;;  %v370_v3 = vld [vmem:[#allocation5 + $0x1d0] sm:$0xff] }
 0x1ff   : > { %5253 = vmatprep.subr.bf16.mxu0 %v7365_v15  ;;  %5511 = vmatprep.subr.bf16.mxu1 %v7367_v16  ;;  %v6665_v15 = vcombine.high %v314_v9, %v318_v10  ;;  %v6667_v16 = vcombine.high %v315_v11, %v319_v12  ;;  %v374_v4 = vld [vmem:[#allocation5 + $0x1f0] sm:$0xff] }
 0x202   : > { %5254 = vmatpush1.bf16.msra.mxu0 %v7364_v21  ;;  %5512 = vmatpush1.bf16.msra.mxu1 %v7366_v22  ;;  %v327_v21 = vld [vmem:[#allocation5 + $0x78] sm:$0xff]  ;;  %v6664_v22 = vcombine.low %v314_v9, %v318_v10  ;;  %v6721_v9 = vcombine.high %v370_v3, %v374_v4 }
 0x203   : > { %5255 = vmatprep.subr.bf16.mxu0 %v7373_v23  ;;  %5513 = vmatprep.subr.bf16.mxu1 %v7375_v24  ;;  %v6666_v23 = vcombine.low %v315_v11, %v319_v12  ;;  %v6673_v24 = vcombine.high %v322_v17, %v326_v18  ;;  %v6675_v25 = vcombine.high %v323_v20, %v327_v21  ;;  %v378_v11 = vld [vmem:[#allocation5 + $0x210] sm:$0xff] }
 0x204   : > { %v382_v12 = vld [vmem:[#allocation5 + $0x230] sm:$0xff] }
 0x206   : > { %5256 = vmatpush1.bf16.msra.mxu0 %v7372_v29  ;;  %5514 = vmatpush1.bf16.msra.mxu1 %v7374_v30  ;;  %v335_v29 = vld [vmem:[#allocation5 + $0xb8] sm:$0xff]  ;;  %v6672_v30 = vcombine.low %v322_v17, %v326_v18  ;;  %v6729_v17 = vcombine.high %v378_v11, %v382_v12 }
 0x207   : > { %5257 = vmatprep.subr.bf16.mxu0 %v7381_v31  ;;  %5515 = vmatprep.subr.bf16.mxu1 %v7383_v32  ;;  %v6674_v31 = vcombine.low %v323_v20, %v327_v21  ;;  %v6681_v32 = vcombine.high %v330_v26, %v334_v27  ;;  %v6683_v33 = vcombine.high %v331_v28, %v335_v29  ;;  %v390_v20 = vld [vmem:[#allocation5 + $0x270] sm:$0xff]  ;;  %v387_v21 = vld [vmem:[#allocation5 + $0x258] sm:$0xff] }
 0x20a   : > { %5258 = vmatpush1.bf16.msra.mxu0 %v7380_v37  ;;  %5516 = vmatpush1.bf16.msra.mxu1 %v7382_v38  ;;  %v339_v37 = vld [vmem:[#allocation5 + $0xd8] sm:$0xff] }
 0x20b   : > { %5259 = vmatprep.subr.bf16.mxu0 %v7389_v39  ;;  %5517 = vmatprep.subr.bf16.mxu1 %v7391_v40  ;;  %v343_v38 = vld [vmem:[#allocation5 + $0xf8] sm:$0xff]  ;;  %v6680_v39 = vcombine.low %v330_v26, %v334_v27  ;;  %v6682_v40 = vcombine.low %v331_v28, %v335_v29  ;;  %v394_v27 = vld [vmem:[#allocation5 + $0x290] sm:$0xff] }
 0x20c   : > { %v6691_v42 = vcombine.high %v339_v37, %v343_v38  ;;  %v398_v28 = vld [vmem:[#allocation5 + $0x2b0] sm:$0xff]  ;;  %v395_v29 = vld [vmem:[#allocation5 + $0x298] sm:$0xff] }
 0x20e   : > { %5260 = vmatpush1.bf16.msra.mxu0 %v7388_v45  ;;  %5518 = vmatpush1.bf16.msra.mxu1 %v7390_v46  ;;  %v347_v45 = vld [vmem:[#allocation5 + $0x118] sm:$0xff] }
 0x20f   : > { %5261 = vmatprep.subr.bf16.mxu0 %v7397_v47  ;;  %5519 = vmatprep.subr.bf16.mxu1 %v7399_v48  ;;  %v351_v46 = vld [vmem:[#allocation5 + $0x138] sm:$0xff]  ;;  %v6688_v47 = vcombine.low %v338_v34, %v342_v35  ;;  %v6690_v48 = vcombine.low %v339_v37, %v343_v38  ;;  %v402_v35 = vld [vmem:[#allocation5 + $0x2d0] sm:$0xff] }
 0x210   : > { %v6699_v50 = vcombine.high %v347_v45, %v351_v46  ;;  %v403_v37 = vld [vmem:[#allocation5 + $0x2d8] sm:$0xff] }
 0x211   : > { %v407_v38 = vld [vmem:[#allocation5 + $0x2f8] sm:$0xff] }
 0x212   : > { %5262 = vmatpush1.bf16.msra.mxu0 %v7396_v53  ;;  %5520 = vmatpush1.bf16.msra.mxu1 %v7398_v54  ;;  %v355_v53 = vld [vmem:[#allocation5 + $0x158] sm:$0xff] }
 0x213   : > { %5263 = vmatprep.subr.bf16.mxu0 %v7405_v55  ;;  %5521 = vmatprep.subr.bf16.mxu1 %v7407_v56  ;;  %v359_v54 = vld [vmem:[#allocation5 + $0x178] sm:$0xff]  ;;  %v6696_v55 = vcombine.low %v346_v43, %v350_v44  ;;  %v6698_v56 = vcombine.low %v347_v45, %v351_v46  ;;  %v410_v43 = vld [vmem:[#allocation5 + $0x310] sm:$0xff] }
 0x214   : > { %v6707_v58 = vcombine.high %v355_v53, %v359_v54  ;;  %v414_v44 = vld [vmem:[#allocation5 + $0x330] sm:$0xff]  ;;  %v411_v45 = vld [vmem:[#allocation5 + $0x318] sm:$0xff] }
 0x215   : > { %v415_v46 = vld [vmem:[#allocation5 + $0x338] sm:$0xff] }
 0x216   : > { %5264 = vmatpush1.bf16.msra.mxu0 %v7404_v61  ;;  %5522 = vmatpush1.bf16.msra.mxu1 %v7406_v62  ;;  %v363_v61 = vld [vmem:[#allocation5 + $0x198] sm:$0xff] }
 0x217   : > { %5265 = vmatprep.subr.bf16.mxu0 %v7413_v63  ;;  %5523 = vmatprep.subr.bf16.mxu1 %v7415_v0  ;;  %v367_v62 = vld [vmem:[#allocation5 + $0x1b8] sm:$0xff]  ;;  %v6704_v63 = vcombine.low %v354_v51, %v358_v52  ;;  %v6706_v0 = vcombine.low %v355_v53, %v359_v54  ;;  %v418_v51 = vld [vmem:[#allocation5 + $0x350] sm:$0xff] }
 0x218   : > { %v6715_v2 = vcombine.high %v363_v61, %v367_v62  ;;  %v422_v52 = vld [vmem:[#allocation5 + $0x370] sm:$0xff]  ;;  %v419_v53 = vld [vmem:[#allocation5 + $0x358] sm:$0xff] }
 0x219   : > { %v423_v54 = vld [vmem:[#allocation5 + $0x378] sm:$0xff] }
 0x21a   : > { %5266 = vmatpush1.bf16.msra.mxu0 %v7412_v5  ;;  %5524 = vmatpush1.bf16.msra.mxu1 %v7414_v6  ;;  %v371_v5 = vld [vmem:[#allocation5 + $0x1d8] sm:$0xff] }
 0x21b   : > { %5267 = vmatprep.subr.bf16.mxu0 %v7421_v7  ;;  %5525 = vmatprep.subr.bf16.mxu1 %v7423_v8  ;;  %v375_v6 = vld [vmem:[#allocation5 + $0x1f8] sm:$0xff]  ;;  %v6712_v7 = vcombine.low %v362_v59, %v366_v60  ;;  %v6714_v8 = vcombine.low %v363_v61, %v367_v62  ;;  %v426_v59 = vld [vmem:[#allocation5 + $0x390] sm:$0xff] }
 0x21c   : > { %v6723_v10 = vcombine.high %v371_v5, %v375_v6  ;;  %v430_v60 = vld [vmem:[#allocation5 + $0x3b0] sm:$0xff]  ;;  %v427_v61 = vld [vmem:[#allocation5 + $0x398] sm:$0xff] }
 0x21d   : > { %v431_v62 = vld [vmem:[#allocation5 + $0x3b8] sm:$0xff] }
 0x21e   : > { %5268 = vmatpush1.bf16.msra.mxu0 %v7420_v13  ;;  %5526 = vmatpush1.bf16.msra.mxu1 %v7422_v14  ;;  %v379_v13 = vld [vmem:[#allocation5 + $0x218] sm:$0xff] }
 0x21f   : > { %5538 = vmatprep.subr.bf16.mxu0 %v6665_v15  ;;  %5796 = vmatprep.subr.bf16.mxu1 %v6667_v16  ;;  %v383_v14 = vld [vmem:[#allocation5 + $0x238] sm:$0xff]  ;;  %v6720_v15 = vcombine.low %v370_v3, %v374_v4  ;;  %v6722_v16 = vcombine.low %v371_v5, %v375_v6  ;;  %v434_v3 = vld [vmem:[#allocation5 + $0x3d0] sm:$0xff] }
 0x220   : > { %v6731_v18 = vcombine.high %v379_v13, %v383_v14  ;;  %v438_v4 = vld [vmem:[#allocation5 + $0x3f0] sm:$0xff]  ;;  %v435_v5 = vld [vmem:[#allocation5 + $0x3d8] sm:$0xff] }
 0x221   : > { %5270 = vmatmul.mubr.bf16.vlgmr.msra.gmra.mrb[0].mxu0 %v7926_v19  ;;  %5528 = vmatmul.mubr.bf16.vlgmr.msra.gmra.mrb[0].mxu1 %v7926_v19  ;;  %v386_v19 = vld [vmem:[#allocation5 + $0x250] sm:$0xff]  ;;  %v439_v6 = vld [vmem:[#allocation5 + $0x3f8] sm:$0xff] }
 0x222   : > { %5539 = vmatpush1.bf16.msra.mxu0 %v6664_v22  ;;  %5797 = vmatpush1.bf16.msra.mxu1 %v6666_v23  ;;  %v391_v22 = vld [vmem:[#allocation5 + $0x278] sm:$0xff]  ;;  %v6728_v23 = vcombine.low %v378_v11, %v382_v12  ;;  %v442_v11 = vld [vmem:[#allocation5 + $0x410] sm:$0xff] }
 0x223   : > { %5540 = vmatprep.subr.bf16.mxu0 %v6673_v24  ;;  %5798 = vmatprep.subr.bf16.mxu1 %v6675_v25  ;;  %v6730_v24 = vcombine.low %v379_v13, %v383_v14  ;;  %v6737_v25 = vcombine.high %v386_v19, %v390_v20  ;;  %v6739_v26 = vcombine.high %v387_v21, %v391_v22  ;;  %v446_v12 = vld [vmem:[#allocation5 + $0x430] sm:$0xff]  ;;  %v443_v13 = vld [vmem:[#allocation5 + $0x418] sm:$0xff] }
 0x224   : > { %5570 = vmatprep.mubr.bf16.mxu0 %v7927_v36  ;;  %5828 = vmatprep.mubr.bf16.mxu1 %v7927_v36  ;;  %v406_v36 = vld [vmem:[#allocation5 + $0x2f0] sm:$0xff]  ;;  %v447_v14 = vld [vmem:[#allocation5 + $0x438] sm:$0xff] }
 0x226   : > { %5541 = vmatpush1.bf16.msra.mxu0 %v6672_v30  ;;  %5799 = vmatpush1.bf16.msra.mxu1 %v6674_v31  ;;  %v399_v30 = vld [vmem:[#allocation5 + $0x2b8] sm:$0xff]  ;;  %v6736_v31 = vcombine.low %v386_v19, %v390_v20  ;;  %v450_v19 = vld [vmem:[#allocation5 + $0x450] sm:$0xff] }
 0x227   : > { %5542 = vmatprep.subr.bf16.mxu0 %v6681_v32  ;;  %5800 = vmatprep.subr.bf16.mxu1 %v6683_v33  ;;  %v6738_v32 = vcombine.low %v387_v21, %v391_v22  ;;  %v6745_v33 = vcombine.high %v394_v27, %v398_v28  ;;  %v6747_v34 = vcombine.high %v395_v29, %v399_v30  ;;  %v454_v20 = vld [vmem:[#allocation5 + $0x470] sm:$0xff]  ;;  %v451_v21 = vld [vmem:[#allocation5 + $0x458] sm:$0xff] }
 0x228   : > { %v455_v22 = vld [vmem:[#allocation5 + $0x478] sm:$0xff] }
 0x22a   : > { %5543 = vmatpush1.bf16.msra.mxu0 %v6680_v39  ;;  %5801 = vmatpush1.bf16.msra.mxu1 %v6682_v40  ;;  %v6744_v39 = vcombine.low %v394_v27, %v398_v28  ;;  %v6746_v40 = vcombine.low %v395_v29, %v399_v30  ;;  %v458_v27 = vld [vmem:[#allocation5 + $0x490] sm:$0xff]  ;;  %v459_v30 = vld [vmem:[#allocation5 + $0x498] sm:$0xff] }
 0x22b   : > { %5544 = vmatprep.subr.bf16.mxu0 %v6689_v41  ;;  %5802 = vmatprep.subr.bf16.mxu1 %v6691_v42  ;;  %v6753_v41 = vcombine.high %v402_v35, %v406_v36  ;;  %v6755_v42 = vcombine.high %v403_v37, %v407_v38  ;;  %v462_v28 = vld [vmem:[#allocation5 + $0x4b0] sm:$0xff] }
 0x22c   : > { %v7928_v29 = vld [vmem:[%s8413_s8] ss:$48 sps:$4 sm:$0xff]  }
 0x22e   : > { %5545 = vmatpush1.bf16.msra.mxu0 %v6688_v47  ;;  %5803 = vmatpush1.bf16.msra.mxu1 %v6690_v48  ;;  %v6752_v47 = vcombine.low %v402_v35, %v406_v36  ;;  %v6754_v48 = vcombine.low %v403_v37, %v407_v38  ;;  %v466_v36 = vld [vmem:[#allocation5 + $0x4d0] sm:$0xff]  ;;  %v7929_v38 = vld [vmem:[%s8413_s8 + $0xc] ss:$48 sps:$4 sm:$0xff]  }
 0x22f   : > { %5546 = vmatprep.subr.bf16.mxu0 %v6697_v49  ;;  %5804 = vmatprep.subr.bf16.mxu1 %v6699_v50  ;;  %v6761_v49 = vcombine.high %v410_v43, %v414_v44  ;;  %v6763_v50 = vcombine.high %v411_v45, %v415_v46  ;;  %v470_v37 = vld [vmem:[#allocation5 + $0x4f0] sm:$0xff] }
 0x232   : > { %5547 = vmatpush1.bf16.msra.mxu0 %v6696_v55  ;;  %5805 = vmatpush1.bf16.msra.mxu1 %v6698_v56  ;;  %v6760_v55 = vcombine.low %v410_v43, %v414_v44  ;;  %v6762_v56 = vcombine.low %v411_v45, %v415_v46  ;;  %v6817_v43 = vcombine.high %v466_v36, %v470_v37  ;;  %v474_v45 = vld [vmem:[#allocation5 + $0x510] sm:$0xff] }
 0x233   : > { %5548 = vmatprep.subr.bf16.mxu0 %v6705_v57  ;;  %5806 = vmatprep.subr.bf16.mxu1 %v6707_v58  ;;  %v6769_v57 = vcombine.high %v418_v51, %v422_v52  ;;  %v6771_v58 = vcombine.high %v419_v53, %v423_v54  ;;  %v478_v46 = vld [vmem:[#allocation5 + $0x530] sm:$0xff] }
 0x236   : > { %5549 = vmatpush1.bf16.msra.mxu0 %v6704_v63  ;;  %5807 = vmatpush1.bf16.msra.mxu1 %v6706_v0  ;;  %v6768_v63 = vcombine.low %v418_v51, %v422_v52  ;;  %v6770_v0 = vcombine.low %v419_v53, %v423_v54  ;;  %v6825_v51 = vcombine.high %v474_v45, %v478_v46  ;;  %v482_v53 = vld [vmem:[#allocation5 + $0x550] sm:$0xff] }
 0x237   : > { %5550 = vmatprep.subr.bf16.mxu0 %v6713_v1  ;;  %5808 = vmatprep.subr.bf16.mxu1 %v6715_v2  ;;  %v6777_v1 = vcombine.high %v426_v59, %v430_v60  ;;  %v6779_v2 = vcombine.high %v427_v61, %v431_v62  ;;  %v486_v54 = vld [vmem:[#allocation5 + $0x570] sm:$0xff] }
 0x23a   : > { %5551 = vmatpush1.bf16.msra.mxu0 %v6712_v7  ;;  %5809 = vmatpush1.bf16.msra.mxu1 %v6714_v8  ;;  %v6776_v7 = vcombine.low %v426_v59, %v430_v60  ;;  %v6778_v8 = vcombine.low %v427_v61, %v431_v62  ;;  %v6833_v59 = vcombine.high %v482_v53, %v486_v54  ;;  %v490_v61 = vld [vmem:[#allocation5 + $0x590] sm:$0xff] }
 0x23b   : > { %5552 = vmatprep.subr.bf16.mxu0 %v6721_v9  ;;  %5810 = vmatprep.subr.bf16.mxu1 %v6723_v10  ;;  %v6785_v9 = vcombine.high %v434_v3, %v438_v4  ;;  %v6787_v10 = vcombine.high %v435_v5, %v439_v6  ;;  %v494_v62 = vld [vmem:[#allocation5 + $0x5b0] sm:$0xff] }
 0x23e   : > { %5553 = vmatpush1.bf16.msra.mxu0 %v6720_v15  ;;  %5811 = vmatpush1.bf16.msra.mxu1 %v6722_v16  ;;  %v6784_v15 = vcombine.low %v434_v3, %v438_v4  ;;  %v6786_v16 = vcombine.low %v435_v5, %v439_v6  ;;  %v6841_v3 = vcombine.high %v490_v61, %v494_v62  ;;  %v498_v5 = vld [vmem:[#allocation5 + $0x5d0] sm:$0xff] }
 0x23f   : > { %5554 = vmatprep.subr.bf16.mxu0 %v6729_v17  ;;  %5812 = vmatprep.subr.bf16.mxu1 %v6731_v18  ;;  %v6793_v17 = vcombine.high %v442_v11, %v446_v12  ;;  %v6795_v18 = vcombine.high %v443_v13, %v447_v14  ;;  %v502_v6 = vld [vmem:[#allocation5 + $0x5f0] sm:$0xff] }
 0x242   : > { %5555 = vmatpush1.bf16.msra.mxu0 %v6728_v23  ;;  %5813 = vmatpush1.bf16.msra.mxu1 %v6730_v24  ;;  %v6792_v23 = vcombine.low %v442_v11, %v446_v12  ;;  %v6794_v24 = vcombine.low %v443_v13, %v447_v14  ;;  %v6849_v11 = vcombine.high %v498_v5, %v502_v6  ;;  %v506_v13 = vld [vmem:[#allocation5 + $0x610] sm:$0xff] }
 0x243   : > { %5556 = vmatprep.subr.bf16.mxu0 %v6737_v25  ;;  %5814 = vmatprep.subr.bf16.mxu1 %v6739_v26  ;;  %v6801_v25 = vcombine.high %v450_v19, %v454_v20  ;;  %v6803_v26 = vcombine.high %v451_v21, %v455_v22  ;;  %v510_v14 = vld [vmem:[#allocation5 + $0x630] sm:$0xff] }
 0x246   : > { %5557 = vmatpush1.bf16.msra.mxu0 %v6736_v31  ;;  %5815 = vmatpush1.bf16.msra.mxu1 %v6738_v32  ;;  %v463_v31 = vld [vmem:[#allocation5 + $0x4b8] sm:$0xff]  ;;  %v6800_v32 = vcombine.low %v450_v19, %v454_v20  ;;  %v6857_v19 = vcombine.high %v506_v13, %v510_v14 }
 0x247   : > { %5558 = vmatprep.subr.bf16.mxu0 %v6745_v33  ;;  %5816 = vmatprep.subr.bf16.mxu1 %v6747_v34  ;;  %v6802_v33 = vcombine.low %v451_v21, %v455_v22  ;;  %v6809_v34 = vcombine.high %v458_v27, %v462_v28  ;;  %v6811_v35 = vcombine.high %v459_v30, %v463_v31  ;;  %v514_v21 = vld [vmem:[#allocation5 + $0x650] sm:$0xff] }
 0x248   : > { %v518_v22 = vld [vmem:[#allocation5 + $0x670] sm:$0xff] }
 0x24a   : > { %5559 = vmatpush1.bf16.msra.mxu0 %v6744_v39  ;;  %5817 = vmatpush1.bf16.msra.mxu1 %v6746_v40  ;;  %v467_v39 = vld [vmem:[#allocation5 + $0x4d8] sm:$0xff] }
 0x24b   : > { %5560 = vmatprep.subr.bf16.mxu0 %v6753_v41  ;;  %5818 = vmatprep.subr.bf16.mxu1 %v6755_v42  ;;  %v471_v40 = vld [vmem:[#allocation5 + $0x4f8] sm:$0xff]  ;;  %v6808_v41 = vcombine.low %v458_v27, %v462_v28  ;;  %v6810_v42 = vcombine.low %v459_v30, %v463_v31  ;;  %v6865_v27 = vcombine.high %v514_v21, %v518_v22  ;;  %v526_v30 = vld [vmem:[#allocation5 + $0x6b0] sm:$0xff] }
 0x24c   : > { %v6819_v44 = vcombine.high %v467_v39, %v471_v40  ;;  %v523_v31 = vld [vmem:[#allocation5 + $0x698] sm:$0xff] }
 0x24e   : > { %5561 = vmatpush1.bf16.msra.mxu0 %v6752_v47  ;;  %5819 = vmatpush1.bf16.msra.mxu1 %v6754_v48  ;;  %v475_v47 = vld [vmem:[#allocation5 + $0x518] sm:$0xff] }
 0x24f   : > { %5562 = vmatprep.subr.bf16.mxu0 %v6761_v49  ;;  %5820 = vmatprep.subr.bf16.mxu1 %v6763_v50  ;;  %v479_v48 = vld [vmem:[#allocation5 + $0x538] sm:$0xff]  ;;  %v6816_v49 = vcombine.low %v466_v36, %v470_v37  ;;  %v6818_v50 = vcombine.low %v467_v39, %v471_v40  ;;  %v530_v37 = vld [vmem:[#allocation5 + $0x6d0] sm:$0xff] }
 0x250   : > { %v6827_v52 = vcombine.high %v475_v47, %v479_v48  ;;  %v531_v39 = vld [vmem:[#allocation5 + $0x6d8] sm:$0xff] }
 0x251   : > { %v535_v40 = vld [vmem:[#allocation5 + $0x6f8] sm:$0xff] }
 0x252   : > { %5563 = vmatpush1.bf16.msra.mxu0 %v6760_v55  ;;  %5821 = vmatpush1.bf16.msra.mxu1 %v6762_v56  ;;  %v483_v55 = vld [vmem:[#allocation5 + $0x558] sm:$0xff] }
 0x253   : > { %5564 = vmatprep.subr.bf16.mxu0 %v6769_v57  ;;  %5822 = vmatprep.subr.bf16.mxu1 %v6771_v58  ;;  %v487_v56 = vld [vmem:[#allocation5 + $0x578] sm:$0xff]  ;;  %v6824_v57 = vcombine.low %v474_v45, %v478_v46  ;;  %v6826_v58 = vcombine.low %v475_v47, %v479_v48  ;;  %v538_v45 = vld [vmem:[#allocation5 + $0x710] sm:$0xff] }
 0x254   : > { %v6835_v60 = vcombine.high %v483_v55, %v487_v56  ;;  %v542_v46 = vld [vmem:[#allocation5 + $0x730] sm:$0xff]  ;;  %v539_v47 = vld [vmem:[#allocation5 + $0x718] sm:$0xff] }
 0x255   : > { %v543_v48 = vld [vmem:[#allocation5 + $0x738] sm:$0xff] }
 0x256   : > { %5565 = vmatpush1.bf16.msra.mxu0 %v6768_v63  ;;  %5823 = vmatpush1.bf16.msra.mxu1 %v6770_v0  ;;  %v491_v63 = vld [vmem:[#allocation5 + $0x598] sm:$0xff] }
 0x257   : > { %5566 = vmatprep.subr.bf16.mxu0 %v6777_v1  ;;  %5824 = vmatprep.subr.bf16.mxu1 %v6779_v2  ;;  %v495_v0 = vld [vmem:[#allocation5 + $0x5b8] sm:$0xff]  ;;  %v6832_v1 = vcombine.low %v482_v53, %v486_v54  ;;  %v6834_v2 = vcombine.low %v483_v55, %v487_v56  ;;  %v546_v53 = vld [vmem:[#allocation5 + $0x750] sm:$0xff] }
 0x258   : > { %v6843_v4 = vcombine.high %v491_v63, %v495_v0  ;;  %v550_v54 = vld [vmem:[#allocation5 + $0x770] sm:$0xff]  ;;  %v547_v55 = vld [vmem:[#allocation5 + $0x758] sm:$0xff] }
 0x259   : > { %v551_v56 = vld [vmem:[#allocation5 + $0x778] sm:$0xff] }
 0x25a   : > { %5567 = vmatpush1.bf16.msra.mxu0 %v6776_v7  ;;  %5825 = vmatpush1.bf16.msra.mxu1 %v6778_v8  ;;  %v499_v7 = vld [vmem:[#allocation5 + $0x5d8] sm:$0xff] }
 0x25b   : > { %5568 = vmatprep.subr.bf16.mxu0 %v6785_v9  ;;  %5826 = vmatprep.subr.bf16.mxu1 %v6787_v10  ;;  %v503_v8 = vld [vmem:[#allocation5 + $0x5f8] sm:$0xff]  ;;  %v6840_v9 = vcombine.low %v490_v61, %v494_v62  ;;  %v6842_v10 = vcombine.low %v491_v63, %v495_v0  ;;  %v554_v61 = vld [vmem:[#allocation5 + $0x790] sm:$0xff] }
 0x25c   : > { %v6851_v12 = vcombine.high %v499_v7, %v503_v8  ;;  %v558_v62 = vld [vmem:[#allocation5 + $0x7b0] sm:$0xff]  ;;  %v555_v63 = vld [vmem:[#allocation5 + $0x798] sm:$0xff] }
 0x25d   : > { %v559_v0 = vld [vmem:[#allocation5 + $0x7b8] sm:$0xff] }
 0x25e   : > { %5569 = vmatpush1.bf16.msra.mxu0 %v6784_v15  ;;  %5827 = vmatpush1.bf16.msra.mxu1 %v6786_v16  ;;  %v507_v15 = vld [vmem:[#allocation5 + $0x618] sm:$0xff] }
 0x25f   : > { %5581 = vmatprep.subr.bf16.mxu0 %v6793_v17  ;;  %5839 = vmatprep.subr.bf16.mxu1 %v6795_v18  ;;  %v511_v16 = vld [vmem:[#allocation5 + $0x638] sm:$0xff]  ;;  %v6848_v17 = vcombine.low %v498_v5, %v502_v6  ;;  %v6850_v18 = vcombine.low %v499_v7, %v503_v8  ;;  %v562_v5 = vld [vmem:[#allocation5 + $0x7d0] sm:$0xff] }
 0x260   : > { %v6859_v20 = vcombine.high %v507_v15, %v511_v16  ;;  %v566_v6 = vld [vmem:[#allocation5 + $0x7f0] sm:$0xff]  ;;  %v563_v7 = vld [vmem:[#allocation5 + $0x7d8] sm:$0xff] }
 0x261   : > { %5571 = vmatmul.mubr.bf16.vlgmr.msra.gmra.mrb[4].mxu0 %v7928_v29  ;;  %5829 = vmatmul.mubr.bf16.vlgmr.msra.gmra.mrb[4].mxu1 %v7928_v29  ;;  %v522_v29 = vld [vmem:[#allocation5 + $0x690] sm:$0xff]  ;;  %v567_v8 = vld [vmem:[#allocation5 + $0x7f8] sm:$0xff] }
 0x262   : > { %5582 = vmatpush1.bf16.msra.mxu0 %v6792_v23  ;;  %5840 = vmatpush1.bf16.msra.mxu1 %v6794_v24  ;;  %v515_v23 = vld [vmem:[#allocation5 + $0x658] sm:$0xff] }
 0x263   : > { %5583 = vmatprep.subr.bf16.mxu0 %v6801_v25  ;;  %5841 = vmatprep.subr.bf16.mxu1 %v6803_v26  ;;  %v519_v24 = vld [vmem:[#allocation5 + $0x678] sm:$0xff]  ;;  %v6856_v25 = vcombine.low %v506_v13, %v510_v14  ;;  %v6858_v26 = vcombine.low %v507_v15, %v511_v16  ;;  %v570_v13 = vld [vmem:[#allocation5 + $0x810] sm:$0xff] }
 0x264   : > { %5613 = vmatprep.mubr.bf16.mxu0 %v7929_v38  ;;  %5871 = vmatprep.mubr.bf16.mxu1 %v7929_v38  ;;  %v6867_v28 = vcombine.high %v515_v23, %v519_v24  ;;  %v534_v38 = vld [vmem:[#allocation5 + $0x6f0] sm:$0xff]  ;;  %v571_v15 = vld [vmem:[#allocation5 + $0x818] sm:$0xff] }
 0x265   : > { %v574_v14 = vld [vmem:[#allocation5 + $0x830] sm:$0xff]  ;;  %v575_v16 = vld [vmem:[#allocation5 + $0x838] sm:$0xff] }
 0x266   : > { %5584 = vmatpush1.bf16.msra.mxu0 %v6800_v32  ;;  %5842 = vmatpush1.bf16.msra.mxu1 %v6802_v33  ;;  %v527_v32 = vld [vmem:[#allocation5 + $0x6b8] sm:$0xff]  ;;  %v6864_v33 = vcombine.low %v514_v21, %v518_v22  ;;  %v578_v21 = vld [vmem:[#allocation5 + $0x850] sm:$0xff] }
 0x267   : > { %5585 = vmatprep.subr.bf16.mxu0 %v6809_v34  ;;  %5843 = vmatprep.subr.bf16.mxu1 %v6811_v35  ;;  %v6866_v34 = vcombine.low %v515_v23, %v519_v24  ;;  %v6873_v35 = vcombine.high %v522_v29, %v526_v30  ;;  %v6875_v36 = vcombine.high %v523_v31, %v527_v32  ;;  %v582_v22 = vld [vmem:[#allocation5 + $0x870] sm:$0xff]  ;;  %v579_v23 = vld [vmem:[#allocation5 + $0x858] sm:$0xff] }
 0x268   : > { %v583_v24 = vld [vmem:[#allocation5 + $0x878] sm:$0xff] }
 0x26a   : > { %5586 = vmatpush1.bf16.msra.mxu0 %v6808_v41  ;;  %5844 = vmatpush1.bf16.msra.mxu1 %v6810_v42  ;;  %v6872_v41 = vcombine.low %v522_v29, %v526_v30  ;;  %v6874_v42 = vcombine.low %v523_v31, %v527_v32  ;;  %v586_v29 = vld [vmem:[#allocation5 + $0x890] sm:$0xff]  ;;  %v7930_v31 = vld [vmem:[%s8413_s8 + $0x8] ss:$48 sps:$4 sm:$0xff]  }
 0x26b   : > { %5587 = vmatprep.subr.bf16.mxu0 %v6817_v43  ;;  %5845 = vmatprep.subr.bf16.mxu1 %v6819_v44  ;;  %v6881_v43 = vcombine.high %v530_v37, %v534_v38  ;;  %v6883_v44 = vcombine.high %v531_v39, %v535_v40  ;;  %v590_v30 = vld [vmem:[#allocation5 + $0x8b0] sm:$0xff]  ;;  %v587_v32 = vld [vmem:[#allocation5 + $0x898] sm:$0xff] }
 0x26e   : > { %5588 = vmatpush1.bf16.msra.mxu0 %v6816_v49  ;;  %5846 = vmatpush1.bf16.msra.mxu1 %v6818_v50  ;;  %v6880_v49 = vcombine.low %v530_v37, %v534_v38  ;;  %v6882_v50 = vcombine.low %v531_v39, %v535_v40  ;;  %v594_v38 = vld [vmem:[#allocation5 + $0x8d0] sm:$0xff] }
 0x26f   : > { %5589 = vmatprep.subr.bf16.mxu0 %v6825_v51  ;;  %5847 = vmatprep.subr.bf16.mxu1 %v6827_v52  ;;  %v6889_v51 = vcombine.high %v538_v45, %v542_v46  ;;  %v6891_v52 = vcombine.high %v539_v47, %v543_v48  ;;  %v598_v39 = vld [vmem:[#allocation5 + $0x8f0] sm:$0xff] }
 0x270   : > { %v7931_v40 = vld [vmem:[%s8413_s8 + $0x14] ss:$48 sps:$4 sm:$0xff]  }
 0x272   : > { %5590 = vmatpush1.bf16.msra.mxu0 %v6824_v57  ;;  %5848 = vmatpush1.bf16.msra.mxu1 %v6826_v58  ;;  %v6888_v57 = vcombine.low %v538_v45, %v542_v46  ;;  %v6890_v58 = vcombine.low %v539_v47, %v543_v48  ;;  %v6945_v45 = vcombine.high %v594_v38, %v598_v39  ;;  %v602_v47 = vld [vmem:[#allocation5 + $0x910] sm:$0xff] }
 0x273   : > { %5591 = vmatprep.subr.bf16.mxu0 %v6833_v59  ;;  %5849 = vmatprep.subr.bf16.mxu1 %v6835_v60  ;;  %v6897_v59 = vcombine.high %v546_v53, %v550_v54  ;;  %v6899_v60 = vcombine.high %v547_v55, %v551_v56  ;;  %v606_v48 = vld [vmem:[#allocation5 + $0x930] sm:$0xff] }
 0x276   : > { %5592 = vmatpush1.bf16.msra.mxu0 %v6832_v1  ;;  %5850 = vmatpush1.bf16.msra.mxu1 %v6834_v2  ;;  %v6896_v1 = vcombine.low %v546_v53, %v550_v54  ;;  %v6898_v2 = vcombine.low %v547_v55, %v551_v56  ;;  %v6953_v53 = vcombine.high %v602_v47, %v606_v48  ;;  %v610_v55 = vld [vmem:[#allocation5 + $0x950] sm:$0xff] }
 0x277   : > { %5593 = vmatprep.subr.bf16.mxu0 %v6841_v3  ;;  %5851 = vmatprep.subr.bf16.mxu1 %v6843_v4  ;;  %v6905_v3 = vcombine.high %v554_v61, %v558_v62  ;;  %v6907_v4 = vcombine.high %v555_v63, %v559_v0  ;;  %v614_v56 = vld [vmem:[#allocation5 + $0x970] sm:$0xff] }
 0x27a   : > { %5594 = vmatpush1.bf16.msra.mxu0 %v6840_v9  ;;  %5852 = vmatpush1.bf16.msra.mxu1 %v6842_v10  ;;  %v6904_v9 = vcombine.low %v554_v61, %v558_v62  ;;  %v6906_v10 = vcombine.low %v555_v63, %v559_v0  ;;  %v6961_v61 = vcombine.high %v610_v55, %v614_v56  ;;  %v618_v63 = vld [vmem:[#allocation5 + $0x990] sm:$0xff] }
 0x27b   : > { %5595 = vmatprep.subr.bf16.mxu0 %v6849_v11  ;;  %5853 = vmatprep.subr.bf16.mxu1 %v6851_v12  ;;  %v6913_v11 = vcombine.high %v562_v5, %v566_v6  ;;  %v6915_v12 = vcombine.high %v563_v7, %v567_v8  ;;  %v622_v0 = vld [vmem:[#allocation5 + $0x9b0] sm:$0xff] }
 0x27e   : > { %5596 = vmatpush1.bf16.msra.mxu0 %v6848_v17  ;;  %5854 = vmatpush1.bf16.msra.mxu1 %v6850_v18  ;;  %v6912_v17 = vcombine.low %v562_v5, %v566_v6  ;;  %v6914_v18 = vcombine.low %v563_v7, %v567_v8  ;;  %v6969_v5 = vcombine.high %v618_v63, %v622_v0  ;;  %v626_v7 = vld [vmem:[#allocation5 + $0x9d0] sm:$0xff] }
 0x27f   : > { %5597 = vmatprep.subr.bf16.mxu0 %v6857_v19  ;;  %5855 = vmatprep.subr.bf16.mxu1 %v6859_v20  ;;  %v6921_v19 = vcombine.high %v570_v13, %v574_v14  ;;  %v6923_v20 = vcombine.high %v571_v15, %v575_v16  ;;  %v630_v8 = vld [vmem:[#allocation5 + $0x9f0] sm:$0xff] }
 0x282   : > { %5598 = vmatpush1.bf16.msra.mxu0 %v6856_v25  ;;  %5856 = vmatpush1.bf16.msra.mxu1 %v6858_v26  ;;  %v6920_v25 = vcombine.low %v570_v13, %v574_v14  ;;  %v6922_v26 = vcombine.low %v571_v15, %v575_v16  ;;  %v6977_v13 = vcombine.high %v626_v7, %v630_v8  ;;  %v634_v15 = vld [vmem:[#allocation5 + $0xa10] sm:$0xff] }
 0x283   : > { %5599 = vmatprep.subr.bf16.mxu0 %v6865_v27  ;;  %5857 = vmatprep.subr.bf16.mxu1 %v6867_v28  ;;  %v6929_v27 = vcombine.high %v578_v21, %v582_v22  ;;  %v6931_v28 = vcombine.high %v579_v23, %v583_v24  ;;  %v638_v16 = vld [vmem:[#allocation5 + $0xa30] sm:$0xff] }
 0x286   : > { %5600 = vmatpush1.bf16.msra.mxu0 %v6864_v33  ;;  %5858 = vmatpush1.bf16.msra.mxu1 %v6866_v34  ;;  %v591_v33 = vld [vmem:[#allocation5 + $0x8b8] sm:$0xff]  ;;  %v6928_v34 = vcombine.low %v578_v21, %v582_v22  ;;  %v6985_v21 = vcombine.high %v634_v15, %v638_v16 }
 0x287   : > { %5601 = vmatprep.subr.bf16.mxu0 %v6873_v35  ;;  %5859 = vmatprep.subr.bf16.mxu1 %v6875_v36  ;;  %v6930_v35 = vcombine.low %v579_v23, %v583_v24  ;;  %v6937_v36 = vcombine.high %v586_v29, %v590_v30  ;;  %v6939_v37 = vcombine.high %v587_v32, %v591_v33  ;;  %v642_v23 = vld [vmem:[#allocation5 + $0xa50] sm:$0xff] }
 0x288   : > { %v646_v24 = vld [vmem:[#allocation5 + $0xa70] sm:$0xff] }
 0x28a   : > { %5602 = vmatpush1.bf16.msra.mxu0 %v6872_v41  ;;  %5860 = vmatpush1.bf16.msra.mxu1 %v6874_v42  ;;  %v595_v41 = vld [vmem:[#allocation5 + $0x8d8] sm:$0xff] }
 0x28b   : > { %5603 = vmatprep.subr.bf16.mxu0 %v6881_v43  ;;  %5861 = vmatprep.subr.bf16.mxu1 %v6883_v44  ;;  %v599_v42 = vld [vmem:[#allocation5 + $0x8f8] sm:$0xff]  ;;  %v6936_v43 = vcombine.low %v586_v29, %v590_v30  ;;  %v6938_v44 = vcombine.low %v587_v32, %v591_v33  ;;  %v6993_v29 = vcombine.high %v642_v23, %v646_v24  ;;  %v654_v32 = vld [vmem:[#allocation5 + $0xab0] sm:$0xff] }
 0x28c   : > { %v6947_v46 = vcombine.high %v595_v41, %v599_v42  ;;  %v651_v33 = vld [vmem:[#allocation5 + $0xa98] sm:$0xff] }
 0x28e   : > { %5604 = vmatpush1.bf16.msra.mxu0 %v6880_v49  ;;  %5862 = vmatpush1.bf16.msra.mxu1 %v6882_v50  ;;  %v603_v49 = vld [vmem:[#allocation5 + $0x918] sm:$0xff] }
 0x28f   : > { %5605 = vmatprep.subr.bf16.mxu0 %v6889_v51  ;;  %5863 = vmatprep.subr.bf16.mxu1 %v6891_v52  ;;  %v607_v50 = vld [vmem:[#allocation5 + $0x938] sm:$0xff]  ;;  %v6944_v51 = vcombine.low %v594_v38, %v598_v39  ;;  %v6946_v52 = vcombine.low %v595_v41, %v599_v42  ;;  %v658_v39 = vld [vmem:[#allocation5 + $0xad0] sm:$0xff] }
 0x290   : > { %v6955_v54 = vcombine.high %v603_v49, %v607_v50  ;;  %v659_v41 = vld [vmem:[#allocation5 + $0xad8] sm:$0xff] }
 0x291   : > { %v663_v42 = vld [vmem:[#allocation5 + $0xaf8] sm:$0xff] }
 0x292   : > { %5606 = vmatpush1.bf16.msra.mxu0 %v6888_v57  ;;  %5864 = vmatpush1.bf16.msra.mxu1 %v6890_v58  ;;  %v611_v57 = vld [vmem:[#allocation5 + $0x958] sm:$0xff] }
 0x293   : > { %5607 = vmatprep.subr.bf16.mxu0 %v6897_v59  ;;  %5865 = vmatprep.subr.bf16.mxu1 %v6899_v60  ;;  %v615_v58 = vld [vmem:[#allocation5 + $0x978] sm:$0xff]  ;;  %v6952_v59 = vcombine.low %v602_v47, %v606_v48  ;;  %v6954_v60 = vcombine.low %v603_v49, %v607_v50  ;;  %v666_v47 = vld [vmem:[#allocation5 + $0xb10] sm:$0xff] }
 0x294   : > { %v6963_v62 = vcombine.high %v611_v57, %v615_v58  ;;  %v670_v48 = vld [vmem:[#allocation5 + $0xb30] sm:$0xff]  ;;  %v667_v49 = vld [vmem:[#allocation5 + $0xb18] sm:$0xff] }
 0x295   : > { %v671_v50 = vld [vmem:[#allocation5 + $0xb38] sm:$0xff] }
 0x296   : > { %5608 = vmatpush1.bf16.msra.mxu0 %v6896_v1  ;;  %5866 = vmatpush1.bf16.msra.mxu1 %v6898_v2  ;;  %v619_v1 = vld [vmem:[#allocation5 + $0x998] sm:$0xff] }
 0x297   : > { %5609 = vmatprep.subr.bf16.mxu0 %v6905_v3  ;;  %5867 = vmatprep.subr.bf16.mxu1 %v6907_v4  ;;  %v623_v2 = vld [vmem:[#allocation5 + $0x9b8] sm:$0xff]  ;;  %v6960_v3 = vcombine.low %v610_v55, %v614_v56  ;;  %v6962_v4 = vcombine.low %v611_v57, %v615_v58  ;;  %v674_v55 = vld [vmem:[#allocation5 + $0xb50] sm:$0xff] }
 0x298   : > { %v6971_v6 = vcombine.high %v619_v1, %v623_v2  ;;  %v678_v56 = vld [vmem:[#allocation5 + $0xb70] sm:$0xff]  ;;  %v675_v57 = vld [vmem:[#allocation5 + $0xb58] sm:$0xff] }
 0x299   : > { %v679_v58 = vld [vmem:[#allocation5 + $0xb78] sm:$0xff] }
 0x29a   : > { %5610 = vmatpush1.bf16.msra.mxu0 %v6904_v9  ;;  %5868 = vmatpush1.bf16.msra.mxu1 %v6906_v10  ;;  %v627_v9 = vld [vmem:[#allocation5 + $0x9d8] sm:$0xff] }
 0x29b   : > { %5611 = vmatprep.subr.bf16.mxu0 %v6913_v11  ;;  %5869 = vmatprep.subr.bf16.mxu1 %v6915_v12  ;;  %v631_v10 = vld [vmem:[#allocation5 + $0x9f8] sm:$0xff]  ;;  %v6968_v11 = vcombine.low %v618_v63, %v622_v0  ;;  %v6970_v12 = vcombine.low %v619_v1, %v623_v2  ;;  %v682_v63 = vld [vmem:[#allocation5 + $0xb90] sm:$0xff] }
 0x29c   : > { %v6979_v14 = vcombine.high %v627_v9, %v631_v10  ;;  %v686_v0 = vld [vmem:[#allocation5 + $0xbb0] sm:$0xff]  ;;  %v683_v1 = vld [vmem:[#allocation5 + $0xb98] sm:$0xff] }
 0x29d   : > { %v687_v2 = vld [vmem:[#allocation5 + $0xbb8] sm:$0xff] }
 0x29e   : > { %5612 = vmatpush1.bf16.msra.mxu0 %v6912_v17  ;;  %5870 = vmatpush1.bf16.msra.mxu1 %v6914_v18  ;;  %v635_v17 = vld [vmem:[#allocation5 + $0xa18] sm:$0xff] }
 0x29f   : > { %5624 = vmatprep.subr.bf16.mxu0 %v6921_v19  ;;  %5882 = vmatprep.subr.bf16.mxu1 %v6923_v20  ;;  %v639_v18 = vld [vmem:[#allocation5 + $0xa38] sm:$0xff]  ;;  %v6976_v19 = vcombine.low %v626_v7, %v630_v8  ;;  %v6978_v20 = vcombine.low %v627_v9, %v631_v10  ;;  %v690_v7 = vld [vmem:[#allocation5 + $0xbd0] sm:$0xff] }
 0x2a0   : > { %v6987_v22 = vcombine.high %v635_v17, %v639_v18  ;;  %v694_v8 = vld [vmem:[#allocation5 + $0xbf0] sm:$0xff]  ;;  %v691_v9 = vld [vmem:[#allocation5 + $0xbd8] sm:$0xff] }
 0x2a1   : > { %5614 = vmatmul.mubr.bf16.vlgmr.msra.gmra.mrb[4].mxu0 %v7930_v31  ;;  %5872 = vmatmul.mubr.bf16.vlgmr.msra.gmra.mrb[4].mxu1 %v7930_v31  ;;  %v650_v31 = vld [vmem:[#allocation5 + $0xa90] sm:$0xff]  ;;  %v695_v10 = vld [vmem:[#allocation5 + $0xbf8] sm:$0xff] }
 0x2a2   : > { %5625 = vmatpush1.bf16.msra.mxu0 %v6920_v25  ;;  %5883 = vmatpush1.bf16.msra.mxu1 %v6922_v26  ;;  %v643_v25 = vld [vmem:[#allocation5 + $0xa58] sm:$0xff] }
 0x2a3   : > { %5626 = vmatprep.subr.bf16.mxu0 %v6929_v27  ;;  %5884 = vmatprep.subr.bf16.mxu1 %v6931_v28  ;;  %v647_v26 = vld [vmem:[#allocation5 + $0xa78] sm:$0xff]  ;;  %v6984_v27 = vcombine.low %v634_v15, %v638_v16  ;;  %v6986_v28 = vcombine.low %v635_v17, %v639_v18  ;;  %v698_v15 = vld [vmem:[#allocation5 + $0xc10] sm:$0xff] }
 0x2a4   : > { %5656 = vmatprep.mubr.bf16.mxu0 %v7931_v40  ;;  %5914 = vmatprep.mubr.bf16.mxu1 %v7931_v40  ;;  %v6995_v30 = vcombine.high %v643_v25, %v647_v26  ;;  %v662_v40 = vld [vmem:[#allocation5 + $0xaf0] sm:$0xff]  ;;  %v699_v17 = vld [vmem:[#allocation5 + $0xc18] sm:$0xff] }
 0x2a5   : > { %v702_v16 = vld [vmem:[#allocation5 + $0xc30] sm:$0xff]  ;;  %v703_v18 = vld [vmem:[#allocation5 + $0xc38] sm:$0xff] }
 0x2a6   : > { %5627 = vmatpush1.bf16.msra.mxu0 %v6928_v34  ;;  %5885 = vmatpush1.bf16.msra.mxu1 %v6930_v35  ;;  %v655_v34 = vld [vmem:[#allocation5 + $0xab8] sm:$0xff]  ;;  %v6992_v35 = vcombine.low %v642_v23, %v646_v24  ;;  %v706_v23 = vld [vmem:[#allocation5 + $0xc50] sm:$0xff] }
 0x2a7   : > { %5628 = vmatprep.subr.bf16.mxu0 %v6937_v36  ;;  %5886 = vmatprep.subr.bf16.mxu1 %v6939_v37  ;;  %v6994_v36 = vcombine.low %v643_v25, %v647_v26  ;;  %v7001_v37 = vcombine.high %v650_v31, %v654_v32  ;;  %v7003_v38 = vcombine.high %v651_v33, %v655_v34  ;;  %v710_v24 = vld [vmem:[#allocation5 + $0xc70] sm:$0xff]  ;;  %v707_v25 = vld [vmem:[#allocation5 + $0xc58] sm:$0xff] }
 0x2a8   : > { %v711_v26 = vld [vmem:[#allocation5 + $0xc78] sm:$0xff] }
 0x2aa   : > { %5629 = vmatpush1.bf16.msra.mxu0 %v6936_v43  ;;  %5887 = vmatpush1.bf16.msra.mxu1 %v6938_v44  ;;  %v7000_v43 = vcombine.low %v650_v31, %v654_v32  ;;  %v7002_v44 = vcombine.low %v651_v33, %v655_v34  ;;  %v714_v31 = vld [vmem:[#allocation5 + $0xc90] sm:$0xff]  ;;  %v715_v34 = vld [vmem:[#allocation5 + $0xc98] sm:$0xff] }
 0x2ab   : > { %5630 = vmatprep.subr.bf16.mxu0 %v6945_v45  ;;  %5888 = vmatprep.subr.bf16.mxu1 %v6947_v46  ;;  %v7009_v45 = vcombine.high %v658_v39, %v662_v40  ;;  %v7011_v46 = vcombine.high %v659_v41, %v663_v42  ;;  %v718_v32 = vld [vmem:[#allocation5 + $0xcb0] sm:$0xff] }
 0x2ac   : > { %v7932_v33 = vld [vmem:[%s8413_s8 + $0x10] ss:$48 sps:$4 sm:$0xff]  }
 0x2ae   : > { %5631 = vmatpush1.bf16.msra.mxu0 %v6944_v51  ;;  %5889 = vmatpush1.bf16.msra.mxu1 %v6946_v52  ;;  %v7008_v51 = vcombine.low %v658_v39, %v662_v40  ;;  %v7010_v52 = vcombine.low %v659_v41, %v663_v42  ;;  %v722_v40 = vld [vmem:[#allocation5 + $0xcd0] sm:$0xff]  ;;  %v7933_v42 = vld [vmem:[%s8413_s8 + $0x1c] ss:$48 sps:$4 sm:$0xff]  }
 0x2af   : > { %5632 = vmatprep.subr.bf16.mxu0 %v6953_v53  ;;  %5890 = vmatprep.subr.bf16.mxu1 %v6955_v54  ;;  %v7017_v53 = vcombine.high %v666_v47, %v670_v48  ;;  %v7019_v54 = vcombine.high %v667_v49, %v671_v50  ;;  %v726_v41 = vld [vmem:[#allocation5 + $0xcf0] sm:$0xff] }
 0x2b2   : > { %5633 = vmatpush1.bf16.msra.mxu0 %v6952_v59  ;;  %5891 = vmatpush1.bf16.msra.mxu1 %v6954_v60  ;;  %v7016_v59 = vcombine.low %v666_v47, %v670_v48  ;;  %v7018_v60 = vcombine.low %v667_v49, %v671_v50  ;;  %v7073_v47 = vcombine.high %v722_v40, %v726_v41  ;;  %v730_v49 = vld [vmem:[#allocation5 + $0xd10] sm:$0xff] }
 0x2b3   : > { %5634 = vmatprep.subr.bf16.mxu0 %v6961_v61  ;;  %5892 = vmatprep.subr.bf16.mxu1 %v6963_v62  ;;  %v7025_v61 = vcombine.high %v674_v55, %v678_v56  ;;  %v7027_v62 = vcombine.high %v675_v57, %v679_v58  ;;  %v734_v50 = vld [vmem:[#allocation5 + $0xd30] sm:$0xff] }
 0x2b6   : > { %5635 = vmatpush1.bf16.msra.mxu0 %v6960_v3  ;;  %5893 = vmatpush1.bf16.msra.mxu1 %v6962_v4  ;;  %v7024_v3 = vcombine.low %v674_v55, %v678_v56  ;;  %v7026_v4 = vcombine.low %v675_v57, %v679_v58  ;;  %v7081_v55 = vcombine.high %v730_v49, %v734_v50  ;;  %v738_v57 = vld [vmem:[#allocation5 + $0xd50] sm:$0xff] }
 0x2b7   : > { %5636 = vmatprep.subr.bf16.mxu0 %v6969_v5  ;;  %5894 = vmatprep.subr.bf16.mxu1 %v6971_v6  ;;  %v7033_v5 = vcombine.high %v682_v63, %v686_v0  ;;  %v7035_v6 = vcombine.high %v683_v1, %v687_v2  ;;  %v742_v58 = vld [vmem:[#allocation5 + $0xd70] sm:$0xff] }
 0x2ba   : > { %5637 = vmatpush1.bf16.msra.mxu0 %v6968_v11  ;;  %5895 = vmatpush1.bf16.msra.mxu1 %v6970_v12  ;;  %v7032_v11 = vcombine.low %v682_v63, %v686_v0  ;;  %v7034_v12 = vcombine.low %v683_v1, %v687_v2  ;;  %v7089_v63 = vcombine.high %v738_v57, %v742_v58  ;;  %v746_v1 = vld [vmem:[#allocation5 + $0xd90] sm:$0xff] }
 0x2bb   : > { %5638 = vmatprep.subr.bf16.mxu0 %v6977_v13  ;;  %5896 = vmatprep.subr.bf16.mxu1 %v6979_v14  ;;  %v7041_v13 = vcombine.high %v690_v7, %v694_v8  ;;  %v7043_v14 = vcombine.high %v691_v9, %v695_v10  ;;  %v750_v2 = vld [vmem:[#allocation5 + $0xdb0] sm:$0xff] }
 0x2be   : > { %5639 = vmatpush1.bf16.msra.mxu0 %v6976_v19  ;;  %5897 = vmatpush1.bf16.msra.mxu1 %v6978_v20  ;;  %v7040_v19 = vcombine.low %v690_v7, %v694_v8  ;;  %v7042_v20 = vcombine.low %v691_v9, %v695_v10  ;;  %v7097_v7 = vcombine.high %v746_v1, %v750_v2  ;;  %v754_v10 = vld [vmem:[#allocation5 + $0xdd0] sm:$0xff] }
 0x2bf   : > { %5640 = vmatprep.subr.bf16.mxu0 %v6985_v21  ;;  %5898 = vmatprep.subr.bf16.mxu1 %v6987_v22  ;;  %v7049_v21 = vcombine.high %v698_v15, %v702_v16  ;;  %v7051_v22 = vcombine.high %v699_v17, %v703_v18 }
 0x2c2   : > { %5641 = vmatpush1.bf16.msra.mxu0 %v6984_v27  ;;  %5899 = vmatpush1.bf16.msra.mxu1 %v6986_v28  ;;  %v7048_v27 = vcombine.low %v698_v15, %v702_v16  ;;  %v7050_v28 = vcombine.low %v699_v17, %v703_v18  ;;  %v759_v15 = vld [vmem:[#allocation5 + $0xdf8] sm:$0xff]  ;;  %v7096_v18 = vcombine.low %v746_v1, %v750_v2  ;;  %v802_v1 = vld [vmem:[#allocation5 + $0xf50] sm:$0xff] }
 0x2c3   : > { %5642 = vmatprep.subr.bf16.mxu0 %v6993_v29  ;;  %5900 = vmatprep.subr.bf16.mxu1 %v6995_v30  ;;  %v7057_v29 = vcombine.high %v706_v23, %v710_v24  ;;  %v7059_v30 = vcombine.high %v707_v25, %v711_v26  ;;  %v806_v2 = vld [vmem:[#allocation5 + $0xf70] sm:$0xff] }
 0x2c6   : > { %5643 = vmatpush1.bf16.msra.mxu0 %v6992_v35  ;;  %5901 = vmatpush1.bf16.msra.mxu1 %v6994_v36  ;;  %v719_v35 = vld [vmem:[#allocation5 + $0xcb8] sm:$0xff]  ;;  %v7056_v36 = vcombine.low %v706_v23, %v710_v24 }
 0x2c7   : > { %5644 = vmatprep.subr.bf16.mxu0 %v7001_v37  ;;  %5902 = vmatprep.subr.bf16.mxu1 %v7003_v38  ;;  %v7058_v37 = vcombine.low %v707_v25, %v711_v26  ;;  %v7065_v38 = vcombine.high %v714_v31, %v718_v32  ;;  %v7067_v39 = vcombine.high %v715_v34, %v719_v35  ;;  %v762_v25 = vld [vmem:[#allocation5 + $0xe10] sm:$0xff] }
 0x2c8   : > { %v766_v26 = vld [vmem:[#allocation5 + $0xe30] sm:$0xff] }
 0x2ca   : > { %5645 = vmatpush1.bf16.msra.mxu0 %v7000_v43  ;;  %5903 = vmatpush1.bf16.msra.mxu1 %v7002_v44  ;;  %v723_v43 = vld [vmem:[#allocation5 + $0xcd8] sm:$0xff] }
 0x2cb   : > { %5646 = vmatprep.subr.bf16.mxu0 %v7009_v45  ;;  %5904 = vmatprep.subr.bf16.mxu1 %v7011_v46  ;;  %v727_v44 = vld [vmem:[#allocation5 + $0xcf8] sm:$0xff]  ;;  %v7064_v45 = vcombine.low %v714_v31, %v718_v32  ;;  %v7066_v46 = vcombine.low %v715_v34, %v719_v35  ;;  %v7113_v31 = vcombine.high %v762_v25, %v766_v26  ;;  %v774_v34 = vld [vmem:[#allocation5 + $0xe70] sm:$0xff] }
 0x2cc   : > { %v7075_v48 = vcombine.high %v723_v43, %v727_v44  ;;  %v771_v35 = vld [vmem:[#allocation5 + $0xe58] sm:$0xff] }
 0x2ce   : > { %5647 = vmatpush1.bf16.msra.mxu0 %v7008_v51  ;;  %5905 = vmatpush1.bf16.msra.mxu1 %v7010_v52  ;;  %v731_v51 = vld [vmem:[#allocation5 + $0xd18] sm:$0xff] }
 0x2cf   : > { %5648 = vmatprep.subr.bf16.mxu0 %v7017_v53  ;;  %5906 = vmatprep.subr.bf16.mxu1 %v7019_v54  ;;  %v735_v52 = vld [vmem:[#allocation5 + $0xd38] sm:$0xff]  ;;  %v7072_v53 = vcombine.low %v722_v40, %v726_v41  ;;  %v7074_v54 = vcombine.low %v723_v43, %v727_v44  ;;  %v778_v41 = vld [vmem:[#allocation5 + $0xe90] sm:$0xff] }
 0x2d0   : > { %v7083_v56 = vcombine.high %v731_v51, %v735_v52  ;;  %v779_v43 = vld [vmem:[#allocation5 + $0xe98] sm:$0xff] }
 0x2d1   : > { %v783_v44 = vld [vmem:[#allocation5 + $0xeb8] sm:$0xff] }
 0x2d2   : > { %5649 = vmatpush1.bf16.msra.mxu0 %v7016_v59  ;;  %5907 = vmatpush1.bf16.msra.mxu1 %v7018_v60  ;;  %v739_v59 = vld [vmem:[#allocation5 + $0xd58] sm:$0xff] }
 0x2d3   : > { %5650 = vmatprep.subr.bf16.mxu0 %v7025_v61  ;;  %5908 = vmatprep.subr.bf16.mxu1 %v7027_v62  ;;  %v743_v60 = vld [vmem:[#allocation5 + $0xd78] sm:$0xff]  ;;  %v7080_v61 = vcombine.low %v730_v49, %v734_v50  ;;  %v7082_v62 = vcombine.low %v731_v51, %v735_v52  ;;  %v786_v49 = vld [vmem:[#allocation5 + $0xed0] sm:$0xff] }
 0x2d4   : > { %v7091_v0 = vcombine.high %v739_v59, %v743_v60  ;;  %v790_v50 = vld [vmem:[#allocation5 + $0xef0] sm:$0xff]  ;;  %v787_v51 = vld [vmem:[#allocation5 + $0xed8] sm:$0xff] }
 0x2d5   : > { %v791_v52 = vld [vmem:[#allocation5 + $0xef8] sm:$0xff] }
 0x2d6   : > { %5651 = vmatpush1.bf16.msra.mxu0 %v7024_v3  ;;  %5909 = vmatpush1.bf16.msra.mxu1 %v7026_v4  ;;  %v747_v3 = vld [vmem:[#allocation5 + $0xd98] sm:$0xff] }
 0x2d7   : > { %5652 = vmatprep.subr.bf16.mxu0 %v7033_v5  ;;  %5910 = vmatprep.subr.bf16.mxu1 %v7035_v6  ;;  %v751_v4 = vld [vmem:[#allocation5 + $0xdb8] sm:$0xff]  ;;  %v7088_v5 = vcombine.low %v738_v57, %v742_v58  ;;  %v7090_v6 = vcombine.low %v739_v59, %v743_v60  ;;  %v794_v57 = vld [vmem:[#allocation5 + $0xf10] sm:$0xff] }
 0x2d8   : > { %v7099_v9 = vcombine.high %v747_v3, %v751_v4  ;;  %v798_v58 = vld [vmem:[#allocation5 + $0xf30] sm:$0xff]  ;;  %v795_v59 = vld [vmem:[#allocation5 + $0xf18] sm:$0xff] }
 0x2d9   : > { %v799_v60 = vld [vmem:[#allocation5 + $0xf38] sm:$0xff] }
 0x2da   : > { %5653 = vmatpush1.bf16.msra.mxu0 %v7032_v11  ;;  %5911 = vmatpush1.bf16.msra.mxu1 %v7034_v12  ;;  %v758_v11 = vld [vmem:[#allocation5 + $0xdf0] sm:$0xff] }
 0x2db   : > { %5654 = vmatprep.subr.bf16.mxu0 %v7041_v13  ;;  %5912 = vmatprep.subr.bf16.mxu1 %v7043_v14  ;;  %v755_v14 = vld [vmem:[#allocation5 + $0xdd8] sm:$0xff] }
 0x2dc   : > { %v7107_v24 = vcombine.high %v755_v14, %v759_v15 }
 0x2de   : > { %5655 = vmatpush1.bf16.msra.mxu0 %v7040_v19  ;;  %5913 = vmatpush1.bf16.msra.mxu1 %v7042_v20 }
 0x2df   : > { %5667 = vmatprep.subr.bf16.mxu0 %v7049_v21  ;;  %5925 = vmatprep.subr.bf16.mxu1 %v7051_v22  ;;  %v7098_v21 = vcombine.low %v747_v3, %v751_v4  ;;  %v7105_v22 = vcombine.high %v754_v10, %v758_v11  ;;  %v803_v3 = vld [vmem:[#allocation5 + $0xf58] sm:$0xff] }
 0x2e0   : > { %v807_v4 = vld [vmem:[#allocation5 + $0xf78] sm:$0xff] }
 0x2e1   : > { %5657 = vmatmul.mubr.bf16.vlgmr.msra.gmra.mrb[4].mxu0 %v7932_v33  ;;  %5915 = vmatmul.mubr.bf16.vlgmr.msra.gmra.mrb[4].mxu1 %v7932_v33  ;;  %v770_v33 = vld [vmem:[#allocation5 + $0xe50] sm:$0xff] }
 0x2e2   : > { %5668 = vmatpush1.bf16.msra.mxu0 %v7048_v27  ;;  %5926 = vmatpush1.bf16.msra.mxu1 %v7050_v28  ;;  %v763_v27 = vld [vmem:[#allocation5 + $0xe18] sm:$0xff] }
 0x2e3   : > { %5669 = vmatprep.subr.bf16.mxu0 %v7057_v29  ;;  %5927 = vmatprep.subr.bf16.mxu1 %v7059_v30  ;;  %v767_v28 = vld [vmem:[#allocation5 + $0xe38] sm:$0xff]  ;;  %v7104_v29 = vcombine.low %v754_v10, %v758_v11  ;;  %v7106_v30 = vcombine.low %v755_v14, %v759_v15  ;;  %v810_v10 = vld [vmem:[#allocation5 + $0xf90] sm:$0xff] }
 0x2e4   : > { %5699 = vmatprep.mubr.bf16.mxu0 %v7933_v42  ;;  %5957 = vmatprep.mubr.bf16.mxu1 %v7933_v42  ;;  %v7115_v32 = vcombine.high %v763_v27, %v767_v28  ;;  %v782_v42 = vld [vmem:[#allocation5 + $0xeb0] sm:$0xff]  ;;  %v811_v14 = vld [vmem:[#allocation5 + $0xf98] sm:$0xff] }
 0x2e5   : > { %v814_v11 = vld [vmem:[#allocation5 + $0xfb0] sm:$0xff]  ;;  %v815_v15 = vld [vmem:[#allocation5 + $0xfb8] sm:$0xff] }
 0x2e6   : > { %5670 = vmatpush1.bf16.msra.mxu0 %v7056_v36  ;;  %5928 = vmatpush1.bf16.msra.mxu1 %v7058_v37  ;;  %v775_v36 = vld [vmem:[#allocation5 + $0xe78] sm:$0xff]  ;;  %v7112_v37 = vcombine.low %v762_v25, %v766_v26  ;;  %v818_v25 = vld [vmem:[#allocation5 + $0xfd0] sm:$0xff] }
 0x2e7   : > { %5671 = vmatprep.subr.bf16.mxu0 %v7065_v38  ;;  %5929 = vmatprep.subr.bf16.mxu1 %v7067_v39  ;;  %v7114_v38 = vcombine.low %v763_v27, %v767_v28  ;;  %v7121_v39 = vcombine.high %v770_v33, %v774_v34  ;;  %v7123_v40 = vcombine.high %v771_v35, %v775_v36  ;;  %v822_v26 = vld [vmem:[#allocation5 + $0xff0] sm:$0xff]  ;;  %v819_v27 = vld [vmem:[#allocation5 + $0xfd8] sm:$0xff] }
 0x2e8   : > { %v823_v28 = vld [vmem:[#allocation5 + $0xff8] sm:$0xff] }
 0x2ea   : > { %5672 = vmatpush1.bf16.msra.mxu0 %v7064_v45  ;;  %5930 = vmatpush1.bf16.msra.mxu1 %v7066_v46  ;;  %v7120_v45 = vcombine.low %v770_v33, %v774_v34  ;;  %v7122_v46 = vcombine.low %v771_v35, %v775_v36  ;;  %v826_v33 = vld [vmem:[#allocation5 + $0x1010] sm:$0xff]  ;;  %v827_v35 = vld [vmem:[#allocation5 + $0x1018] sm:$0xff] }
 0x2eb   : > { %5673 = vmatprep.subr.bf16.mxu0 %v7073_v47  ;;  %5931 = vmatprep.subr.bf16.mxu1 %v7075_v48  ;;  %v7129_v47 = vcombine.high %v778_v41, %v782_v42  ;;  %v7131_v48 = vcombine.high %v779_v43, %v783_v44  ;;  %v830_v34 = vld [vmem:[#allocation5 + $0x1030] sm:$0xff]  ;;  %v831_v36 = vld [vmem:[#allocation5 + $0x1038] sm:$0xff] }
 0x2ee   : > { %5674 = vmatpush1.bf16.msra.mxu0 %v7072_v53  ;;  %5932 = vmatpush1.bf16.msra.mxu1 %v7074_v54  ;;  %v7128_v53 = vcombine.low %v778_v41, %v782_v42  ;;  %v7130_v54 = vcombine.low %v779_v43, %v783_v44  ;;  %v834_v41 = vld [vmem:[#allocation5 + $0x1050] sm:$0xff]  ;;  %v835_v43 = vld [vmem:[#allocation5 + $0x1058] sm:$0xff] }
 0x2ef   : > { %5675 = vmatprep.subr.bf16.mxu0 %v7081_v55  ;;  %5933 = vmatprep.subr.bf16.mxu1 %v7083_v56  ;;  %v7137_v55 = vcombine.high %v786_v49, %v790_v50  ;;  %v7139_v56 = vcombine.high %v787_v51, %v791_v52  ;;  %v838_v42 = vld [vmem:[#allocation5 + $0x1070] sm:$0xff]  ;;  %v839_v44 = vld [vmem:[#allocation5 + $0x1078] sm:$0xff] }
 0x2f2   : > { %5676 = vmatpush1.bf16.msra.mxu0 %v7080_v61  ;;  %5934 = vmatpush1.bf16.msra.mxu1 %v7082_v62  ;;  %v7136_v61 = vcombine.low %v786_v49, %v790_v50  ;;  %v7138_v62 = vcombine.low %v787_v51, %v791_v52  ;;  %v842_v49 = vld [vmem:[#allocation5 + $0x1090] sm:$0xff]  ;;  %v7934_v51 = vld [vmem:[%s8413_s8 + $0x18] ss:$48 sps:$4 sm:$0xff]  }
 0x2f3   : > { %5677 = vmatprep.subr.bf16.mxu0 %v7089_v63  ;;  %5935 = vmatprep.subr.bf16.mxu1 %v7091_v0  ;;  %v7145_v63 = vcombine.high %v794_v57, %v798_v58  ;;  %v7147_v0 = vcombine.high %v795_v59, %v799_v60  ;;  %v846_v50 = vld [vmem:[#allocation5 + $0x10b0] sm:$0xff]  ;;  %v843_v52 = vld [vmem:[#allocation5 + $0x1098] sm:$0xff] }
 0x2f4   : > { %v8446_v8 = vpop.f32.mrb[0].mxu0  ;;  %v8448_v12 = vpop.f32.mrb[0].mxu1 }
 0x2f5   : > { %v8450_v13 = vpop.f32.mrb[1].mxu0  ;;  %v8452_v16 = vpop.f32.mrb[1].mxu1 }
 0x2f6   : > { %v8454_v17 = vpop.f32.mrb[2].mxu0  ;;  %5678 = vmatpush1.bf16.msra.mxu0 %v7088_v5  ;;  %v8456_v19 = vpop.f32.mrb[2].mxu1  ;;  %5936 = vmatpush1.bf16.msra.mxu1 %v7090_v6  ;;  %v7144_v5 = vcombine.low %v794_v57, %v798_v58  ;;  %v7146_v6 = vcombine.low %v795_v59, %v799_v60  ;;  %v850_v58 = vld [vmem:[#allocation5 + $0x10d0] sm:$0xff] }
 0x2f7   : > { %v8458_v20 = vpop.f32.mrb[3].mxu0  ;;  %5679 = vmatprep.subr.bf16.mxu0 %v7097_v7  ;;  %v8460_v23 = vpop.f32.mrb[3].mxu1  ;;  %5937 = vmatprep.subr.bf16.mxu1 %v7099_v9  ;;  %v7153_v7 = vcombine.high %v802_v1, %v806_v2  ;;  %v7155_v9 = vcombine.high %v803_v3, %v807_v4  ;;  %v854_v59 = vld [vmem:[#allocation5 + $0x10f0] sm:$0xff] }
 0x2f8   : > { %v7935_v60 = vld [vmem:[%s8413_s8 + $0x24] ss:$48 sps:$4 sm:$0xff]  }
 0x2fa   : > { %5680 = vmatpush1.bf16.msra.mxu0 %v7096_v18  ;;  %5938 = vmatpush1.bf16.msra.mxu1 %v7098_v21  ;;  %v7152_v18 = vcombine.low %v802_v1, %v806_v2  ;;  %v7154_v21 = vcombine.low %v803_v3, %v807_v4  ;;  %v7201_v1 = vcombine.high %v850_v58, %v854_v59  ;;  %v858_v3 = vld [vmem:[#allocation5 + $0x1110] sm:$0xff] }
 0x2fb   : > { %5681 = vmatprep.subr.bf16.mxu0 %v7105_v22  ;;  %5939 = vmatprep.subr.bf16.mxu1 %v7107_v24  ;;  %v7161_v22 = vcombine.high %v810_v10, %v814_v11  ;;  %v7163_v24 = vcombine.high %v811_v14, %v815_v15  ;;  %v862_v4 = vld [vmem:[#allocation5 + $0x1130] sm:$0xff] }
 0x2fe   : > { %5682 = vmatpush1.bf16.msra.mxu0 %v7104_v29  ;;  %5940 = vmatpush1.bf16.msra.mxu1 %v7106_v30  ;;  %v7160_v29 = vcombine.low %v810_v10, %v814_v11  ;;  %v7162_v30 = vcombine.low %v811_v14, %v815_v15  ;;  %v7209_v10 = vcombine.high %v858_v3, %v862_v4  ;;  %v866_v14 = vld [vmem:[#allocation5 + $0x1150] sm:$0xff] }
 0x2ff   : > { %5683 = vmatprep.subr.bf16.mxu0 %v7113_v31  ;;  %5941 = vmatprep.subr.bf16.mxu1 %v7115_v32  ;;  %v7169_v31 = vcombine.high %v818_v25, %v822_v26  ;;  %v7171_v32 = vcombine.high %v819_v27, %v823_v28  ;;  %v870_v15 = vld [vmem:[#allocation5 + $0x1170] sm:$0xff] }
 0x302   : > { %5684 = vmatpush1.bf16.msra.mxu0 %v7112_v37  ;;  %5942 = vmatpush1.bf16.msra.mxu1 %v7114_v38  ;;  %v7168_v37 = vcombine.low %v818_v25, %v822_v26  ;;  %v7170_v38 = vcombine.low %v819_v27, %v823_v28  ;;  %v7217_v25 = vcombine.high %v866_v14, %v870_v15  ;;  %v874_v27 = vld [vmem:[#allocation5 + $0x1190] sm:$0xff] }
 0x303   : > { %5685 = vmatprep.subr.bf16.mxu0 %v7121_v39  ;;  %5943 = vmatprep.subr.bf16.mxu1 %v7123_v40  ;;  %v7177_v39 = vcombine.high %v826_v33, %v830_v34  ;;  %v7179_v40 = vcombine.high %v827_v35, %v831_v36  ;;  %v878_v28 = vld [vmem:[#allocation5 + $0x11b0] sm:$0xff] }
 0x306   : > { %5686 = vmatpush1.bf16.msra.mxu0 %v7120_v45  ;;  %5944 = vmatpush1.bf16.msra.mxu1 %v7122_v46  ;;  %v7176_v45 = vcombine.low %v826_v33, %v830_v34  ;;  %v7178_v46 = vcombine.low %v827_v35, %v831_v36  ;;  %v7225_v33 = vcombine.high %v874_v27, %v878_v28  ;;  %v882_v35 = vld [vmem:[#allocation5 + $0x11d0] sm:$0xff] }
 0x307   : > { %5687 = vmatprep.subr.bf16.mxu0 %v7129_v47  ;;  %5945 = vmatprep.subr.bf16.mxu1 %v7131_v48  ;;  %v7185_v47 = vcombine.high %v834_v41, %v838_v42  ;;  %v7187_v48 = vcombine.high %v835_v43, %v839_v44  ;;  %v886_v36 = vld [vmem:[#allocation5 + $0x11f0] sm:$0xff] }
 0x30a   : > { %5688 = vmatpush1.bf16.msra.mxu0 %v7128_v53  ;;  %5946 = vmatpush1.bf16.msra.mxu1 %v7130_v54  ;;  %v847_v53 = vld [vmem:[#allocation5 + $0x10b8] sm:$0xff]  ;;  %v7184_v54 = vcombine.low %v834_v41, %v838_v42  ;;  %v7233_v41 = vcombine.high %v882_v35, %v886_v36 }
 0x30b   : > { %5689 = vmatprep.subr.bf16.mxu0 %v7137_v55  ;;  %5947 = vmatprep.subr.bf16.mxu1 %v7139_v56  ;;  %v7186_v55 = vcombine.low %v835_v43, %v839_v44  ;;  %v7193_v56 = vcombine.high %v842_v49, %v846_v50  ;;  %v7195_v57 = vcombine.high %v843_v52, %v847_v53  ;;  %v890_v43 = vld [vmem:[#allocation5 + $0x1210] sm:$0xff] }
 0x30c   : > { %v894_v44 = vld [vmem:[#allocation5 + $0x1230] sm:$0xff] }
 0x30e   : > { %5690 = vmatpush1.bf16.msra.mxu0 %v7136_v61  ;;  %5948 = vmatpush1.bf16.msra.mxu1 %v7138_v62  ;;  %v851_v61 = vld [vmem:[#allocation5 + $0x10d8] sm:$0xff] }
 0x30f   : > { %5691 = vmatprep.subr.bf16.mxu0 %v7145_v63  ;;  %5949 = vmatprep.subr.bf16.mxu1 %v7147_v0  ;;  %v855_v62 = vld [vmem:[#allocation5 + $0x10f8] sm:$0xff]  ;;  %v7192_v63 = vcombine.low %v842_v49, %v846_v50  ;;  %v7194_v0 = vcombine.low %v843_v52, %v847_v53  ;;  %v7241_v49 = vcombine.high %v890_v43, %v894_v44  ;;  %v902_v52 = vld [vmem:[#allocation5 + $0x1270] sm:$0xff] }
 0x310   : > { %v7203_v2 = vcombine.high %v851_v61, %v855_v62  ;;  %v899_v53 = vld [vmem:[#allocation5 + $0x1258] sm:$0xff] }
 0x312   : > { %5692 = vmatpush1.bf16.msra.mxu0 %v7144_v5  ;;  %5950 = vmatpush1.bf16.msra.mxu1 %v7146_v6  ;;  %v859_v5 = vld [vmem:[#allocation5 + $0x1118] sm:$0xff] }
 0x313   : > { %5693 = vmatprep.subr.bf16.mxu0 %v7153_v7  ;;  %5951 = vmatprep.subr.bf16.mxu1 %v7155_v9  ;;  %v863_v6 = vld [vmem:[#allocation5 + $0x1138] sm:$0xff]  ;;  %v7200_v7 = vcombine.low %v850_v58, %v854_v59  ;;  %v7202_v9 = vcombine.low %v851_v61, %v855_v62  ;;  %v906_v59 = vld [vmem:[#allocation5 + $0x1290] sm:$0xff] }
 0x314   : > { %v7211_v11 = vcombine.high %v859_v5, %v863_v6  ;;  %v907_v61 = vld [vmem:[#allocation5 + $0x1298] sm:$0xff] }
 0x315   : > { %v911_v62 = vld [vmem:[#allocation5 + $0x12b8] sm:$0xff] }
 0x316   : > { %5694 = vmatpush1.bf16.msra.mxu0 %v7152_v18  ;;  %5952 = vmatpush1.bf16.msra.mxu1 %v7154_v21  ;;  %v867_v18 = vld [vmem:[#allocation5 + $0x1158] sm:$0xff] }
 0x317   : > { %5695 = vmatprep.subr.bf16.mxu0 %v7161_v22  ;;  %5953 = vmatprep.subr.bf16.mxu1 %v7163_v24  ;;  %v871_v21 = vld [vmem:[#allocation5 + $0x1178] sm:$0xff]  ;;  %v7208_v22 = vcombine.low %v858_v3, %v862_v4  ;;  %v7210_v24 = vcombine.low %v859_v5, %v863_v6  ;;  %v914_v3 = vld [vmem:[#allocation5 + $0x12d0] sm:$0xff] }
 0x318   : > { %v7219_v26 = vcombine.high %v867_v18, %v871_v21  ;;  %v918_v4 = vld [vmem:[#allocation5 + $0x12f0] sm:$0xff]  ;;  %v915_v5 = vld [vmem:[#allocation5 + $0x12d8] sm:$0xff] }
 0x319   : > { %v919_v6 = vld [vmem:[#allocation5 + $0x12f8] sm:$0xff] }
 0x31a   : > { %5696 = vmatpush1.bf16.msra.mxu0 %v7160_v29  ;;  %5954 = vmatpush1.bf16.msra.mxu1 %v7162_v30  ;;  %v875_v29 = vld [vmem:[#allocation5 + $0x1198] sm:$0xff] }
 0x31b   : > { %5697 = vmatprep.subr.bf16.mxu0 %v7169_v31  ;;  %5955 = vmatprep.subr.bf16.mxu1 %v7171_v32  ;;  %v879_v30 = vld [vmem:[#allocation5 + $0x11b8] sm:$0xff]  ;;  %v7216_v31 = vcombine.low %v866_v14, %v870_v15  ;;  %v7218_v32 = vcombine.low %v867_v18, %v871_v21  ;;  %v922_v14 = vld [vmem:[#allocation5 + $0x1310] sm:$0xff] }
 0x31c   : > { %v7227_v34 = vcombine.high %v875_v29, %v879_v30  ;;  %v926_v15 = vld [vmem:[#allocation5 + $0x1330] sm:$0xff]  ;;  %v923_v18 = vld [vmem:[#allocation5 + $0x1318] sm:$0xff] }
 0x31d   : > { %v927_v21 = vld [vmem:[#allocation5 + $0x1338] sm:$0xff] }
 0x31e   : > { %5698 = vmatpush1.bf16.msra.mxu0 %v7168_v37  ;;  %5956 = vmatpush1.bf16.msra.mxu1 %v7170_v38  ;;  %v883_v37 = vld [vmem:[#allocation5 + $0x11d8] sm:$0xff] }
 0x31f   : > { %5710 = vmatprep.subr.bf16.mxu0 %v7177_v39  ;;  %5968 = vmatprep.subr.bf16.mxu1 %v7179_v40  ;;  %v887_v38 = vld [vmem:[#allocation5 + $0x11f8] sm:$0xff]  ;;  %v7224_v39 = vcombine.low %v874_v27, %v878_v28  ;;  %v7226_v40 = vcombine.low %v875_v29, %v879_v30  ;;  %v930_v27 = vld [vmem:[#allocation5 + $0x1350] sm:$0xff] }
 0x320   : > { %v7235_v42 = vcombine.high %v883_v37, %v887_v38  ;;  %v934_v28 = vld [vmem:[#allocation5 + $0x1370] sm:$0xff]  ;;  %v931_v29 = vld [vmem:[#allocation5 + $0x1358] sm:$0xff] }
 0x321   : > { %5700 = vmatmul.mubr.bf16.vlgmr.msra.gmra.mrb[4].mxu0 %v7934_v51  ;;  %5958 = vmatmul.mubr.bf16.vlgmr.msra.gmra.mrb[4].mxu1 %v7934_v51  ;;  %v898_v51 = vld [vmem:[#allocation5 + $0x1250] sm:$0xff]  ;;  %v935_v30 = vld [vmem:[#allocation5 + $0x1378] sm:$0xff] }
 0x322   : > { %5711 = vmatpush1.bf16.msra.mxu0 %v7176_v45  ;;  %5969 = vmatpush1.bf16.msra.mxu1 %v7178_v46  ;;  %v891_v45 = vld [vmem:[#allocation5 + $0x1218] sm:$0xff] }
 0x323   : > { %5712 = vmatprep.subr.bf16.mxu0 %v7185_v47  ;;  %5970 = vmatprep.subr.bf16.mxu1 %v7187_v48  ;;  %v895_v46 = vld [vmem:[#allocation5 + $0x1238] sm:$0xff]  ;;  %v7232_v47 = vcombine.low %v882_v35, %v886_v36  ;;  %v7234_v48 = vcombine.low %v883_v37, %v887_v38  ;;  %v938_v35 = vld [vmem:[#allocation5 + $0x1390] sm:$0xff] }
 0x324   : > { %5742 = vmatprep.mubr.bf16.mxu0 %v7935_v60  ;;  %6000 = vmatprep.mubr.bf16.mxu1 %v7935_v60  ;;  %v7243_v50 = vcombine.high %v891_v45, %v895_v46  ;;  %v910_v60 = vld [vmem:[#allocation5 + $0x12b0] sm:$0xff]  ;;  %v939_v37 = vld [vmem:[#allocation5 + $0x1398] sm:$0xff] }
 0x325   : > { %v942_v36 = vld [vmem:[#allocation5 + $0x13b0] sm:$0xff]  ;;  %v943_v38 = vld [vmem:[#allocation5 + $0x13b8] sm:$0xff] }
 0x326   : > { %5713 = vmatpush1.bf16.msra.mxu0 %v7184_v54  ;;  %5971 = vmatpush1.bf16.msra.mxu1 %v7186_v55  ;;  %v903_v54 = vld [vmem:[#allocation5 + $0x1278] sm:$0xff]  ;;  %v7240_v55 = vcombine.low %v890_v43, %v894_v44  ;;  %v946_v43 = vld [vmem:[#allocation5 + $0x13d0] sm:$0xff] }
 0x327   : > { %5714 = vmatprep.subr.bf16.mxu0 %v7193_v56  ;;  %5972 = vmatprep.subr.bf16.mxu1 %v7195_v57  ;;  %v7242_v56 = vcombine.low %v891_v45, %v895_v46  ;;  %v7249_v57 = vcombine.high %v898_v51, %v902_v52  ;;  %v7251_v58 = vcombine.high %v899_v53, %v903_v54  ;;  %v950_v44 = vld [vmem:[#allocation5 + $0x13f0] sm:$0xff]  ;;  %v947_v45 = vld [vmem:[#allocation5 + $0x13d8] sm:$0xff] }
 0x328   : > { %v951_v46 = vld [vmem:[#allocation5 + $0x13f8] sm:$0xff] }
 0x32a   : > { %5715 = vmatpush1.bf16.msra.mxu0 %v7192_v63  ;;  %5973 = vmatpush1.bf16.msra.mxu1 %v7194_v0  ;;  %v7248_v63 = vcombine.low %v898_v51, %v902_v52  ;;  %v7250_v0 = vcombine.low %v899_v53, %v903_v54  ;;  %v954_v51 = vld [vmem:[#allocation5 + $0x1410] sm:$0xff]  ;;  %v955_v53 = vld [vmem:[#allocation5 + $0x1418] sm:$0xff] }
 0x32b   : > { %5716 = vmatprep.subr.bf16.mxu0 %v7201_v1  ;;  %5974 = vmatprep.subr.bf16.mxu1 %v7203_v2  ;;  %v7257_v1 = vcombine.high %v906_v59, %v910_v60  ;;  %v7259_v2 = vcombine.high %v907_v61, %v911_v62  ;;  %v958_v52 = vld [vmem:[#allocation5 + $0x1430] sm:$0xff]  ;;  %v959_v54 = vld [vmem:[#allocation5 + $0x1438] sm:$0xff] }
 0x32e   : > { %5717 = vmatpush1.bf16.msra.mxu0 %v7200_v7  ;;  %5975 = vmatpush1.bf16.msra.mxu1 %v7202_v9  ;;  %v7256_v7 = vcombine.low %v906_v59, %v910_v60  ;;  %v7258_v9 = vcombine.low %v907_v61, %v911_v62  ;;  %v962_v59 = vld [vmem:[#allocation5 + $0x1450] sm:$0xff]  ;;  %v963_v61 = vld [vmem:[#allocation5 + $0x1458] sm:$0xff] }
 0x32f   : > { %5718 = vmatprep.subr.bf16.mxu0 %v7209_v10  ;;  %5976 = vmatprep.subr.bf16.mxu1 %v7211_v11  ;;  %v7265_v10 = vcombine.high %v914_v3, %v918_v4  ;;  %v7267_v11 = vcombine.high %v915_v5, %v919_v6  ;;  %v966_v60 = vld [vmem:[#allocation5 + $0x1470] sm:$0xff]  ;;  %v967_v62 = vld [vmem:[#allocation5 + $0x1478] sm:$0xff] }
 0x332   : > { %5719 = vmatpush1.bf16.msra.mxu0 %v7208_v22  ;;  %5977 = vmatpush1.bf16.msra.mxu1 %v7210_v24  ;;  %v7264_v22 = vcombine.low %v914_v3, %v918_v4  ;;  %v7266_v24 = vcombine.low %v915_v5, %v919_v6  ;;  %v970_v3 = vld [vmem:[#allocation5 + $0x1490] sm:$0xff]  ;;  %v971_v6 = vld [vmem:[#allocation5 + $0x1498] sm:$0xff] }
 0x333   : > { %5720 = vmatprep.subr.bf16.mxu0 %v7217_v25  ;;  %5978 = vmatprep.subr.bf16.mxu1 %v7219_v26  ;;  %v7273_v25 = vcombine.high %v922_v14, %v926_v15  ;;  %v7275_v26 = vcombine.high %v923_v18, %v927_v21  ;;  %v974_v4 = vld [vmem:[#allocation5 + $0x14b0] sm:$0xff] }
 0x334   : > { %v7936_v5 = vld [vmem:[%s8413_s8 + $0x20] ss:$48 sps:$4 sm:$0xff]  }
 0x336   : > { %5721 = vmatpush1.bf16.msra.mxu0 %v7216_v31  ;;  %5979 = vmatpush1.bf16.msra.mxu1 %v7218_v32  ;;  %v7272_v31 = vcombine.low %v922_v14, %v926_v15  ;;  %v7274_v32 = vcombine.low %v923_v18, %v927_v21  ;;  %v978_v15 = vld [vmem:[#allocation5 + $0x14d0] sm:$0xff]  ;;  %v7937_v21 = vld [vmem:[%s8413_s8 + $0x2c] ss:$48 sps:$4 sm:$0xff]  }
 0x337   : > { %5722 = vmatprep.subr.bf16.mxu0 %v7225_v33  ;;  %5980 = vmatprep.subr.bf16.mxu1 %v7227_v34  ;;  %v7281_v33 = vcombine.high %v930_v27, %v934_v28  ;;  %v7283_v34 = vcombine.high %v931_v29, %v935_v30  ;;  %v982_v18 = vld [vmem:[#allocation5 + $0x14f0] sm:$0xff] }
 0x33a   : > { %5723 = vmatpush1.bf16.msra.mxu0 %v7224_v39  ;;  %5981 = vmatpush1.bf16.msra.mxu1 %v7226_v40  ;;  %v7280_v39 = vcombine.low %v930_v27, %v934_v28  ;;  %v7282_v40 = vcombine.low %v931_v29, %v935_v30  ;;  %v7329_v27 = vcombine.high %v978_v15, %v982_v18  ;;  %v986_v29 = vld [vmem:[#allocation5 + $0x1510] sm:$0xff] }
 0x33b   : > { %5724 = vmatprep.subr.bf16.mxu0 %v7233_v41  ;;  %5982 = vmatprep.subr.bf16.mxu1 %v7235_v42  ;;  %v7289_v41 = vcombine.high %v938_v35, %v942_v36  ;;  %v7291_v42 = vcombine.high %v939_v37, %v943_v38  ;;  %v990_v30 = vld [vmem:[#allocation5 + $0x1530] sm:$0xff] }
 0x33e   : > { %5725 = vmatpush1.bf16.msra.mxu0 %v7232_v47  ;;  %5983 = vmatpush1.bf16.msra.mxu1 %v7234_v48  ;;  %v7288_v47 = vcombine.low %v938_v35, %v942_v36  ;;  %v7290_v48 = vcombine.low %v939_v37, %v943_v38  ;;  %v7337_v35 = vcombine.high %v986_v29, %v990_v30  ;;  %v994_v37 = vld [vmem:[#allocation5 + $0x1550] sm:$0xff] }
 0x33f   : > { %5726 = vmatprep.subr.bf16.mxu0 %v7241_v49  ;;  %5984 = vmatprep.subr.bf16.mxu1 %v7243_v50  ;;  %v7297_v49 = vcombine.high %v946_v43, %v950_v44  ;;  %v7299_v50 = vcombine.high %v947_v45, %v951_v46  ;;  %v998_v38 = vld [vmem:[#allocation5 + $0x1570] sm:$0xff] }
 0x342   : > { %5727 = vmatpush1.bf16.msra.mxu0 %v7240_v55  ;;  %5985 = vmatpush1.bf16.msra.mxu1 %v7242_v56  ;;  %v7296_v55 = vcombine.low %v946_v43, %v950_v44  ;;  %v7298_v56 = vcombine.low %v947_v45, %v951_v46  ;;  %v7345_v43 = vcombine.high %v994_v37, %v998_v38  ;;  %v1002_v45 = vld [vmem:[#allocation5 + $0x1590] sm:$0xff] }
 0x343   : > { %5728 = vmatprep.subr.bf16.mxu0 %v7249_v57  ;;  %5986 = vmatprep.subr.bf16.mxu1 %v7251_v58  ;;  %v7305_v57 = vcombine.high %v954_v51, %v958_v52  ;;  %v7307_v58 = vcombine.high %v955_v53, %v959_v54  ;;  %v1006_v46 = vld [vmem:[#allocation5 + $0x15b0] sm:$0xff] }
 0x346   : > { %5729 = vmatpush1.bf16.msra.mxu0 %v7248_v63  ;;  %5987 = vmatpush1.bf16.msra.mxu1 %v7250_v0  ;;  %v7304_v63 = vcombine.low %v954_v51, %v958_v52  ;;  %v7306_v0 = vcombine.low %v955_v53, %v959_v54  ;;  %v7353_v51 = vcombine.high %v1002_v45, %v1006_v46  ;;  %v1010_v53 = vld [vmem:[#allocation5 + $0x15d0] sm:$0xff] }
 0x347   : > { %5730 = vmatprep.subr.bf16.mxu0 %v7257_v1  ;;  %5988 = vmatprep.subr.bf16.mxu1 %v7259_v2  ;;  %v7313_v1 = vcombine.high %v962_v59, %v966_v60  ;;  %v7315_v2 = vcombine.high %v963_v61, %v967_v62  ;;  %v1014_v54 = vld [vmem:[#allocation5 + $0x15f0] sm:$0xff] }
 0x34a   : > { %5731 = vmatpush1.bf16.msra.mxu0 %v7256_v7  ;;  %5989 = vmatpush1.bf16.msra.mxu1 %v7258_v9  ;;  %v975_v7 = vld [vmem:[#allocation5 + $0x14b8] sm:$0xff]  ;;  %v7312_v9 = vcombine.low %v962_v59, %v966_v60  ;;  %v7361_v59 = vcombine.high %v1010_v53, %v1014_v54 }
 0x34b   : > { %5732 = vmatprep.subr.bf16.mxu0 %v7265_v10  ;;  %5990 = vmatprep.subr.bf16.mxu1 %v7267_v11  ;;  %v7314_v10 = vcombine.low %v963_v61, %v967_v62  ;;  %v7321_v11 = vcombine.high %v970_v3, %v974_v4  ;;  %v7323_v14 = vcombine.high %v971_v6, %v975_v7  ;;  %v1018_v61 = vld [vmem:[#allocation5 + $0x1610] sm:$0xff] }
 0x34c   : > { %v1022_v62 = vld [vmem:[#allocation5 + $0x1630] sm:$0xff] }
 0x34e   : > { %5733 = vmatpush1.bf16.msra.mxu0 %v7264_v22  ;;  %5991 = vmatpush1.bf16.msra.mxu1 %v7266_v24  ;;  %v979_v22 = vld [vmem:[#allocation5 + $0x14d8] sm:$0xff] }
 0x34f   : > { %5734 = vmatprep.subr.bf16.mxu0 %v7273_v25  ;;  %5992 = vmatprep.subr.bf16.mxu1 %v7275_v26  ;;  %v983_v24 = vld [vmem:[#allocation5 + $0x14f8] sm:$0xff]  ;;  %v7320_v25 = vcombine.low %v970_v3, %v974_v4  ;;  %v7322_v26 = vcombine.low %v971_v6, %v975_v7  ;;  %v7369_v3 = vcombine.high %v1018_v61, %v1022_v62  ;;  %v1030_v6 = vld [vmem:[#allocation5 + $0x1670] sm:$0xff] }
 0x350   : > { %v7331_v28 = vcombine.high %v979_v22, %v983_v24  ;;  %v1027_v7 = vld [vmem:[#allocation5 + $0x1658] sm:$0xff] }
 0x352   : > { %5735 = vmatpush1.bf16.msra.mxu0 %v7272_v31  ;;  %5993 = vmatpush1.bf16.msra.mxu1 %v7274_v32  ;;  %v987_v31 = vld [vmem:[#allocation5 + $0x1518] sm:$0xff] }
 0x353   : > { %5736 = vmatprep.subr.bf16.mxu0 %v7281_v33  ;;  %5994 = vmatprep.subr.bf16.mxu1 %v7283_v34  ;;  %v991_v32 = vld [vmem:[#allocation5 + $0x1538] sm:$0xff]  ;;  %v7328_v33 = vcombine.low %v978_v15, %v982_v18  ;;  %v7330_v34 = vcombine.low %v979_v22, %v983_v24  ;;  %v1034_v18 = vld [vmem:[#allocation5 + $0x1690] sm:$0xff] }
 0x354   : > { %v7339_v36 = vcombine.high %v987_v31, %v991_v32  ;;  %v1035_v22 = vld [vmem:[#allocation5 + $0x1698] sm:$0xff] }
 0x355   : > { %v1039_v24 = vld [vmem:[#allocation5 + $0x16b8] sm:$0xff] }
 0x356   : > { %5737 = vmatpush1.bf16.msra.mxu0 %v7280_v39  ;;  %5995 = vmatpush1.bf16.msra.mxu1 %v7282_v40  ;;  %v995_v39 = vld [vmem:[#allocation5 + $0x1558] sm:$0xff] }
 0x357   : > { %5738 = vmatprep.subr.bf16.mxu0 %v7289_v41  ;;  %5996 = vmatprep.subr.bf16.mxu1 %v7291_v42  ;;  %v999_v40 = vld [vmem:[#allocation5 + $0x1578] sm:$0xff]  ;;  %v7336_v41 = vcombine.low %v986_v29, %v990_v30  ;;  %v7338_v42 = vcombine.low %v987_v31, %v991_v32  ;;  %v1042_v29 = vld [vmem:[#allocation5 + $0x16d0] sm:$0xff] }
 0x358   : > { %v7347_v44 = vcombine.high %v995_v39, %v999_v40  ;;  %v1046_v30 = vld [vmem:[#allocation5 + $0x16f0] sm:$0xff]  ;;  %v1043_v31 = vld [vmem:[#allocation5 + $0x16d8] sm:$0xff] }
 0x359   : > { %v1047_v32 = vld [vmem:[#allocation5 + $0x16f8] sm:$0xff] }
 0x35a   : > { %5739 = vmatpush1.bf16.msra.mxu0 %v7288_v47  ;;  %5997 = vmatpush1.bf16.msra.mxu1 %v7290_v48  ;;  %v1003_v47 = vld [vmem:[#allocation5 + $0x1598] sm:$0xff] }
 0x35b   : > { %5740 = vmatprep.subr.bf16.mxu0 %v7297_v49  ;;  %5998 = vmatprep.subr.bf16.mxu1 %v7299_v50  ;;  %v1007_v48 = vld [vmem:[#allocation5 + $0x15b8] sm:$0xff]  ;;  %v7344_v49 = vcombine.low %v994_v37, %v998_v38  ;;  %v7346_v50 = vcombine.low %v995_v39, %v999_v40  ;;  %v1050_v37 = vld [vmem:[#allocation5 + $0x1710] sm:$0xff] }
 0x35c   : > { %v7355_v52 = vcombine.high %v1003_v47, %v1007_v48  ;;  %v1054_v38 = vld [vmem:[#allocation5 + $0x1730] sm:$0xff]  ;;  %v1051_v39 = vld [vmem:[#allocation5 + $0x1718] sm:$0xff] }
 0x35d   : > { %v1055_v40 = vld [vmem:[#allocation5 + $0x1738] sm:$0xff] }
 0x35e   : > { %5741 = vmatpush1.bf16.msra.mxu0 %v7296_v55  ;;  %5999 = vmatpush1.bf16.msra.mxu1 %v7298_v56  ;;  %v1011_v55 = vld [vmem:[#allocation5 + $0x15d8] sm:$0xff] }
 0x35f   : > { %5753 = vmatprep.subr.bf16.mxu0 %v7305_v57  ;;  %6011 = vmatprep.subr.bf16.mxu1 %v7307_v58  ;;  %v1015_v56 = vld [vmem:[#allocation5 + $0x15f8] sm:$0xff]  ;;  %v7352_v57 = vcombine.low %v1002_v45, %v1006_v46  ;;  %v7354_v58 = vcombine.low %v1003_v47, %v1007_v48  ;;  %v1058_v45 = vld [vmem:[#allocation5 + $0x1750] sm:$0xff]  ;;  %v1082_v47 = vlaneseq }
 0x360   : > { %v7363_v60 = vcombine.high %v1011_v55, %v1015_v56  ;;  %v1062_v46 = vld [vmem:[#allocation5 + $0x1770] sm:$0xff]  ;;  %v1059_v48 = vld [vmem:[#allocation5 + $0x1758] sm:$0xff] }
 0x361   : > { %5743 = vmatmul.mubr.bf16.vlgmr.msra.gmra.mrb[4].mxu0 %v7936_v5  ;;  %6001 = vmatmul.mubr.bf16.vlgmr.msra.gmra.mrb[4].mxu1 %v7936_v5  ;;  %v1026_v5 = vld [vmem:[#allocation5 + $0x1650] sm:$0xff] }
 0x362   : > { %5754 = vmatpush1.bf16.msra.mxu0 %v7304_v63  ;;  %6012 = vmatpush1.bf16.msra.mxu1 %v7306_v0  ;;  %v1019_v63 = vld [vmem:[#allocation5 + $0x1618] sm:$0xff] }
 0x363   : > { %5755 = vmatprep.subr.bf16.mxu0 %v7313_v1  ;;  %6013 = vmatprep.subr.bf16.mxu1 %v7315_v2  ;;  %v1023_v0 = vld [vmem:[#allocation5 + $0x1638] sm:$0xff]  ;;  %v7360_v1 = vcombine.low %v1010_v53, %v1014_v54  ;;  %v7362_v2 = vcombine.low %v1011_v55, %v1015_v56  ;;  %v1066_v54 = vld [vmem:[#allocation5 + $0x1790] sm:$0xff]  ;;  %v8466_v56 = vshrl.u32 %v1082_v47, 7 }
 0x364   : > { %5785 = vmatprep.mubr.bf16.mxu0 %v7937_v21  ;;  %6043 = vmatprep.mubr.bf16.mxu1 %v7937_v21  ;;  %v7371_v4 = vcombine.high %v1019_v63, %v1023_v0  ;;  %v1038_v21 = vld [vmem:[#allocation5 + $0x16b0] sm:$0xff]  ;;  %v7938_v47 = vld [vmem:[%s8413_s8 + $0x28] ss:$48 sps:$4 sm:$0xff]  }
 0x365   : > { %v1070_v55 = vld [vmem:[#allocation5 + $0x17b0] sm:$0xff] }
 0x366   : > { %5756 = vmatpush1.bf16.msra.mxu0 %v7312_v9  ;;  %6014 = vmatpush1.bf16.msra.mxu1 %v7314_v10  ;;  %v1031_v9 = vld [vmem:[#allocation5 + $0x1678] sm:$0xff]  ;;  %v7368_v10 = vcombine.low %v1018_v61, %v1022_v62  ;;  %v7417_v61 = vcombine.high %v1066_v54, %v1070_v55 }
 0x367   : > { %5757 = vmatprep.subr.bf16.mxu0 %v7321_v11  ;;  %6015 = vmatprep.subr.bf16.mxu1 %v7323_v14  ;;  %v7370_v11 = vcombine.low %v1019_v63, %v1023_v0  ;;  %v7377_v14 = vcombine.high %v1026_v5, %v1030_v6  ;;  %v7379_v15 = vcombine.high %v1027_v7, %v1031_v9  ;;  %v1074_v63 = vld [vmem:[#allocation5 + $0x17d0] sm:$0xff] }
 0x368   : > { %v1078_v0 = vld [vmem:[#allocation5 + $0x17f0] sm:$0xff] }
 0x36a   : > { %5758 = vmatpush1.bf16.msra.mxu0 %v7320_v25  ;;  %6016 = vmatpush1.bf16.msra.mxu1 %v7322_v26  ;;  %v7376_v25 = vcombine.low %v1026_v5, %v1030_v6  ;;  %v7378_v26 = vcombine.low %v1027_v7, %v1031_v9  ;;  %v1096_v5 = vsub.s32 3, %v8466_v56  ;;  %v7416_v6 = vcombine.low %v1066_v54, %v1070_v55  ;;  %v6074_v54 = vld [vmem:[#allocation8 + $0x20] sm:$0xff]  ;;  %v6075_v55 = vld [vmem:[#allocation8 + $0x28] sm:$0xff] }
 0x36b   : > { %5759 = vmatprep.subr.bf16.mxu0 %v7329_v27  ;;  %6017 = vmatprep.subr.bf16.mxu1 %v7331_v28  ;;  %v7385_v27 = vcombine.high %v1034_v18, %v1038_v21  ;;  %v7387_v28 = vcombine.high %v1035_v22, %v1039_v24  ;;  %v7425_v9 = vcombine.high %v1074_v63, %v1078_v0 }
 0x36e   : > { %5760 = vmatpush1.bf16.msra.mxu0 %v7328_v33  ;;  %6018 = vmatpush1.bf16.msra.mxu1 %v7330_v34  ;;  %v7384_v33 = vcombine.low %v1034_v18, %v1038_v21  ;;  %v7386_v34 = vcombine.low %v1035_v22, %v1039_v24  ;;  %v6118_v18 = vld [vmem:[#allocation8 + $0x180] sm:$0xff]  ;;  %v6119_v21 = vld [vmem:[#allocation8 + $0x188] sm:$0xff]  ;;  %v7424_v24 = vcombine.low %v1074_v63, %v1078_v0  ;;  %v6125_v63 = vld [vmem:[#allocation8 + $0x1b8] sm:$0xff] }
 0x36f   : > { %5761 = vmatprep.subr.bf16.mxu0 %v7337_v35  ;;  %6019 = vmatprep.subr.bf16.mxu1 %v7339_v36  ;;  %v7393_v35 = vcombine.high %v1042_v29, %v1046_v30  ;;  %v7395_v36 = vcombine.high %v1043_v31, %v1047_v32  ;;  %v7597_v0 = vpack.c.bf16 %v6075_v55, %v6074_v54  ;;  %v6115_v54 = vld [vmem:[#allocation8 + $0x168] sm:$0xff]  ;;  %v6100_v55 = vld [vmem:[#allocation8 + $0xf0] sm:$0xff] }
 0x372   : > { %5762 = vmatpush1.bf16.msra.mxu0 %v7336_v41  ;;  %6020 = vmatpush1.bf16.msra.mxu1 %v7338_v42  ;;  %v7392_v41 = vcombine.low %v1042_v29, %v1046_v30  ;;  %v7394_v42 = vcombine.low %v1043_v31, %v1047_v32  ;;  %v7619_v29 = vpack.c.bf16 %v6119_v21, %v6118_v18  ;;  %v6102_v30 = vld [vmem:[#allocation8 + $0x100] sm:$0xff]  ;;  %v6103_v31 = vld [vmem:[#allocation8 + $0x108] sm:$0xff] }
 0x373   : > { %5763 = vmatprep.subr.bf16.mxu0 %v7345_v43  ;;  %6021 = vmatprep.subr.bf16.mxu1 %v7347_v44  ;;  %v7401_v43 = vcombine.high %v1050_v37, %v1054_v38  ;;  %v7403_v44 = vcombine.high %v1051_v39, %v1055_v40  ;;  %v6127_v18 = vld [vmem:[#allocation8 + $0x1c8] sm:$0xff] }
 0x376   : > { %5764 = vmatpush1.bf16.msra.mxu0 %v7344_v49  ;;  %6022 = vmatpush1.bf16.msra.mxu1 %v7346_v50  ;;  %v1063_v49 = vld [vmem:[#allocation5 + $0x1778] sm:$0xff]  ;;  %v7400_v50 = vcombine.low %v1050_v37, %v1054_v38  ;;  %v6121_v38 = vld [vmem:[#allocation8 + $0x198] sm:$0xff] }
 0x377   : > { %5765 = vmatprep.subr.bf16.mxu0 %v7353_v51  ;;  %6023 = vmatprep.subr.bf16.mxu1 %v7355_v52  ;;  %v7402_v51 = vcombine.low %v1051_v39, %v1055_v40  ;;  %v7409_v52 = vcombine.high %v1058_v45, %v1062_v46  ;;  %v7411_v53 = vcombine.high %v1059_v48, %v1063_v49  ;;  %v6120_v37 = vld [vmem:[#allocation8 + $0x190] sm:$0xff] }
 0x378   : > { %v7621_v39 = vpack.c.bf16 %v6103_v31, %v6102_v30  ;;  %v6072_v40 = vld [vmem:[#allocation8 + $0x10] sm:$0xff]  ;;  %v6111_v30 = vld [vmem:[#allocation8 + $0x148] sm:$0xff] }
 0x379   : > { %v6096_v31 = vld [vmem:[#allocation8 + $0xd0] sm:$0xff] }
 0x37a   : > { %5766 = vmatpush1.bf16.msra.mxu0 %v7352_v57  ;;  %6024 = vmatpush1.bf16.msra.mxu1 %v7354_v58  ;;  %v1067_v57 = vld [vmem:[#allocation5 + $0x1798] sm:$0xff] }
 0x37b   : > { %5767 = vmatprep.subr.bf16.mxu0 %v7361_v59  ;;  %6025 = vmatprep.subr.bf16.mxu1 %v7363_v60  ;;  %v1071_v58 = vld [vmem:[#allocation5 + $0x17b8] sm:$0xff]  ;;  %v7408_v59 = vcombine.low %v1058_v45, %v1062_v46  ;;  %v7410_v60 = vcombine.low %v1059_v48, %v1063_v49  ;;  %v6091_v45 = vld [vmem:[#allocation8 + $0xa8] sm:$0xff]  ;;  %v6122_v48 = vld [vmem:[#allocation8 + $0x1a0] sm:$0xff] }
 0x37c   : > { %v7419_v62 = vcombine.high %v1067_v57, %v1071_v58  ;;  %v7418_v7 = vcombine.low %v1067_v57, %v1071_v58  ;;  %v6123_v49 = vld [vmem:[#allocation8 + $0x1a8] sm:$0xff]  ;;  %v6106_v57 = vld [vmem:[#allocation8 + $0x120] sm:$0xff] }
 0x37d   : > { %v7627_v58 = vpack.c.bf16 %v6123_v49, %v6122_v48 }
 0x37e   : > { %5768 = vmatpush1.bf16.msra.mxu0 %v7360_v1  ;;  %6026 = vmatpush1.bf16.msra.mxu1 %v7362_v2  ;;  %v1088_v1 = vsub.s32 1, %v8466_v56  ;;  %v1075_v2 = vld [vmem:[#allocation5 + $0x17d8] sm:$0xff] }
 0x37f   : > { %5769 = vmatprep.subr.bf16.mxu0 %v7369_v3  ;;  %6027 = vmatprep.subr.bf16.mxu1 %v7371_v4  ;;  %v1079_v3 = vld [vmem:[#allocation5 + $0x17f8] sm:$0xff]  ;;  %v8469_v4 = vld [vmem:[#allocation7] sm:$0xff] }
 0x380   : > { %v8476_v22 = vrot.slane %v8469_v4, %v1096_v5  ;;  %v6077_v5 = vld [vmem:[#allocation8 + $0x38] sm:$0xff] }
 0x382   : > { %5770 = vmatpush1.bf16.msra.mxu0 %v7368_v10  ;;  %6028 = vmatpush1.bf16.msra.mxu1 %v7370_v11  ;;  %v7427_v10 = vcombine.high %v1075_v2, %v1079_v3  ;;  %v6086_v11 = vld [vmem:[#allocation8 + $0x80] sm:$0xff] }
 0x383   : > { %5771 = vmatprep.subr.bf16.mxu0 %v7377_v14  ;;  %6029 = vmatprep.subr.bf16.mxu1 %v7379_v15  ;;  %v6087_v14 = vld [vmem:[#allocation8 + $0x88] sm:$0xff]  ;;  %v8473_v15 = vrot.slane %v8469_v4, %v1088_v1 }
 0x385   : > { %v7716_v32 = vadd.f32 %v8450_v13, %v8473_v15  ;;  %v6090_v13 = vld [vmem:[#allocation8 + $0xa0] sm:$0xff] }
 0x386   : > { %5772 = vmatpush1.bf16.msra.mxu0 %v7376_v25  ;;  %6030 = vmatpush1.bf16.msra.mxu1 %v7378_v26  ;;  %v7426_v25 = vcombine.low %v1075_v2, %v1079_v3  ;;  %v7587_v26 = vpack.c.bf16 %v6087_v14, %v6086_v11  ;;  %v6076_v3 = vld [vmem:[#allocation8 + $0x30] sm:$0xff]  ;;  %v6095_v11 = vld [vmem:[#allocation8 + $0xc8] sm:$0xff]  ;;  %v6126_v14 = vld [vmem:[#allocation8 + $0x1c0] sm:$0xff] }
 0x387   : > { %5773 = vmatprep.subr.bf16.mxu0 %v7385_v27  ;;  %6031 = vmatprep.subr.bf16.mxu1 %v7387_v28  ;;  %v6070_v27 = vld [vmem:[#allocation8] sm:$0xff]  ;;  %v6071_v28 = vld [vmem:[#allocation8 + $0x8] sm:$0xff]  ;;  %v6055_v46 = vmax.f32 %v7716_v32, 0.0  ;;  %v7601_v21 = vpack.c.bf16 %v6077_v5, %v6076_v3  ;;  %v6097_v32 = vld [vmem:[#allocation8 + $0xd8] sm:$0xff] }
 0x388   : > { %v6116_v3 = vld [vmem:[#allocation8 + $0x170] sm:$0xff] }
 0x38a   : > { %5774 = vmatpush1.bf16.msra.mxu0 %v7384_v33  ;;  %6032 = vmatpush1.bf16.msra.mxu1 %v7386_v34  ;;  %v6088_v33 = vld [vmem:[#allocation8 + $0x90] sm:$0xff]  ;;  %v6089_v34 = vld [vmem:[#allocation8 + $0x98] sm:$0xff] }
 0x38b   : > { %5775 = vmatprep.subr.bf16.mxu0 %v7393_v35  ;;  %6033 = vmatprep.subr.bf16.mxu1 %v7395_v36  ;;  %v7720_v35 = vadd.f32 %v8452_v16, %v8476_v22  ;;  %v7589_v36 = vpack.c.bf16 %v6071_v28, %v6070_v27  ;;  %v7623_v16 = vpack.c.bf16 %v6121_v38, %v6120_v37  ;;  %v6079_v27 = vld [vmem:[#allocation8 + $0x48] sm:$0xff]  ;;  %v6110_v28 = vld [vmem:[#allocation8 + $0x140] sm:$0xff]  ;;  %v6080_v38 = vld [vmem:[#allocation8 + $0x50] sm:$0xff] }
 0x38c   : > { %v7607_v37 = vpack.c.bf16 %v6097_v32, %v6096_v31  ;;  %v7722_v31 = vadd.f32 %v8460_v23, %v8476_v22  ;;  %v6152_v32 = vld [vmem:[#allocation8 + $0x290] sm:$0xff]  ;;  %v6137_v22 = vld [vmem:[#allocation8 + $0x218] sm:$0xff] }
 0x38d   : > { %v6136_v23 = vld [vmem:[#allocation8 + $0x210] sm:$0xff] }
 0x38e   : > { %5776 = vmatpush1.bf16.msra.mxu0 %v7392_v41  ;;  %6034 = vmatpush1.bf16.msra.mxu1 %v7394_v42  ;;  %v6073_v41 = vld [vmem:[#allocation8 + $0x18] sm:$0xff]  ;;  %v6104_v42 = vld [vmem:[#allocation8 + $0x110] sm:$0xff] }
 0x38f   : > { %5777 = vmatprep.subr.bf16.mxu0 %v7401_v43  ;;  %6035 = vmatprep.subr.bf16.mxu1 %v7403_v44  ;;  %v7591_v43 = vpack.c.bf16 %v6089_v34, %v6088_v33  ;;  %v6105_v44 = vld [vmem:[#allocation8 + $0x118] sm:$0xff]  ;;  %v6128_v33 = vld [vmem:[#allocation8 + $0x1d0] sm:$0xff] }
 0x390   : > { %v6129_v34 = vld [vmem:[#allocation8 + $0x1d8] sm:$0xff] }
 0x392   : > { %5778 = vmatpush1.bf16.msra.mxu0 %v7400_v50  ;;  %6036 = vmatpush1.bf16.msra.mxu1 %v7402_v51  ;;  %v6057_v50 = vmax.f32 %v7720_v35, 0.0  ;;  %v7593_v51 = vpack.c.bf16 %v6073_v41, %v6072_v40  ;;  %v6112_v40 = vld [vmem:[#allocation8 + $0x150] sm:$0xff]  ;;  %v7639_v41 = vpack.c.bf16 %v6129_v34, %v6128_v33  ;;  %v6153_v33 = vld [vmem:[#allocation8 + $0x298] sm:$0xff] }
 0x393   : > { %5779 = vmatprep.subr.bf16.mxu0 %v7409_v52  ;;  %6037 = vmatprep.subr.bf16.mxu1 %v7411_v53  ;;  %v7625_v52 = vpack.c.bf16 %v6105_v44, %v6104_v42  ;;  %v7595_v53 = vpack.c.bf16 %v6091_v45, %v6090_v13  ;;  %v6113_v42 = vld [vmem:[#allocation8 + $0x158] sm:$0xff]  ;;  %v6099_v44 = vld [vmem:[#allocation8 + $0xe8] sm:$0xff]  ;;  %v6130_v13 = vld [vmem:[#allocation8 + $0x1e0] sm:$0xff] }
 0x394   : > { %v6131_v45 = vld [vmem:[#allocation8 + $0x1e8] sm:$0xff]  ;;  %v7641_v48 = vpack.c.bf16 %v6113_v42, %v6112_v40  ;;  %v6185_v34 = vld [vmem:[#allocation8 + $0x398] sm:$0xff]  ;;  %v7655_v40 = vpack.c.bf16 %v6153_v33, %v6152_v32  ;;  %v6065_v42 = vmax.f32 %v7722_v31, 0.0  ;;  %v6144_v33 = vld [vmem:[#allocation8 + $0x250] sm:$0xff] }
 0x396   : > { %5780 = vmatpush1.bf16.msra.mxu0 %v7408_v59  ;;  %6038 = vmatpush1.bf16.msra.mxu1 %v7410_v60  ;;  %v6107_v59 = vld [vmem:[#allocation8 + $0x128] sm:$0xff]  ;;  %v6092_v60 = vld [vmem:[#allocation8 + $0xb0] sm:$0xff] }
 0x397   : > { %5781 = vmatprep.subr.bf16.mxu0 %v7417_v61  ;;  %6039 = vmatprep.subr.bf16.mxu1 %v7419_v62  ;;  %v6093_v61 = vld [vmem:[#allocation8 + $0xb8] sm:$0xff]  ;;  %v6124_v62 = vld [vmem:[#allocation8 + $0x1b0] sm:$0xff]  ;;  %v7629_v1 = vpack.c.bf16 %v6107_v59, %v6106_v57 }
 0x398   : > { %v7599_v2 = vpack.c.bf16 %v6093_v61, %v6092_v60  ;;  %v6101_v57 = vld [vmem:[#allocation8 + $0xf8] sm:$0xff] }
 0x399   : > { %v6133_v59 = vld [vmem:[#allocation8 + $0x1f8] sm:$0xff] }
 0x39a   : > { %5782 = vmatpush1.bf16.msra.mxu0 %v7416_v6  ;;  %6040 = vmatpush1.bf16.msra.mxu1 %v7418_v7  ;;  %v6108_v6 = vld [vmem:[#allocation8 + $0x130] sm:$0xff]  ;;  %v7631_v7 = vpack.c.bf16 %v6125_v63, %v6124_v62 }
 0x39b   : > { %5783 = vmatprep.subr.bf16.mxu0 %v7425_v9  ;;  %6041 = vmatprep.subr.bf16.mxu1 %v7427_v10  ;;  %v6109_v9 = vld [vmem:[#allocation8 + $0x138] sm:$0xff]  ;;  %v6094_v10 = vld [vmem:[#allocation8 + $0xc0] sm:$0xff] }
 0x39e   : > { %5784 = vmatpush1.bf16.msra.mxu0 %v7424_v24  ;;  %6042 = vmatpush1.bf16.msra.mxu1 %v7426_v25  ;;  %v7633_v24 = vpack.c.bf16 %v6109_v9, %v6108_v6  ;;  %v7603_v25 = vpack.c.bf16 %v6095_v11, %v6094_v10  ;;  %v6117_v6 = vld [vmem:[#allocation8 + $0x178] sm:$0xff]  ;;  %v6151_v9 = vld [vmem:[#allocation8 + $0x288] sm:$0xff]  ;;  %v6182_v10 = vld [vmem:[#allocation8 + $0x380] sm:$0xff] }
 0x39f   : > { %7588 = vmatprep.subr.bf16.mxu0 %v7587_v26  ;;  %7620 = vmatprep.subr.bf16.mxu1 %v7619_v29  ;;  %v6078_v26 = vld [vmem:[#allocation8 + $0x40] sm:$0xff]  ;;  %v7635_v29 = vpack.c.bf16 %v6127_v18, %v6126_v14  ;;  %v6183_v11 = vld [vmem:[#allocation8 + $0x388] sm:$0xff] }
 0x3a0   : > { %v7605_v35 = vpack.c.bf16 %v6079_v27, %v6078_v26  ;;  %v7718_v26 = vadd.f32 %v8458_v20, %v8473_v15  ;;  %v7683_v27 = vpack.c.bf16 %v6183_v11, %v6182_v10 }
 0x3a1   : > { %5786 = vmatmul.mubr.bf16.vlgmr.msra.gmra.mrb[4].mxu0 %v7938_v47  ;;  %6044 = vmatmul.mubr.bf16.vlgmr.msra.gmra.mrb[4].mxu1 %v7938_v47 }
 0x3a2   : > { %7590 = vmatpush3.bf16.msra.mxu0 %v7589_v36  ;;  %6269 = vmatprep.mubr.f32.mxu0 %v6055_v46  ;;  %v7637_v36 = vpack.c.bf16 %v6111_v30, %v6110_v28  ;;  %v1084_v46 = vsub.s32 0, %v8466_v56  ;;  %v6134_v28 = vld [vmem:[#allocation8 + $0x200] sm:$0xff] }
 0x3a3   : > { %7622 = vmatpush3.bf16.msra.mxu1 %v7621_v39  ;;  %6344 = vmatprep.mubr.f32.mxu1 %v6057_v50  ;;  %v6081_v39 = vld [vmem:[#allocation8 + $0x58] sm:$0xff]  ;;  %v6082_v50 = vld [vmem:[#allocation8 + $0x60] sm:$0xff] }
 0x3a4   : > { %7592 = vmatprep.subr.bf16.mxu0 %v7591_v43  ;;  %7624 = vmatprep.subr.bf16.mxu1 %v7623_v16  ;;  %v6098_v43 = vld [vmem:[#allocation8 + $0xe0] sm:$0xff]  ;;  %v7609_v47 = vpack.c.bf16 %v6081_v39, %v6080_v38  ;;  %v1092_v16 = vsub.s32 2, %v8466_v56  ;;  %v1085_v60 = vrot.slane %v8469_v4, %v1084_v46  ;;  %v6063_v38 = vmax.f32 %v7718_v26, 0.0  ;;  %v6187_v46 = vld [vmem:[#allocation8 + $0x3a8] sm:$0xff] }
 0x3a5   : > { %v7611_v49 = vpack.c.bf16 %v6099_v44, %v6098_v43  ;;  %v6166_v30 = vld [vmem:[#allocation8 + $0x300] sm:$0xff]  ;;  %v6169_v44 = vld [vmem:[#allocation8 + $0x318] sm:$0xff]  ;;  %v6175_v26 = vld [vmem:[#allocation8 + $0x348] sm:$0xff] }
 0x3a6   : > { %7594 = vmatpush3.bf16.msra.mxu0 %v7593_v51  ;;  %v6083_v51 = vld [vmem:[#allocation8 + $0x68] sm:$0xff]  ;;  %v1093_v62 = vrot.slane %v8469_v4, %v1092_v16  ;;  %v7715_v14 = vadd.f32 %v8446_v8, %v1085_v60 }
 0x3a7   : > { %7626 = vmatpush3.bf16.msra.mxu1 %v7625_v52  ;;  %7596 = vmatprep.subr.bf16.mxu0 %v7595_v53  ;;  %v6114_v52 = vld [vmem:[#allocation8 + $0x160] sm:$0xff]  ;;  %v7643_v53 = vpack.c.bf16 %v6131_v45, %v6130_v13  ;;  %v7613_v61 = vpack.c.bf16 %v6083_v51, %v6082_v50  ;;  %v6167_v8 = vld [vmem:[#allocation8 + $0x308] sm:$0xff] }
 0x3a8   : > { %7628 = vmatprep.subr.bf16.mxu1 %v7627_v58  ;;  %v6132_v58 = vld [vmem:[#allocation8 + $0x1f0] sm:$0xff]  ;;  %v7645_v63 = vpack.c.bf16 %v6115_v54, %v6114_v52  ;;  %v7721_v15 = vadd.f32 %v8456_v19, %v1093_v62  ;;  %v7685_v39 = vpack.c.bf16 %v6167_v8, %v6166_v30  ;;  %v6154_v13 = vld [vmem:[#allocation8 + $0x2a0] sm:$0xff]  ;;  %v6155_v45 = vld [vmem:[#allocation8 + $0x2a8] sm:$0xff]  ;;  %v7657_v19 = vpack.c.bf16 %v6137_v22, %v6136_v23 }
 0x3a9   : > { %v7647_v5 = vpack.c.bf16 %v6133_v59, %v6132_v58  ;;  %v6138_v50 = vld [vmem:[#allocation8 + $0x220] sm:$0xff]  ;;  %v6139_v51 = vld [vmem:[#allocation8 + $0x228] sm:$0xff]  ;;  %v6188_v58 = vld [vmem:[#allocation8 + $0x3b0] sm:$0xff] }
 0x3aa   : > { %7598 = vmatpush3.bf16.msra.mxu0 %v7597_v0  ;;  %v7615_v0 = vpack.c.bf16 %v6101_v57, %v6100_v55  ;;  %v6064_v16 = vmax.f32 %v7721_v15, 0.0  ;;  %v6170_v52 = vld [vmem:[#allocation8 + $0x320] sm:$0xff]  ;;  %v6171_v54 = vld [vmem:[#allocation8 + $0x328] sm:$0xff]  ;;  %v6156_v55 = vld [vmem:[#allocation8 + $0x2b0] sm:$0xff] }
 0x3ab   : > { %7630 = vmatpush3.bf16.msra.mxu1 %v7629_v1  ;;  %7600 = vmatprep.subr.bf16.mxu0 %v7599_v2  ;;  %v6084_v1 = vld [vmem:[#allocation8 + $0x70] sm:$0xff]  ;;  %v6085_v2 = vld [vmem:[#allocation8 + $0x78] sm:$0xff]  ;;  %v6194_v15 = vld [vmem:[#allocation8 + $0x3e0] sm:$0xff] }
 0x3ac   : > { %7632 = vmatprep.subr.bf16.mxu1 %v7631_v7  ;;  %v6150_v7 = vld [vmem:[#allocation8 + $0x280] sm:$0xff]  ;;  %v7617_v18 = vpack.c.bf16 %v6085_v2, %v6084_v1  ;;  %v6157_v57 = vld [vmem:[#allocation8 + $0x2b8] sm:$0xff]  ;;  %v6172_v1 = vld [vmem:[#allocation8 + $0x330] sm:$0xff] }
 0x3ad   : > { %v6189_v59 = vld [vmem:[#allocation8 + $0x3b8] sm:$0xff] }
 0x3ae   : > { %7602 = vmatpush3.bf16.msra.mxu0 %v7601_v21  ;;  %v7719_v21 = vadd.f32 %v8448_v12, %v1093_v62  ;;  %v6184_v12 = vld [vmem:[#allocation8 + $0x390] sm:$0xff]  ;;  %v7663_v62 = vpack.c.bf16 %v6157_v57, %v6156_v55  ;;  %v7695_v2 = vpack.c.bf16 %v6189_v59, %v6188_v58  ;;  %v6193_v30 = vld [vmem:[#allocation8 + $0x3d8] sm:$0xff]  ;;  %v1100_v55 = vsub.s32 4, %v8466_v56 }
 0x3af   : > { %7634 = vmatpush3.bf16.msra.mxu1 %v7633_v24  ;;  %7604 = vmatprep.subr.bf16.mxu0 %v7603_v25  ;;  %v7649_v24 = vpack.c.bf16 %v6117_v6, %v6116_v3  ;;  %v7651_v25 = vpack.c.bf16 %v6151_v9, %v6150_v7  ;;  %v7687_v43 = vpack.c.bf16 %v6185_v34, %v6184_v12  ;;  %v6173_v3 = vld [vmem:[#allocation8 + $0x338] sm:$0xff]  ;;  %v6159_v6 = vld [vmem:[#allocation8 + $0x2c8] sm:$0xff]  ;;  %v6190_v7 = vld [vmem:[#allocation8 + $0x3c0] sm:$0xff]  ;;  %v1108_v57 = vsub.s32 6, %v8466_v56 }
 0x3b0   : > { %7636 = vmatprep.subr.bf16.mxu1 %v7635_v29  ;;  %v6135_v29 = vld [vmem:[#allocation8 + $0x208] sm:$0xff]  ;;  %v7697_v11 = vpack.c.bf16 %v6173_v3, %v6172_v1  ;;  %v6145_v12 = vld [vmem:[#allocation8 + $0x258] sm:$0xff]  ;;  %v6176_v34 = vld [vmem:[#allocation8 + $0x350] sm:$0xff]  ;;  %v1104_v58 = vsub.s32 5, %v8466_v56  ;;  %v1112_v59 = vsub.s32 7, %v8466_v56 }
 0x3b1   : > { %v7653_v20 = vpack.c.bf16 %v6135_v29, %v6134_v28  ;;  %v6191_v9 = vld [vmem:[#allocation8 + $0x3c8] sm:$0xff]  ;;  %v6161_v28 = vld [vmem:[#allocation8 + $0x2d8] sm:$0xff]  ;;  %v6192_v29 = vld [vmem:[#allocation8 + $0x3d0] sm:$0xff] }
 0x3b2   : > { %7606 = vmatpush3.bf16.msra.mxu0 %v7605_v35  ;;  %v6054_v35 = vmax.f32 %v7715_v14, 0.0 }
 0x3b3   : > { %7638 = vmatpush3.bf16.msra.mxu1 %v7637_v36  ;;  %7608 = vmatprep.subr.bf16.mxu0 %v7607_v37  ;;  %v6056_v36 = vmax.f32 %v7719_v21, 0.0  ;;  %v7717_v37 = vadd.f32 %v8454_v17, %v1085_v60  ;;  %v6186_v17 = vld [vmem:[#allocation8 + $0x3a0] sm:$0xff]  ;;  %v7661_v60 = vpack.c.bf16 %v6139_v51, %v6138_v50  ;;  %v6143_v21 = vld [vmem:[#allocation8 + $0x248] sm:$0xff] }
 0x3b4   : > { %7640 = vmatprep.subr.bf16.mxu1 %v7639_v41  ;;  %v6168_v41 = vld [vmem:[#allocation8 + $0x310] sm:$0xff] }
 0x3b6   : > { %7610 = vmatpush3.bf16.msra.mxu0 %v7609_v47  ;;  %v6062_v47 = vmax.f32 %v7717_v37, 0.0  ;;  %v6162_v37 = vld [vmem:[#allocation8 + $0x2e0] sm:$0xff] }
 0x3b7   : > { %7642 = vmatpush3.bf16.msra.mxu1 %v7641_v48  ;;  %7612 = vmatprep.subr.bf16.mxu0 %v7611_v49  ;;  %v7689_v48 = vpack.c.bf16 %v6169_v44, %v6168_v41  ;;  %v7659_v49 = vpack.c.bf16 %v6155_v45, %v6154_v13  ;;  %v6146_v41 = vld [vmem:[#allocation8 + $0x260] sm:$0xff]  ;;  %v6179_v13 = vld [vmem:[#allocation8 + $0x368] sm:$0xff] }
 0x3b8   : > { %7644 = vmatprep.subr.bf16.mxu1 %v7643_v53  ;;  %v7691_v53 = vpack.c.bf16 %v6187_v46, %v6186_v17  ;;  %v6164_v17 = vld [vmem:[#allocation8 + $0x2f0] sm:$0xff]  ;;  %v6165_v46 = vld [vmem:[#allocation8 + $0x2f8] sm:$0xff] }
 0x3ba   : > { %7614 = vmatpush3.bf16.msra.mxu0 %v7613_v61  ;;  %v7693_v61 = vpack.c.bf16 %v6171_v54, %v6170_v52  ;;  %v6180_v52 = vld [vmem:[#allocation8 + $0x370] sm:$0xff] }
 0x3bb   : > { %7646 = vmatpush3.bf16.msra.mxu1 %v7645_v63  ;;  %7616 = vmatprep.subr.bf16.mxu0 %v7615_v0  ;;  %v6140_v63 = vld [vmem:[#allocation8 + $0x230] sm:$0xff]  ;;  %v6141_v0 = vld [vmem:[#allocation8 + $0x238] sm:$0xff] }
 0x3bc   : > { %7648 = vmatprep.subr.bf16.mxu1 %v7647_v5  ;;  %v6158_v5 = vld [vmem:[#allocation8 + $0x2c0] sm:$0xff]  ;;  %v7665_v10 = vpack.c.bf16 %v6141_v0, %v6140_v63  ;;  %v1113_v63 = vrot.slane %v8469_v4, %v1112_v59 }
 0x3bd   : > { %v7667_v14 = vpack.c.bf16 %v6159_v6, %v6158_v5 }
 0x3be   : > { %7618 = vmatpush3.bf16.msra.mxu0 %v7617_v18  ;;  %v6142_v18 = vld [vmem:[#allocation8 + $0x240] sm:$0xff] }
 0x3bf   : > { %7650 = vmatpush3.bf16.msra.mxu1 %v7649_v24  ;;  %7652 = vmatprep.subr.bf16.mxu0 %v7651_v25  ;;  %v6174_v24 = vld [vmem:[#allocation8 + $0x340] sm:$0xff]  ;;  %v7699_v25 = vpack.c.bf16 %v6191_v9, %v6190_v7  ;;  %v7669_v31 = vpack.c.bf16 %v6143_v21, %v6142_v18 }
 0x3c0   : > { %7684 = vmatprep.subr.bf16.mxu1 %v7683_v27  ;;  %v6160_v27 = vld [vmem:[#allocation8 + $0x2d0] sm:$0xff]  ;;  %v7701_v8 = vpack.c.bf16 %v6175_v26, %v6174_v24 }
 0x3c1   : > { %6270 = vmatmul.mubr.f32.vlgmr.msra.gmra.mrb[8].mxu0 %v6054_v35  ;;  %v7671_v32 = vpack.c.bf16 %v6161_v28, %v6160_v27  ;;  %v7703_v35 = vpack.c.bf16 %v6193_v30, %v6192_v29 }
 0x3c2   : > { %6345 = vmatmul.mubr.f32.vlgmr.msra.gmra.mrb[8].mxu1 %v6056_v36  ;;  %6274 = vmatprep.mubr.f32.mxu0 %v6063_v38  ;;  %v6177_v36 = vld [vmem:[#allocation8 + $0x358] sm:$0xff]  ;;  %v6195_v38 = vld [vmem:[#allocation8 + $0x3e8] sm:$0xff] }
 0x3c3   : > { %6349 = vmatprep.mubr.f32.mxu1 %v6065_v42  ;;  %7654 = vmatpush3.bf16.msra.mxu0 %v7653_v20  ;;  %v6163_v20 = vld [vmem:[#allocation8 + $0x2e8] sm:$0xff]  ;;  %v7707_v22 = vpack.c.bf16 %v6195_v38, %v6194_v15 }
 0x3c4   : > { %7686 = vmatpush3.bf16.msra.mxu1 %v7685_v39  ;;  %7656 = vmatprep.subr.bf16.mxu0 %v7655_v40  ;;  %v7673_v39 = vpack.c.bf16 %v6145_v12, %v6144_v33  ;;  %v7705_v40 = vpack.c.bf16 %v6177_v36, %v6176_v34  ;;  %v7675_v23 = vpack.c.bf16 %v6163_v20, %v6162_v37  ;;  %v6147_v42 = vld [vmem:[#allocation8 + $0x268] sm:$0xff]  ;;  %v7428_v12 = vld [vmem:[#allocation10] ss:$0 sm:$0xff] }
 0x3c5   : > { %6275 = vmatmul.mubr.f32.gmra.mrb[10].mxu0 %v6062_v47  ;;  %7688 = vmatprep.subr.bf16.mxu1 %v7687_v43  ;;  %v6178_v43 = vld [vmem:[#allocation8 + $0x360] sm:$0xff]  ;;  %v7677_v44 = vpack.c.bf16 %v6147_v42, %v6146_v41  ;;  %v6196_v47 = vld [vmem:[#allocation8 + $0x3f0] sm:$0xff] }
 0x3c6   : > { %6350 = vmatmul.mubr.f32.gmra.mrb[10].mxu1 %v6064_v16  ;;  %v7709_v45 = vpack.c.bf16 %v6179_v13, %v6178_v43  ;;  %v6197_v16 = vld [vmem:[#allocation8 + $0x3f8] sm:$0xff] }
 0x3c7   : > { %7658 = vmatpush3.bf16.msra.mxu0 %v7657_v19  ;;  %v7679_v19 = vpack.c.bf16 %v6165_v46, %v6164_v17  ;;  %v7711_v50 = vpack.c.bf16 %v6197_v16, %v6196_v47 }
 0x3c8   : > { %7690 = vmatpush3.bf16.msra.mxu1 %v7689_v48  ;;  %7660 = vmatprep.subr.bf16.mxu0 %v7659_v49  ;;  %v6148_v48 = vld [vmem:[#allocation8 + $0x270] sm:$0xff]  ;;  %v6149_v49 = vld [vmem:[#allocation8 + $0x278] sm:$0xff] }
 0x3c9   : > { %7692 = vmatprep.subr.bf16.mxu1 %v7691_v53  ;;  %v7681_v51 = vpack.c.bf16 %v6149_v49, %v6148_v48  ;;  %v6181_v53 = vld [vmem:[#allocation8 + $0x378] sm:$0xff] }
 0x3ca   : > { %v7713_v54 = vpack.c.bf16 %v6181_v53, %v6180_v52 }
 0x3cb   : > { %7662 = vmatpush3.bf16.msra.mxu0 %v7661_v60  ;;  %v1101_v60 = vrot.slane %v8469_v4, %v1100_v55 }
 0x3cc   : > { %7694 = vmatpush3.bf16.msra.mxu1 %v7693_v61  ;;  %7664 = vmatprep.subr.bf16.mxu0 %v7663_v62  ;;  %v1109_v61 = vrot.slane %v8469_v4, %v1108_v57  ;;  %v1105_v62 = vrot.slane %v8469_v4, %v1104_v58 }
 0x3cd   : > { %7696 = vmatprep.subr.bf16.mxu1 %v7695_v2 }
 0x3cf   : > { %7666 = vmatpush3.bf16.msra.mxu0 %v7665_v10 }
 0x3d0   : > { %7698 = vmatpush3.bf16.msra.mxu1 %v7697_v11  ;;  %7668 = vmatprep.subr.bf16.mxu0 %v7667_v14 }
 0x3d1   : > { %7700 = vmatprep.subr.bf16.mxu1 %v7699_v25 }
 0x3d3   : > { %7670 = vmatpush3.bf16.msra.mxu0 %v7669_v31 }
 0x3d4   : > { %7702 = vmatpush3.bf16.msra.mxu1 %v7701_v8  ;;  %7672 = vmatprep.subr.bf16.mxu0 %v7671_v32 }
 0x3d5   : > { %7704 = vmatprep.subr.bf16.mxu1 %v7703_v35 }
 0x3d7   : > { %7674 = vmatpush3.bf16.msra.mxu0 %v7673_v39 }
 0x3d8   : > { %7706 = vmatpush3.bf16.msra.mxu1 %v7705_v40  ;;  %7676 = vmatprep.subr.bf16.mxu0 %v7675_v23 }
 0x3d9   : > { %7708 = vmatprep.subr.bf16.mxu1 %v7707_v22 }
 0x3db   : > { %7678 = vmatpush3.bf16.msra.mxu0 %v7677_v44 }
 0x3dc   : > { %7710 = vmatpush3.bf16.msra.mxu1 %v7709_v45  ;;  %7680 = vmatprep.subr.bf16.mxu0 %v7679_v19 }
 0x3dd   : > { %7712 = vmatprep.subr.bf16.mxu1 %v7711_v50 }
 0x3df   : > { %7682 = vmatpush3.bf16.msra.mxu0 %v7681_v51 }
 0x3e0   : > { %7714 = vmatpush3.bf16.msra.mxu1 %v7713_v54 }
 0x474   : > { %v5787_v0 = vpop.f32.mrb[4].mxu0  ;;  %v6045_v2 = vpop.f32.mrb[4].mxu1 }
 0x475   : > { %v7723_v1 = vadd.f32 %v5787_v0, %v1101_v60  ;;  %v5789_v3 = vpop.f32.mrb[5].mxu0  ;;  %v7727_v5 = vadd.f32 %v6045_v2, %v1109_v61  ;;  %v6047_v7 = vpop.f32.mrb[5].mxu1 }
 0x476   : > { %v7724_v6 = vadd.f32 %v5789_v3, %v1105_v62  ;;  %v5791_v9 = vpop.f32.mrb[6].mxu0  ;;  %v7728_v10 = vadd.f32 %v6047_v7, %v1113_v63  ;;  %v6049_v11 = vpop.f32.mrb[6].mxu1 }
 0x477   : > { %v5793_v14 = vpop.f32.mrb[7].mxu0  ;;  %v6051_v21 = vpop.f32.mrb[7].mxu1  ;;  %v6058_v24 = vmax.f32 %v7723_v1, 0.0  ;;  %v7725_v26 = vadd.f32 %v5791_v9, %v1101_v60  ;;  %v6060_v28 = vmax.f32 %v7727_v5, 0.0  ;;  %v7729_v4 = vadd.f32 %v6049_v11, %v1109_v61 }
 0x478   : > { %v6059_v56 = vmax.f32 %v7724_v6, 0.0  ;;  %v7726_v18 = vadd.f32 %v5793_v14, %v1105_v62  ;;  %v6061_v25 = vmax.f32 %v7728_v10, 0.0  ;;  %v7730_v27 = vadd.f32 %v6051_v21, %v1113_v63 }
 0x479   : > { %v6066_v31 = vmax.f32 %v7725_v26, 0.0  ;;  %v6068_v8 = vmax.f32 %v7729_v4, 0.0 }
 0x47a   : > { %v6067_v29 = vmax.f32 %v7726_v18, 0.0  ;;  %6419 = vmatprep.mubr.f32.mxu0 %v6059_v56  ;;  %v6069_v30 = vmax.f32 %v7730_v27, 0.0  ;;  %6494 = vmatprep.mubr.f32.mxu1 %v6061_v25 }
 0x47b   : > { %6420 = vmatmul.mubr.f32.vlgmr.msra.gmra.mrb[12].mxu0 %v6058_v24  ;;  %6495 = vmatmul.mubr.f32.vlgmr.msra.gmra.mrb[12].mxu1 %v6060_v28 }
 0x47c   : > { %6424 = vmatprep.mubr.f32.mxu0 %v6067_v29  ;;  %6499 = vmatprep.mubr.f32.mxu1 %v6069_v30 }
 0x47f   : > { %6425 = vmatmul.mubr.f32.gmra.mrb[14].mxu0 %v6066_v31  ;;  %6500 = vmatmul.mubr.f32.gmra.mrb[14].mxu1 %v6068_v8 }
 0x494   : > { %v7467_v32 = vpop.f32.mrb[8].mxu0 }
 0x495   : > { %v7505_v33 = vpop.f32.mrb[8].mxu1  ;;  %v7468_v34 = vpop.f32.mrb[9].mxu0 }
 0x496   : > { %v7469_v35 = vadd.f32 %v7468_v34, %v7467_v32  ;;  %v7506_v36 = vpop.f32.mrb[9].mxu1 }
 0x497   : > { %v7507_v37 = vadd.f32 %v7506_v36, %v7505_v33 }
 0x498   : > { %v6272_v20 = vadd.f32 %v7469_v35, %v7428_v12  ;;  %v7470_v15 = vpop.f32.mrb[10].mxu0 }
 0x499   : > { %v7508_v38 = vpop.f32.mrb[10].mxu1  ;;  %v7471_v39 = vpop.f32.mrb[11].mxu0 }
 0x49a   : > { %v6347_v40 = vadd.f32 %v7507_v37, %v6272_v20  ;;  %v7472_v23 = vadd.f32 %v7471_v39, %v7470_v15  ;;  %v7509_v22 = vpop.f32.mrb[11].mxu1 }
 0x49b   : > { %v7510_v41 = vadd.f32 %v7509_v22, %v7508_v38 }
 0x49c   : > { %v6277_v42 = vadd.f32 %v7472_v23, %v7428_v12 }
 0x49e   : > { %v6352_v43 = vadd.f32 %v7510_v41, %v6277_v42 }
 0x54e   : > { %v7543_v44 = vpop.f32.mrb[12].mxu0  ;;  %v7581_v13 = vpop.f32.mrb[12].mxu1 }
 0x54f   : > { %v7544_v45 = vpop.f32.mrb[13].mxu0  ;;  %v7582_v46 = vpop.f32.mrb[13].mxu1 }
 0x550   : > { %v7545_v17 = vadd.f32 %v7544_v45, %v7543_v44  ;;  %v7583_v47 = vadd.f32 %v7582_v46, %v7581_v13 }
 0x552   : > { %v6422_v19 = vadd.f32 %v7545_v17, %v6347_v40  ;;  %v7546_v16 = vpop.f32.mrb[14].mxu0  ;;  %v7584_v48 = vpop.f32.mrb[14].mxu1 }
 0x553   : > { %v7547_v49 = vpop.f32.mrb[15].mxu0  ;;  %v7585_v52 = vpop.f32.mrb[15].mxu1 }
 0x554   : > { %v6497_v50 = vadd.f32 %v7583_v47, %v6422_v19  ;;  %v7548_v51 = vadd.f32 %v7547_v49, %v7546_v16  ;;  %v7586_v53 = vadd.f32 %v7585_v52, %v7584_v48 }
 0x556   : > { %6505 = vst [vmem:[%s297_s26] sm:$0xff] %v6497_v50  ;;  %v6427_v54 = vadd.f32 %v7548_v51, %v6352_v43 }
 0x558   : > { %v6502_v55 = vadd.f32 %v7586_v53, %v6427_v54 }
 0x55a   : > { %6506 = vst [vmem:[%s297_s26 + $0x8] sm:$0xff] %v6502_v55 }
 0x55b   : > { %8094 = shalt.err (!%p8091_p12)
}
 0x55c   : > { %s8095_s6 = scalar_lea.hbm %s8510_s17, 256  ;;  %s8099_s8 = scalar_lea.hbm %s8558_s5, 768 }
 0x55d   : > { %p8096_p0 = scmp.ne.s32.totalorder %s8510_s17, %s8095_s6  ;;  %p8100_p11 = scmp.lt.u32.totalorder %s8510_s17, %s8558_s5 }
 0x55e   : > { %p8101_p1 = scmp.lt.u32.totalorder %s8099_s8, %s8095_s6  ;;  %p8103_p4 = scmp.lt.u32.totalorder %s8095_s6, %s8510_s17 }
 0x55f   : > { %p8097_p5 = pnand %p8096_p0, %p8360_p6 }
 0x560   : > { %p8102_p2 = por %p8101_p1, %p8100_p11 }
 0x561   : > { %p8098_p10 = pneg %p8097_p5 }
 0x562   : > { %p8104_p8 = por %p8103_p4, %p8102_p2 }
 0x564   : > { %p8105_p13 = pnand %p8104_p8, %p8098_p10 }
 0x566   : > { %8108 = shalt.err (!%p8105_p13)
}
 0x567   : > { %s8169_s10 = smov 128   ;;  %s8170_s27 = smov 8  }
 0x568   : > { %7832 = dma.vmem_to_hbm [thread:$0]  (%p8360_p6), %s8505_s30, 256, %s8510_s17, %s6508_s23, %s8169_s10, %s8169_s10, %s8170_s27  }
 0x569 PF: > { %p7864_p3 = scmp.ge.s32.totalorder %s8155_s21, 2  ;;  %s6536_s13 = sand.u32 1, %s8143_s18  }
 0x56a   : > { %p8576_p7 = scmp.ne.s32.totalorder %s8563_s25, 0  ;;  %s6537_s9 = scalar_lea.sflag [#allocation4], %s6536_s13 }
 0x56c   : > { %p7852_p9 = pnand %p7864_p3, %p8576_p7 }
 0x56e   : > { %8138 = dma.done.wait (!%p7852_p9), %s6537_s9, 256  }
 0x56f   : > { %8140 = vsyncadd (!%p7852_p9), %s6537_s9, 4294967040  ;;  %p20_p12 = scmp.ge.s32.totalorder %s8347_s12, 5   ;;  %s8577_s18 = smov %s8147_s19 }
 0x570   : > { %s8578_s19 = smov %s8151_s20  ;;  %s8579_s20 = smov %s8356_s15 }
 0x571   : > { %s8580_s21 = smov %s8347_s12  ;;  %22 = sbr.rel (!%p20_p12) target bundleno = 7 (0x7), region = 101 }
 0x578   :  { %6542 = vsyncpa [#allocation3], 1 }
 0x579   :  { %6544 = vsyncpa [#allocation3 + $0x1], 1 }
 0x57a   :  { %6545 = vsyncpa [#allocation6], 1 }
 0x57b   :  { %6546 = vsyncpa [#allocation9], 1 }
 0x57c   :  { %6547 = vsyncpa [#allocation4], 1 }
 0x57d   :  { %6549 = vsyncpa [#allocation4 + $0x1], 1 }

</bundles_post_ra>
